<compile_context>
chip_gen: v7x
topology: tpu7x:2x2x1
jax: 0.10.0
libtpu: 0.0.40
codegen_flags: <defaults>
</compile_context>

<pallas_src>
import functools

import jax
import jax.numpy as jnp
from jax import lax
from jax.experimental import pallas as pl
from jax.experimental.pallas import tpu as pltpu

_VMEM_LIMIT = 32 * 1024 * 1024


def _round_up(x, m):
    return (x + m - 1) // m * m


# --------------------------------------------------------------------------
# Tiled MXU matmul kernel (used for every conv via im2col, and the fc head).
# grid = (M//tm, N//tn, K//tk); accumulator in VMEM scratch; optional bias +
# ReLU epilogue; optional fused per-tile (sum, sumsq) stats outputs for BN.
# --------------------------------------------------------------------------
def _matmul_kernel(a_ref, b_ref, *rest, apply_relu, has_bias, emit_stats):
    idx = 0
    bias_ref = None
    if has_bias:
        bias_ref = rest[idx]
        idx += 1
    o_ref = rest[idx]
    idx += 1
    if emit_stats:
        sum_ref = rest[idx]
        sq_ref = rest[idx + 1]
        idx += 2
    acc_ref = rest[idx]

    k = pl.program_id(2)

    @pl.when(k == 0)
    def _():
        acc_ref[...] = jnp.zeros_like(acc_ref)

    acc_ref[...] += jnp.dot(a_ref[...], b_ref[...],
                            preferred_element_type=jnp.float32)

    @pl.when(k == pl.num_programs(2) - 1)
    def _():
        out = acc_ref[...]
        if has_bias:
            out = out + bias_ref[...]
        if apply_relu:
            out = jnp.maximum(out, 0.0)
        o_ref[...] = out.astype(o_ref.dtype)
        if emit_stats:
            s = jnp.sum(out, axis=0, keepdims=True)
            q = jnp.sum(out * out, axis=0, keepdims=True)
            sum_ref[...] = jnp.broadcast_to(s, sum_ref.shape)
            sq_ref[...] = jnp.broadcast_to(q, sq_ref.shape)


def pallas_matmul(a, b, bias=None, *, apply_relu=False, emit_stats=False,
                  out_dtype=jnp.float32):
    """a: (M, K), b: (K, N) -> (M, N) in out_dtype.

    Operands are cast to bf16 (f32 accumulation on the MXU).  If emit_stats,
    also returns per-channel sum and sum-of-squares of the f32 result
    (zero-padded rows contribute 0 because stats mode has no bias / relu).
    """
    M, K = a.shape
    K2, N = b.shape
    assert K == K2

    a = a.astype(jnp.bfloat16)
    b = b.astype(jnp.bfloat16)

    # ---- tile sizes (lane-aligned or full-dim escape) ----
    Mp = _round_up(M, 8)
    tm = min(256, Mp)
    Mp = _round_up(Mp, tm)

    if N < 128:
        Np, tn = N, N                      # last dim == full array dim is allowed
    else:
        Np = _round_up(N, 128)
        tn = 256 if Np % 256 == 0 else 128

    Kp = K if K < 128 else _round_up(K, 128)
    if Kp <= 512:
        tk = Kp
    else:
        tk = 128
        for cand in (512, 384, 256, 128):
            if Kp % cand == 0:
                tk = cand
                break

    # ---- conditional zero-padding (skipped when already aligned) ----
    if (Mp, Kp) != (M, K):
        a = jnp.pad(a, ((0, Mp - M), (0, Kp - K)))
    if (Kp, Np) != (K, N):
        b = jnp.pad(b, ((0, Kp - K), (0, Np - N)))

    has_bias = bias is not None
    inputs = [a, b]
    in_specs = [
        pl.BlockSpec((tm, tk), lambda i, j, k: (i, k)),
        pl.BlockSpec((tk, tn), lambda i, j, k: (k, j)),
    ]
    if has_bias:
        bias_p = bias.astype(jnp.float32).reshape(1, N)
        if Np != N:
            bias_p = jnp.pad(bias_p, ((0, 0), (0, Np - N)))
        inputs.append(bias_p)
        in_specs.append(pl.BlockSpec((1, tn), lambda i, j, k: (0, j)))

    n_m = Mp // tm
    out_shapes = [jax.ShapeDtypeStruct((Mp, Np), out_dtype)]
    out_specs = [pl.BlockSpec((tm, tn), lambda i, j, k: (i, j))]
    if emit_stats:
        out_shapes += [jax.ShapeDtypeStruct((n_m * 8, Np), jnp.float32)] * 2
        out_specs += [pl.BlockSpec((8, tn), lambda i, j, k: (i, j))] * 2

    kernel = functools.partial(_matmul_kernel, apply_relu=apply_relu,
                               has_bias=has_bias, emit_stats=emit_stats)
    res = pl.pallas_call(
        kernel,
        out_shape=tuple(out_shapes),
        grid_spec=pltpu.PrefetchScalarGridSpec(
            num_scalar_prefetch=0,
            grid=(Mp // tm, Np // tn, Kp // tk),
            in_specs=in_specs,
            out_specs=out_specs,
            scratch_shapes=[pltpu.VMEM((tm, tn), jnp.float32)],
        ),
        compiler_params=pltpu.CompilerParams(
            dimension_semantics=("parallel", "parallel", "arbitrary"),
            vmem_limit_bytes=_VMEM_LIMIT),
    )(*inputs)

    out = res[0]
    if (Mp, Np) != (M, N):
        out = out[:M, :N]
    if not emit_stats:
        return out
    sums = res[1].reshape(n_m, 8, Np)[:, 0, :N].sum(axis=0)
    sqs = res[2].reshape(n_m, 8, Np)[:, 0, :N].sum(axis=0)
    return out, sums, sqs


# --------------------------------------------------------------------------
# Fused elementwise kernel: y = x*scale + shift (+ residual) (+ ReLU).
# Tiled over rows of the flattened (N*H*W, C) NHWC tensor.  BN math in f32.
# --------------------------------------------------------------------------
def _bn_act_kernel(x_ref, *rest, apply_relu, add_residual):
    idx = 0
    res_ref = None
    if add_residual:
        res_ref = rest[idx]
        idx += 1
    scale_ref = rest[idx]
    shift_ref = rest[idx + 1]
    o_ref = rest[idx + 2]

    y = x_ref[...].astype(jnp.float32) * scale_ref[...] + shift_ref[...]
    if add_residual:
        y = y + res_ref[...].astype(jnp.float32)
    if apply_relu:
        y = jnp.maximum(y, 0.0)
    o_ref[...] = y.astype(o_ref.dtype)


def pallas_bn_act(x2d, scale, shift, residual=None, *, apply_relu=True,
                  out_dtype=jnp.float32):
    M0, C0 = x2d.shape
    scale = scale.astype(jnp.float32)
    shift = shift.astype(jnp.float32)

    # Lane-dense folding: when C < 128, view (M, C) as (M/k, k*C) with k*C == 128
    # so output stores are full-lane (no masked partial vst).  Per-channel scale /
    # shift are tiled k times to match the folded last dim.
    fold = 1
    if C0 < 128 and 128 % C0 == 0 and M0 % (128 // C0) == 0:
        fold = 128 // C0
    if fold > 1:
        x2d = x2d.reshape(M0 // fold, C0 * fold)
        if residual is not None:
            residual = residual.reshape(M0 // fold, C0 * fold)
        scale = jnp.tile(scale, fold)
        shift = jnp.tile(shift, fold)

    M, C = x2d.shape
    Mp = _round_up(M, 8)
    tm = min(512, Mp)
    Mp = _round_up(Mp, tm)
    Cp = C if (C < 128 or C % 128 == 0) else _round_up(C, 128)

    x_p = x2d
    if (Mp, Cp) != (M, C):
        x_p = jnp.pad(x2d, ((0, Mp - M), (0, Cp - C)))

    scale_p = scale.reshape(1, C)
    shift_p = shift.reshape(1, C)
    if Cp != C:
        scale_p = jnp.pad(scale_p, ((0, 0), (0, Cp - C)))
        shift_p = jnp.pad(shift_p, ((0, 0), (0, Cp - C)))

    add_residual = residual is not None
    inputs = [x_p]
    in_specs = [pl.BlockSpec((tm, Cp), lambda i: (i, 0))]
    if add_residual:
        res_p = residual
        if (Mp, Cp) != (M, C):
            res_p = jnp.pad(residual, ((0, Mp - M), (0, Cp - C)))
        inputs.append(res_p)
        in_specs.append(pl.BlockSpec((tm, Cp), lambda i: (i, 0)))
    inputs += [scale_p, shift_p]
    in_specs += [pl.BlockSpec((1, Cp), lambda i: (0, 0)),
                 pl.BlockSpec((1, Cp), lambda i: (0, 0))]

    kernel = functools.partial(_bn_act_kernel, apply_relu=apply_relu,
                               add_residual=add_residual)
    out = pl.pallas_call(
        kernel,
        out_shape=jax.ShapeDtypeStruct((Mp, Cp), out_dtype),
        grid_spec=pltpu.PrefetchScalarGridSpec(
            num_scalar_prefetch=0,
            grid=(Mp // tm,),
            in_specs=in_specs,
            out_specs=pl.BlockSpec((tm, Cp), lambda i: (i, 0)),
        ),
        compiler_params=pltpu.CompilerParams(
            dimension_semantics=("parallel",),
            vmem_limit_bytes=_VMEM_LIMIT),
    )(*inputs)
    if (Mp, Cp) != (M, C):
        out = out[:M, :C]
    if fold > 1:
        out = out.reshape(M0, C0)
    return out


# --------------------------------------------------------------------------
# ResNet18 building blocks (glue in plain JAX, hot paths in Pallas).
# --------------------------------------------------------------------------
def conv2d_pallas(x_nhwc, w_mat, oc, kh, kw, stride, pad):
    """x: (N,H,W,C); w_mat: pre-laid-out (KH*KW*IC, OC) bf16 matrix.

    Returns flat bf16 conv output (M, OC) plus fused per-channel (sum, sumsq)."""
    N, H, W, C = x_nhwc.shape
    OH = (H + 2 * pad - kh) // stride + 1
    OW = (W + 2 * pad - kw) // stride + 1
    x_bf = x_nhwc.astype(jnp.bfloat16)            # halve im2col HBM bytes
    if pad > 0:
        x_bf = jnp.pad(x_bf, ((0, 0), (pad, pad), (pad, pad), (0, 0)))
    # TODO(synk): im2col still materializes KH*KW shifted activation copies in HBM;
    # a per-tap conv kernel needs element-offset windows not expressible with
    # Blocked BlockSpecs, so it is left as bf16 im2col + one tiled matmul.
    cols = []
    for dh in range(kh):
        for dw in range(kw):
            cols.append(x_bf[:, dh:dh + stride * OH:stride,
                             dw:dw + stride * OW:stride, :])
    patches = jnp.concatenate(cols, axis=-1) if len(cols) > 1 else cols[0]
    a = patches.reshape(N * OH * OW, kh * kw * C)
    y, ssum, ssq = pallas_matmul(a, w_mat, None, apply_relu=False,
                                 emit_stats=True, out_dtype=jnp.bfloat16)
    return y, ssum, ssq, (N, OH, OW, oc)


def bn_from_stats(y2d, ssum, ssq, count, gamma, beta, *, relu,
                  residual=None, eps=1e-5, out_dtype=jnp.bfloat16):
    # Training-mode BatchNorm (batch statistics, biased variance), using the
    # per-channel (sum, sumsq) emitted by the matmul epilogue — no extra HBM
    # pass over the conv output for the stats.
    count = float(count)
    mean = ssum / count
    var = jnp.maximum(ssq / count - mean * mean, 0.0)
    scale = gamma * lax.rsqrt(var + eps)
    shift = beta - mean * scale
    return pallas_bn_act(y2d, scale, shift, residual, apply_relu=relu,
                         out_dtype=out_dtype)


def maxpool3x3_s2(x_nhwc):
    # TODO(synk): 3x3/2 max-pool kept as plain-JAX shifted-slice max (minor op).
    N, H, W, C = x_nhwc.shape
    OH = (H + 2 - 3) // 2 + 1
    OW = (W + 2 - 3) // 2 + 1
    xp = jnp.pad(x_nhwc, ((0, 0), (1, 1), (1, 1), (0, 0)),
                 constant_values=-jnp.inf)
    out = None
    for dh in range(3):
        for dw in range(3):
            s = xp[:, dh:dh + 2 * OH:2, dw:dw + 2 * OW:2, :]
            out = s if out is None else jnp.maximum(out, s)
    return out


def basic_block(x2d, shape, blk_p, blk_c):
    N, H, W, C = shape
    stride = blk_c['stride']
    oc = blk_c['out_ch']
    x = x2d.reshape(N, H, W, C)

    y, s1, q1, shp1 = conv2d_pallas(x, blk_p['conv1_w'], oc, 3, 3, stride, 1)
    m1 = shp1[0] * shp1[1] * shp1[2]
    y = bn_from_stats(y, s1, q1, m1, blk_p['bn1_g'], blk_p['bn1_b'], relu=True)
    y = y.reshape(shp1)

    y2, s2, q2, shp2 = conv2d_pallas(y, blk_p['conv2_w'], oc, 3, 3, 1, 1)
    m2 = shp2[0] * shp2[1] * shp2[2]

    if blk_c['has_down']:
        idn, sd, qd, _ = conv2d_pallas(x, blk_p['down_w'], oc, 1, 1, stride, 0)
        idn = bn_from_stats(idn, sd, qd, m1, blk_p['down_g'], blk_p['down_b'],
                            relu=False)
    else:
        idn = x2d

    out = bn_from_stats(y2, s2, q2, m2, blk_p['bn2_g'], blk_p['bn2_b'],
                        relu=True, residual=idn)
    return out, shp2


def _prep_conv(w_oihw):
    # PyTorch (OC,IC,KH,KW) -> (KH*KW*IC, OC) matmul operand, bf16, done once.
    oc, ic, kh, kw = w_oihw.shape
    return jnp.transpose(w_oihw, (2, 3, 1, 0)).reshape(kh * kw * ic,
                                                       oc).astype(jnp.bfloat16)


def init_params(key):
    keys = iter(jax.random.split(key, 64))

    def conv_w(oc, ic, kh, kw):
        fan_in = ic * kh * kw
        w = jax.random.normal(next(keys), (oc, ic, kh, kw),
                              jnp.float32) / jnp.sqrt(float(fan_in))
        return _prep_conv(w)

    params = {
        'conv1_w': conv_w(64, 3, 7, 7),
        'bn1_g': jnp.ones((64,), jnp.float32),
        'bn1_b': jnp.zeros((64,), jnp.float32),
    }
    cfg = [(64, 64, 1), (64, 64, 1),
           (64, 128, 2), (128, 128, 1),
           (128, 256, 2), (256, 256, 1),
           (256, 512, 2), (512, 512, 1)]
    blocks, block_cfg = [], []
    for ic, oc, stride in cfg:
        blk = {
            'conv1_w': conv_w(oc, ic, 3, 3),
            'bn1_g': jnp.ones((oc,), jnp.float32),
            'bn1_b': jnp.zeros((oc,), jnp.float32),
            'conv2_w': conv_w(oc, oc, 3, 3),
            'bn2_g': jnp.ones((oc,), jnp.float32),
            'bn2_b': jnp.zeros((oc,), jnp.float32),
        }
        has_down = (stride != 1 or ic != oc)
        if has_down:
            blk['down_w'] = conv_w(oc, ic, 1, 1)
            blk['down_g'] = jnp.ones((oc,), jnp.float32)
            blk['down_b'] = jnp.zeros((oc,), jnp.float32)
        blocks.append(blk)
        block_cfg.append({'stride': stride, 'out_ch': oc, 'has_down': has_down})
    params['blocks'] = blocks
    # fc Linear(512, 256): store weight already transposed to (512, 256) bf16.
    params['fc_w'] = (jax.random.normal(next(keys), (256, 512), jnp.float32)
                      / jnp.sqrt(512.0)).T.astype(jnp.bfloat16)
    params['fc_b'] = jnp.zeros((256,), jnp.float32)
    config = {'blocks': block_cfg}
    return params, config


def feature_extractor_forward(params, x_nchw, *, config):
    """Equivalent of FeatureExtractor.forward. x: (N, 3, H, W) -> (N, 256)."""
    x = jnp.transpose(x_nchw, (0, 2, 3, 1)).astype(jnp.float32)     # NHWC

    # conv1 7x7/2 + BN(batch stats) + ReLU
    y2d, s, q, (N, OH, OW, C) = conv2d_pallas(x, params['conv1_w'], 64, 7, 7, 2, 3)
    y2d = bn_from_stats(y2d, s, q, N * OH * OW, params['bn1_g'],
                        params['bn1_b'], relu=True)
    x = y2d.reshape(N, OH, OW, C)

    # maxpool 3x3/2
    x = maxpool3x3_s2(x)
    N, H, W, C = x.shape
    x2d = x.reshape(N * H * W, C)
    shape = (N, H, W, C)

    # layer1..layer4 (8 BasicBlocks)
    for blk_p, blk_c in zip(params['blocks'], config['blocks']):
        x2d, shape = basic_block(x2d, shape, blk_p, blk_c)

    # adaptive avg pool to 1x1 (f32 accumulation)
    N, H, W, C = shape
    pooled = jnp.mean(x2d.astype(jnp.float32).reshape(N, H * W, C), axis=1)  # (N, 512)

    # fc: Linear(512, 256) + ReLU fused in the Pallas matmul epilogue
    feats = pallas_matmul(pooled, params['fc_w'], params['fc_b'],
                          apply_relu=True, out_dtype=jnp.float32)    # (N, 256)
    return feats


if __name__ == "__main__":
    key = jax.random.PRNGKey(0)
    pkey, xkey = jax.random.split(key)
    params, config = init_params(pkey)

    x = jax.random.normal(xkey, (2, 3, 32, 32), jnp.float32)         # NCHW input
    fwd = jax.jit(functools.partial(feature_extractor_forward, config=config))
    feats = jax.block_until_ready(fwd(params, x))

    assert feats.shape == (2, 256), feats.shape
    assert feats.dtype == jnp.float32
    assert bool(jnp.all(feats >= 0.0))   # final ReLU
    assert bool(jnp.all(jnp.isfinite(feats)))
    print("KERNEL_OK")
</pallas_src>

<mosaic_0001>
module attributes {stable_mosaic.version = 11 : i64} {
  func.func @_bn_act_kernel(%arg0: i32, %arg1: memref<256x128xbf16, #tpu.memory_space<vmem>>, %arg2: memref<1x128xf32, #tpu.memory_space<vmem>>, %arg3: memref<1x128xf32, #tpu.memory_space<vmem>>, %arg4: memref<256x128xbf16, #tpu.memory_space<vmem>>) attributes {dimension_semantics = [#tpu.dimension_semantics<parallel>], iteration_bounds = array<i64: 1>, scalar_prefetch = 0 : i64, scratch_operands = 0 : i64, tpu.core_type = #tpu.core_type<tc>, window_params = [{transform_indices = @transform_0, window_bounds = array<i64: 256, 128>}, {pipeline_mode = #tpu.pipeline_mode<synchronous>, transform_indices = @transform_1, window_bounds = array<i64: 1, 128>}, {pipeline_mode = #tpu.pipeline_mode<synchronous>, transform_indices = @transform_2, window_bounds = array<i64: 1, 128>}, {transform_indices = @transform_3, window_bounds = array<i64: 256, 128>}]} {
    %c0 = arith.constant 0 : index
    %c0_0 = arith.constant 0 : index
    %0 = vector.load %arg1[%c0, %c0_0] : memref<256x128xbf16, #tpu.memory_space<vmem>>, vector<256x128xbf16>
    %1 = arith.extf %0 : vector<256x128xbf16> to vector<256x128xf32>
    %c0_1 = arith.constant 0 : index
    %c0_2 = arith.constant 0 : index
    %2 = vector.load %arg2[%c0_1, %c0_2] : memref<1x128xf32, #tpu.memory_space<vmem>>, vector<1x128xf32>
    %3 = vector.broadcast %2 : vector<1x128xf32> to vector<256x128xf32>
    %4 = arith.mulf %1, %3 : vector<256x128xf32>
    %c0_3 = arith.constant 0 : index
    %c0_4 = arith.constant 0 : index
    %5 = vector.load %arg3[%c0_3, %c0_4] : memref<1x128xf32, #tpu.memory_space<vmem>>, vector<1x128xf32>
    %6 = vector.broadcast %5 : vector<1x128xf32> to vector<256x128xf32>
    %7 = arith.addf %4, %6 : vector<256x128xf32>
    %cst = arith.constant 0.000000e+00 : f32
    %8 = vector.broadcast %cst : f32 to vector<256x128xf32>
    %9 = arith.maximumf %7, %8 : vector<256x128xf32>
    %10 = arith.truncf %9 : vector<256x128xf32> to vector<256x128xbf16>
    %c0_5 = arith.constant 0 : index
    %c0_6 = arith.constant 0 : index
    %11 = vector.load %arg4[%c0_5, %c0_6] : memref<256x128xbf16, #tpu.memory_space<vmem>>, vector<256x128xbf16>
    tpu.vector_store %arg4[%c0_5, %c0_6], %10 {strides = array<i32>} : memref<256x128xbf16, #tpu.memory_space<vmem>>, vector<256x128xbf16>,
    return
  }
  func.func @transform_0(%arg0: i32) -> (i32, i32) {
    %c0_i32 = arith.constant 0 : i32
    %c0_i32_0 = arith.constant 0 : i32
    return %arg0, %c0_i32 : i32, i32
  }
  func.func @transform_1(%arg0: i32) -> (i32, i32) {
    %c0_i32 = arith.constant 0 : i32
    %c0_i32_0 = arith.constant 0 : i32
    %c0_i32_1 = arith.constant 0 : i32
    return %c0_i32, %c0_i32_0 : i32, i32
  }
  func.func @transform_2(%arg0: i32) -> (i32, i32) {
    %c0_i32 = arith.constant 0 : i32
    %c0_i32_0 = arith.constant 0 : i32
    %c0_i32_1 = arith.constant 0 : i32
    return %c0_i32, %c0_i32_0 : i32, i32
  }
  func.func @transform_3(%arg0: i32) -> (i32, i32) {
    %c0_i32 = arith.constant 0 : i32
    %c0_i32_0 = arith.constant 0 : i32
    return %arg0, %c0_i32 : i32, i32
  }
}

module attributes {stable_mosaic.version = 11 : i64} {
  func.func @_matmul_kernel(%arg0: i32, %arg1: i32, %arg2: i32, %arg3: memref<256x256xbf16, #tpu.memory_space<vmem>>, %arg4: memref<256x64xbf16, #tpu.memory_space<vmem>>, %arg5: memref<256x64xbf16, #tpu.memory_space<vmem>>, %arg6: memref<8x64xf32, #tpu.memory_space<vmem>>, %arg7: memref<8x64xf32, #tpu.memory_space<vmem>>, %arg8: memref<256x64xf32, #tpu.memory_space<vmem>>) attributes {dimension_semantics = [#tpu.dimension_semantics<parallel>, #tpu.dimension_semantics<parallel>, #tpu.dimension_semantics<arbitrary>], iteration_bounds = array<i64: 2, 1, 1>, scalar_prefetch = 0 : i64, scratch_operands = 1 : i64, tpu.core_type = #tpu.core_type<tc>, window_params = [{transform_indices = @transform_0, window_bounds = array<i64: 256, 256>}, {transform_indices = @transform_1, window_bounds = array<i64: 256, 64>}, {transform_indices = @transform_2, window_bounds = array<i64: 256, 64>}, {transform_indices = @transform_3, window_bounds = array<i64: 8, 64>}, {transform_indices = @transform_4, window_bounds = array<i64: 8, 64>}]} {
    %c0_i32 = arith.constant 0 : i32
    %0 = arith.cmpi eq, %arg2, %c0_i32 : i32
    %1 = arith.extui %0 : i1 to i32
    %c0_i32_0 = arith.constant 0 : i32
    %2 = arith.cmpi ne, %1, %c0_i32_0 : i32
    scf.if %2 {
      %cst_10 = arith.constant 0.000000e+00 : f32
      %12 = vector.broadcast %cst_10 : f32 to vector<256x64xf32>
      %c0_11 = arith.constant 0 : index
      %c0_12 = arith.constant 0 : index
      %13 = vector.load %arg8[%c0_11, %c0_12] : memref<256x64xf32, #tpu.memory_space<vmem>>, vector<256x64xf32>
      tpu.vector_store %arg8[%c0_11, %c0_12], %12 {strides = array<i32>} : memref<256x64xf32, #tpu.memory_space<vmem>>, vector<256x64xf32>,
    } else {
    }
    %c0 = arith.constant 0 : index
    %c0_1 = arith.constant 0 : index
    %3 = vector.load %arg8[%c0, %c0_1] : memref<256x64xf32, #tpu.memory_space<vmem>>, vector<256x64xf32>
    %c0_2 = arith.constant 0 : index
    %c0_3 = arith.constant 0 : index
    %4 = vector.load %arg3[%c0_2, %c0_3] : memref<256x256xbf16, #tpu.memory_space<vmem>>, vector<256x256xbf16>
    %c0_4 = arith.constant 0 : index
    %c0_5 = arith.constant 0 : index
    %5 = vector.load %arg4[%c0_4, %c0_5] : memref<256x64xbf16, #tpu.memory_space<vmem>>, vector<256x64xbf16>
    %cst = arith.constant dense<0.000000e+00> : vector<256x64xf32>
    %6 = tpu.matmul %4, %5, %cst {dimension_numbers = #tpu.dot_dimension_numbers<[1], [0], [0], [1], [0, 0, 1, 1], [], []>} : vector<256x256xbf16>, vector<256x64xbf16>, vector<256x64xf32> -> vector<256x64xf32>
    %7 = arith.addf %3, %6 : vector<256x64xf32>
    %c0_6 = arith.constant 0 : index
    %c0_7 = arith.constant 0 : index
    %8 = vector.load %arg8[%c0_6, %c0_7] : memref<256x64xf32, #tpu.memory_space<vmem>>, vector<256x64xf32>
    tpu.vector_store %arg8[%c0_6, %c0_7], %7 {strides = array<i32>} : memref<256x64xf32, #tpu.memory_space<vmem>>, vector<256x64xf32>,
    %c0_i32_8 = arith.constant 0 : i32
    %9 = arith.cmpi eq, %arg2, %c0_i32_8 : i32
    %10 = arith.extui %9 : i1 to i32
    %c0_i32_9 = arith.constant 0 : i32
    %11 = arith.cmpi ne, %10, %c0_i32_9 : i32
    scf.if %11 {
      %c0_10 = arith.constant 0 : index
      %c0_11 = arith.constant 0 : index
      %12 = vector.load %arg8[%c0_10, %c0_11] : memref<256x64xf32, #tpu.memory_space<vmem>>, vector<256x64xf32>
      %13 = arith.truncf %12 : vector<256x64xf32> to vector<256x64xbf16>
      %c0_12 = arith.constant 0 : index
      %c0_13 = arith.constant 0 : index
      %14 = vector.load %arg5[%c0_12, %c0_13] : memref<256x64xbf16, #tpu.memory_space<vmem>>, vector<256x64xbf16>
      tpu.vector_store %arg5[%c0_12, %c0_13], %13 {strides = array<i32>} : memref<256x64xbf16, #tpu.memory_space<vmem>>, vector<256x64xbf16>,
      %cst_14 = arith.constant dense<0.000000e+00> : vector<64xf32>
      %15 = vector.multi_reduction <add>, %12, %cst_14 [0] : vector<256x64xf32> to vector<64xf32>
      %16 = vector.shape_cast %15 : vector<64xf32> to vector<1x64xf32>
      %17 = arith.mulf %12, %12 : vector<256x64xf32>
      %cst_15 = arith.constant dense<0.000000e+00> : vector<64xf32>
      %18 = vector.multi_reduction <add>, %17, %cst_15 [0] : vector<256x64xf32> to vector<64xf32>
      %19 = vector.shape_cast %18 : vector<64xf32> to vector<1x64xf32>
      %20 = vector.shape_cast %16 : vector<1x64xf32> to vector<1x64xf32>
      %21 = vector.broadcast %20 : vector<1x64xf32> to vector<8x64xf32>
      %c0_16 = arith.constant 0 : index
      %c0_17 = arith.constant 0 : index
      %22 = vector.load %arg6[%c0_16, %c0_17] : memref<8x64xf32, #tpu.memory_space<vmem>>, vector<8x64xf32>
      tpu.vector_store %arg6[%c0_16, %c0_17], %21 {strides = array<i32>} : memref<8x64xf32, #tpu.memory_space<vmem>>, vector<8x64xf32>,
      %23 = vector.shape_cast %19 : vector<1x64xf32> to vector<1x64xf32>
      %24 = vector.broadcast %23 : vector<1x64xf32> to vector<8x64xf32>
      %c0_18 = arith.constant 0 : index
      %c0_19 = arith.constant 0 : index
      %25 = vector.load %arg7[%c0_18, %c0_19] : memref<8x64xf32, #tpu.memory_space<vmem>>, vector<8x64xf32>
      tpu.vector_store %arg7[%c0_18, %c0_19], %24 {strides = array<i32>} : memref<8x64xf32, #tpu.memory_space<vmem>>, vector<8x64xf32>,
    } else {
    }
    return
  }
  func.func @transform_0(%arg0: i32, %arg1: i32, %arg2: i32) -> (i32, i32) {
    %c0_i32 = arith.constant 0 : i32
    return %arg0, %arg2 : i32, i32
  }
  func.func @transform_1(%arg0: i32, %arg1: i32, %arg2: i32) -> (i32, i32) {
    %c0_i32 = arith.constant 0 : i32
    return %arg2, %arg1 : i32, i32
  }
  func.func @transform_2(%arg0: i32, %arg1: i32, %arg2: i32) -> (i32, i32) {
    %c0_i32 = arith.constant 0 : i32
    return %arg0, %arg1 : i32, i32
  }
  func.func @transform_3(%arg0: i32, %arg1: i32, %arg2: i32) -> (i32, i32) {
    %c0_i32 = arith.constant 0 : i32
    return %arg0, %arg1 : i32, i32
  }
  func.func @transform_4(%arg0: i32, %arg1: i32, %arg2: i32) -> (i32, i32) {
    %c0_i32 = arith.constant 0 : i32
    return %arg0, %arg1 : i32, i32
  }
}

module attributes {stable_mosaic.version = 11 : i64} {
  func.func @_matmul_kernel(%arg0: i32, %arg1: i32, %arg2: i32, %arg3: memref<128x128xbf16, #tpu.memory_space<vmem>>, %arg4: memref<128x64xbf16, #tpu.memory_space<vmem>>, %arg5: memref<128x64xbf16, #tpu.memory_space<vmem>>, %arg6: memref<8x64xf32, #tpu.memory_space<vmem>>, %arg7: memref<8x64xf32, #tpu.memory_space<vmem>>, %arg8: memref<128x64xf32, #tpu.memory_space<vmem>>) attributes {dimension_semantics = [#tpu.dimension_semantics<parallel>, #tpu.dimension_semantics<parallel>, #tpu.dimension_semantics<arbitrary>], iteration_bounds = array<i64: 1, 1, 5>, scalar_prefetch = 0 : i64, scratch_operands = 1 : i64, tpu.core_type = #tpu.core_type<tc>, window_params = [{transform_indices = @transform_0, window_bounds = array<i64: 128, 128>}, {transform_indices = @transform_1, window_bounds = array<i64: 128, 64>}, {transform_indices = @transform_2, window_bounds = array<i64: 128, 64>}, {transform_indices = @transform_3, window_bounds = array<i64: 8, 64>}, {transform_indices = @transform_4, window_bounds = array<i64: 8, 64>}]} {
    %c0_i32 = arith.constant 0 : i32
    %0 = arith.cmpi eq, %arg2, %c0_i32 : i32
    %1 = arith.extui %0 : i1 to i32
    %c0_i32_0 = arith.constant 0 : i32
    %2 = arith.cmpi ne, %1, %c0_i32_0 : i32
    scf.if %2 {
      %cst_9 = arith.constant 0.000000e+00 : f32
      %12 = vector.broadcast %cst_9 : f32 to vector<128x64xf32>
      %c0_10 = arith.constant 0 : index
      %c0_11 = arith.constant 0 : index
      %13 = vector.load %arg8[%c0_10, %c0_11] : memref<128x64xf32, #tpu.memory_space<vmem>>, vector<128x64xf32>
      tpu.vector_store %arg8[%c0_10, %c0_11], %12 {strides = array<i32>} : memref<128x64xf32, #tpu.memory_space<vmem>>, vector<128x64xf32>,
    } else {
    }
    %c0 = arith.constant 0 : index
    %c0_1 = arith.constant 0 : index
    %3 = vector.load %arg8[%c0, %c0_1] : memref<128x64xf32, #tpu.memory_space<vmem>>, vector<128x64xf32>
    %c0_2 = arith.constant 0 : index
    %c0_3 = arith.constant 0 : index
    %4 = vector.load %arg3[%c0_2, %c0_3] : memref<128x128xbf16, #tpu.memory_space<vmem>>, vector<128x128xbf16>
    %c0_4 = arith.constant 0 : index
    %c0_5 = arith.constant 0 : index
    %5 = vector.load %arg4[%c0_4, %c0_5] : memref<128x64xbf16, #tpu.memory_space<vmem>>, vector<128x64xbf16>
    %cst = arith.constant dense<0.000000e+00> : vector<128x64xf32>
    %6 = tpu.matmul %4, %5, %cst {dimension_numbers = #tpu.dot_dimension_numbers<[1], [0], [0], [1], [0, 0, 1, 1], [], []>} : vector<128x128xbf16>, vector<128x64xbf16>, vector<128x64xf32> -> vector<128x64xf32>
    %7 = arith.addf %3, %6 : vector<128x64xf32>
    %c0_6 = arith.constant 0 : index
    %c0_7 = arith.constant 0 : index
    %8 = vector.load %arg8[%c0_6, %c0_7] : memref<128x64xf32, #tpu.memory_space<vmem>>, vector<128x64xf32>
    tpu.vector_store %arg8[%c0_6, %c0_7], %7 {strides = array<i32>} : memref<128x64xf32, #tpu.memory_space<vmem>>, vector<128x64xf32>,
    %c4_i32 = arith.constant 4 : i32
    %9 = arith.cmpi eq, %arg2, %c4_i32 : i32
    %10 = arith.extui %9 : i1 to i32
    %c0_i32_8 = arith.constant 0 : i32
    %11 = arith.cmpi ne, %10, %c0_i32_8 : i32
    scf.if %11 {
      %c0_9 = arith.constant 0 : index
      %c0_10 = arith.constant 0 : index
      %12 = vector.load %arg8[%c0_9, %c0_10] : memref<128x64xf32, #tpu.memory_space<vmem>>, vector<128x64xf32>
      %13 = arith.truncf %12 : vector<128x64xf32> to vector<128x64xbf16>
      %c0_11 = arith.constant 0 : index
      %c0_12 = arith.constant 0 : index
      %14 = vector.load %arg5[%c0_11, %c0_12] : memref<128x64xbf16, #tpu.memory_space<vmem>>, vector<128x64xbf16>
      tpu.vector_store %arg5[%c0_11, %c0_12], %13 {strides = array<i32>} : memref<128x64xbf16, #tpu.memory_space<vmem>>, vector<128x64xbf16>,
      %cst_13 = arith.constant dense<0.000000e+00> : vector<64xf32>
      %15 = vector.multi_reduction <add>, %12, %cst_13 [0] : vector<128x64xf32> to vector<64xf32>
      %16 = vector.shape_cast %15 : vector<64xf32> to vector<1x64xf32>
      %17 = arith.mulf %12, %12 : vector<128x64xf32>
      %cst_14 = arith.constant dense<0.000000e+00> : vector<64xf32>
      %18 = vector.multi_reduction <add>, %17, %cst_14 [0] : vector<128x64xf32> to vector<64xf32>
      %19 = vector.shape_cast %18 : vector<64xf32> to vector<1x64xf32>
      %20 = vector.shape_cast %16 : vector<1x64xf32> to vector<1x64xf32>
      %21 = vector.broadcast %20 : vector<1x64xf32> to vector<8x64xf32>
      %c0_15 = arith.constant 0 : index
      %c0_16 = arith.constant 0 : index
      %22 = vector.load %arg6[%c0_15, %c0_16] : memref<8x64xf32, #tpu.memory_space<vmem>>, vector<8x64xf32>
      tpu.vector_store %arg6[%c0_15, %c0_16], %21 {strides = array<i32>} : memref<8x64xf32, #tpu.memory_space<vmem>>, vector<8x64xf32>,
      %23 = vector.shape_cast %19 : vector<1x64xf32> to vector<1x64xf32>
      %24 = vector.broadcast %23 : vector<1x64xf32> to vector<8x64xf32>
      %c0_17 = arith.constant 0 : index
      %c0_18 = arith.constant 0 : index
      %25 = vector.load %arg7[%c0_17, %c0_18] : memref<8x64xf32, #tpu.memory_space<vmem>>, vector<8x64xf32>
      tpu.vector_store %arg7[%c0_17, %c0_18], %24 {strides = array<i32>} : memref<8x64xf32, #tpu.memory_space<vmem>>, vector<8x64xf32>,
    } else {
    }
    return
  }
  func.func @transform_0(%arg0: i32, %arg1: i32, %arg2: i32) -> (i32, i32) {
    %c0_i32 = arith.constant 0 : i32
    return %arg0, %arg2 : i32, i32
  }
  func.func @transform_1(%arg0: i32, %arg1: i32, %arg2: i32) -> (i32, i32) {
    %c0_i32 = arith.constant 0 : i32
    return %arg2, %arg1 : i32, i32
  }
  func.func @transform_2(%arg0: i32, %arg1: i32, %arg2: i32) -> (i32, i32) {
    %c0_i32 = arith.constant 0 : i32
    return %arg0, %arg1 : i32, i32
  }
  func.func @transform_3(%arg0: i32, %arg1: i32, %arg2: i32) -> (i32, i32) {
    %c0_i32 = arith.constant 0 : i32
    return %arg0, %arg1 : i32, i32
  }
  func.func @transform_4(%arg0: i32, %arg1: i32, %arg2: i32) -> (i32, i32) {
    %c0_i32 = arith.constant 0 : i32
    return %arg0, %arg1 : i32, i32
  }
}

module attributes {stable_mosaic.version = 11 : i64} {
  func.func @_bn_act_kernel(%arg0: i32, %arg1: memref<64x128xbf16, #tpu.memory_space<vmem>>, %arg2: memref<1x128xf32, #tpu.memory_space<vmem>>, %arg3: memref<1x128xf32, #tpu.memory_space<vmem>>, %arg4: memref<64x128xbf16, #tpu.memory_space<vmem>>) attributes {dimension_semantics = [#tpu.dimension_semantics<parallel>], iteration_bounds = array<i64: 1>, scalar_prefetch = 0 : i64, scratch_operands = 0 : i64, tpu.core_type = #tpu.core_type<tc>, window_params = [{transform_indices = @transform_0, window_bounds = array<i64: 64, 128>}, {pipeline_mode = #tpu.pipeline_mode<synchronous>, transform_indices = @transform_1, window_bounds = array<i64: 1, 128>}, {pipeline_mode = #tpu.pipeline_mode<synchronous>, transform_indices = @transform_2, window_bounds = array<i64: 1, 128>}, {transform_indices = @transform_3, window_bounds = array<i64: 64, 128>}]} {
    %c0 = arith.constant 0 : index
    %c0_0 = arith.constant 0 : index
    %0 = vector.load %arg1[%c0, %c0_0] : memref<64x128xbf16, #tpu.memory_space<vmem>>, vector<64x128xbf16>
    %1 = arith.extf %0 : vector<64x128xbf16> to vector<64x128xf32>
    %c0_1 = arith.constant 0 : index
    %c0_2 = arith.constant 0 : index
    %2 = vector.load %arg2[%c0_1, %c0_2] : memref<1x128xf32, #tpu.memory_space<vmem>>, vector<1x128xf32>
    %3 = vector.broadcast %2 : vector<1x128xf32> to vector<64x128xf32>
    %4 = arith.mulf %1, %3 : vector<64x128xf32>
    %c0_3 = arith.constant 0 : index
    %c0_4 = arith.constant 0 : index
    %5 = vector.load %arg3[%c0_3, %c0_4] : memref<1x128xf32, #tpu.memory_space<vmem>>, vector<1x128xf32>
    %6 = vector.broadcast %5 : vector<1x128xf32> to vector<64x128xf32>
    %7 = arith.addf %4, %6 : vector<64x128xf32>
    %cst = arith.constant 0.000000e+00 : f32
    %8 = vector.broadcast %cst : f32 to vector<64x128xf32>
    %9 = arith.maximumf %7, %8 : vector<64x128xf32>
    %10 = arith.truncf %9 : vector<64x128xf32> to vector<64x128xbf16>
    %c0_5 = arith.constant 0 : index
    %c0_6 = arith.constant 0 : index
    %11 = vector.load %arg4[%c0_5, %c0_6] : memref<64x128xbf16, #tpu.memory_space<vmem>>, vector<64x128xbf16>
    tpu.vector_store %arg4[%c0_5, %c0_6], %10 {strides = array<i32>} : memref<64x128xbf16, #tpu.memory_space<vmem>>, vector<64x128xbf16>,
    return
  }
  func.func @transform_0(%arg0: i32) -> (i32, i32) {
    %c0_i32 = arith.constant 0 : i32
    %c0_i32_0 = arith.constant 0 : i32
    return %arg0, %c0_i32 : i32, i32
  }
  func.func @transform_1(%arg0: i32) -> (i32, i32) {
    %c0_i32 = arith.constant 0 : i32
    %c0_i32_0 = arith.constant 0 : i32
    %c0_i32_1 = arith.constant 0 : i32
    return %c0_i32, %c0_i32_0 : i32, i32
  }
  func.func @transform_2(%arg0: i32) -> (i32, i32) {
    %c0_i32 = arith.constant 0 : i32
    %c0_i32_0 = arith.constant 0 : i32
    %c0_i32_1 = arith.constant 0 : i32
    return %c0_i32, %c0_i32_0 : i32, i32
  }
  func.func @transform_3(%arg0: i32) -> (i32, i32) {
    %c0_i32 = arith.constant 0 : i32
    %c0_i32_0 = arith.constant 0 : i32
    return %arg0, %c0_i32 : i32, i32
  }
}

module attributes {stable_mosaic.version = 11 : i64} {
  func.func @_bn_act_kernel(%arg0: i32, %arg1: memref<64x128xbf16, #tpu.memory_space<vmem>>, %arg2: memref<64x128xbf16, #tpu.memory_space<vmem>>, %arg3: memref<1x128xf32, #tpu.memory_space<vmem>>, %arg4: memref<1x128xf32, #tpu.memory_space<vmem>>, %arg5: memref<64x128xbf16, #tpu.memory_space<vmem>>) attributes {dimension_semantics = [#tpu.dimension_semantics<parallel>], iteration_bounds = array<i64: 1>, scalar_prefetch = 0 : i64, scratch_operands = 0 : i64, tpu.core_type = #tpu.core_type<tc>, window_params = [{transform_indices = @transform_0, window_bounds = array<i64: 64, 128>}, {transform_indices = @transform_1, window_bounds = array<i64: 64, 128>}, {pipeline_mode = #tpu.pipeline_mode<synchronous>, transform_indices = @transform_2, window_bounds = array<i64: 1, 128>}, {pipeline_mode = #tpu.pipeline_mode<synchronous>, transform_indices = @transform_3, window_bounds = array<i64: 1, 128>}, {transform_indices = @transform_4, window_bounds = array<i64: 64, 128>}]} {
    %c0 = arith.constant 0 : index
    %c0_0 = arith.constant 0 : index
    %0 = vector.load %arg1[%c0, %c0_0] : memref<64x128xbf16, #tpu.memory_space<vmem>>, vector<64x128xbf16>
    %1 = arith.extf %0 : vector<64x128xbf16> to vector<64x128xf32>
    %c0_1 = arith.constant 0 : index
    %c0_2 = arith.constant 0 : index
    %2 = vector.load %arg3[%c0_1, %c0_2] : memref<1x128xf32, #tpu.memory_space<vmem>>, vector<1x128xf32>
    %3 = vector.broadcast %2 : vector<1x128xf32> to vector<64x128xf32>
    %4 = arith.mulf %1, %3 : vector<64x128xf32>
    %c0_3 = arith.constant 0 : index
    %c0_4 = arith.constant 0 : index
    %5 = vector.load %arg4[%c0_3, %c0_4] : memref<1x128xf32, #tpu.memory_space<vmem>>, vector<1x128xf32>
    %6 = vector.broadcast %5 : vector<1x128xf32> to vector<64x128xf32>
    %7 = arith.addf %4, %6 : vector<64x128xf32>
    %c0_5 = arith.constant 0 : index
    %c0_6 = arith.constant 0 : index
    %8 = vector.load %arg2[%c0_5, %c0_6] : memref<64x128xbf16, #tpu.memory_space<vmem>>, vector<64x128xbf16>
    %9 = arith.extf %8 : vector<64x128xbf16> to vector<64x128xf32>
    %10 = arith.addf %7, %9 : vector<64x128xf32>
    %cst = arith.constant 0.000000e+00 : f32
    %11 = vector.broadcast %cst : f32 to vector<64x128xf32>
    %12 = arith.maximumf %10, %11 : vector<64x128xf32>
    %13 = arith.truncf %12 : vector<64x128xf32> to vector<64x128xbf16>
    %c0_7 = arith.constant 0 : index
    %c0_8 = arith.constant 0 : index
    %14 = vector.load %arg5[%c0_7, %c0_8] : memref<64x128xbf16, #tpu.memory_space<vmem>>, vector<64x128xbf16>
    tpu.vector_store %arg5[%c0_7, %c0_8], %13 {strides = array<i32>} : memref<64x128xbf16, #tpu.memory_space<vmem>>, vector<64x128xbf16>,
    return
  }
  func.func @transform_0(%arg0: i32) -> (i32, i32) {
    %c0_i32 = arith.constant 0 : i32
    %c0_i32_0 = arith.constant 0 : i32
    return %arg0, %c0_i32 : i32, i32
  }
  func.func @transform_1(%arg0: i32) -> (i32, i32) {
    %c0_i32 = arith.constant 0 : i32
    %c0_i32_0 = arith.constant 0 : i32
    return %arg0, %c0_i32 : i32, i32
  }
  func.func @transform_2(%arg0: i32) -> (i32, i32) {
    %c0_i32 = arith.constant 0 : i32
    %c0_i32_0 = arith.constant 0 : i32
    %c0_i32_1 = arith.constant 0 : i32
    return %c0_i32, %c0_i32_0 : i32, i32
  }
  func.func @transform_3(%arg0: i32) -> (i32, i32) {
    %c0_i32 = arith.constant 0 : i32
    %c0_i32_0 = arith.constant 0 : i32
    %c0_i32_1 = arith.constant 0 : i32
    return %c0_i32, %c0_i32_0 : i32, i32
  }
  func.func @transform_4(%arg0: i32) -> (i32, i32) {
    %c0_i32 = arith.constant 0 : i32
    %c0_i32_0 = arith.constant 0 : i32
    return %arg0, %c0_i32 : i32, i32
  }
}

module attributes {stable_mosaic.version = 11 : i64} {
  func.func @_matmul_kernel(%arg0: i32, %arg1: i32, %arg2: i32, %arg3: memref<32x128xbf16, #tpu.memory_space<vmem>>, %arg4: memref<128x128xbf16, #tpu.memory_space<vmem>>, %arg5: memref<32x128xbf16, #tpu.memory_space<vmem>>, %arg6: memref<8x128xf32, #tpu.memory_space<vmem>>, %arg7: memref<8x128xf32, #tpu.memory_space<vmem>>, %arg8: memref<32x128xf32, #tpu.memory_space<vmem>>) attributes {dimension_semantics = [#tpu.dimension_semantics<parallel>, #tpu.dimension_semantics<parallel>, #tpu.dimension_semantics<arbitrary>], iteration_bounds = array<i64: 1, 1, 5>, scalar_prefetch = 0 : i64, scratch_operands = 1 : i64, tpu.core_type = #tpu.core_type<tc>, window_params = [{transform_indices = @transform_0, window_bounds = array<i64: 32, 128>}, {transform_indices = @transform_1, window_bounds = array<i64: 128, 128>}, {transform_indices = @transform_2, window_bounds = array<i64: 32, 128>}, {transform_indices = @transform_3, window_bounds = array<i64: 8, 128>}, {transform_indices = @transform_4, window_bounds = array<i64: 8, 128>}]} {
    %c0_i32 = arith.constant 0 : i32
    %0 = arith.cmpi eq, %arg2, %c0_i32 : i32
    %1 = arith.extui %0 : i1 to i32
    %c0_i32_0 = arith.constant 0 : i32
    %2 = arith.cmpi ne, %1, %c0_i32_0 : i32
    scf.if %2 {
      %cst_9 = arith.constant 0.000000e+00 : f32
      %12 = vector.broadcast %cst_9 : f32 to vector<32x128xf32>
      %c0_10 = arith.constant 0 : index
      %c0_11 = arith.constant 0 : index
      %13 = vector.load %arg8[%c0_10, %c0_11] : memref<32x128xf32, #tpu.memory_space<vmem>>, vector<32x128xf32>
      tpu.vector_store %arg8[%c0_10, %c0_11], %12 {strides = array<i32>} : memref<32x128xf32, #tpu.memory_space<vmem>>, vector<32x128xf32>,
    } else {
    }
    %c0 = arith.constant 0 : index
    %c0_1 = arith.constant 0 : index
    %3 = vector.load %arg8[%c0, %c0_1] : memref<32x128xf32, #tpu.memory_space<vmem>>, vector<32x128xf32>
    %c0_2 = arith.constant 0 : index
    %c0_3 = arith.constant 0 : index
    %4 = vector.load %arg3[%c0_2, %c0_3] : memref<32x128xbf16, #tpu.memory_space<vmem>>, vector<32x128xbf16>
    %c0_4 = arith.constant 0 : index
    %c0_5 = arith.constant 0 : index
    %5 = vector.load %arg4[%c0_4, %c0_5] : memref<128x128xbf16, #tpu.memory_space<vmem>>, vector<128x128xbf16>
    %cst = arith.constant dense<0.000000e+00> : vector<32x128xf32>
    %6 = tpu.matmul %4, %5, %cst {dimension_numbers = #tpu.dot_dimension_numbers<[1], [0], [0], [1], [0, 0, 1, 1], [], []>} : vector<32x128xbf16>, vector<128x128xbf16>, vector<32x128xf32> -> vector<32x128xf32>
    %7 = arith.addf %3, %6 : vector<32x128xf32>
    %c0_6 = arith.constant 0 : index
    %c0_7 = arith.constant 0 : index
    %8 = vector.load %arg8[%c0_6, %c0_7] : memref<32x128xf32, #tpu.memory_space<vmem>>, vector<32x128xf32>
    tpu.vector_store %arg8[%c0_6, %c0_7], %7 {strides = array<i32>} : memref<32x128xf32, #tpu.memory_space<vmem>>, vector<32x128xf32>,
    %c4_i32 = arith.constant 4 : i32
    %9 = arith.cmpi eq, %arg2, %c4_i32 : i32
    %10 = arith.extui %9 : i1 to i32
    %c0_i32_8 = arith.constant 0 : i32
    %11 = arith.cmpi ne, %10, %c0_i32_8 : i32
    scf.if %11 {
      %c0_9 = arith.constant 0 : index
      %c0_10 = arith.constant 0 : index
      %12 = vector.load %arg8[%c0_9, %c0_10] : memref<32x128xf32, #tpu.memory_space<vmem>>, vector<32x128xf32>
      %13 = arith.truncf %12 : vector<32x128xf32> to vector<32x128xbf16>
      %c0_11 = arith.constant 0 : index
      %c0_12 = arith.constant 0 : index
      %14 = vector.load %arg5[%c0_11, %c0_12] : memref<32x128xbf16, #tpu.memory_space<vmem>>, vector<32x128xbf16>
      tpu.vector_store %arg5[%c0_11, %c0_12], %13 {strides = array<i32>} : memref<32x128xbf16, #tpu.memory_space<vmem>>, vector<32x128xbf16>,
      %cst_13 = arith.constant dense<0.000000e+00> : vector<128xf32>
      %15 = vector.multi_reduction <add>, %12, %cst_13 [0] : vector<32x128xf32> to vector<128xf32>
      %16 = vector.shape_cast %15 : vector<128xf32> to vector<1x128xf32>
      %17 = arith.mulf %12, %12 : vector<32x128xf32>
      %cst_14 = arith.constant dense<0.000000e+00> : vector<128xf32>
      %18 = vector.multi_reduction <add>, %17, %cst_14 [0] : vector<32x128xf32> to vector<128xf32>
      %19 = vector.shape_cast %18 : vector<128xf32> to vector<1x128xf32>
      %20 = vector.shape_cast %16 : vector<1x128xf32> to vector<1x128xf32>
      %21 = vector.broadcast %20 : vector<1x128xf32> to vector<8x128xf32>
      %c0_15 = arith.constant 0 : index
      %c0_16 = arith.constant 0 : index
      %22 = vector.load %arg6[%c0_15, %c0_16] : memref<8x128xf32, #tpu.memory_space<vmem>>, vector<8x128xf32>
      tpu.vector_store %arg6[%c0_15, %c0_16], %21 {strides = array<i32>} : memref<8x128xf32, #tpu.memory_space<vmem>>, vector<8x128xf32>,
      %23 = vector.shape_cast %19 : vector<1x128xf32> to vector<1x128xf32>
      %24 = vector.broadcast %23 : vector<1x128xf32> to vector<8x128xf32>
      %c0_17 = arith.constant 0 : index
      %c0_18 = arith.constant 0 : index
      %25 = vector.load %arg7[%c0_17, %c0_18] : memref<8x128xf32, #tpu.memory_space<vmem>>, vector<8x128xf32>
      tpu.vector_store %arg7[%c0_17, %c0_18], %24 {strides = array<i32>} : memref<8x128xf32, #tpu.memory_space<vmem>>, vector<8x128xf32>,
    } else {
    }
    return
  }
  func.func @transform_0(%arg0: i32, %arg1: i32, %arg2: i32) -> (i32, i32) {
    %c0_i32 = arith.constant 0 : i32
    return %arg0, %arg2 : i32, i32
  }
  func.func @transform_1(%arg0: i32, %arg1: i32, %arg2: i32) -> (i32, i32) {
    %c0_i32 = arith.constant 0 : i32
    return %arg2, %arg1 : i32, i32
  }
  func.func @transform_2(%arg0: i32, %arg1: i32, %arg2: i32) -> (i32, i32) {
    %c0_i32 = arith.constant 0 : i32
    return %arg0, %arg1 : i32, i32
  }
  func.func @transform_3(%arg0: i32, %arg1: i32, %arg2: i32) -> (i32, i32) {
    %c0_i32 = arith.constant 0 : i32
    return %arg0, %arg1 : i32, i32
  }
  func.func @transform_4(%arg0: i32, %arg1: i32, %arg2: i32) -> (i32, i32) {
    %c0_i32 = arith.constant 0 : i32
    return %arg0, %arg1 : i32, i32
  }
}

module attributes {stable_mosaic.version = 11 : i64} {
  func.func @_bn_act_kernel(%arg0: i32, %arg1: memref<32x128xbf16, #tpu.memory_space<vmem>>, %arg2: memref<1x128xf32, #tpu.memory_space<vmem>>, %arg3: memref<1x128xf32, #tpu.memory_space<vmem>>, %arg4: memref<32x128xbf16, #tpu.memory_space<vmem>>) attributes {dimension_semantics = [#tpu.dimension_semantics<parallel>], iteration_bounds = array<i64: 1>, scalar_prefetch = 0 : i64, scratch_operands = 0 : i64, tpu.core_type = #tpu.core_type<tc>, window_params = [{transform_indices = @transform_0, window_bounds = array<i64: 32, 128>}, {pipeline_mode = #tpu.pipeline_mode<synchronous>, transform_indices = @transform_1, window_bounds = array<i64: 1, 128>}, {pipeline_mode = #tpu.pipeline_mode<synchronous>, transform_indices = @transform_2, window_bounds = array<i64: 1, 128>}, {transform_indices = @transform_3, window_bounds = array<i64: 32, 128>}]} {
    %c0 = arith.constant 0 : index
    %c0_0 = arith.constant 0 : index
    %0 = vector.load %arg1[%c0, %c0_0] : memref<32x128xbf16, #tpu.memory_space<vmem>>, vector<32x128xbf16>
    %1 = arith.extf %0 : vector<32x128xbf16> to vector<32x128xf32>
    %c0_1 = arith.constant 0 : index
    %c0_2 = arith.constant 0 : index
    %2 = vector.load %arg2[%c0_1, %c0_2] : memref<1x128xf32, #tpu.memory_space<vmem>>, vector<1x128xf32>
    %3 = vector.broadcast %2 : vector<1x128xf32> to vector<32x128xf32>
    %4 = arith.mulf %1, %3 : vector<32x128xf32>
    %c0_3 = arith.constant 0 : index
    %c0_4 = arith.constant 0 : index
    %5 = vector.load %arg3[%c0_3, %c0_4] : memref<1x128xf32, #tpu.memory_space<vmem>>, vector<1x128xf32>
    %6 = vector.broadcast %5 : vector<1x128xf32> to vector<32x128xf32>
    %7 = arith.addf %4, %6 : vector<32x128xf32>
    %cst = arith.constant 0.000000e+00 : f32
    %8 = vector.broadcast %cst : f32 to vector<32x128xf32>
    %9 = arith.maximumf %7, %8 : vector<32x128xf32>
    %10 = arith.truncf %9 : vector<32x128xf32> to vector<32x128xbf16>
    %c0_5 = arith.constant 0 : index
    %c0_6 = arith.constant 0 : index
    %11 = vector.load %arg4[%c0_5, %c0_6] : memref<32x128xbf16, #tpu.memory_space<vmem>>, vector<32x128xbf16>
    tpu.vector_store %arg4[%c0_5, %c0_6], %10 {strides = array<i32>} : memref<32x128xbf16, #tpu.memory_space<vmem>>, vector<32x128xbf16>,
    return
  }
  func.func @transform_0(%arg0: i32) -> (i32, i32) {
    %c0_i32 = arith.constant 0 : i32
    %c0_i32_0 = arith.constant 0 : i32
    return %arg0, %c0_i32 : i32, i32
  }
  func.func @transform_1(%arg0: i32) -> (i32, i32) {
    %c0_i32 = arith.constant 0 : i32
    %c0_i32_0 = arith.constant 0 : i32
    %c0_i32_1 = arith.constant 0 : i32
    return %c0_i32, %c0_i32_0 : i32, i32
  }
  func.func @transform_2(%arg0: i32) -> (i32, i32) {
    %c0_i32 = arith.constant 0 : i32
    %c0_i32_0 = arith.constant 0 : i32
    %c0_i32_1 = arith.constant 0 : i32
    return %c0_i32, %c0_i32_0 : i32, i32
  }
  func.func @transform_3(%arg0: i32) -> (i32, i32) {
    %c0_i32 = arith.constant 0 : i32
    %c0_i32_0 = arith.constant 0 : i32
    return %arg0, %c0_i32 : i32, i32
  }
}

module attributes {stable_mosaic.version = 11 : i64} {
  func.func @_matmul_kernel(%arg0: i32, %arg1: i32, %arg2: i32, %arg3: memref<32x64xbf16, #tpu.memory_space<vmem>>, %arg4: memref<64x128xbf16, #tpu.memory_space<vmem>>, %arg5: memref<32x128xbf16, #tpu.memory_space<vmem>>, %arg6: memref<8x128xf32, #tpu.memory_space<vmem>>, %arg7: memref<8x128xf32, #tpu.memory_space<vmem>>, %arg8: memref<32x128xf32, #tpu.memory_space<vmem>>) attributes {dimension_semantics = [#tpu.dimension_semantics<parallel>, #tpu.dimension_semantics<parallel>, #tpu.dimension_semantics<arbitrary>], iteration_bounds = array<i64: 1, 1, 1>, scalar_prefetch = 0 : i64, scratch_operands = 1 : i64, tpu.core_type = #tpu.core_type<tc>, window_params = [{transform_indices = @transform_0, window_bounds = array<i64: 32, 64>}, {transform_indices = @transform_1, window_bounds = array<i64: 64, 128>}, {transform_indices = @transform_2, window_bounds = array<i64: 32, 128>}, {transform_indices = @transform_3, window_bounds = array<i64: 8, 128>}, {transform_indices = @transform_4, window_bounds = array<i64: 8, 128>}]} {
    %c0_i32 = arith.constant 0 : i32
    %0 = arith.cmpi eq, %arg2, %c0_i32 : i32
    %1 = arith.extui %0 : i1 to i32
    %c0_i32_0 = arith.constant 0 : i32
    %2 = arith.cmpi ne, %1, %c0_i32_0 : i32
    scf.if %2 {
      %cst_10 = arith.constant 0.000000e+00 : f32
      %12 = vector.broadcast %cst_10 : f32 to vector<32x128xf32>
      %c0_11 = arith.constant 0 : index
      %c0_12 = arith.constant 0 : index
      %13 = vector.load %arg8[%c0_11, %c0_12] : memref<32x128xf32, #tpu.memory_space<vmem>>, vector<32x128xf32>
      tpu.vector_store %arg8[%c0_11, %c0_12], %12 {strides = array<i32>} : memref<32x128xf32, #tpu.memory_space<vmem>>, vector<32x128xf32>,
    } else {
    }
    %c0 = arith.constant 0 : index
    %c0_1 = arith.constant 0 : index
    %3 = vector.load %arg8[%c0, %c0_1] : memref<32x128xf32, #tpu.memory_space<vmem>>, vector<32x128xf32>
    %c0_2 = arith.constant 0 : index
    %c0_3 = arith.constant 0 : index
    %4 = vector.load %arg3[%c0_2, %c0_3] : memref<32x64xbf16, #tpu.memory_space<vmem>>, vector<32x64xbf16>
    %c0_4 = arith.constant 0 : index
    %c0_5 = arith.constant 0 : index
    %5 = vector.load %arg4[%c0_4, %c0_5] : memref<64x128xbf16, #tpu.memory_space<vmem>>, vector<64x128xbf16>
    %cst = arith.constant dense<0.000000e+00> : vector<32x128xf32>
    %6 = tpu.matmul %4, %5, %cst {dimension_numbers = #tpu.dot_dimension_numbers<[1], [0], [0], [1], [0, 0, 1, 1], [], []>} : vector<32x64xbf16>, vector<64x128xbf16>, vector<32x128xf32> -> vector<32x128xf32>
    %7 = arith.addf %3, %6 : vector<32x128xf32>
    %c0_6 = arith.constant 0 : index
    %c0_7 = arith.constant 0 : index
    %8 = vector.load %arg8[%c0_6, %c0_7] : memref<32x128xf32, #tpu.memory_space<vmem>>, vector<32x128xf32>
    tpu.vector_store %arg8[%c0_6, %c0_7], %7 {strides = array<i32>} : memref<32x128xf32, #tpu.memory_space<vmem>>, vector<32x128xf32>,
    %c0_i32_8 = arith.constant 0 : i32
    %9 = arith.cmpi eq, %arg2, %c0_i32_8 : i32
    %10 = arith.extui %9 : i1 to i32
    %c0_i32_9 = arith.constant 0 : i32
    %11 = arith.cmpi ne, %10, %c0_i32_9 : i32
    scf.if %11 {
      %c0_10 = arith.constant 0 : index
      %c0_11 = arith.constant 0 : index
      %12 = vector.load %arg8[%c0_10, %c0_11] : memref<32x128xf32, #tpu.memory_space<vmem>>, vector<32x128xf32>
      %13 = arith.truncf %12 : vector<32x128xf32> to vector<32x128xbf16>
      %c0_12 = arith.constant 0 : index
      %c0_13 = arith.constant 0 : index
      %14 = vector.load %arg5[%c0_12, %c0_13] : memref<32x128xbf16, #tpu.memory_space<vmem>>, vector<32x128xbf16>
      tpu.vector_store %arg5[%c0_12, %c0_13], %13 {strides = array<i32>} : memref<32x128xbf16, #tpu.memory_space<vmem>>, vector<32x128xbf16>,
      %cst_14 = arith.constant dense<0.000000e+00> : vector<128xf32>
      %15 = vector.multi_reduction <add>, %12, %cst_14 [0] : vector<32x128xf32> to vector<128xf32>
      %16 = vector.shape_cast %15 : vector<128xf32> to vector<1x128xf32>
      %17 = arith.mulf %12, %12 : vector<32x128xf32>
      %cst_15 = arith.constant dense<0.000000e+00> : vector<128xf32>
      %18 = vector.multi_reduction <add>, %17, %cst_15 [0] : vector<32x128xf32> to vector<128xf32>
      %19 = vector.shape_cast %18 : vector<128xf32> to vector<1x128xf32>
      %20 = vector.shape_cast %16 : vector<1x128xf32> to vector<1x128xf32>
      %21 = vector.broadcast %20 : vector<1x128xf32> to vector<8x128xf32>
      %c0_16 = arith.constant 0 : index
      %c0_17 = arith.constant 0 : index
      %22 = vector.load %arg6[%c0_16, %c0_17] : memref<8x128xf32, #tpu.memory_space<vmem>>, vector<8x128xf32>
      tpu.vector_store %arg6[%c0_16, %c0_17], %21 {strides = array<i32>} : memref<8x128xf32, #tpu.memory_space<vmem>>, vector<8x128xf32>,
      %23 = vector.shape_cast %19 : vector<1x128xf32> to vector<1x128xf32>
      %24 = vector.broadcast %23 : vector<1x128xf32> to vector<8x128xf32>
      %c0_18 = arith.constant 0 : index
      %c0_19 = arith.constant 0 : index
      %25 = vector.load %arg7[%c0_18, %c0_19] : memref<8x128xf32, #tpu.memory_space<vmem>>, vector<8x128xf32>
      tpu.vector_store %arg7[%c0_18, %c0_19], %24 {strides = array<i32>} : memref<8x128xf32, #tpu.memory_space<vmem>>, vector<8x128xf32>,
    } else {
    }
    return
  }
  func.func @transform_0(%arg0: i32, %arg1: i32, %arg2: i32) -> (i32, i32) {
    %c0_i32 = arith.constant 0 : i32
    return %arg0, %arg2 : i32, i32
  }
  func.func @transform_1(%arg0: i32, %arg1: i32, %arg2: i32) -> (i32, i32) {
    %c0_i32 = arith.constant 0 : i32
    return %arg2, %arg1 : i32, i32
  }
  func.func @transform_2(%arg0: i32, %arg1: i32, %arg2: i32) -> (i32, i32) {
    %c0_i32 = arith.constant 0 : i32
    return %arg0, %arg1 : i32, i32
  }
  func.func @transform_3(%arg0: i32, %arg1: i32, %arg2: i32) -> (i32, i32) {
    %c0_i32 = arith.constant 0 : i32
    return %arg0, %arg1 : i32, i32
  }
  func.func @transform_4(%arg0: i32, %arg1: i32, %arg2: i32) -> (i32, i32) {
    %c0_i32 = arith.constant 0 : i32
    return %arg0, %arg1 : i32, i32
  }
}

module attributes {stable_mosaic.version = 11 : i64} {
  func.func @_matmul_kernel(%arg0: i32, %arg1: i32, %arg2: i32, %arg3: memref<32x384xbf16, #tpu.memory_space<vmem>>, %arg4: memref<384x128xbf16, #tpu.memory_space<vmem>>, %arg5: memref<32x128xbf16, #tpu.memory_space<vmem>>, %arg6: memref<8x128xf32, #tpu.memory_space<vmem>>, %arg7: memref<8x128xf32, #tpu.memory_space<vmem>>, %arg8: memref<32x128xf32, #tpu.memory_space<vmem>>) attributes {dimension_semantics = [#tpu.dimension_semantics<parallel>, #tpu.dimension_semantics<parallel>, #tpu.dimension_semantics<arbitrary>], iteration_bounds = array<i64: 1, 1, 3>, scalar_prefetch = 0 : i64, scratch_operands = 1 : i64, tpu.core_type = #tpu.core_type<tc>, window_params = [{transform_indices = @transform_0, window_bounds = array<i64: 32, 384>}, {transform_indices = @transform_1, window_bounds = array<i64: 384, 128>}, {transform_indices = @transform_2, window_bounds = array<i64: 32, 128>}, {transform_indices = @transform_3, window_bounds = array<i64: 8, 128>}, {transform_indices = @transform_4, window_bounds = array<i64: 8, 128>}]} {
    %c0_i32 = arith.constant 0 : i32
    %0 = arith.cmpi eq, %arg2, %c0_i32 : i32
    %1 = arith.extui %0 : i1 to i32
    %c0_i32_0 = arith.constant 0 : i32
    %2 = arith.cmpi ne, %1, %c0_i32_0 : i32
    scf.if %2 {
      %cst_9 = arith.constant 0.000000e+00 : f32
      %12 = vector.broadcast %cst_9 : f32 to vector<32x128xf32>
      %c0_10 = arith.constant 0 : index
      %c0_11 = arith.constant 0 : index
      %13 = vector.load %arg8[%c0_10, %c0_11] : memref<32x128xf32, #tpu.memory_space<vmem>>, vector<32x128xf32>
      tpu.vector_store %arg8[%c0_10, %c0_11], %12 {strides = array<i32>} : memref<32x128xf32, #tpu.memory_space<vmem>>, vector<32x128xf32>,
    } else {
    }
    %c0 = arith.constant 0 : index
    %c0_1 = arith.constant 0 : index
    %3 = vector.load %arg8[%c0, %c0_1] : memref<32x128xf32, #tpu.memory_space<vmem>>, vector<32x128xf32>
    %c0_2 = arith.constant 0 : index
    %c0_3 = arith.constant 0 : index
    %4 = vector.load %arg3[%c0_2, %c0_3] : memref<32x384xbf16, #tpu.memory_space<vmem>>, vector<32x384xbf16>
    %c0_4 = arith.constant 0 : index
    %c0_5 = arith.constant 0 : index
    %5 = vector.load %arg4[%c0_4, %c0_5] : memref<384x128xbf16, #tpu.memory_space<vmem>>, vector<384x128xbf16>
    %cst = arith.constant dense<0.000000e+00> : vector<32x128xf32>
    %6 = tpu.matmul %4, %5, %cst {dimension_numbers = #tpu.dot_dimension_numbers<[1], [0], [0], [1], [0, 0, 1, 1], [], []>} : vector<32x384xbf16>, vector<384x128xbf16>, vector<32x128xf32> -> vector<32x128xf32>
    %7 = arith.addf %3, %6 : vector<32x128xf32>
    %c0_6 = arith.constant 0 : index
    %c0_7 = arith.constant 0 : index
    %8 = vector.load %arg8[%c0_6, %c0_7] : memref<32x128xf32, #tpu.memory_space<vmem>>, vector<32x128xf32>
    tpu.vector_store %arg8[%c0_6, %c0_7], %7 {strides = array<i32>} : memref<32x128xf32, #tpu.memory_space<vmem>>, vector<32x128xf32>,
    %c2_i32 = arith.constant 2 : i32
    %9 = arith.cmpi eq, %arg2, %c2_i32 : i32
    %10 = arith.extui %9 : i1 to i32
    %c0_i32_8 = arith.constant 0 : i32
    %11 = arith.cmpi ne, %10, %c0_i32_8 : i32
    scf.if %11 {
      %c0_9 = arith.constant 0 : index
      %c0_10 = arith.constant 0 : index
      %12 = vector.load %arg8[%c0_9, %c0_10] : memref<32x128xf32, #tpu.memory_space<vmem>>, vector<32x128xf32>
      %13 = arith.truncf %12 : vector<32x128xf32> to vector<32x128xbf16>
      %c0_11 = arith.constant 0 : index
      %c0_12 = arith.constant 0 : index
      %14 = vector.load %arg5[%c0_11, %c0_12] : memref<32x128xbf16, #tpu.memory_space<vmem>>, vector<32x128xbf16>
      tpu.vector_store %arg5[%c0_11, %c0_12], %13 {strides = array<i32>} : memref<32x128xbf16, #tpu.memory_space<vmem>>, vector<32x128xbf16>,
      %cst_13 = arith.constant dense<0.000000e+00> : vector<128xf32>
      %15 = vector.multi_reduction <add>, %12, %cst_13 [0] : vector<32x128xf32> to vector<128xf32>
      %16 = vector.shape_cast %15 : vector<128xf32> to vector<1x128xf32>
      %17 = arith.mulf %12, %12 : vector<32x128xf32>
      %cst_14 = arith.constant dense<0.000000e+00> : vector<128xf32>
      %18 = vector.multi_reduction <add>, %17, %cst_14 [0] : vector<32x128xf32> to vector<128xf32>
      %19 = vector.shape_cast %18 : vector<128xf32> to vector<1x128xf32>
      %20 = vector.shape_cast %16 : vector<1x128xf32> to vector<1x128xf32>
      %21 = vector.broadcast %20 : vector<1x128xf32> to vector<8x128xf32>
      %c0_15 = arith.constant 0 : index
      %c0_16 = arith.constant 0 : index
      %22 = vector.load %arg6[%c0_15, %c0_16] : memref<8x128xf32, #tpu.memory_space<vmem>>, vector<8x128xf32>
      tpu.vector_store %arg6[%c0_15, %c0_16], %21 {strides = array<i32>} : memref<8x128xf32, #tpu.memory_space<vmem>>, vector<8x128xf32>,
      %23 = vector.shape_cast %19 : vector<1x128xf32> to vector<1x128xf32>
      %24 = vector.broadcast %23 : vector<1x128xf32> to vector<8x128xf32>
      %c0_17 = arith.constant 0 : index
      %c0_18 = arith.constant 0 : index
      %25 = vector.load %arg7[%c0_17, %c0_18] : memref<8x128xf32, #tpu.memory_space<vmem>>, vector<8x128xf32>
      tpu.vector_store %arg7[%c0_17, %c0_18], %24 {strides = array<i32>} : memref<8x128xf32, #tpu.memory_space<vmem>>, vector<8x128xf32>,
    } else {
    }
    return
  }
  func.func @transform_0(%arg0: i32, %arg1: i32, %arg2: i32) -> (i32, i32) {
    %c0_i32 = arith.constant 0 : i32
    return %arg0, %arg2 : i32, i32
  }
  func.func @transform_1(%arg0: i32, %arg1: i32, %arg2: i32) -> (i32, i32) {
    %c0_i32 = arith.constant 0 : i32
    return %arg2, %arg1 : i32, i32
  }
  func.func @transform_2(%arg0: i32, %arg1: i32, %arg2: i32) -> (i32, i32) {
    %c0_i32 = arith.constant 0 : i32
    return %arg0, %arg1 : i32, i32
  }
  func.func @transform_3(%arg0: i32, %arg1: i32, %arg2: i32) -> (i32, i32) {
    %c0_i32 = arith.constant 0 : i32
    return %arg0, %arg1 : i32, i32
  }
  func.func @transform_4(%arg0: i32, %arg1: i32, %arg2: i32) -> (i32, i32) {
    %c0_i32 = arith.constant 0 : i32
    return %arg0, %arg1 : i32, i32
  }
}

module attributes {stable_mosaic.version = 11 : i64} {
  func.func @_bn_act_kernel(%arg0: i32, %arg1: memref<32x128xbf16, #tpu.memory_space<vmem>>, %arg2: memref<1x128xf32, #tpu.memory_space<vmem>>, %arg3: memref<1x128xf32, #tpu.memory_space<vmem>>, %arg4: memref<32x128xbf16, #tpu.memory_space<vmem>>) attributes {dimension_semantics = [#tpu.dimension_semantics<parallel>], iteration_bounds = array<i64: 1>, scalar_prefetch = 0 : i64, scratch_operands = 0 : i64, tpu.core_type = #tpu.core_type<tc>, window_params = [{transform_indices = @transform_0, window_bounds = array<i64: 32, 128>}, {pipeline_mode = #tpu.pipeline_mode<synchronous>, transform_indices = @transform_1, window_bounds = array<i64: 1, 128>}, {pipeline_mode = #tpu.pipeline_mode<synchronous>, transform_indices = @transform_2, window_bounds = array<i64: 1, 128>}, {transform_indices = @transform_3, window_bounds = array<i64: 32, 128>}]} {
    %c0 = arith.constant 0 : index
    %c0_0 = arith.constant 0 : index
    %0 = vector.load %arg1[%c0, %c0_0] : memref<32x128xbf16, #tpu.memory_space<vmem>>, vector<32x128xbf16>
    %1 = arith.extf %0 : vector<32x128xbf16> to vector<32x128xf32>
    %c0_1 = arith.constant 0 : index
    %c0_2 = arith.constant 0 : index
    %2 = vector.load %arg2[%c0_1, %c0_2] : memref<1x128xf32, #tpu.memory_space<vmem>>, vector<1x128xf32>
    %3 = vector.broadcast %2 : vector<1x128xf32> to vector<32x128xf32>
    %4 = arith.mulf %1, %3 : vector<32x128xf32>
    %c0_3 = arith.constant 0 : index
    %c0_4 = arith.constant 0 : index
    %5 = vector.load %arg3[%c0_3, %c0_4] : memref<1x128xf32, #tpu.memory_space<vmem>>, vector<1x128xf32>
    %6 = vector.broadcast %5 : vector<1x128xf32> to vector<32x128xf32>
    %7 = arith.addf %4, %6 : vector<32x128xf32>
    %8 = arith.truncf %7 : vector<32x128xf32> to vector<32x128xbf16>
    %c0_5 = arith.constant 0 : index
    %c0_6 = arith.constant 0 : index
    %9 = vector.load %arg4[%c0_5, %c0_6] : memref<32x128xbf16, #tpu.memory_space<vmem>>, vector<32x128xbf16>
    tpu.vector_store %arg4[%c0_5, %c0_6], %8 {strides = array<i32>} : memref<32x128xbf16, #tpu.memory_space<vmem>>, vector<32x128xbf16>,
    return
  }
  func.func @transform_0(%arg0: i32) -> (i32, i32) {
    %c0_i32 = arith.constant 0 : i32
    %c0_i32_0 = arith.constant 0 : i32
    return %arg0, %c0_i32 : i32, i32
  }
  func.func @transform_1(%arg0: i32) -> (i32, i32) {
    %c0_i32 = arith.constant 0 : i32
    %c0_i32_0 = arith.constant 0 : i32
    %c0_i32_1 = arith.constant 0 : i32
    return %c0_i32, %c0_i32_0 : i32, i32
  }
  func.func @transform_2(%arg0: i32) -> (i32, i32) {
    %c0_i32 = arith.constant 0 : i32
    %c0_i32_0 = arith.constant 0 : i32
    %c0_i32_1 = arith.constant 0 : i32
    return %c0_i32, %c0_i32_0 : i32, i32
  }
  func.func @transform_3(%arg0: i32) -> (i32, i32) {
    %c0_i32 = arith.constant 0 : i32
    %c0_i32_0 = arith.constant 0 : i32
    return %arg0, %c0_i32 : i32, i32
  }
}

module attributes {stable_mosaic.version = 11 : i64} {
  func.func @_bn_act_kernel(%arg0: i32, %arg1: memref<32x128xbf16, #tpu.memory_space<vmem>>, %arg2: memref<32x128xbf16, #tpu.memory_space<vmem>>, %arg3: memref<1x128xf32, #tpu.memory_space<vmem>>, %arg4: memref<1x128xf32, #tpu.memory_space<vmem>>, %arg5: memref<32x128xbf16, #tpu.memory_space<vmem>>) attributes {dimension_semantics = [#tpu.dimension_semantics<parallel>], iteration_bounds = array<i64: 1>, scalar_prefetch = 0 : i64, scratch_operands = 0 : i64, tpu.core_type = #tpu.core_type<tc>, window_params = [{transform_indices = @transform_0, window_bounds = array<i64: 32, 128>}, {transform_indices = @transform_1, window_bounds = array<i64: 32, 128>}, {pipeline_mode = #tpu.pipeline_mode<synchronous>, transform_indices = @transform_2, window_bounds = array<i64: 1, 128>}, {pipeline_mode = #tpu.pipeline_mode<synchronous>, transform_indices = @transform_3, window_bounds = array<i64: 1, 128>}, {transform_indices = @transform_4, window_bounds = array<i64: 32, 128>}]} {
    %c0 = arith.constant 0 : index
    %c0_0 = arith.constant 0 : index
    %0 = vector.load %arg1[%c0, %c0_0] : memref<32x128xbf16, #tpu.memory_space<vmem>>, vector<32x128xbf16>
    %1 = arith.extf %0 : vector<32x128xbf16> to vector<32x128xf32>
    %c0_1 = arith.constant 0 : index
    %c0_2 = arith.constant 0 : index
    %2 = vector.load %arg3[%c0_1, %c0_2] : memref<1x128xf32, #tpu.memory_space<vmem>>, vector<1x128xf32>
    %3 = vector.broadcast %2 : vector<1x128xf32> to vector<32x128xf32>
    %4 = arith.mulf %1, %3 : vector<32x128xf32>
    %c0_3 = arith.constant 0 : index
    %c0_4 = arith.constant 0 : index
    %5 = vector.load %arg4[%c0_3, %c0_4] : memref<1x128xf32, #tpu.memory_space<vmem>>, vector<1x128xf32>
    %6 = vector.broadcast %5 : vector<1x128xf32> to vector<32x128xf32>
    %7 = arith.addf %4, %6 : vector<32x128xf32>
    %c0_5 = arith.constant 0 : index
    %c0_6 = arith.constant 0 : index
    %8 = vector.load %arg2[%c0_5, %c0_6] : memref<32x128xbf16, #tpu.memory_space<vmem>>, vector<32x128xbf16>
    %9 = arith.extf %8 : vector<32x128xbf16> to vector<32x128xf32>
    %10 = arith.addf %7, %9 : vector<32x128xf32>
    %cst = arith.constant 0.000000e+00 : f32
    %11 = vector.broadcast %cst : f32 to vector<32x128xf32>
    %12 = arith.maximumf %10, %11 : vector<32x128xf32>
    %13 = arith.truncf %12 : vector<32x128xf32> to vector<32x128xbf16>
    %c0_7 = arith.constant 0 : index
    %c0_8 = arith.constant 0 : index
    %14 = vector.load %arg5[%c0_7, %c0_8] : memref<32x128xbf16, #tpu.memory_space<vmem>>, vector<32x128xbf16>
    tpu.vector_store %arg5[%c0_7, %c0_8], %13 {strides = array<i32>} : memref<32x128xbf16, #tpu.memory_space<vmem>>, vector<32x128xbf16>,
    return
  }
  func.func @transform_0(%arg0: i32) -> (i32, i32) {
    %c0_i32 = arith.constant 0 : i32
    %c0_i32_0 = arith.constant 0 : i32
    return %arg0, %c0_i32 : i32, i32
  }
  func.func @transform_1(%arg0: i32) -> (i32, i32) {
    %c0_i32 = arith.constant 0 : i32
    %c0_i32_0 = arith.constant 0 : i32
    return %arg0, %c0_i32 : i32, i32
  }
  func.func @transform_2(%arg0: i32) -> (i32, i32) {
    %c0_i32 = arith.constant 0 : i32
    %c0_i32_0 = arith.constant 0 : i32
    %c0_i32_1 = arith.constant 0 : i32
    return %c0_i32, %c0_i32_0 : i32, i32
  }
  func.func @transform_3(%arg0: i32) -> (i32, i32) {
    %c0_i32 = arith.constant 0 : i32
    %c0_i32_0 = arith.constant 0 : i32
    %c0_i32_1 = arith.constant 0 : i32
    return %c0_i32, %c0_i32_0 : i32, i32
  }
  func.func @transform_4(%arg0: i32) -> (i32, i32) {
    %c0_i32 = arith.constant 0 : i32
    %c0_i32_0 = arith.constant 0 : i32
    return %arg0, %c0_i32 : i32, i32
  }
}

module attributes {stable_mosaic.version = 11 : i64} {
  func.func @_bn_act_kernel(%arg0: i32, %arg1: memref<8x256xbf16, #tpu.memory_space<vmem>>, %arg2: memref<1x256xf32, #tpu.memory_space<vmem>>, %arg3: memref<1x256xf32, #tpu.memory_space<vmem>>, %arg4: memref<8x256xbf16, #tpu.memory_space<vmem>>) attributes {dimension_semantics = [#tpu.dimension_semantics<parallel>], iteration_bounds = array<i64: 1>, scalar_prefetch = 0 : i64, scratch_operands = 0 : i64, tpu.core_type = #tpu.core_type<tc>, window_params = [{transform_indices = @transform_0, window_bounds = array<i64: 8, 256>}, {pipeline_mode = #tpu.pipeline_mode<synchronous>, transform_indices = @transform_1, window_bounds = array<i64: 1, 256>}, {pipeline_mode = #tpu.pipeline_mode<synchronous>, transform_indices = @transform_2, window_bounds = array<i64: 1, 256>}, {transform_indices = @transform_3, window_bounds = array<i64: 8, 256>}]} {
    %c0 = arith.constant 0 : index
    %c0_0 = arith.constant 0 : index
    %0 = vector.load %arg1[%c0, %c0_0] : memref<8x256xbf16, #tpu.memory_space<vmem>>, vector<8x256xbf16>
    %1 = arith.extf %0 : vector<8x256xbf16> to vector<8x256xf32>
    %c0_1 = arith.constant 0 : index
    %c0_2 = arith.constant 0 : index
    %2 = vector.load %arg2[%c0_1, %c0_2] : memref<1x256xf32, #tpu.memory_space<vmem>>, vector<1x256xf32>
    %3 = vector.broadcast %2 : vector<1x256xf32> to vector<8x256xf32>
    %4 = arith.mulf %1, %3 : vector<8x256xf32>
    %c0_3 = arith.constant 0 : index
    %c0_4 = arith.constant 0 : index
    %5 = vector.load %arg3[%c0_3, %c0_4] : memref<1x256xf32, #tpu.memory_space<vmem>>, vector<1x256xf32>
    %6 = vector.broadcast %5 : vector<1x256xf32> to vector<8x256xf32>
    %7 = arith.addf %4, %6 : vector<8x256xf32>
    %cst = arith.constant 0.000000e+00 : f32
    %8 = vector.broadcast %cst : f32 to vector<8x256xf32>
    %9 = arith.maximumf %7, %8 : vector<8x256xf32>
    %10 = arith.truncf %9 : vector<8x256xf32> to vector<8x256xbf16>
    %c0_5 = arith.constant 0 : index
    %c0_6 = arith.constant 0 : index
    %11 = vector.load %arg4[%c0_5, %c0_6] : memref<8x256xbf16, #tpu.memory_space<vmem>>, vector<8x256xbf16>
    tpu.vector_store %arg4[%c0_5, %c0_6], %10 {strides = array<i32>} : memref<8x256xbf16, #tpu.memory_space<vmem>>, vector<8x256xbf16>,
    return
  }
  func.func @transform_0(%arg0: i32) -> (i32, i32) {
    %c0_i32 = arith.constant 0 : i32
    %c0_i32_0 = arith.constant 0 : i32
    return %arg0, %c0_i32 : i32, i32
  }
  func.func @transform_1(%arg0: i32) -> (i32, i32) {
    %c0_i32 = arith.constant 0 : i32
    %c0_i32_0 = arith.constant 0 : i32
    %c0_i32_1 = arith.constant 0 : i32
    return %c0_i32, %c0_i32_0 : i32, i32
  }
  func.func @transform_2(%arg0: i32) -> (i32, i32) {
    %c0_i32 = arith.constant 0 : i32
    %c0_i32_0 = arith.constant 0 : i32
    %c0_i32_1 = arith.constant 0 : i32
    return %c0_i32, %c0_i32_0 : i32, i32
  }
  func.func @transform_3(%arg0: i32) -> (i32, i32) {
    %c0_i32 = arith.constant 0 : i32
    %c0_i32_0 = arith.constant 0 : i32
    return %arg0, %c0_i32 : i32, i32
  }
}

module attributes {stable_mosaic.version = 11 : i64} {
  func.func @_matmul_kernel(%arg0: i32, %arg1: i32, %arg2: i32, %arg3: memref<8x384xbf16, #tpu.memory_space<vmem>>, %arg4: memref<384x256xbf16, #tpu.memory_space<vmem>>, %arg5: memref<8x256xbf16, #tpu.memory_space<vmem>>, %arg6: memref<8x256xf32, #tpu.memory_space<vmem>>, %arg7: memref<8x256xf32, #tpu.memory_space<vmem>>, %arg8: memref<8x256xf32, #tpu.memory_space<vmem>>) attributes {dimension_semantics = [#tpu.dimension_semantics<parallel>, #tpu.dimension_semantics<parallel>, #tpu.dimension_semantics<arbitrary>], iteration_bounds = array<i64: 1, 1, 3>, scalar_prefetch = 0 : i64, scratch_operands = 1 : i64, tpu.core_type = #tpu.core_type<tc>, window_params = [{transform_indices = @transform_0, window_bounds = array<i64: 8, 384>}, {transform_indices = @transform_1, window_bounds = array<i64: 384, 256>}, {transform_indices = @transform_2, window_bounds = array<i64: 8, 256>}, {transform_indices = @transform_3, window_bounds = array<i64: 8, 256>}, {transform_indices = @transform_4, window_bounds = array<i64: 8, 256>}]} {
    %c0_i32 = arith.constant 0 : i32
    %0 = arith.cmpi eq, %arg2, %c0_i32 : i32
    %1 = arith.extui %0 : i1 to i32
    %c0_i32_0 = arith.constant 0 : i32
    %2 = arith.cmpi ne, %1, %c0_i32_0 : i32
    scf.if %2 {
      %cst_9 = arith.constant 0.000000e+00 : f32
      %12 = vector.broadcast %cst_9 : f32 to vector<8x256xf32>
      %c0_10 = arith.constant 0 : index
      %c0_11 = arith.constant 0 : index
      %13 = vector.load %arg8[%c0_10, %c0_11] : memref<8x256xf32, #tpu.memory_space<vmem>>, vector<8x256xf32>
      tpu.vector_store %arg8[%c0_10, %c0_11], %12 {strides = array<i32>} : memref<8x256xf32, #tpu.memory_space<vmem>>, vector<8x256xf32>,
    } else {
    }
    %c0 = arith.constant 0 : index
    %c0_1 = arith.constant 0 : index
    %3 = vector.load %arg8[%c0, %c0_1] : memref<8x256xf32, #tpu.memory_space<vmem>>, vector<8x256xf32>
    %c0_2 = arith.constant 0 : index
    %c0_3 = arith.constant 0 : index
    %4 = vector.load %arg3[%c0_2, %c0_3] : memref<8x384xbf16, #tpu.memory_space<vmem>>, vector<8x384xbf16>
    %c0_4 = arith.constant 0 : index
    %c0_5 = arith.constant 0 : index
    %5 = vector.load %arg4[%c0_4, %c0_5] : memref<384x256xbf16, #tpu.memory_space<vmem>>, vector<384x256xbf16>
    %cst = arith.constant dense<0.000000e+00> : vector<8x256xf32>
    %6 = tpu.matmul %4, %5, %cst {dimension_numbers = #tpu.dot_dimension_numbers<[1], [0], [0], [1], [0, 0, 1, 1], [], []>} : vector<8x384xbf16>, vector<384x256xbf16>, vector<8x256xf32> -> vector<8x256xf32>
    %7 = arith.addf %3, %6 : vector<8x256xf32>
    %c0_6 = arith.constant 0 : index
    %c0_7 = arith.constant 0 : index
    %8 = vector.load %arg8[%c0_6, %c0_7] : memref<8x256xf32, #tpu.memory_space<vmem>>, vector<8x256xf32>
    tpu.vector_store %arg8[%c0_6, %c0_7], %7 {strides = array<i32>} : memref<8x256xf32, #tpu.memory_space<vmem>>, vector<8x256xf32>,
    %c2_i32 = arith.constant 2 : i32
    %9 = arith.cmpi eq, %arg2, %c2_i32 : i32
    %10 = arith.extui %9 : i1 to i32
    %c0_i32_8 = arith.constant 0 : i32
    %11 = arith.cmpi ne, %10, %c0_i32_8 : i32
    scf.if %11 {
      %c0_9 = arith.constant 0 : index
      %c0_10 = arith.constant 0 : index
      %12 = vector.load %arg8[%c0_9, %c0_10] : memref<8x256xf32, #tpu.memory_space<vmem>>, vector<8x256xf32>
      %13 = arith.truncf %12 : vector<8x256xf32> to vector<8x256xbf16>
      %c0_11 = arith.constant 0 : index
      %c0_12 = arith.constant 0 : index
      %14 = vector.load %arg5[%c0_11, %c0_12] : memref<8x256xbf16, #tpu.memory_space<vmem>>, vector<8x256xbf16>
      tpu.vector_store %arg5[%c0_11, %c0_12], %13 {strides = array<i32>} : memref<8x256xbf16, #tpu.memory_space<vmem>>, vector<8x256xbf16>,
      %cst_13 = arith.constant dense<0.000000e+00> : vector<256xf32>
      %15 = vector.multi_reduction <add>, %12, %cst_13 [0] : vector<8x256xf32> to vector<256xf32>
      %16 = vector.shape_cast %15 : vector<256xf32> to vector<1x256xf32>
      %17 = arith.mulf %12, %12 : vector<8x256xf32>
      %cst_14 = arith.constant dense<0.000000e+00> : vector<256xf32>
      %18 = vector.multi_reduction <add>, %17, %cst_14 [0] : vector<8x256xf32> to vector<256xf32>
      %19 = vector.shape_cast %18 : vector<256xf32> to vector<1x256xf32>
      %20 = vector.shape_cast %16 : vector<1x256xf32> to vector<1x256xf32>
      %21 = vector.broadcast %20 : vector<1x256xf32> to vector<8x256xf32>
      %c0_15 = arith.constant 0 : index
      %c0_16 = arith.constant 0 : index
      %22 = vector.load %arg6[%c0_15, %c0_16] : memref<8x256xf32, #tpu.memory_space<vmem>>, vector<8x256xf32>
      tpu.vector_store %arg6[%c0_15, %c0_16], %21 {strides = array<i32>} : memref<8x256xf32, #tpu.memory_space<vmem>>, vector<8x256xf32>,
      %23 = vector.shape_cast %19 : vector<1x256xf32> to vector<1x256xf32>
      %24 = vector.broadcast %23 : vector<1x256xf32> to vector<8x256xf32>
      %c0_17 = arith.constant 0 : index
      %c0_18 = arith.constant 0 : index
      %25 = vector.load %arg7[%c0_17, %c0_18] : memref<8x256xf32, #tpu.memory_space<vmem>>, vector<8x256xf32>
      tpu.vector_store %arg7[%c0_17, %c0_18], %24 {strides = array<i32>} : memref<8x256xf32, #tpu.memory_space<vmem>>, vector<8x256xf32>,
    } else {
    }
    return
  }
  func.func @transform_0(%arg0: i32, %arg1: i32, %arg2: i32) -> (i32, i32) {
    %c0_i32 = arith.constant 0 : i32
    return %arg0, %arg2 : i32, i32
  }
  func.func @transform_1(%arg0: i32, %arg1: i32, %arg2: i32) -> (i32, i32) {
    %c0_i32 = arith.constant 0 : i32
    return %arg2, %arg1 : i32, i32
  }
  func.func @transform_2(%arg0: i32, %arg1: i32, %arg2: i32) -> (i32, i32) {
    %c0_i32 = arith.constant 0 : i32
    return %arg0, %arg1 : i32, i32
  }
  func.func @transform_3(%arg0: i32, %arg1: i32, %arg2: i32) -> (i32, i32) {
    %c0_i32 = arith.constant 0 : i32
    return %arg0, %arg1 : i32, i32
  }
  func.func @transform_4(%arg0: i32, %arg1: i32, %arg2: i32) -> (i32, i32) {
    %c0_i32 = arith.constant 0 : i32
    return %arg0, %arg1 : i32, i32
  }
}

module attributes {stable_mosaic.version = 11 : i64} {
  func.func @_matmul_kernel(%arg0: i32, %arg1: i32, %arg2: i32, %arg3: memref<8x384xbf16, #tpu.memory_space<vmem>>, %arg4: memref<384x256xbf16, #tpu.memory_space<vmem>>, %arg5: memref<8x256xbf16, #tpu.memory_space<vmem>>, %arg6: memref<8x256xf32, #tpu.memory_space<vmem>>, %arg7: memref<8x256xf32, #tpu.memory_space<vmem>>, %arg8: memref<8x256xf32, #tpu.memory_space<vmem>>) attributes {dimension_semantics = [#tpu.dimension_semantics<parallel>, #tpu.dimension_semantics<parallel>, #tpu.dimension_semantics<arbitrary>], iteration_bounds = array<i64: 1, 1, 6>, scalar_prefetch = 0 : i64, scratch_operands = 1 : i64, tpu.core_type = #tpu.core_type<tc>, window_params = [{transform_indices = @transform_0, window_bounds = array<i64: 8, 384>}, {transform_indices = @transform_1, window_bounds = array<i64: 384, 256>}, {transform_indices = @transform_2, window_bounds = array<i64: 8, 256>}, {transform_indices = @transform_3, window_bounds = array<i64: 8, 256>}, {transform_indices = @transform_4, window_bounds = array<i64: 8, 256>}]} {
    %c0_i32 = arith.constant 0 : i32
    %0 = arith.cmpi eq, %arg2, %c0_i32 : i32
    %1 = arith.extui %0 : i1 to i32
    %c0_i32_0 = arith.constant 0 : i32
    %2 = arith.cmpi ne, %1, %c0_i32_0 : i32
    scf.if %2 {
      %cst_9 = arith.constant 0.000000e+00 : f32
      %12 = vector.broadcast %cst_9 : f32 to vector<8x256xf32>
      %c0_10 = arith.constant 0 : index
      %c0_11 = arith.constant 0 : index
      %13 = vector.load %arg8[%c0_10, %c0_11] : memref<8x256xf32, #tpu.memory_space<vmem>>, vector<8x256xf32>
      tpu.vector_store %arg8[%c0_10, %c0_11], %12 {strides = array<i32>} : memref<8x256xf32, #tpu.memory_space<vmem>>, vector<8x256xf32>,
    } else {
    }
    %c0 = arith.constant 0 : index
    %c0_1 = arith.constant 0 : index
    %3 = vector.load %arg8[%c0, %c0_1] : memref<8x256xf32, #tpu.memory_space<vmem>>, vector<8x256xf32>
    %c0_2 = arith.constant 0 : index
    %c0_3 = arith.constant 0 : index
    %4 = vector.load %arg3[%c0_2, %c0_3] : memref<8x384xbf16, #tpu.memory_space<vmem>>, vector<8x384xbf16>
    %c0_4 = arith.constant 0 : index
    %c0_5 = arith.constant 0 : index
    %5 = vector.load %arg4[%c0_4, %c0_5] : memref<384x256xbf16, #tpu.memory_space<vmem>>, vector<384x256xbf16>
    %cst = arith.constant dense<0.000000e+00> : vector<8x256xf32>
    %6 = tpu.matmul %4, %5, %cst {dimension_numbers = #tpu.dot_dimension_numbers<[1], [0], [0], [1], [0, 0, 1, 1], [], []>} : vector<8x384xbf16>, vector<384x256xbf16>, vector<8x256xf32> -> vector<8x256xf32>
    %7 = arith.addf %3, %6 : vector<8x256xf32>
    %c0_6 = arith.constant 0 : index
    %c0_7 = arith.constant 0 : index
    %8 = vector.load %arg8[%c0_6, %c0_7] : memref<8x256xf32, #tpu.memory_space<vmem>>, vector<8x256xf32>
    tpu.vector_store %arg8[%c0_6, %c0_7], %7 {strides = array<i32>} : memref<8x256xf32, #tpu.memory_space<vmem>>, vector<8x256xf32>,
    %c5_i32 = arith.constant 5 : i32
    %9 = arith.cmpi eq, %arg2, %c5_i32 : i32
    %10 = arith.extui %9 : i1 to i32
    %c0_i32_8 = arith.constant 0 : i32
    %11 = arith.cmpi ne, %10, %c0_i32_8 : i32
    scf.if %11 {
      %c0_9 = arith.constant 0 : index
      %c0_10 = arith.constant 0 : index
      %12 = vector.load %arg8[%c0_9, %c0_10] : memref<8x256xf32, #tpu.memory_space<vmem>>, vector<8x256xf32>
      %13 = arith.truncf %12 : vector<8x256xf32> to vector<8x256xbf16>
      %c0_11 = arith.constant 0 : index
      %c0_12 = arith.constant 0 : index
      %14 = vector.load %arg5[%c0_11, %c0_12] : memref<8x256xbf16, #tpu.memory_space<vmem>>, vector<8x256xbf16>
      tpu.vector_store %arg5[%c0_11, %c0_12], %13 {strides = array<i32>} : memref<8x256xbf16, #tpu.memory_space<vmem>>, vector<8x256xbf16>,
      %cst_13 = arith.constant dense<0.000000e+00> : vector<256xf32>
      %15 = vector.multi_reduction <add>, %12, %cst_13 [0] : vector<8x256xf32> to vector<256xf32>
      %16 = vector.shape_cast %15 : vector<256xf32> to vector<1x256xf32>
      %17 = arith.mulf %12, %12 : vector<8x256xf32>
      %cst_14 = arith.constant dense<0.000000e+00> : vector<256xf32>
      %18 = vector.multi_reduction <add>, %17, %cst_14 [0] : vector<8x256xf32> to vector<256xf32>
      %19 = vector.shape_cast %18 : vector<256xf32> to vector<1x256xf32>
      %20 = vector.shape_cast %16 : vector<1x256xf32> to vector<1x256xf32>
      %21 = vector.broadcast %20 : vector<1x256xf32> to vector<8x256xf32>
      %c0_15 = arith.constant 0 : index
      %c0_16 = arith.constant 0 : index
      %22 = vector.load %arg6[%c0_15, %c0_16] : memref<8x256xf32, #tpu.memory_space<vmem>>, vector<8x256xf32>
      tpu.vector_store %arg6[%c0_15, %c0_16], %21 {strides = array<i32>} : memref<8x256xf32, #tpu.memory_space<vmem>>, vector<8x256xf32>,
      %23 = vector.shape_cast %19 : vector<1x256xf32> to vector<1x256xf32>
      %24 = vector.broadcast %23 : vector<1x256xf32> to vector<8x256xf32>
      %c0_17 = arith.constant 0 : index
      %c0_18 = arith.constant 0 : index
      %25 = vector.load %arg7[%c0_17, %c0_18] : memref<8x256xf32, #tpu.memory_space<vmem>>, vector<8x256xf32>
      tpu.vector_store %arg7[%c0_17, %c0_18], %24 {strides = array<i32>} : memref<8x256xf32, #tpu.memory_space<vmem>>, vector<8x256xf32>,
    } else {
    }
    return
  }
  func.func @transform_0(%arg0: i32, %arg1: i32, %arg2: i32) -> (i32, i32) {
    %c0_i32 = arith.constant 0 : i32
    return %arg0, %arg2 : i32, i32
  }
  func.func @transform_1(%arg0: i32, %arg1: i32, %arg2: i32) -> (i32, i32) {
    %c0_i32 = arith.constant 0 : i32
    return %arg2, %arg1 : i32, i32
  }
  func.func @transform_2(%arg0: i32, %arg1: i32, %arg2: i32) -> (i32, i32) {
    %c0_i32 = arith.constant 0 : i32
    return %arg0, %arg1 : i32, i32
  }
  func.func @transform_3(%arg0: i32, %arg1: i32, %arg2: i32) -> (i32, i32) {
    %c0_i32 = arith.constant 0 : i32
    return %arg0, %arg1 : i32, i32
  }
  func.func @transform_4(%arg0: i32, %arg1: i32, %arg2: i32) -> (i32, i32) {
    %c0_i32 = arith.constant 0 : i32
    return %arg0, %arg1 : i32, i32
  }
}

module attributes {stable_mosaic.version = 11 : i64} {
  func.func @_bn_act_kernel(%arg0: i32, %arg1: memref<8x256xbf16, #tpu.memory_space<vmem>>, %arg2: memref<1x256xf32, #tpu.memory_space<vmem>>, %arg3: memref<1x256xf32, #tpu.memory_space<vmem>>, %arg4: memref<8x256xbf16, #tpu.memory_space<vmem>>) attributes {dimension_semantics = [#tpu.dimension_semantics<parallel>], iteration_bounds = array<i64: 1>, scalar_prefetch = 0 : i64, scratch_operands = 0 : i64, tpu.core_type = #tpu.core_type<tc>, window_params = [{transform_indices = @transform_0, window_bounds = array<i64: 8, 256>}, {pipeline_mode = #tpu.pipeline_mode<synchronous>, transform_indices = @transform_1, window_bounds = array<i64: 1, 256>}, {pipeline_mode = #tpu.pipeline_mode<synchronous>, transform_indices = @transform_2, window_bounds = array<i64: 1, 256>}, {transform_indices = @transform_3, window_bounds = array<i64: 8, 256>}]} {
    %c0 = arith.constant 0 : index
    %c0_0 = arith.constant 0 : index
    %0 = vector.load %arg1[%c0, %c0_0] : memref<8x256xbf16, #tpu.memory_space<vmem>>, vector<8x256xbf16>
    %1 = arith.extf %0 : vector<8x256xbf16> to vector<8x256xf32>
    %c0_1 = arith.constant 0 : index
    %c0_2 = arith.constant 0 : index
    %2 = vector.load %arg2[%c0_1, %c0_2] : memref<1x256xf32, #tpu.memory_space<vmem>>, vector<1x256xf32>
    %3 = vector.broadcast %2 : vector<1x256xf32> to vector<8x256xf32>
    %4 = arith.mulf %1, %3 : vector<8x256xf32>
    %c0_3 = arith.constant 0 : index
    %c0_4 = arith.constant 0 : index
    %5 = vector.load %arg3[%c0_3, %c0_4] : memref<1x256xf32, #tpu.memory_space<vmem>>, vector<1x256xf32>
    %6 = vector.broadcast %5 : vector<1x256xf32> to vector<8x256xf32>
    %7 = arith.addf %4, %6 : vector<8x256xf32>
    %8 = arith.truncf %7 : vector<8x256xf32> to vector<8x256xbf16>
    %c0_5 = arith.constant 0 : index
    %c0_6 = arith.constant 0 : index
    %9 = vector.load %arg4[%c0_5, %c0_6] : memref<8x256xbf16, #tpu.memory_space<vmem>>, vector<8x256xbf16>
    tpu.vector_store %arg4[%c0_5, %c0_6], %8 {strides = array<i32>} : memref<8x256xbf16, #tpu.memory_space<vmem>>, vector<8x256xbf16>,
    return
  }
  func.func @transform_0(%arg0: i32) -> (i32, i32) {
    %c0_i32 = arith.constant 0 : i32
    %c0_i32_0 = arith.constant 0 : i32
    return %arg0, %c0_i32 : i32, i32
  }
  func.func @transform_1(%arg0: i32) -> (i32, i32) {
    %c0_i32 = arith.constant 0 : i32
    %c0_i32_0 = arith.constant 0 : i32
    %c0_i32_1 = arith.constant 0 : i32
    return %c0_i32, %c0_i32_0 : i32, i32
  }
  func.func @transform_2(%arg0: i32) -> (i32, i32) {
    %c0_i32 = arith.constant 0 : i32
    %c0_i32_0 = arith.constant 0 : i32
    %c0_i32_1 = arith.constant 0 : i32
    return %c0_i32, %c0_i32_0 : i32, i32
  }
  func.func @transform_3(%arg0: i32) -> (i32, i32) {
    %c0_i32 = arith.constant 0 : i32
    %c0_i32_0 = arith.constant 0 : i32
    return %arg0, %c0_i32 : i32, i32
  }
}

module attributes {stable_mosaic.version = 11 : i64} {
  func.func @_matmul_kernel(%arg0: i32, %arg1: i32, %arg2: i32, %arg3: memref<8x128xbf16, #tpu.memory_space<vmem>>, %arg4: memref<128x256xbf16, #tpu.memory_space<vmem>>, %arg5: memref<8x256xbf16, #tpu.memory_space<vmem>>, %arg6: memref<8x256xf32, #tpu.memory_space<vmem>>, %arg7: memref<8x256xf32, #tpu.memory_space<vmem>>, %arg8: memref<8x256xf32, #tpu.memory_space<vmem>>) attributes {dimension_semantics = [#tpu.dimension_semantics<parallel>, #tpu.dimension_semantics<parallel>, #tpu.dimension_semantics<arbitrary>], iteration_bounds = array<i64: 1, 1, 1>, scalar_prefetch = 0 : i64, scratch_operands = 1 : i64, tpu.core_type = #tpu.core_type<tc>, window_params = [{transform_indices = @transform_0, window_bounds = array<i64: 8, 128>}, {transform_indices = @transform_1, window_bounds = array<i64: 128, 256>}, {transform_indices = @transform_2, window_bounds = array<i64: 8, 256>}, {transform_indices = @transform_3, window_bounds = array<i64: 8, 256>}, {transform_indices = @transform_4, window_bounds = array<i64: 8, 256>}]} {
    %c0_i32 = arith.constant 0 : i32
    %0 = arith.cmpi eq, %arg2, %c0_i32 : i32
    %1 = arith.extui %0 : i1 to i32
    %c0_i32_0 = arith.constant 0 : i32
    %2 = arith.cmpi ne, %1, %c0_i32_0 : i32
    scf.if %2 {
      %cst_10 = arith.constant 0.000000e+00 : f32
      %12 = vector.broadcast %cst_10 : f32 to vector<8x256xf32>
      %c0_11 = arith.constant 0 : index
      %c0_12 = arith.constant 0 : index
      %13 = vector.load %arg8[%c0_11, %c0_12] : memref<8x256xf32, #tpu.memory_space<vmem>>, vector<8x256xf32>
      tpu.vector_store %arg8[%c0_11, %c0_12], %12 {strides = array<i32>} : memref<8x256xf32, #tpu.memory_space<vmem>>, vector<8x256xf32>,
    } else {
    }
    %c0 = arith.constant 0 : index
    %c0_1 = arith.constant 0 : index
    %3 = vector.load %arg8[%c0, %c0_1] : memref<8x256xf32, #tpu.memory_space<vmem>>, vector<8x256xf32>
    %c0_2 = arith.constant 0 : index
    %c0_3 = arith.constant 0 : index
    %4 = vector.load %arg3[%c0_2, %c0_3] : memref<8x128xbf16, #tpu.memory_space<vmem>>, vector<8x128xbf16>
    %c0_4 = arith.constant 0 : index
    %c0_5 = arith.constant 0 : index
    %5 = vector.load %arg4[%c0_4, %c0_5] : memref<128x256xbf16, #tpu.memory_space<vmem>>, vector<128x256xbf16>
    %cst = arith.constant dense<0.000000e+00> : vector<8x256xf32>
    %6 = tpu.matmul %4, %5, %cst {dimension_numbers = #tpu.dot_dimension_numbers<[1], [0], [0], [1], [0, 0, 1, 1], [], []>} : vector<8x128xbf16>, vector<128x256xbf16>, vector<8x256xf32> -> vector<8x256xf32>
    %7 = arith.addf %3, %6 : vector<8x256xf32>
    %c0_6 = arith.constant 0 : index
    %c0_7 = arith.constant 0 : index
    %8 = vector.load %arg8[%c0_6, %c0_7] : memref<8x256xf32, #tpu.memory_space<vmem>>, vector<8x256xf32>
    tpu.vector_store %arg8[%c0_6, %c0_7], %7 {strides = array<i32>} : memref<8x256xf32, #tpu.memory_space<vmem>>, vector<8x256xf32>,
    %c0_i32_8 = arith.constant 0 : i32
    %9 = arith.cmpi eq, %arg2, %c0_i32_8 : i32
    %10 = arith.extui %9 : i1 to i32
    %c0_i32_9 = arith.constant 0 : i32
    %11 = arith.cmpi ne, %10, %c0_i32_9 : i32
    scf.if %11 {
      %c0_10 = arith.constant 0 : index
      %c0_11 = arith.constant 0 : index
      %12 = vector.load %arg8[%c0_10, %c0_11] : memref<8x256xf32, #tpu.memory_space<vmem>>, vector<8x256xf32>
      %13 = arith.truncf %12 : vector<8x256xf32> to vector<8x256xbf16>
      %c0_12 = arith.constant 0 : index
      %c0_13 = arith.constant 0 : index
      %14 = vector.load %arg5[%c0_12, %c0_13] : memref<8x256xbf16, #tpu.memory_space<vmem>>, vector<8x256xbf16>
      tpu.vector_store %arg5[%c0_12, %c0_13], %13 {strides = array<i32>} : memref<8x256xbf16, #tpu.memory_space<vmem>>, vector<8x256xbf16>,
      %cst_14 = arith.constant dense<0.000000e+00> : vector<256xf32>
      %15 = vector.multi_reduction <add>, %12, %cst_14 [0] : vector<8x256xf32> to vector<256xf32>
      %16 = vector.shape_cast %15 : vector<256xf32> to vector<1x256xf32>
      %17 = arith.mulf %12, %12 : vector<8x256xf32>
      %cst_15 = arith.constant dense<0.000000e+00> : vector<256xf32>
      %18 = vector.multi_reduction <add>, %17, %cst_15 [0] : vector<8x256xf32> to vector<256xf32>
      %19 = vector.shape_cast %18 : vector<256xf32> to vector<1x256xf32>
      %20 = vector.shape_cast %16 : vector<1x256xf32> to vector<1x256xf32>
      %21 = vector.broadcast %20 : vector<1x256xf32> to vector<8x256xf32>
      %c0_16 = arith.constant 0 : index
      %c0_17 = arith.constant 0 : index
      %22 = vector.load %arg6[%c0_16, %c0_17] : memref<8x256xf32, #tpu.memory_space<vmem>>, vector<8x256xf32>
      tpu.vector_store %arg6[%c0_16, %c0_17], %21 {strides = array<i32>} : memref<8x256xf32, #tpu.memory_space<vmem>>, vector<8x256xf32>,
      %23 = vector.shape_cast %19 : vector<1x256xf32> to vector<1x256xf32>
      %24 = vector.broadcast %23 : vector<1x256xf32> to vector<8x256xf32>
      %c0_18 = arith.constant 0 : index
      %c0_19 = arith.constant 0 : index
      %25 = vector.load %arg7[%c0_18, %c0_19] : memref<8x256xf32, #tpu.memory_space<vmem>>, vector<8x256xf32>
      tpu.vector_store %arg7[%c0_18, %c0_19], %24 {strides = array<i32>} : memref<8x256xf32, #tpu.memory_space<vmem>>, vector<8x256xf32>,
    } else {
    }
    return
  }
  func.func @transform_0(%arg0: i32, %arg1: i32, %arg2: i32) -> (i32, i32) {
    %c0_i32 = arith.constant 0 : i32
    return %arg0, %arg2 : i32, i32
  }
  func.func @transform_1(%arg0: i32, %arg1: i32, %arg2: i32) -> (i32, i32) {
    %c0_i32 = arith.constant 0 : i32
    return %arg2, %arg1 : i32, i32
  }
  func.func @transform_2(%arg0: i32, %arg1: i32, %arg2: i32) -> (i32, i32) {
    %c0_i32 = arith.constant 0 : i32
    return %arg0, %arg1 : i32, i32
  }
  func.func @transform_3(%arg0: i32, %arg1: i32, %arg2: i32) -> (i32, i32) {
    %c0_i32 = arith.constant 0 : i32
    return %arg0, %arg1 : i32, i32
  }
  func.func @transform_4(%arg0: i32, %arg1: i32, %arg2: i32) -> (i32, i32) {
    %c0_i32 = arith.constant 0 : i32
    return %arg0, %arg1 : i32, i32
  }
}

module attributes {stable_mosaic.version = 11 : i64} {
  func.func @_bn_act_kernel(%arg0: i32, %arg1: memref<8x256xbf16, #tpu.memory_space<vmem>>, %arg2: memref<8x256xbf16, #tpu.memory_space<vmem>>, %arg3: memref<1x256xf32, #tpu.memory_space<vmem>>, %arg4: memref<1x256xf32, #tpu.memory_space<vmem>>, %arg5: memref<8x256xbf16, #tpu.memory_space<vmem>>) attributes {dimension_semantics = [#tpu.dimension_semantics<parallel>], iteration_bounds = array<i64: 1>, scalar_prefetch = 0 : i64, scratch_operands = 0 : i64, tpu.core_type = #tpu.core_type<tc>, window_params = [{transform_indices = @transform_0, window_bounds = array<i64: 8, 256>}, {transform_indices = @transform_1, window_bounds = array<i64: 8, 256>}, {pipeline_mode = #tpu.pipeline_mode<synchronous>, transform_indices = @transform_2, window_bounds = array<i64: 1, 256>}, {pipeline_mode = #tpu.pipeline_mode<synchronous>, transform_indices = @transform_3, window_bounds = array<i64: 1, 256>}, {transform_indices = @transform_4, window_bounds = array<i64: 8, 256>}]} {
    %c0 = arith.constant 0 : index
    %c0_0 = arith.constant 0 : index
    %0 = vector.load %arg1[%c0, %c0_0] : memref<8x256xbf16, #tpu.memory_space<vmem>>, vector<8x256xbf16>
    %1 = arith.extf %0 : vector<8x256xbf16> to vector<8x256xf32>
    %c0_1 = arith.constant 0 : index
    %c0_2 = arith.constant 0 : index
    %2 = vector.load %arg3[%c0_1, %c0_2] : memref<1x256xf32, #tpu.memory_space<vmem>>, vector<1x256xf32>
    %3 = vector.broadcast %2 : vector<1x256xf32> to vector<8x256xf32>
    %4 = arith.mulf %1, %3 : vector<8x256xf32>
    %c0_3 = arith.constant 0 : index
    %c0_4 = arith.constant 0 : index
    %5 = vector.load %arg4[%c0_3, %c0_4] : memref<1x256xf32, #tpu.memory_space<vmem>>, vector<1x256xf32>
    %6 = vector.broadcast %5 : vector<1x256xf32> to vector<8x256xf32>
    %7 = arith.addf %4, %6 : vector<8x256xf32>
    %c0_5 = arith.constant 0 : index
    %c0_6 = arith.constant 0 : index
    %8 = vector.load %arg2[%c0_5, %c0_6] : memref<8x256xbf16, #tpu.memory_space<vmem>>, vector<8x256xbf16>
    %9 = arith.extf %8 : vector<8x256xbf16> to vector<8x256xf32>
    %10 = arith.addf %7, %9 : vector<8x256xf32>
    %cst = arith.constant 0.000000e+00 : f32
    %11 = vector.broadcast %cst : f32 to vector<8x256xf32>
    %12 = arith.maximumf %10, %11 : vector<8x256xf32>
    %13 = arith.truncf %12 : vector<8x256xf32> to vector<8x256xbf16>
    %c0_7 = arith.constant 0 : index
    %c0_8 = arith.constant 0 : index
    %14 = vector.load %arg5[%c0_7, %c0_8] : memref<8x256xbf16, #tpu.memory_space<vmem>>, vector<8x256xbf16>
    tpu.vector_store %arg5[%c0_7, %c0_8], %13 {strides = array<i32>} : memref<8x256xbf16, #tpu.memory_space<vmem>>, vector<8x256xbf16>,
    return
  }
  func.func @transform_0(%arg0: i32) -> (i32, i32) {
    %c0_i32 = arith.constant 0 : i32
    %c0_i32_0 = arith.constant 0 : i32
    return %arg0, %c0_i32 : i32, i32
  }
  func.func @transform_1(%arg0: i32) -> (i32, i32) {
    %c0_i32 = arith.constant 0 : i32
    %c0_i32_0 = arith.constant 0 : i32
    return %arg0, %c0_i32 : i32, i32
  }
  func.func @transform_2(%arg0: i32) -> (i32, i32) {
    %c0_i32 = arith.constant 0 : i32
    %c0_i32_0 = arith.constant 0 : i32
    %c0_i32_1 = arith.constant 0 : i32
    return %c0_i32, %c0_i32_0 : i32, i32
  }
  func.func @transform_3(%arg0: i32) -> (i32, i32) {
    %c0_i32 = arith.constant 0 : i32
    %c0_i32_0 = arith.constant 0 : i32
    %c0_i32_1 = arith.constant 0 : i32
    return %c0_i32, %c0_i32_0 : i32, i32
  }
  func.func @transform_4(%arg0: i32) -> (i32, i32) {
    %c0_i32 = arith.constant 0 : i32
    %c0_i32_0 = arith.constant 0 : i32
    return %arg0, %c0_i32 : i32, i32
  }
}

module attributes {stable_mosaic.version = 11 : i64} {
  func.func @_bn_act_kernel(%arg0: i32, %arg1: memref<8x512xbf16, #tpu.memory_space<vmem>>, %arg2: memref<1x512xf32, #tpu.memory_space<vmem>>, %arg3: memref<1x512xf32, #tpu.memory_space<vmem>>, %arg4: memref<8x512xbf16, #tpu.memory_space<vmem>>) attributes {dimension_semantics = [#tpu.dimension_semantics<parallel>], iteration_bounds = array<i64: 1>, scalar_prefetch = 0 : i64, scratch_operands = 0 : i64, tpu.core_type = #tpu.core_type<tc>, window_params = [{transform_indices = @transform_0, window_bounds = array<i64: 8, 512>}, {pipeline_mode = #tpu.pipeline_mode<synchronous>, transform_indices = @transform_1, window_bounds = array<i64: 1, 512>}, {pipeline_mode = #tpu.pipeline_mode<synchronous>, transform_indices = @transform_2, window_bounds = array<i64: 1, 512>}, {transform_indices = @transform_3, window_bounds = array<i64: 8, 512>}]} {
    %c0 = arith.constant 0 : index
    %c0_0 = arith.constant 0 : index
    %0 = vector.load %arg1[%c0, %c0_0] : memref<8x512xbf16, #tpu.memory_space<vmem>>, vector<8x512xbf16>
    %1 = arith.extf %0 : vector<8x512xbf16> to vector<8x512xf32>
    %c0_1 = arith.constant 0 : index
    %c0_2 = arith.constant 0 : index
    %2 = vector.load %arg2[%c0_1, %c0_2] : memref<1x512xf32, #tpu.memory_space<vmem>>, vector<1x512xf32>
    %3 = vector.broadcast %2 : vector<1x512xf32> to vector<8x512xf32>
    %4 = arith.mulf %1, %3 : vector<8x512xf32>
    %c0_3 = arith.constant 0 : index
    %c0_4 = arith.constant 0 : index
    %5 = vector.load %arg3[%c0_3, %c0_4] : memref<1x512xf32, #tpu.memory_space<vmem>>, vector<1x512xf32>
    %6 = vector.broadcast %5 : vector<1x512xf32> to vector<8x512xf32>
    %7 = arith.addf %4, %6 : vector<8x512xf32>
    %cst = arith.constant 0.000000e+00 : f32
    %8 = vector.broadcast %cst : f32 to vector<8x512xf32>
    %9 = arith.maximumf %7, %8 : vector<8x512xf32>
    %10 = arith.truncf %9 : vector<8x512xf32> to vector<8x512xbf16>
    %c0_5 = arith.constant 0 : index
    %c0_6 = arith.constant 0 : index
    %11 = vector.load %arg4[%c0_5, %c0_6] : memref<8x512xbf16, #tpu.memory_space<vmem>>, vector<8x512xbf16>
    tpu.vector_store %arg4[%c0_5, %c0_6], %10 {strides = array<i32>} : memref<8x512xbf16, #tpu.memory_space<vmem>>, vector<8x512xbf16>,
    return
  }
  func.func @transform_0(%arg0: i32) -> (i32, i32) {
    %c0_i32 = arith.constant 0 : i32
    %c0_i32_0 = arith.constant 0 : i32
    return %arg0, %c0_i32 : i32, i32
  }
  func.func @transform_1(%arg0: i32) -> (i32, i32) {
    %c0_i32 = arith.constant 0 : i32
    %c0_i32_0 = arith.constant 0 : i32
    %c0_i32_1 = arith.constant 0 : i32
    return %c0_i32, %c0_i32_0 : i32, i32
  }
  func.func @transform_2(%arg0: i32) -> (i32, i32) {
    %c0_i32 = arith.constant 0 : i32
    %c0_i32_0 = arith.constant 0 : i32
    %c0_i32_1 = arith.constant 0 : i32
    return %c0_i32, %c0_i32_0 : i32, i32
  }
  func.func @transform_3(%arg0: i32) -> (i32, i32) {
    %c0_i32 = arith.constant 0 : i32
    %c0_i32_0 = arith.constant 0 : i32
    return %arg0, %c0_i32 : i32, i32
  }
}

module attributes {stable_mosaic.version = 11 : i64} {
  func.func @_matmul_kernel(%arg0: i32, %arg1: i32, %arg2: i32, %arg3: memref<8x256xbf16, #tpu.memory_space<vmem>>, %arg4: memref<256x256xbf16, #tpu.memory_space<vmem>>, %arg5: memref<8x256xbf16, #tpu.memory_space<vmem>>, %arg6: memref<8x256xf32, #tpu.memory_space<vmem>>, %arg7: memref<8x256xf32, #tpu.memory_space<vmem>>, %arg8: memref<8x256xf32, #tpu.memory_space<vmem>>) attributes {dimension_semantics = [#tpu.dimension_semantics<parallel>, #tpu.dimension_semantics<parallel>, #tpu.dimension_semantics<arbitrary>], iteration_bounds = array<i64: 1, 2, 1>, scalar_prefetch = 0 : i64, scratch_operands = 1 : i64, tpu.core_type = #tpu.core_type<tc>, window_params = [{transform_indices = @transform_0, window_bounds = array<i64: 8, 256>}, {transform_indices = @transform_1, window_bounds = array<i64: 256, 256>}, {transform_indices = @transform_2, window_bounds = array<i64: 8, 256>}, {transform_indices = @transform_3, window_bounds = array<i64: 8, 256>}, {transform_indices = @transform_4, window_bounds = array<i64: 8, 256>}]} {
    %c0_i32 = arith.constant 0 : i32
    %0 = arith.cmpi eq, %arg2, %c0_i32 : i32
    %1 = arith.extui %0 : i1 to i32
    %c0_i32_0 = arith.constant 0 : i32
    %2 = arith.cmpi ne, %1, %c0_i32_0 : i32
    scf.if %2 {
      %cst_10 = arith.constant 0.000000e+00 : f32
      %12 = vector.broadcast %cst_10 : f32 to vector<8x256xf32>
      %c0_11 = arith.constant 0 : index
      %c0_12 = arith.constant 0 : index
      %13 = vector.load %arg8[%c0_11, %c0_12] : memref<8x256xf32, #tpu.memory_space<vmem>>, vector<8x256xf32>
      tpu.vector_store %arg8[%c0_11, %c0_12], %12 {strides = array<i32>} : memref<8x256xf32, #tpu.memory_space<vmem>>, vector<8x256xf32>,
    } else {
    }
    %c0 = arith.constant 0 : index
    %c0_1 = arith.constant 0 : index
    %3 = vector.load %arg8[%c0, %c0_1] : memref<8x256xf32, #tpu.memory_space<vmem>>, vector<8x256xf32>
    %c0_2 = arith.constant 0 : index
    %c0_3 = arith.constant 0 : index
    %4 = vector.load %arg3[%c0_2, %c0_3] : memref<8x256xbf16, #tpu.memory_space<vmem>>, vector<8x256xbf16>
    %c0_4 = arith.constant 0 : index
    %c0_5 = arith.constant 0 : index
    %5 = vector.load %arg4[%c0_4, %c0_5] : memref<256x256xbf16, #tpu.memory_space<vmem>>, vector<256x256xbf16>
    %cst = arith.constant dense<0.000000e+00> : vector<8x256xf32>
    %6 = tpu.matmul %4, %5, %cst {dimension_numbers = #tpu.dot_dimension_numbers<[1], [0], [0], [1], [0, 0, 1, 1], [], []>} : vector<8x256xbf16>, vector<256x256xbf16>, vector<8x256xf32> -> vector<8x256xf32>
    %7 = arith.addf %3, %6 : vector<8x256xf32>
    %c0_6 = arith.constant 0 : index
    %c0_7 = arith.constant 0 : index
    %8 = vector.load %arg8[%c0_6, %c0_7] : memref<8x256xf32, #tpu.memory_space<vmem>>, vector<8x256xf32>
    tpu.vector_store %arg8[%c0_6, %c0_7], %7 {strides = array<i32>} : memref<8x256xf32, #tpu.memory_space<vmem>>, vector<8x256xf32>,
    %c0_i32_8 = arith.constant 0 : i32
    %9 = arith.cmpi eq, %arg2, %c0_i32_8 : i32
    %10 = arith.extui %9 : i1 to i32
    %c0_i32_9 = arith.constant 0 : i32
    %11 = arith.cmpi ne, %10, %c0_i32_9 : i32
    scf.if %11 {
      %c0_10 = arith.constant 0 : index
      %c0_11 = arith.constant 0 : index
      %12 = vector.load %arg8[%c0_10, %c0_11] : memref<8x256xf32, #tpu.memory_space<vmem>>, vector<8x256xf32>
      %13 = arith.truncf %12 : vector<8x256xf32> to vector<8x256xbf16>
      %c0_12 = arith.constant 0 : index
      %c0_13 = arith.constant 0 : index
      %14 = vector.load %arg5[%c0_12, %c0_13] : memref<8x256xbf16, #tpu.memory_space<vmem>>, vector<8x256xbf16>
      tpu.vector_store %arg5[%c0_12, %c0_13], %13 {strides = array<i32>} : memref<8x256xbf16, #tpu.memory_space<vmem>>, vector<8x256xbf16>,
      %cst_14 = arith.constant dense<0.000000e+00> : vector<256xf32>
      %15 = vector.multi_reduction <add>, %12, %cst_14 [0] : vector<8x256xf32> to vector<256xf32>
      %16 = vector.shape_cast %15 : vector<256xf32> to vector<1x256xf32>
      %17 = arith.mulf %12, %12 : vector<8x256xf32>
      %cst_15 = arith.constant dense<0.000000e+00> : vector<256xf32>
      %18 = vector.multi_reduction <add>, %17, %cst_15 [0] : vector<8x256xf32> to vector<256xf32>
      %19 = vector.shape_cast %18 : vector<256xf32> to vector<1x256xf32>
      %20 = vector.shape_cast %16 : vector<1x256xf32> to vector<1x256xf32>
      %21 = vector.broadcast %20 : vector<1x256xf32> to vector<8x256xf32>
      %c0_16 = arith.constant 0 : index
      %c0_17 = arith.constant 0 : index
      %22 = vector.load %arg6[%c0_16, %c0_17] : memref<8x256xf32, #tpu.memory_space<vmem>>, vector<8x256xf32>
      tpu.vector_store %arg6[%c0_16, %c0_17], %21 {strides = array<i32>} : memref<8x256xf32, #tpu.memory_space<vmem>>, vector<8x256xf32>,
      %23 = vector.shape_cast %19 : vector<1x256xf32> to vector<1x256xf32>
      %24 = vector.broadcast %23 : vector<1x256xf32> to vector<8x256xf32>
      %c0_18 = arith.constant 0 : index
      %c0_19 = arith.constant 0 : index
      %25 = vector.load %arg7[%c0_18, %c0_19] : memref<8x256xf32, #tpu.memory_space<vmem>>, vector<8x256xf32>
      tpu.vector_store %arg7[%c0_18, %c0_19], %24 {strides = array<i32>} : memref<8x256xf32, #tpu.memory_space<vmem>>, vector<8x256xf32>,
    } else {
    }
    return
  }
  func.func @transform_0(%arg0: i32, %arg1: i32, %arg2: i32) -> (i32, i32) {
    %c0_i32 = arith.constant 0 : i32
    return %arg0, %arg2 : i32, i32
  }
  func.func @transform_1(%arg0: i32, %arg1: i32, %arg2: i32) -> (i32, i32) {
    %c0_i32 = arith.constant 0 : i32
    return %arg2, %arg1 : i32, i32
  }
  func.func @transform_2(%arg0: i32, %arg1: i32, %arg2: i32) -> (i32, i32) {
    %c0_i32 = arith.constant 0 : i32
    return %arg0, %arg1 : i32, i32
  }
  func.func @transform_3(%arg0: i32, %arg1: i32, %arg2: i32) -> (i32, i32) {
    %c0_i32 = arith.constant 0 : i32
    return %arg0, %arg1 : i32, i32
  }
  func.func @transform_4(%arg0: i32, %arg1: i32, %arg2: i32) -> (i32, i32) {
    %c0_i32 = arith.constant 0 : i32
    return %arg0, %arg1 : i32, i32
  }
}

module attributes {stable_mosaic.version = 11 : i64} {
  func.func @_matmul_kernel(%arg0: i32, %arg1: i32, %arg2: i32, %arg3: memref<8x384xbf16, #tpu.memory_space<vmem>>, %arg4: memref<384x256xbf16, #tpu.memory_space<vmem>>, %arg5: memref<8x256xbf16, #tpu.memory_space<vmem>>, %arg6: memref<8x256xf32, #tpu.memory_space<vmem>>, %arg7: memref<8x256xf32, #tpu.memory_space<vmem>>, %arg8: memref<8x256xf32, #tpu.memory_space<vmem>>) attributes {dimension_semantics = [#tpu.dimension_semantics<parallel>, #tpu.dimension_semantics<parallel>, #tpu.dimension_semantics<arbitrary>], iteration_bounds = array<i64: 1, 2, 6>, scalar_prefetch = 0 : i64, scratch_operands = 1 : i64, tpu.core_type = #tpu.core_type<tc>, window_params = [{transform_indices = @transform_0, window_bounds = array<i64: 8, 384>}, {transform_indices = @transform_1, window_bounds = array<i64: 384, 256>}, {transform_indices = @transform_2, window_bounds = array<i64: 8, 256>}, {transform_indices = @transform_3, window_bounds = array<i64: 8, 256>}, {transform_indices = @transform_4, window_bounds = array<i64: 8, 256>}]} {
    %c0_i32 = arith.constant 0 : i32
    %0 = arith.cmpi eq, %arg2, %c0_i32 : i32
    %1 = arith.extui %0 : i1 to i32
    %c0_i32_0 = arith.constant 0 : i32
    %2 = arith.cmpi ne, %1, %c0_i32_0 : i32
    scf.if %2 {
      %cst_9 = arith.constant 0.000000e+00 : f32
      %12 = vector.broadcast %cst_9 : f32 to vector<8x256xf32>
      %c0_10 = arith.constant 0 : index
      %c0_11 = arith.constant 0 : index
      %13 = vector.load %arg8[%c0_10, %c0_11] : memref<8x256xf32, #tpu.memory_space<vmem>>, vector<8x256xf32>
      tpu.vector_store %arg8[%c0_10, %c0_11], %12 {strides = array<i32>} : memref<8x256xf32, #tpu.memory_space<vmem>>, vector<8x256xf32>,
    } else {
    }
    %c0 = arith.constant 0 : index
    %c0_1 = arith.constant 0 : index
    %3 = vector.load %arg8[%c0, %c0_1] : memref<8x256xf32, #tpu.memory_space<vmem>>, vector<8x256xf32>
    %c0_2 = arith.constant 0 : index
    %c0_3 = arith.constant 0 : index
    %4 = vector.load %arg3[%c0_2, %c0_3] : memref<8x384xbf16, #tpu.memory_space<vmem>>, vector<8x384xbf16>
    %c0_4 = arith.constant 0 : index
    %c0_5 = arith.constant 0 : index
    %5 = vector.load %arg4[%c0_4, %c0_5] : memref<384x256xbf16, #tpu.memory_space<vmem>>, vector<384x256xbf16>
    %cst = arith.constant dense<0.000000e+00> : vector<8x256xf32>
    %6 = tpu.matmul %4, %5, %cst {dimension_numbers = #tpu.dot_dimension_numbers<[1], [0], [0], [1], [0, 0, 1, 1], [], []>} : vector<8x384xbf16>, vector<384x256xbf16>, vector<8x256xf32> -> vector<8x256xf32>
    %7 = arith.addf %3, %6 : vector<8x256xf32>
    %c0_6 = arith.constant 0 : index
    %c0_7 = arith.constant 0 : index
    %8 = vector.load %arg8[%c0_6, %c0_7] : memref<8x256xf32, #tpu.memory_space<vmem>>, vector<8x256xf32>
    tpu.vector_store %arg8[%c0_6, %c0_7], %7 {strides = array<i32>} : memref<8x256xf32, #tpu.memory_space<vmem>>, vector<8x256xf32>,
    %c5_i32 = arith.constant 5 : i32
    %9 = arith.cmpi eq, %arg2, %c5_i32 : i32
    %10 = arith.extui %9 : i1 to i32
    %c0_i32_8 = arith.constant 0 : i32
    %11 = arith.cmpi ne, %10, %c0_i32_8 : i32
    scf.if %11 {
      %c0_9 = arith.constant 0 : index
      %c0_10 = arith.constant 0 : index
      %12 = vector.load %arg8[%c0_9, %c0_10] : memref<8x256xf32, #tpu.memory_space<vmem>>, vector<8x256xf32>
      %13 = arith.truncf %12 : vector<8x256xf32> to vector<8x256xbf16>
      %c0_11 = arith.constant 0 : index
      %c0_12 = arith.constant 0 : index
      %14 = vector.load %arg5[%c0_11, %c0_12] : memref<8x256xbf16, #tpu.memory_space<vmem>>, vector<8x256xbf16>
      tpu.vector_store %arg5[%c0_11, %c0_12], %13 {strides = array<i32>} : memref<8x256xbf16, #tpu.memory_space<vmem>>, vector<8x256xbf16>,
      %cst_13 = arith.constant dense<0.000000e+00> : vector<256xf32>
      %15 = vector.multi_reduction <add>, %12, %cst_13 [0] : vector<8x256xf32> to vector<256xf32>
      %16 = vector.shape_cast %15 : vector<256xf32> to vector<1x256xf32>
      %17 = arith.mulf %12, %12 : vector<8x256xf32>
      %cst_14 = arith.constant dense<0.000000e+00> : vector<256xf32>
      %18 = vector.multi_reduction <add>, %17, %cst_14 [0] : vector<8x256xf32> to vector<256xf32>
      %19 = vector.shape_cast %18 : vector<256xf32> to vector<1x256xf32>
      %20 = vector.shape_cast %16 : vector<1x256xf32> to vector<1x256xf32>
      %21 = vector.broadcast %20 : vector<1x256xf32> to vector<8x256xf32>
      %c0_15 = arith.constant 0 : index
      %c0_16 = arith.constant 0 : index
      %22 = vector.load %arg6[%c0_15, %c0_16] : memref<8x256xf32, #tpu.memory_space<vmem>>, vector<8x256xf32>
      tpu.vector_store %arg6[%c0_15, %c0_16], %21 {strides = array<i32>} : memref<8x256xf32, #tpu.memory_space<vmem>>, vector<8x256xf32>,
      %23 = vector.shape_cast %19 : vector<1x256xf32> to vector<1x256xf32>
      %24 = vector.broadcast %23 : vector<1x256xf32> to vector<8x256xf32>
      %c0_17 = arith.constant 0 : index
      %c0_18 = arith.constant 0 : index
      %25 = vector.load %arg7[%c0_17, %c0_18] : memref<8x256xf32, #tpu.memory_space<vmem>>, vector<8x256xf32>
      tpu.vector_store %arg7[%c0_17, %c0_18], %24 {strides = array<i32>} : memref<8x256xf32, #tpu.memory_space<vmem>>, vector<8x256xf32>,
    } else {
    }
    return
  }
  func.func @transform_0(%arg0: i32, %arg1: i32, %arg2: i32) -> (i32, i32) {
    %c0_i32 = arith.constant 0 : i32
    return %arg0, %arg2 : i32, i32
  }
  func.func @transform_1(%arg0: i32, %arg1: i32, %arg2: i32) -> (i32, i32) {
    %c0_i32 = arith.constant 0 : i32
    return %arg2, %arg1 : i32, i32
  }
  func.func @transform_2(%arg0: i32, %arg1: i32, %arg2: i32) -> (i32, i32) {
    %c0_i32 = arith.constant 0 : i32
    return %arg0, %arg1 : i32, i32
  }
  func.func @transform_3(%arg0: i32, %arg1: i32, %arg2: i32) -> (i32, i32) {
    %c0_i32 = arith.constant 0 : i32
    return %arg0, %arg1 : i32, i32
  }
  func.func @transform_4(%arg0: i32, %arg1: i32, %arg2: i32) -> (i32, i32) {
    %c0_i32 = arith.constant 0 : i32
    return %arg0, %arg1 : i32, i32
  }
}

module attributes {stable_mosaic.version = 11 : i64} {
  func.func @_matmul_kernel(%arg0: i32, %arg1: i32, %arg2: i32, %arg3: memref<8x512xbf16, #tpu.memory_space<vmem>>, %arg4: memref<512x256xbf16, #tpu.memory_space<vmem>>, %arg5: memref<8x256xbf16, #tpu.memory_space<vmem>>, %arg6: memref<8x256xf32, #tpu.memory_space<vmem>>, %arg7: memref<8x256xf32, #tpu.memory_space<vmem>>, %arg8: memref<8x256xf32, #tpu.memory_space<vmem>>) attributes {dimension_semantics = [#tpu.dimension_semantics<parallel>, #tpu.dimension_semantics<parallel>, #tpu.dimension_semantics<arbitrary>], iteration_bounds = array<i64: 1, 2, 9>, scalar_prefetch = 0 : i64, scratch_operands = 1 : i64, tpu.core_type = #tpu.core_type<tc>, window_params = [{transform_indices = @transform_0, window_bounds = array<i64: 8, 512>}, {transform_indices = @transform_1, window_bounds = array<i64: 512, 256>}, {transform_indices = @transform_2, window_bounds = array<i64: 8, 256>}, {transform_indices = @transform_3, window_bounds = array<i64: 8, 256>}, {transform_indices = @transform_4, window_bounds = array<i64: 8, 256>}]} {
    %c0_i32 = arith.constant 0 : i32
    %0 = arith.cmpi eq, %arg2, %c0_i32 : i32
    %1 = arith.extui %0 : i1 to i32
    %c0_i32_0 = arith.constant 0 : i32
    %2 = arith.cmpi ne, %1, %c0_i32_0 : i32
    scf.if %2 {
      %cst_9 = arith.constant 0.000000e+00 : f32
      %12 = vector.broadcast %cst_9 : f32 to vector<8x256xf32>
      %c0_10 = arith.constant 0 : index
      %c0_11 = arith.constant 0 : index
      %13 = vector.load %arg8[%c0_10, %c0_11] : memref<8x256xf32, #tpu.memory_space<vmem>>, vector<8x256xf32>
      tpu.vector_store %arg8[%c0_10, %c0_11], %12 {strides = array<i32>} : memref<8x256xf32, #tpu.memory_space<vmem>>, vector<8x256xf32>,
    } else {
    }
    %c0 = arith.constant 0 : index
    %c0_1 = arith.constant 0 : index
    %3 = vector.load %arg8[%c0, %c0_1] : memref<8x256xf32, #tpu.memory_space<vmem>>, vector<8x256xf32>
    %c0_2 = arith.constant 0 : index
    %c0_3 = arith.constant 0 : index
    %4 = vector.load %arg3[%c0_2, %c0_3] : memref<8x512xbf16, #tpu.memory_space<vmem>>, vector<8x512xbf16>
    %c0_4 = arith.constant 0 : index
    %c0_5 = arith.constant 0 : index
    %5 = vector.load %arg4[%c0_4, %c0_5] : memref<512x256xbf16, #tpu.memory_space<vmem>>, vector<512x256xbf16>
    %cst = arith.constant dense<0.000000e+00> : vector<8x256xf32>
    %6 = tpu.matmul %4, %5, %cst {dimension_numbers = #tpu.dot_dimension_numbers<[1], [0], [0], [1], [0, 0, 1, 1], [], []>} : vector<8x512xbf16>, vector<512x256xbf16>, vector<8x256xf32> -> vector<8x256xf32>
    %7 = arith.addf %3, %6 : vector<8x256xf32>
    %c0_6 = arith.constant 0 : index
    %c0_7 = arith.constant 0 : index
    %8 = vector.load %arg8[%c0_6, %c0_7] : memref<8x256xf32, #tpu.memory_space<vmem>>, vector<8x256xf32>
    tpu.vector_store %arg8[%c0_6, %c0_7], %7 {strides = array<i32>} : memref<8x256xf32, #tpu.memory_space<vmem>>, vector<8x256xf32>,
    %c8_i32 = arith.constant 8 : i32
    %9 = arith.cmpi eq, %arg2, %c8_i32 : i32
    %10 = arith.extui %9 : i1 to i32
    %c0_i32_8 = arith.constant 0 : i32
    %11 = arith.cmpi ne, %10, %c0_i32_8 : i32
    scf.if %11 {
      %c0_9 = arith.constant 0 : index
      %c0_10 = arith.constant 0 : index
      %12 = vector.load %arg8[%c0_9, %c0_10] : memref<8x256xf32, #tpu.memory_space<vmem>>, vector<8x256xf32>
      %13 = arith.truncf %12 : vector<8x256xf32> to vector<8x256xbf16>
      %c0_11 = arith.constant 0 : index
      %c0_12 = arith.constant 0 : index
      %14 = vector.load %arg5[%c0_11, %c0_12] : memref<8x256xbf16, #tpu.memory_space<vmem>>, vector<8x256xbf16>
      tpu.vector_store %arg5[%c0_11, %c0_12], %13 {strides = array<i32>} : memref<8x256xbf16, #tpu.memory_space<vmem>>, vector<8x256xbf16>,
      %cst_13 = arith.constant dense<0.000000e+00> : vector<256xf32>
      %15 = vector.multi_reduction <add>, %12, %cst_13 [0] : vector<8x256xf32> to vector<256xf32>
      %16 = vector.shape_cast %15 : vector<256xf32> to vector<1x256xf32>
      %17 = arith.mulf %12, %12 : vector<8x256xf32>
      %cst_14 = arith.constant dense<0.000000e+00> : vector<256xf32>
      %18 = vector.multi_reduction <add>, %17, %cst_14 [0] : vector<8x256xf32> to vector<256xf32>
      %19 = vector.shape_cast %18 : vector<256xf32> to vector<1x256xf32>
      %20 = vector.shape_cast %16 : vector<1x256xf32> to vector<1x256xf32>
      %21 = vector.broadcast %20 : vector<1x256xf32> to vector<8x256xf32>
      %c0_15 = arith.constant 0 : index
      %c0_16 = arith.constant 0 : index
      %22 = vector.load %arg6[%c0_15, %c0_16] : memref<8x256xf32, #tpu.memory_space<vmem>>, vector<8x256xf32>
      tpu.vector_store %arg6[%c0_15, %c0_16], %21 {strides = array<i32>} : memref<8x256xf32, #tpu.memory_space<vmem>>, vector<8x256xf32>,
      %23 = vector.shape_cast %19 : vector<1x256xf32> to vector<1x256xf32>
      %24 = vector.broadcast %23 : vector<1x256xf32> to vector<8x256xf32>
      %c0_17 = arith.constant 0 : index
      %c0_18 = arith.constant 0 : index
      %25 = vector.load %arg7[%c0_17, %c0_18] : memref<8x256xf32, #tpu.memory_space<vmem>>, vector<8x256xf32>
      tpu.vector_store %arg7[%c0_17, %c0_18], %24 {strides = array<i32>} : memref<8x256xf32, #tpu.memory_space<vmem>>, vector<8x256xf32>,
    } else {
    }
    return
  }
  func.func @transform_0(%arg0: i32, %arg1: i32, %arg2: i32) -> (i32, i32) {
    %c0_i32 = arith.constant 0 : i32
    return %arg0, %arg2 : i32, i32
  }
  func.func @transform_1(%arg0: i32, %arg1: i32, %arg2: i32) -> (i32, i32) {
    %c0_i32 = arith.constant 0 : i32
    return %arg2, %arg1 : i32, i32
  }
  func.func @transform_2(%arg0: i32, %arg1: i32, %arg2: i32) -> (i32, i32) {
    %c0_i32 = arith.constant 0 : i32
    return %arg0, %arg1 : i32, i32
  }
  func.func @transform_3(%arg0: i32, %arg1: i32, %arg2: i32) -> (i32, i32) {
    %c0_i32 = arith.constant 0 : i32
    return %arg0, %arg1 : i32, i32
  }
  func.func @transform_4(%arg0: i32, %arg1: i32, %arg2: i32) -> (i32, i32) {
    %c0_i32 = arith.constant 0 : i32
    return %arg0, %arg1 : i32, i32
  }
}

module attributes {stable_mosaic.version = 11 : i64} {
  func.func @_bn_act_kernel(%arg0: i32, %arg1: memref<8x512xbf16, #tpu.memory_space<vmem>>, %arg2: memref<1x512xf32, #tpu.memory_space<vmem>>, %arg3: memref<1x512xf32, #tpu.memory_space<vmem>>, %arg4: memref<8x512xbf16, #tpu.memory_space<vmem>>) attributes {dimension_semantics = [#tpu.dimension_semantics<parallel>], iteration_bounds = array<i64: 1>, scalar_prefetch = 0 : i64, scratch_operands = 0 : i64, tpu.core_type = #tpu.core_type<tc>, window_params = [{transform_indices = @transform_0, window_bounds = array<i64: 8, 512>}, {pipeline_mode = #tpu.pipeline_mode<synchronous>, transform_indices = @transform_1, window_bounds = array<i64: 1, 512>}, {pipeline_mode = #tpu.pipeline_mode<synchronous>, transform_indices = @transform_2, window_bounds = array<i64: 1, 512>}, {transform_indices = @transform_3, window_bounds = array<i64: 8, 512>}]} {
    %c0 = arith.constant 0 : index
    %c0_0 = arith.constant 0 : index
    %0 = vector.load %arg1[%c0, %c0_0] : memref<8x512xbf16, #tpu.memory_space<vmem>>, vector<8x512xbf16>
    %1 = arith.extf %0 : vector<8x512xbf16> to vector<8x512xf32>
    %c0_1 = arith.constant 0 : index
    %c0_2 = arith.constant 0 : index
    %2 = vector.load %arg2[%c0_1, %c0_2] : memref<1x512xf32, #tpu.memory_space<vmem>>, vector<1x512xf32>
    %3 = vector.broadcast %2 : vector<1x512xf32> to vector<8x512xf32>
    %4 = arith.mulf %1, %3 : vector<8x512xf32>
    %c0_3 = arith.constant 0 : index
    %c0_4 = arith.constant 0 : index
    %5 = vector.load %arg3[%c0_3, %c0_4] : memref<1x512xf32, #tpu.memory_space<vmem>>, vector<1x512xf32>
    %6 = vector.broadcast %5 : vector<1x512xf32> to vector<8x512xf32>
    %7 = arith.addf %4, %6 : vector<8x512xf32>
    %8 = arith.truncf %7 : vector<8x512xf32> to vector<8x512xbf16>
    %c0_5 = arith.constant 0 : index
    %c0_6 = arith.constant 0 : index
    %9 = vector.load %arg4[%c0_5, %c0_6] : memref<8x512xbf16, #tpu.memory_space<vmem>>, vector<8x512xbf16>
    tpu.vector_store %arg4[%c0_5, %c0_6], %8 {strides = array<i32>} : memref<8x512xbf16, #tpu.memory_space<vmem>>, vector<8x512xbf16>,
    return
  }
  func.func @transform_0(%arg0: i32) -> (i32, i32) {
    %c0_i32 = arith.constant 0 : i32
    %c0_i32_0 = arith.constant 0 : i32
    return %arg0, %c0_i32 : i32, i32
  }
  func.func @transform_1(%arg0: i32) -> (i32, i32) {
    %c0_i32 = arith.constant 0 : i32
    %c0_i32_0 = arith.constant 0 : i32
    %c0_i32_1 = arith.constant 0 : i32
    return %c0_i32, %c0_i32_0 : i32, i32
  }
  func.func @transform_2(%arg0: i32) -> (i32, i32) {
    %c0_i32 = arith.constant 0 : i32
    %c0_i32_0 = arith.constant 0 : i32
    %c0_i32_1 = arith.constant 0 : i32
    return %c0_i32, %c0_i32_0 : i32, i32
  }
  func.func @transform_3(%arg0: i32) -> (i32, i32) {
    %c0_i32 = arith.constant 0 : i32
    %c0_i32_0 = arith.constant 0 : i32
    return %arg0, %c0_i32 : i32, i32
  }
}

module attributes {stable_mosaic.version = 11 : i64} {
  func.func @_matmul_kernel(%arg0: i32, %arg1: i32, %arg2: i32, %arg3: memref<8x512xbf16, #tpu.memory_space<vmem>>, %arg4: memref<512x256xbf16, #tpu.memory_space<vmem>>, %arg5: memref<1x256xf32, #tpu.memory_space<vmem>>, %arg6: memref<8x256xf32, #tpu.memory_space<vmem>>, %arg7: memref<8x256xf32, #tpu.memory_space<vmem>>) attributes {dimension_semantics = [#tpu.dimension_semantics<parallel>, #tpu.dimension_semantics<parallel>, #tpu.dimension_semantics<arbitrary>], iteration_bounds = array<i64: 1, 1, 1>, scalar_prefetch = 0 : i64, scratch_operands = 1 : i64, tpu.core_type = #tpu.core_type<tc>, window_params = [{transform_indices = @transform_0, window_bounds = array<i64: 8, 512>}, {transform_indices = @transform_1, window_bounds = array<i64: 512, 256>}, {transform_indices = @transform_2, window_bounds = array<i64: 1, 256>}, {transform_indices = @transform_3, window_bounds = array<i64: 8, 256>}]} {
    %c0_i32 = arith.constant 0 : i32
    %0 = arith.cmpi eq, %arg2, %c0_i32 : i32
    %1 = arith.extui %0 : i1 to i32
    %c0_i32_0 = arith.constant 0 : i32
    %2 = arith.cmpi ne, %1, %c0_i32_0 : i32
    scf.if %2 {
      %cst_10 = arith.constant 0.000000e+00 : f32
      %12 = vector.broadcast %cst_10 : f32 to vector<8x256xf32>
      %c0_11 = arith.constant 0 : index
      %c0_12 = arith.constant 0 : index
      %13 = vector.load %arg7[%c0_11, %c0_12] : memref<8x256xf32, #tpu.memory_space<vmem>>, vector<8x256xf32>
      tpu.vector_store %arg7[%c0_11, %c0_12], %12 {strides = array<i32>} : memref<8x256xf32, #tpu.memory_space<vmem>>, vector<8x256xf32>,
    } else {
    }
    %c0 = arith.constant 0 : index
    %c0_1 = arith.constant 0 : index
    %3 = vector.load %arg7[%c0, %c0_1] : memref<8x256xf32, #tpu.memory_space<vmem>>, vector<8x256xf32>
    %c0_2 = arith.constant 0 : index
    %c0_3 = arith.constant 0 : index
    %4 = vector.load %arg3[%c0_2, %c0_3] : memref<8x512xbf16, #tpu.memory_space<vmem>>, vector<8x512xbf16>
    %c0_4 = arith.constant 0 : index
    %c0_5 = arith.constant 0 : index
    %5 = vector.load %arg4[%c0_4, %c0_5] : memref<512x256xbf16, #tpu.memory_space<vmem>>, vector<512x256xbf16>
    %cst = arith.constant dense<0.000000e+00> : vector<8x256xf32>
    %6 = tpu.matmul %4, %5, %cst {dimension_numbers = #tpu.dot_dimension_numbers<[1], [0], [0], [1], [0, 0, 1, 1], [], []>} : vector<8x512xbf16>, vector<512x256xbf16>, vector<8x256xf32> -> vector<8x256xf32>
    %7 = arith.addf %3, %6 : vector<8x256xf32>
    %c0_6 = arith.constant 0 : index
    %c0_7 = arith.constant 0 : index
    %8 = vector.load %arg7[%c0_6, %c0_7] : memref<8x256xf32, #tpu.memory_space<vmem>>, vector<8x256xf32>
    tpu.vector_store %arg7[%c0_6, %c0_7], %7 {strides = array<i32>} : memref<8x256xf32, #tpu.memory_space<vmem>>, vector<8x256xf32>,
    %c0_i32_8 = arith.constant 0 : i32
    %9 = arith.cmpi eq, %arg2, %c0_i32_8 : i32
    %10 = arith.extui %9 : i1 to i32
    %c0_i32_9 = arith.constant 0 : i32
    %11 = arith.cmpi ne, %10, %c0_i32_9 : i32
    scf.if %11 {
      %c0_10 = arith.constant 0 : index
      %c0_11 = arith.constant 0 : index
      %12 = vector.load %arg7[%c0_10, %c0_11] : memref<8x256xf32, #tpu.memory_space<vmem>>, vector<8x256xf32>
      %c0_12 = arith.constant 0 : index
      %c0_13 = arith.constant 0 : index
      %13 = vector.load %arg5[%c0_12, %c0_13] : memref<1x256xf32, #tpu.memory_space<vmem>>, vector<1x256xf32>
      %14 = vector.broadcast %13 : vector<1x256xf32> to vector<8x256xf32>
      %15 = arith.addf %12, %14 : vector<8x256xf32>
      %cst_14 = arith.constant 0.000000e+00 : f32
      %16 = vector.broadcast %cst_14 : f32 to vector<8x256xf32>
      %17 = arith.maximumf %15, %16 : vector<8x256xf32>
      %c0_15 = arith.constant 0 : index
      %c0_16 = arith.constant 0 : index
      %18 = vector.load %arg6[%c0_15, %c0_16] : memref<8x256xf32, #tpu.memory_space<vmem>>, vector<8x256xf32>
      tpu.vector_store %arg6[%c0_15, %c0_16], %17 {strides = array<i32>} : memref<8x256xf32, #tpu.memory_space<vmem>>, vector<8x256xf32>,
    } else {
    }
    return
  }
  func.func @transform_0(%arg0: i32, %arg1: i32, %arg2: i32) -> (i32, i32) {
    %c0_i32 = arith.constant 0 : i32
    return %arg0, %arg2 : i32, i32
  }
  func.func @transform_1(%arg0: i32, %arg1: i32, %arg2: i32) -> (i32, i32) {
    %c0_i32 = arith.constant 0 : i32
    return %arg2, %arg1 : i32, i32
  }
  func.func @transform_2(%arg0: i32, %arg1: i32, %arg2: i32) -> (i32, i32) {
    %c0_i32 = arith.constant 0 : i32
    %c0_i32_0 = arith.constant 0 : i32
    return %c0_i32, %arg1 : i32, i32
  }
  func.func @transform_3(%arg0: i32, %arg1: i32, %arg2: i32) -> (i32, i32) {
    %c0_i32 = arith.constant 0 : i32
    return %arg0, %arg1 : i32, i32
  }
}

module attributes {stable_mosaic.version = 11 : i64} {
  func.func @_bn_act_kernel(%arg0: i32, %arg1: memref<8x512xbf16, #tpu.memory_space<vmem>>, %arg2: memref<8x512xbf16, #tpu.memory_space<vmem>>, %arg3: memref<1x512xf32, #tpu.memory_space<vmem>>, %arg4: memref<1x512xf32, #tpu.memory_space<vmem>>, %arg5: memref<8x512xbf16, #tpu.memory_space<vmem>>) attributes {dimension_semantics = [#tpu.dimension_semantics<parallel>], iteration_bounds = array<i64: 1>, scalar_prefetch = 0 : i64, scratch_operands = 0 : i64, tpu.core_type = #tpu.core_type<tc>, window_params = [{transform_indices = @transform_0, window_bounds = array<i64: 8, 512>}, {transform_indices = @transform_1, window_bounds = array<i64: 8, 512>}, {pipeline_mode = #tpu.pipeline_mode<synchronous>, transform_indices = @transform_2, window_bounds = array<i64: 1, 512>}, {pipeline_mode = #tpu.pipeline_mode<synchronous>, transform_indices = @transform_3, window_bounds = array<i64: 1, 512>}, {transform_indices = @transform_4, window_bounds = array<i64: 8, 512>}]} {
    %c0 = arith.constant 0 : index
    %c0_0 = arith.constant 0 : index
    %0 = vector.load %arg1[%c0, %c0_0] : memref<8x512xbf16, #tpu.memory_space<vmem>>, vector<8x512xbf16>
    %1 = arith.extf %0 : vector<8x512xbf16> to vector<8x512xf32>
    %c0_1 = arith.constant 0 : index
    %c0_2 = arith.constant 0 : index
    %2 = vector.load %arg3[%c0_1, %c0_2] : memref<1x512xf32, #tpu.memory_space<vmem>>, vector<1x512xf32>
    %3 = vector.broadcast %2 : vector<1x512xf32> to vector<8x512xf32>
    %4 = arith.mulf %1, %3 : vector<8x512xf32>
    %c0_3 = arith.constant 0 : index
    %c0_4 = arith.constant 0 : index
    %5 = vector.load %arg4[%c0_3, %c0_4] : memref<1x512xf32, #tpu.memory_space<vmem>>, vector<1x512xf32>
    %6 = vector.broadcast %5 : vector<1x512xf32> to vector<8x512xf32>
    %7 = arith.addf %4, %6 : vector<8x512xf32>
    %c0_5 = arith.constant 0 : index
    %c0_6 = arith.constant 0 : index
    %8 = vector.load %arg2[%c0_5, %c0_6] : memref<8x512xbf16, #tpu.memory_space<vmem>>, vector<8x512xbf16>
    %9 = arith.extf %8 : vector<8x512xbf16> to vector<8x512xf32>
    %10 = arith.addf %7, %9 : vector<8x512xf32>
    %cst = arith.constant 0.000000e+00 : f32
    %11 = vector.broadcast %cst : f32 to vector<8x512xf32>
    %12 = arith.maximumf %10, %11 : vector<8x512xf32>
    %13 = arith.truncf %12 : vector<8x512xf32> to vector<8x512xbf16>
    %c0_7 = arith.constant 0 : index
    %c0_8 = arith.constant 0 : index
    %14 = vector.load %arg5[%c0_7, %c0_8] : memref<8x512xbf16, #tpu.memory_space<vmem>>, vector<8x512xbf16>
    tpu.vector_store %arg5[%c0_7, %c0_8], %13 {strides = array<i32>} : memref<8x512xbf16, #tpu.memory_space<vmem>>, vector<8x512xbf16>,
    return
  }
  func.func @transform_0(%arg0: i32) -> (i32, i32) {
    %c0_i32 = arith.constant 0 : i32
    %c0_i32_0 = arith.constant 0 : i32
    return %arg0, %c0_i32 : i32, i32
  }
  func.func @transform_1(%arg0: i32) -> (i32, i32) {
    %c0_i32 = arith.constant 0 : i32
    %c0_i32_0 = arith.constant 0 : i32
    return %arg0, %c0_i32 : i32, i32
  }
  func.func @transform_2(%arg0: i32) -> (i32, i32) {
    %c0_i32 = arith.constant 0 : i32
    %c0_i32_0 = arith.constant 0 : i32
    %c0_i32_1 = arith.constant 0 : i32
    return %c0_i32, %c0_i32_0 : i32, i32
  }
  func.func @transform_3(%arg0: i32) -> (i32, i32) {
    %c0_i32 = arith.constant 0 : i32
    %c0_i32_0 = arith.constant 0 : i32
    %c0_i32_1 = arith.constant 0 : i32
    return %c0_i32, %c0_i32_0 : i32, i32
  }
  func.func @transform_4(%arg0: i32) -> (i32, i32) {
    %c0_i32 = arith.constant 0 : i32
    %c0_i32_0 = arith.constant 0 : i32
    return %arg0, %c0_i32 : i32, i32
  }
}

</mosaic_0001>

<bundles_post_ra>
// kernel: tile.53
= control target key start
LH: loop header
LB: loop body
LE: loop exit
PB: predicated region body
PF: predicated region fallthrough
CT: control target
= control target key end

     0   :  { %s22_s0 = inlined_call_operand.vmem [shape: f32[64], index: 0, kind: input, shape index: {}]   ;;  %s23_s1 = inlined_call_operand.vmem [shape: f32[2,64], index: 1, kind: output, shape index: {}]  }
   0x1   :  { %v4_v0 = vld [vmem:[%s22_s0] ss:$0 sm:$0xff] }
   0x2   :  { %5 = vst [vmem:[%s23_s1] sm:$0x3] %v4_v0 }

// kernel: tile.58
= control target key start
LH: loop header
LB: loop body
LE: loop exit
PB: predicated region body
PF: predicated region fallthrough
CT: control target
= control target key end

     0   :  { %vm7_vm0 = vcmask 523264   ;;  %vm13_vm1 = vcmask 1048064   ;;  %s39_s0 = inlined_call_operand.vmem [shape: f32[2,64], index: 0, kind: input, shape index: {}]   ;;  %s40_s1 = inlined_call_operand.vmem [shape: f32[1,128], index: 1, kind: output, shape index: {}]  }
   0x1   :  { %v4_v0 = vld [vmem:[%s39_s0] sm:$0x3]  ;;  %s22_s0 = smov 64  }
   0x2   :  { %5 = vst [vmem:[#allocation1] sm:$0x3] %v4_v0 }
   0x9   :  { %v10_v1 = vld [vmem:[#allocation1 + $0x1] sm:$0x1]   ;;  %v6_v2 = vld [vmem:[#allocation1] sm:$0x1]  }
   0xa   :  { %11 = vrot.lane.b32.xlu0 %v10_v1, %s22_s0  ;;  %8 = vst.msk [vmem:[#allocation0] sm:$0x1] %vm7_vm0, %v6_v2  }
  0x7c   :  { %v12_v3 = vpop.permute.xlu0 %11  }
  0x7d   :  { %14 = vst.msk [vmem:[#allocation0] sm:$0x1] %vm13_vm1, %v12_v3  }
  0x84   :  { %v18_v4 = vld [vmem:[#allocation0] sm:$0x1] }
  0x85   :  { %20 = vst [vmem:[%s40_s1] sm:$0x1] %v18_v4 }

// kernel: feature_extractor_forward.42
= control target key start
LH: loop header
LB: loop body
LE: loop exit
PB: predicated region body
PF: predicated region fallthrough
CT: control target
= control target key end

     0   :  { %s782_s0 = inlined_call_operand.vmem [shape: bf16[256,128], index: 0, kind: input, shape index: {}]   ;;  %s783_s1 = inlined_call_operand.vmem [shape: f32[1,128], index: 1, kind: input, shape index: {}]   ;;  %s784_s2 = inlined_call_operand.vmem [shape: f32[1,128], index: 2, kind: input, shape index: {}]   ;;  %s785_s3 = inlined_call_operand.vmem [shape: bf16[256,128], index: 3, kind: output, shape index: {}]  }
   0x1   :  { %v419_v0 = vld [vmem:[%s782_s0] sm:$0xff]   ;;  %v562_v4 = vld [vmem:[%s782_s0 + $0x8] sm:$0xff]   ;;  %v563_v5 = vld [vmem:[%s782_s0 + $0x10] sm:$0xff]  }
   0x2   :  { %v618_v1 = vld [vmem:[%s783_s1] ss:$0 sm:$0xff]  ;;  %v420_v2 = vunpack.c.l.bf16 %v419_v0  ;;  %v421_v3 = vunpack.c.h.bf16 %v419_v0  ;;  %v564_v6 = vld [vmem:[%s782_s0 + $0x18] sm:$0xff]   ;;  %v424_v8 = vunpack.c.l.bf16 %v562_v4  ;;  %v425_v9 = vunpack.c.h.bf16 %v562_v4  ;;  %v566_v33 = vld [vmem:[%s782_s0 + $0x28] sm:$0xff]  }
   0x3   :  { %v632_v7 = vld [vmem:[%s784_s2] ss:$0 sm:$0xff]  ;;  %v428_v10 = vunpack.c.l.bf16 %v563_v5  ;;  %v429_v11 = vunpack.c.h.bf16 %v563_v5  ;;  %v432_v14 = vunpack.c.l.bf16 %v564_v6  ;;  %v433_v15 = vunpack.c.h.bf16 %v564_v6  ;;  %v567_v38 = vld [vmem:[%s782_s0 + $0x30] sm:$0xff]   ;;  %v568_v43 = vld [vmem:[%s782_s0 + $0x38] sm:$0xff]  }
   0x4   :  { %v85_v12 = vmul.f32 %v420_v2, %v618_v1  ;;  %v86_v13 = vmul.f32 %v421_v3, %v618_v1  ;;  %v87_v16 = vmul.f32 %v424_v8, %v618_v1  ;;  %v88_v17 = vmul.f32 %v425_v9, %v618_v1  ;;  %v565_v28 = vld [vmem:[%s782_s0 + $0x20] sm:$0xff]  }
   0x5   :  { %v89_v18 = vmul.f32 %v428_v10, %v618_v1  ;;  %v90_v19 = vmul.f32 %v429_v11, %v618_v1  ;;  %v91_v22 = vmul.f32 %v432_v14, %v618_v1  ;;  %v92_v23 = vmul.f32 %v433_v15, %v618_v1  ;;  %v569_v0 = vld [vmem:[%s782_s0 + $0x40] sm:$0xff]   ;;  %v570_v11 = vld [vmem:[%s782_s0 + $0x48] sm:$0xff]  }
   0x6   :  { %v124_v20 = vadd.f32 %v632_v7, %v85_v12  ;;  %v125_v21 = vadd.f32 %v632_v7, %v86_v13  ;;  %v126_v24 = vadd.f32 %v632_v7, %v87_v16  ;;  %v127_v25 = vadd.f32 %v632_v7, %v88_v17  ;;  %v571_v16 = vld [vmem:[%s782_s0 + $0x50] sm:$0xff]  }
   0x7   :  { %v128_v26 = vadd.f32 %v632_v7, %v89_v18  ;;  %v129_v27 = vadd.f32 %v632_v7, %v90_v19  ;;  %v130_v31 = vadd.f32 %v632_v7, %v91_v22  ;;  %v131_v32 = vadd.f32 %v632_v7, %v92_v23 }
   0x8   :  { %v156_v29 = vmax.f32 %v124_v20, 0.0  ;;  %v157_v30 = vmax.f32 %v125_v21, 0.0  ;;  %v158_v34 = vmax.f32 %v126_v24, 0.0  ;;  %v159_v35 = vmax.f32 %v127_v25, 0.0  ;;  %v572_v25 = vld [vmem:[%s782_s0 + $0x58] sm:$0xff]  }
   0x9   :  { %v160_v36 = vmax.f32 %v128_v26, 0.0  ;;  %v161_v37 = vmax.f32 %v129_v27, 0.0  ;;  %v162_v40 = vmax.f32 %v130_v31, 0.0  ;;  %v163_v41 = vmax.f32 %v131_v32, 0.0 }
   0xa   :  { %v485_v39 = vpack.c.bf16 %v157_v30, %v156_v29  ;;  %v436_v42 = vunpack.c.l.bf16 %v565_v28  ;;  %v490_v44 = vpack.c.bf16 %v159_v35, %v158_v34  ;;  %v437_v46 = vunpack.c.h.bf16 %v565_v28 }
   0xb   :  { %v495_v45 = vpack.c.bf16 %v161_v37, %v160_v36  ;;  %v440_v47 = vunpack.c.l.bf16 %v566_v33  ;;  %v500_v48 = vpack.c.bf16 %v163_v41, %v162_v40  ;;  %v441_v50 = vunpack.c.h.bf16 %v566_v33 }
   0xc   :  { %486 = vst [vmem:[%s785_s3] sm:$0xff] %v485_v39   ;;  %v93_v49 = vmul.f32 %v436_v42, %v618_v1  ;;  %v444_v51 = vunpack.c.l.bf16 %v567_v38  ;;  %577 = vst [vmem:[%s785_s3 + $0x8] sm:$0xff] %v490_v44   ;;  %v94_v52 = vmul.f32 %v437_v46, %v618_v1  ;;  %v445_v54 = vunpack.c.h.bf16 %v567_v38  ;;  %v573_v38 = vld [vmem:[%s782_s0 + $0x60] sm:$0xff]  }
   0xd   :  { %578 = vst [vmem:[%s785_s3 + $0x10] sm:$0xff] %v495_v45   ;;  %v95_v53 = vmul.f32 %v440_v47, %v618_v1  ;;  %v448_v55 = vunpack.c.l.bf16 %v568_v43  ;;  %579 = vst [vmem:[%s785_s3 + $0x18] sm:$0xff] %v500_v48   ;;  %v96_v57 = vmul.f32 %v441_v50, %v618_v1  ;;  %v449_v59 = vunpack.c.h.bf16 %v568_v43 }
   0xe   :  { %v132_v56 = vadd.f32 %v632_v7, %v93_v49  ;;  %v97_v58 = vmul.f32 %v444_v51, %v618_v1  ;;  %v133_v60 = vadd.f32 %v632_v7, %v94_v52  ;;  %v98_v62 = vmul.f32 %v445_v54, %v618_v1  ;;  %v574_v51 = vld [vmem:[%s782_s0 + $0x68] sm:$0xff]  }
   0xf   :  { %v134_v61 = vadd.f32 %v632_v7, %v95_v53  ;;  %v99_v63 = vmul.f32 %v448_v55, %v618_v1  ;;  %v135_v3 = vadd.f32 %v632_v7, %v96_v57  ;;  %v100_v5 = vmul.f32 %v449_v59, %v618_v1 }
  0x10   :  { %v164_v2 = vmax.f32 %v132_v56, 0.0  ;;  %v136_v4 = vadd.f32 %v632_v7, %v97_v58  ;;  %v165_v6 = vmax.f32 %v133_v60, 0.0  ;;  %v137_v9 = vadd.f32 %v632_v7, %v98_v62  ;;  %v575_v60 = vld [vmem:[%s782_s0 + $0x70] sm:$0xff]  }
  0x11   :  { %v166_v8 = vmax.f32 %v134_v61, 0.0  ;;  %v138_v10 = vadd.f32 %v632_v7, %v99_v63  ;;  %v167_v12 = vmax.f32 %v135_v3, 0.0  ;;  %v139_v14 = vadd.f32 %v632_v7, %v100_v5 }
  0x12   :  { %v168_v13 = vmax.f32 %v136_v4, 0.0  ;;  %v452_v15 = vunpack.c.l.bf16 %v569_v0  ;;  %v505_v17 = vpack.c.bf16 %v165_v6, %v164_v2  ;;  %v169_v18 = vmax.f32 %v137_v9, 0.0  ;;  %v576_v2 = vld [vmem:[%s782_s0 + $0x78] sm:$0xff]  }
  0x13   :  { %v170_v19 = vmax.f32 %v138_v10, 0.0  ;;  %v453_v20 = vunpack.c.h.bf16 %v569_v0  ;;  %v510_v21 = vpack.c.bf16 %v167_v12, %v166_v8  ;;  %v171_v22 = vmax.f32 %v139_v14, 0.0 }
  0x14   :  { %v101_v23 = vmul.f32 %v452_v15, %v618_v1  ;;  %v456_v24 = vunpack.c.l.bf16 %v570_v11  ;;  %580 = vst [vmem:[%s785_s3 + $0x20] sm:$0xff] %v505_v17   ;;  %v515_v26 = vpack.c.bf16 %v169_v18, %v168_v13  ;;  %v457_v28 = vunpack.c.h.bf16 %v570_v11 }
  0x15   :  { %v102_v27 = vmul.f32 %v453_v20, %v618_v1  ;;  %v460_v29 = vunpack.c.l.bf16 %v571_v16  ;;  %581 = vst [vmem:[%s785_s3 + $0x28] sm:$0xff] %v510_v21   ;;  %v520_v30 = vpack.c.bf16 %v171_v22, %v170_v19  ;;  %v461_v33 = vunpack.c.h.bf16 %v571_v16 }
  0x16   :  { %v140_v31 = vadd.f32 %v632_v7, %v101_v23  ;;  %v103_v32 = vmul.f32 %v456_v24, %v618_v1  ;;  %582 = vst [vmem:[%s785_s3 + $0x30] sm:$0xff] %v515_v26   ;;  %v104_v35 = vmul.f32 %v457_v28, %v618_v1  ;;  %v464_v37 = vunpack.c.l.bf16 %v572_v25 }
  0x17   :  { %v141_v34 = vadd.f32 %v632_v7, %v102_v27  ;;  %v105_v36 = vmul.f32 %v460_v29, %v618_v1  ;;  %583 = vst [vmem:[%s785_s3 + $0x38] sm:$0xff] %v520_v30   ;;  %v106_v41 = vmul.f32 %v461_v33, %v618_v1  ;;  %v465_v42 = vunpack.c.h.bf16 %v572_v25 }
  0x18   :  { %v172_v39 = vmax.f32 %v140_v31, 0.0  ;;  %v142_v40 = vadd.f32 %v632_v7, %v103_v32  ;;  %v143_v44 = vadd.f32 %v632_v7, %v104_v35  ;;  %v107_v46 = vmul.f32 %v464_v37, %v618_v1 }
  0x19   :  { %v173_v43 = vmax.f32 %v141_v34, 0.0  ;;  %v144_v45 = vadd.f32 %v632_v7, %v105_v36  ;;  %v145_v48 = vadd.f32 %v632_v7, %v106_v41  ;;  %v108_v49 = vmul.f32 %v465_v42, %v618_v1 }
  0x1a   :  { %v174_v47 = vmax.f32 %v142_v40, 0.0  ;;  %v468_v50 = vunpack.c.l.bf16 %v573_v38  ;;  %v175_v53 = vmax.f32 %v143_v44, 0.0  ;;  %v146_v55 = vadd.f32 %v632_v7, %v107_v46 }
  0x1b   :  { %v525_v52 = vpack.c.bf16 %v173_v43, %v172_v39  ;;  %v176_v54 = vmax.f32 %v144_v45, 0.0  ;;  %v177_v56 = vmax.f32 %v145_v48, 0.0  ;;  %v147_v57 = vadd.f32 %v632_v7, %v108_v49 }
  0x1c   :  { %v469_v58 = vunpack.c.h.bf16 %v573_v38  ;;  %v109_v59 = vmul.f32 %v468_v50, %v618_v1  ;;  %v530_v61 = vpack.c.bf16 %v175_v53, %v174_v47  ;;  %v178_v62 = vmax.f32 %v146_v55, 0.0 }
  0x1d   :  { %584 = vst [vmem:[%s785_s3 + $0x40] sm:$0xff] %v525_v52   ;;  %v472_v63 = vunpack.c.l.bf16 %v574_v51  ;;  %v473_v0 = vunpack.c.h.bf16 %v574_v51  ;;  %v535_v3 = vpack.c.bf16 %v177_v56, %v176_v54  ;;  %v179_v4 = vmax.f32 %v147_v57, 0.0 }
  0x1e   :  { %v110_v5 = vmul.f32 %v469_v58, %v618_v1  ;;  %v148_v6 = vadd.f32 %v632_v7, %v109_v59  ;;  %585 = vst [vmem:[%s785_s3 + $0x48] sm:$0xff] %v530_v61   ;;  %v476_v10 = vunpack.c.l.bf16 %v575_v60  ;;  %v477_v11 = vunpack.c.h.bf16 %v575_v60 }
  0x1f   :  { %v111_v8 = vmul.f32 %v472_v63, %v618_v1  ;;  %v112_v9 = vmul.f32 %v473_v0, %v618_v1  ;;  %586 = vst [vmem:[%s785_s3 + $0x50] sm:$0xff] %v535_v3   ;;  %v540_v12 = vpack.c.bf16 %v179_v4, %v178_v62  ;;  %v480_v15 = vunpack.c.l.bf16 %v576_v2 }
  0x20   :  { %v149_v13 = vadd.f32 %v632_v7, %v110_v5  ;;  %v180_v14 = vmax.f32 %v148_v6, 0.0  ;;  %v113_v18 = vmul.f32 %v476_v10, %v618_v1  ;;  %v114_v19 = vmul.f32 %v477_v11, %v618_v1 }
  0x21   :  { %v150_v16 = vadd.f32 %v632_v7, %v111_v8  ;;  %v151_v17 = vadd.f32 %v632_v7, %v112_v9  ;;  %587 = vst [vmem:[%s785_s3 + $0x58] sm:$0xff] %v540_v12   ;;  %v481_v21 = vunpack.c.h.bf16 %v576_v2  ;;  %v115_v22 = vmul.f32 %v480_v15, %v618_v1 }
  0x22   :  { %v181_v20 = vmax.f32 %v149_v13, 0.0  ;;  %v152_v25 = vadd.f32 %v632_v7, %v113_v18  ;;  %v153_v26 = vadd.f32 %v632_v7, %v114_v19 }
  0x23   :  { %v182_v23 = vmax.f32 %v150_v16, 0.0  ;;  %v183_v24 = vmax.f32 %v151_v17, 0.0  ;;  %v116_v28 = vmul.f32 %v481_v21, %v618_v1  ;;  %v154_v29 = vadd.f32 %v632_v7, %v115_v22 }
  0x24   :  { %v545_v27 = vpack.c.bf16 %v181_v20, %v180_v14  ;;  %v184_v31 = vmax.f32 %v152_v25, 0.0  ;;  %v185_v32 = vmax.f32 %v153_v26, 0.0 }
  0x25   :  { %v550_v30 = vpack.c.bf16 %v183_v24, %v182_v23  ;;  %v155_v33 = vadd.f32 %v632_v7, %v116_v28  ;;  %v186_v34 = vmax.f32 %v154_v29, 0.0 }
  0x26   :  { %588 = vst [vmem:[%s785_s3 + $0x60] sm:$0xff] %v545_v27   ;;  %v555_v35 = vpack.c.bf16 %v185_v32, %v184_v31 }
  0x27   :  { %589 = vst [vmem:[%s785_s3 + $0x68] sm:$0xff] %v550_v30   ;;  %v187_v36 = vmax.f32 %v155_v33, 0.0 }
  0x28   :  { %590 = vst [vmem:[%s785_s3 + $0x70] sm:$0xff] %v555_v35  }
  0x29   :  { %v560_v1 = vpack.c.bf16 %v187_v36, %v186_v34 }
  0x2b   :  { %591 = vst [vmem:[%s785_s3 + $0x78] sm:$0xff] %v560_v1  }

// kernel: feature_extractor_forward.41
= control target key start
LH: loop header
LB: loop body
LE: loop exit
PB: predicated region body
PF: predicated region fallthrough
CT: control target
= control target key end

     0   :  { %s1880_s15 = smov 0   ;;  %s1882_s16 = smov 0   ;;  %s2346_s0 = inlined_call_operand.vmem [shape: bf16[512,256], index: 0, kind: input, shape index: {}]   ;;  %s2347_s1 = inlined_call_operand.vmem [shape: bf16[256,64], index: 1, kind: input, shape index: {}]   ;;  %s2348_s2 = inlined_call_operand.vmem [shape: bf16[512,64], index: 2, kind: output, shape index: {0}]   ;;  %s2349_s3 = inlined_call_operand.vmem [shape: f32[16,64], index: 3, kind: output, shape index: {1}]   ;;  %s2350_s4 = inlined_call_operand.vmem [shape: f32[16,64], index: 4, kind: output, shape index: {2}]  }
   0x1   :  { %s1884_s17 = smov 0  }
   0x2 LB: > { %s34_s18 = sadd.s32 1, %s1848_s16  ;;  %p1490_p0 = scmp.ge.s32.totalorder %s1852_s17, 1  ;;  %s1852_s17 = sphi %s1884_s17, %s15_s17   ;;  %s1848_s16 = sphi %s1882_s16, %s2352_s16   ;;  %s1844_s15 = sphi %s1880_s15, %s2351_s15  }
   0x3   : > { %p36_p1 = scmp.ge.s32.totalorder %s34_s18, 2  ;;  %p217_p2 = scmp.lt.s32.totalorder %s1852_s17, 3 }
   0x5   : > { %s2354_s18 = smov (%p36_p1, %s34_s18), 0  ;;  %p218_p3 = pnand %p1490_p0, %p217_p2 }
   0x6   : > { %v1766_v0 = vld [vmem:[%s2347_s1 + $0x40] sm:$0xff] (!%p218_p3)   ;;  %s1491_s21 = sshll.u32 (!%p218_p3), %s1844_s15, 5  ;;  %v1768_v2 = vld [vmem:[%s2347_s1 + $0x48] sm:$0xff] (!%p218_p3)   ;;  %v1770_v4 = vld [vmem:[%s2347_s1 + $0x50] sm:$0xff] (!%p218_p3)   ;;  %vm322_vm0 = vcmask (!%p218_p3), 523264   ;;  %v1854_v48 = vmov (!%p218_p3), 0.0  }
   0x7   : > { %221 = sbr.rel (%p218_p3) target bundleno = 373 (0x175), region = 28  ;;  %v1767_v1 = vld [vmem:[%s2347_s1] sm:$0xff] (!%p218_p3)   ;;  %1613 = vmatprep.subr.bf16.mxu0 (!%p218_p3), %v1766_v0  ;;  %1725 = vmatprep.subr.bf16.mxu1 (!%p218_p3), %v1766_v0  ;;  %v1769_v3 = vld [vmem:[%s2347_s1 + $0x8] sm:$0xff] (!%p218_p3)   ;;  %p275_p4 = scmp.lt.s32.totalorder (!%p218_p3), %s1491_s21, 63  ;;  %v1771_v5 = vld [vmem:[%s2347_s1 + $0x10] sm:$0xff] (!%p218_p3)   ;;  %323 = vst.msk [vmem:[#allocation2] sm:$0xff] (!%p218_p3), %vm322_vm0, %v1854_v48 }
   0x8   : > { %1614 = vmatpush3.bf16.msra.mxu0 (!%p218_p3), %v1767_v1  ;;  %1733 = vmatpush3.bf16.msra.mxu1 (!%p218_p3), %v1767_v1  ;;  %v1772_v6 = vld [vmem:[%s2347_s1 + $0x58] sm:$0xff] (!%p218_p3)   ;;  %v1774_v8 = vld [vmem:[%s2347_s1 + $0x60] sm:$0xff] (!%p218_p3)   ;;  %v1776_v10 = vld [vmem:[%s2347_s1 + $0x68] sm:$0xff] (!%p218_p3)   ;;  %324 = vst.msk [vmem:[#allocation2 + $0x8] sm:$0xff] (!%p218_p3), %vm322_vm0, %v1854_v48  ;;  %vm1096_vm1 = vcmask (!%p218_p3), 519168   ;;  %p303_p5 = scmp.lt.s32.totalorder (!%p218_p3), %s1844_s15, 1 }
   0x9   : > { %1615 = vmatprep.subr.bf16.mxu0 (!%p218_p3), %v1768_v2  ;;  %1726 = vmatprep.subr.bf16.mxu1 (!%p218_p3), %v1768_v2  ;;  %v1773_v7 = vld [vmem:[%s2347_s1 + $0x18] sm:$0xff] (!%p218_p3)   ;;  %v1775_v9 = vld [vmem:[%s2347_s1 + $0x20] sm:$0xff] (!%p218_p3)   ;;  %v1777_v12 = vld [vmem:[%s2347_s1 + $0x28] sm:$0xff] (!%p218_p3)   ;;  %325 = vst.msk [vmem:[#allocation2 + $0x10] sm:$0xff] (!%p218_p3), %vm322_vm0, %v1854_v48 }
   0xa   : > { %v1778_v13 = vld [vmem:[%s2347_s1 + $0x70] sm:$0xff] (!%p218_p3)   ;;  %v1780_v16 = vld [vmem:[%s2347_s1 + $0x78] sm:$0xff] (!%p218_p3)   ;;  %326 = vst.msk [vmem:[#allocation2 + $0x18] sm:$0xff] (!%p218_p3), %vm322_vm0, %v1854_v48  ;;  %327 = vst.msk [vmem:[#allocation2 + $0x20] sm:$0xff] (!%p218_p3), %vm322_vm0, %v1854_v48 }
   0xb   : > { %v1779_v15 = vld [vmem:[%s2347_s1 + $0x30] sm:$0xff] (!%p218_p3)   ;;  %v1781_v17 = vld [vmem:[%s2347_s1 + $0x38] sm:$0xff] (!%p218_p3)   ;;  %328 = vst.msk [vmem:[#allocation2 + $0x28] sm:$0xff] (!%p218_p3), %vm322_vm0, %v1854_v48  ;;  %329 = vst.msk [vmem:[#allocation2 + $0x30] sm:$0xff] (!%p218_p3), %vm322_vm0, %v1854_v48 }
   0xc   : > { %1616 = vmatpush3.bf16.msra.mxu0 (!%p218_p3), %v1769_v3  ;;  %1734 = vmatpush3.bf16.msra.mxu1 (!%p218_p3), %v1769_v3  ;;  %330 = vst.msk [vmem:[#allocation2 + $0x38] sm:$0xff] (!%p218_p3), %vm322_vm0, %v1854_v48  ;;  %331 = vst.msk [vmem:[#allocation2 + $0x40] sm:$0xff] (!%p218_p3), %vm322_vm0, %v1854_v48 }
   0xd   : > { %1617 = vmatprep.subr.bf16.mxu0 (!%p218_p3), %v1770_v4  ;;  %1727 = vmatprep.subr.bf16.mxu1 (!%p218_p3), %v1770_v4  ;;  %332 = vst.msk [vmem:[#allocation2 + $0x48] sm:$0xff] (!%p218_p3), %vm322_vm0, %v1854_v48  ;;  %333 = vst.msk [vmem:[#allocation2 + $0x50] sm:$0xff] (!%p218_p3), %vm322_vm0, %v1854_v48 }
   0xe   : > { %s2356_s21 = smov (!%p275_p4, %s1491_s21), 63  ;;  %334 = vst.msk [vmem:[#allocation2 + $0x58] sm:$0xff] %vm322_vm0, %v1854_v48  ;;  %335 = vst.msk [vmem:[#allocation2 + $0x60] sm:$0xff] %vm322_vm0, %v1854_v48  ;;  %v355_v50 = vld [vmem:[#allocation2] sm:$0xff]  ;;  %s2358_s15 = smov (!%p303_p5, %s1844_s15), 1 }
   0xf   : > { %s1580_s10 = sshll.u32 %s2356_s21, 3  ;;  %336 = vst.msk [vmem:[#allocation2 + $0x68] sm:$0xff] %vm322_vm0, %v1854_v48  ;;  %337 = vst.msk [vmem:[#allocation2 + $0x70] sm:$0xff] %vm322_vm0, %v1854_v48  ;;  %v356_v57 = vld [vmem:[#allocation2 + $0x8] sm:$0xff]  ;;  %s1495_s9 = sshll.u32 %s2356_s21, 2 }
  0x10   : > { %1618 = vmatpush3.bf16.msra.mxu0 %v1771_v5  ;;  %1735 = vmatpush3.bf16.msra.mxu1 %v1771_v5  ;;  %s1934_s19 = scalar_lea.vmem %s2346_s0, %s1580_s10  ;;  %338 = vst.msk [vmem:[#allocation2 + $0x78] sm:$0xff] %vm322_vm0, %v1854_v48  ;;  %339 = vst.msk [vmem:[#allocation2 + $0x80] sm:$0xff] %vm322_vm0, %v1854_v48  ;;  %s2029_s12 = scalar_lea.vmem %s2348_s2, %s1495_s9 }
  0x11   : > { %1619 = vmatprep.subr.bf16.mxu0 %v1772_v6  ;;  %1728 = vmatprep.subr.bf16.mxu1 %v1772_v6  ;;  %v1784_v11 = vld [vmem:[%s1934_s19 + $0x4] ss:$8 sps:$4 sm:$0xff]   ;;  %v1782_v18 = vld [vmem:[%s1934_s19] ss:$8 sps:$4 sm:$0xff]   ;;  %v1785_v19 = vld [vmem:[%s1934_s19 + $0x14] ss:$8 sps:$4 sm:$0xff]  }
  0x12   : > { %739 = vmatprep.mubr.bf16.mxu0 %v1784_v11  ;;  %v1796_v14 = vld [vmem:[%s1934_s19 + $0x84] ss:$8 sps:$4 sm:$0xff]   ;;  %v1794_v20 = vld [vmem:[%s1934_s19 + $0x80] ss:$8 sps:$4 sm:$0xff]   ;;  %v1800_v21 = vld [vmem:[%s1934_s19 + $0x94] ss:$8 sps:$4 sm:$0xff]  }
  0x13   : > { %803 = vmatprep.mubr.bf16.mxu1 %v1796_v14  ;;  %v1787_v22 = vld [vmem:[%s1934_s19 + $0x10] ss:$8 sps:$4 sm:$0xff]   ;;  %v1788_v23 = vld [vmem:[%s1934_s19 + $0x24] ss:$8 sps:$4 sm:$0xff]   ;;  %v1790_v26 = vld [vmem:[%s1934_s19 + $0x20] ss:$8 sps:$4 sm:$0xff]  }
  0x14   : > { %1620 = vmatpush3.bf16.msra.mxu0 %v1773_v7  ;;  %1736 = vmatpush3.bf16.msra.mxu1 %v1773_v7  ;;  %v1802_v24 = vld [vmem:[%s1934_s19 + $0x90] ss:$8 sps:$4 sm:$0xff]   ;;  %v1806_v25 = vld [vmem:[%s1934_s19 + $0xa4] ss:$8 sps:$4 sm:$0xff]   ;;  %v1791_v27 = vld [vmem:[%s1934_s19 + $0x34] ss:$8 sps:$4 sm:$0xff]  }
  0x15   : > { %1621 = vmatprep.subr.bf16.mxu0 %v1774_v8  ;;  %1729 = vmatprep.subr.bf16.mxu1 %v1774_v8  ;;  %v1808_v28 = vld [vmem:[%s1934_s19 + $0xa0] ss:$8 sps:$4 sm:$0xff]   ;;  %v1812_v29 = vld [vmem:[%s1934_s19 + $0xb4] ss:$8 sps:$4 sm:$0xff]   ;;  %v1793_v30 = vld [vmem:[%s1934_s19 + $0x30] ss:$8 sps:$4 sm:$0xff]  }
  0x16   : > { %v1797_v31 = vld [vmem:[%s1934_s19 + $0x44] ss:$8 sps:$4 sm:$0xff]   ;;  %v1814_v32 = vld [vmem:[%s1934_s19 + $0xb0] ss:$8 sps:$4 sm:$0xff]   ;;  %v1799_v34 = vld [vmem:[%s1934_s19 + $0x40] ss:$8 sps:$4 sm:$0xff]  }
  0x17   : > { %v1818_v33 = vld [vmem:[%s1934_s19 + $0xc4] ss:$8 sps:$4 sm:$0xff]   ;;  %v1803_v35 = vld [vmem:[%s1934_s19 + $0x54] ss:$8 sps:$4 sm:$0xff]   ;;  %v1820_v36 = vld [vmem:[%s1934_s19 + $0xc0] ss:$8 sps:$4 sm:$0xff]  }
  0x18   : > { %1622 = vmatpush3.bf16.msra.mxu0 %v1775_v9  ;;  %1737 = vmatpush3.bf16.msra.mxu1 %v1775_v9  ;;  %v1821_v37 = vld [vmem:[%s1934_s19 + $0xd4] ss:$8 sps:$4 sm:$0xff]   ;;  %v1805_v38 = vld [vmem:[%s1934_s19 + $0x50] ss:$8 sps:$4 sm:$0xff]   ;;  %v1809_v39 = vld [vmem:[%s1934_s19 + $0x64] ss:$8 sps:$4 sm:$0xff]  }
  0x19   : > { %1623 = vmatprep.subr.bf16.mxu0 %v1776_v10  ;;  %1730 = vmatprep.subr.bf16.mxu1 %v1776_v10  ;;  %v1823_v40 = vld [vmem:[%s1934_s19 + $0xd0] ss:$8 sps:$4 sm:$0xff]   ;;  %v1824_v41 = vld [vmem:[%s1934_s19 + $0xe4] ss:$8 sps:$4 sm:$0xff]   ;;  %v1811_v42 = vld [vmem:[%s1934_s19 + $0x60] ss:$8 sps:$4 sm:$0xff]  }
  0x1a   : > { %v1815_v43 = vld [vmem:[%s1934_s19 + $0x74] ss:$8 sps:$4 sm:$0xff]   ;;  %v1826_v44 = vld [vmem:[%s1934_s19 + $0xe0] ss:$8 sps:$4 sm:$0xff]   ;;  %v1817_v46 = vld [vmem:[%s1934_s19 + $0x70] ss:$8 sps:$4 sm:$0xff]  }
  0x1b   : > { %v1827_v45 = vld [vmem:[%s1934_s19 + $0xf4] ss:$8 sps:$4 sm:$0xff]   ;;  %v1829_v47 = vld [vmem:[%s1934_s19 + $0xf0] ss:$8 sps:$4 sm:$0xff]   ;;  %340 = vst.msk [vmem:[#allocation2 + $0x88] sm:$0xff] %vm322_vm0, %v1854_v48  ;;  %341 = vst.msk [vmem:[#allocation2 + $0x90] sm:$0xff] %vm322_vm0, %v1854_v48 }
  0x1c   : > { %1624 = vmatpush3.bf16.msra.mxu0 %v1777_v12  ;;  %1738 = vmatpush3.bf16.msra.mxu1 %v1777_v12  ;;  %342 = vst.msk [vmem:[#allocation2 + $0x98] sm:$0xff] %vm322_vm0, %v1854_v48  ;;  %343 = vst.msk [vmem:[#allocation2 + $0xa0] sm:$0xff] %vm322_vm0, %v1854_v48  ;;  %v371_v55 = vld [vmem:[#allocation2 + $0x80] sm:$0xff]  ;;  %v357_v6 = vld [vmem:[#allocation2 + $0x10] sm:$0xff]  ;;  %s1496_s21 = sshll.u32 %s2358_s15, 3 }
  0x1d   : > { %1625 = vmatprep.subr.bf16.mxu0 %v1778_v13  ;;  %1731 = vmatprep.subr.bf16.mxu1 %v1778_v13  ;;  %344 = vst.msk [vmem:[#allocation2 + $0xa8] sm:$0xff] %vm322_vm0, %v1854_v48  ;;  %345 = vst.msk [vmem:[#allocation2 + $0xb0] sm:$0xff] %vm322_vm0, %v1854_v48  ;;  %v358_v13 = vld [vmem:[#allocation2 + $0x18] sm:$0xff]  ;;  %s309_s19 = scalar_lea.vmem %s2349_s3, %s1496_s21  ;;  %s316_s23 = scalar_lea.vmem %s2350_s4, %s1496_s21 }
  0x1e   : > { %346 = vst.msk [vmem:[#allocation2 + $0xb8] sm:$0xff] %vm322_vm0, %v1854_v48  ;;  %347 = vst.msk [vmem:[#allocation2 + $0xc0] sm:$0xff] %vm322_vm0, %v1854_v48 }
  0x1f   : > { %348 = vst.msk [vmem:[#allocation2 + $0xc8] sm:$0xff] %vm322_vm0, %v1854_v48  ;;  %349 = vst.msk [vmem:[#allocation2 + $0xd0] sm:$0xff] %vm322_vm0, %v1854_v48 }
  0x20   : > { %1626 = vmatpush3.bf16.msra.mxu0 %v1779_v15  ;;  %1739 = vmatpush3.bf16.msra.mxu1 %v1779_v15  ;;  %350 = vst.msk [vmem:[#allocation2 + $0xd8] sm:$0xff] %vm322_vm0, %v1854_v48  ;;  %351 = vst.msk [vmem:[#allocation2 + $0xe0] sm:$0xff] %vm322_vm0, %v1854_v48 }
  0x21   : > { %1627 = vmatprep.subr.bf16.mxu0 %v1780_v16  ;;  %1732 = vmatprep.subr.bf16.mxu1 %v1780_v16  ;;  %352 = vst.msk [vmem:[#allocation2 + $0xe8] sm:$0xff] %vm322_vm0, %v1854_v48  ;;  %353 = vst.msk [vmem:[#allocation2 + $0xf0] sm:$0xff] %vm322_vm0, %v1854_v48 }
  0x22   : > { %354 = vst.msk [vmem:[#allocation2 + $0xf8] sm:$0xff] %vm322_vm0, %v1854_v48  ;;  %v372_v63 = vld [vmem:[#allocation2 + $0x88] sm:$0xff]  ;;  %v373_v11 = vld [vmem:[#allocation2 + $0x90] sm:$0xff] }
  0x24   : > { %1628 = vmatpush3.bf16.msra.mxu0 %v1781_v17  ;;  %1740 = vmatpush3.bf16.msra.mxu1 %v1781_v17 }
  0x27   : > { %740 = vmatmul.mubr.bf16.vlgmr.msra.gmra.mrb[0].mxu0 %v1782_v18  ;;  %804 = vmatmul.mubr.bf16.vlgmr.msra.gmra.mrb[0].mxu1 %v1794_v20 }
  0x28   : > { %747 = vmatprep.mubr.bf16.mxu0 %v1785_v19  ;;  %811 = vmatprep.mubr.bf16.mxu1 %v1800_v21  ;;  %v374_v19 = vld [vmem:[#allocation2 + $0x98] sm:$0xff] }
  0x2f   : > { %748 = vmatmul.mubr.bf16.gmra.mrb[4].mxu0 %v1787_v22  ;;  %812 = vmatmul.mubr.bf16.gmra.mrb[4].mxu1 %v1802_v24 }
  0x30   : > { %755 = vmatprep.mubr.bf16.mxu0 %v1788_v23  ;;  %819 = vmatprep.mubr.bf16.mxu1 %v1806_v25 }
  0x37   : > { %756 = vmatmul.mubr.bf16.gmra.mrb[8].mxu0 %v1790_v26  ;;  %820 = vmatmul.mubr.bf16.gmra.mrb[8].mxu1 %v1808_v28 }
  0x38   : > { %763 = vmatprep.mubr.bf16.mxu0 %v1791_v27  ;;  %827 = vmatprep.mubr.bf16.mxu1 %v1812_v29 }
  0x3f   : > { %764 = vmatmul.mubr.bf16.gmra.mrb[12].mxu0 %v1793_v30  ;;  %828 = vmatmul.mubr.bf16.gmra.mrb[12].mxu1 %v1814_v32 }
  0x40   : > { %771 = vmatprep.mubr.bf16.mxu0 %v1797_v31  ;;  %835 = vmatprep.mubr.bf16.mxu1 %v1818_v33  ;;  %v359_v33 = vld [vmem:[#allocation2 + $0x20] sm:$0xff] }
  0x47   : > { %772 = vmatmul.mubr.bf16.gmra.mrb[16].mxu0 %v1799_v34  ;;  %836 = vmatmul.mubr.bf16.gmra.mrb[16].mxu1 %v1820_v36 }
  0x48   : > { %779 = vmatprep.mubr.bf16.mxu0 %v1803_v35  ;;  %843 = vmatprep.mubr.bf16.mxu1 %v1821_v37 }
  0x4f   : > { %780 = vmatmul.mubr.bf16.gmra.mrb[20].mxu0 %v1805_v38  ;;  %844 = vmatmul.mubr.bf16.gmra.mrb[20].mxu1 %v1823_v40 }
  0x50   : > { %787 = vmatprep.mubr.bf16.mxu0 %v1809_v39  ;;  %851 = vmatprep.mubr.bf16.mxu1 %v1824_v41  ;;  %v375_v39 = vld [vmem:[#allocation2 + $0xa0] sm:$0xff]  ;;  %v360_v41 = vld [vmem:[#allocation2 + $0x28] sm:$0xff] }
  0x57   : > { %788 = vmatmul.mubr.bf16.gmra.mrb[24].mxu0 %v1811_v42  ;;  %852 = vmatmul.mubr.bf16.gmra.mrb[24].mxu1 %v1826_v44 }
  0x58   : > { %795 = vmatprep.mubr.bf16.mxu0 %v1815_v43  ;;  %859 = vmatprep.mubr.bf16.mxu1 %v1827_v45 }
  0x5f   : > { %796 = vmatmul.mubr.bf16.gmra.mrb[28].mxu0 %v1817_v46  ;;  %860 = vmatmul.mubr.bf16.gmra.mrb[28].mxu1 %v1829_v47 }
  0xfa   : > { %v1629_v49 = vpop.f32.mrb[0].mxu0  ;;  %v1677_v52 = vpop.f32.mrb[0].mxu1 }
  0xfb   : > { %v1630_v51 = vpop.f32.mrb[1].mxu0  ;;  %v1678_v56 = vpop.f32.mrb[1].mxu1 }
  0xfc   : > { %v1631_v53 = vadd.f32 %v1630_v51, %v1629_v49  ;;  %v1632_v54 = vpop.f32.mrb[2].mxu0  ;;  %v1679_v59 = vadd.f32 %v1678_v56, %v1677_v52  ;;  %v1680_v60 = vpop.f32.mrb[2].mxu1 }
  0xfd   : > { %v1633_v58 = vpop.f32.mrb[3].mxu0  ;;  %v1681_v0 = vpop.f32.mrb[3].mxu1 }
  0xfe   : > { %v868_v61 = vadd.f32 %v1631_v53, %v355_v50  ;;  %v1634_v62 = vadd.f32 %v1633_v58, %v1632_v54  ;;  %v884_v1 = vadd.f32 %v1679_v59, %v371_v55  ;;  %v1682_v2 = vadd.f32 %v1681_v0, %v1680_v60  ;;  %v376_v59 = vld [vmem:[#allocation2 + $0xa8] sm:$0xff]  ;;  %v361_v60 = vld [vmem:[#allocation2 + $0x30] sm:$0xff] }
 0x100   : > { %901 = vst.msk [vmem:[#allocation2] sm:$0xff] %vm322_vm0, %v868_v61  ;;  %v869_v3 = vadd.f32 %v1634_v62, %v356_v57  ;;  %917 = vst.msk [vmem:[#allocation2 + $0x80] sm:$0xff] %vm322_vm0, %v884_v1  ;;  %v885_v4 = vadd.f32 %v1682_v2, %v372_v63  ;;  %v377_v2 = vld [vmem:[#allocation2 + $0xb0] sm:$0xff] }
 0x102   : > { %902 = vst.msk [vmem:[#allocation2 + $0x8] sm:$0xff] %vm322_vm0, %v869_v3  ;;  %v1635_v5 = vpop.f32.mrb[4].mxu0  ;;  %918 = vst.msk [vmem:[#allocation2 + $0x88] sm:$0xff] %vm322_vm0, %v885_v4  ;;  %v1683_v8 = vpop.f32.mrb[4].mxu1  ;;  %v362_v4 = vld [vmem:[#allocation2 + $0x38] sm:$0xff] }
 0x103   : > { %v1636_v7 = vpop.f32.mrb[5].mxu0  ;;  %v1684_v12 = vpop.f32.mrb[5].mxu1 }
 0x104   : > { %v1637_v9 = vadd.f32 %v1636_v7, %v1635_v5  ;;  %v1638_v10 = vpop.f32.mrb[6].mxu0  ;;  %v1685_v15 = vadd.f32 %v1684_v12, %v1683_v8  ;;  %v1686_v16 = vpop.f32.mrb[6].mxu1 }
 0x105   : > { %v1639_v14 = vpop.f32.mrb[7].mxu0  ;;  %v1687_v20 = vpop.f32.mrb[7].mxu1 }
 0x106   : > { %v870_v17 = vadd.f32 %v1637_v9, %v357_v6  ;;  %v1640_v18 = vadd.f32 %v1639_v14, %v1638_v10  ;;  %v886_v22 = vadd.f32 %v1685_v15, %v373_v11  ;;  %v1688_v23 = vadd.f32 %v1687_v20, %v1686_v16 }
 0x107   : > { %v2031_v21 = vld [vmem:[#allocation2] sm:$0xff] }
 0x108   : > { %v1581_v24 = vpack.c.bf16 %v2031_v21, %v2031_v21  ;;  %903 = vst.msk [vmem:[#allocation2 + $0x10] sm:$0xff] %vm322_vm0, %v870_v17  ;;  %v871_v25 = vadd.f32 %v1640_v18, %v358_v13  ;;  %v2036_v26 = vld [vmem:[#allocation2 + $0x80] sm:$0xff]  ;;  %919 = vst.msk [vmem:[#allocation2 + $0x90] sm:$0xff] %vm322_vm0, %v886_v22  ;;  %v887_v29 = vadd.f32 %v1688_v23, %v374_v19  ;;  %v378_v23 = vld [vmem:[#allocation2 + $0xb8] sm:$0xff] }
 0x109   : > { %v2038_v27 = vld [vmem:[#allocation2 + $0x8] sm:$0xff]  ;;  %v1597_v28 = vpack.c.bf16 %v2036_v26, %v2036_v26  ;;  %v1198_v13 = vmul.f32 %v2031_v21, %v2031_v21 }
 0x10a   : > { %1097 = vst.msk [vmem:[%s2029_s12] sm:$0xf] %vm1096_vm1, %v1581_v24  ;;  %v1582_v30 = vpack.c.bf16 %v2038_v27, %v2038_v27  ;;  %v1641_v31 = vpop.f32.mrb[8].mxu0  ;;  %v2048_v32 = vld [vmem:[#allocation2 + $0x88] sm:$0xff]  ;;  %v1689_v36 = vpop.f32.mrb[8].mxu1  ;;  %v1199_v9 = vmul.f32 %v2038_v27, %v2038_v27  ;;  %v1130_v17 = vsel %vm322_vm0, %v2038_v27, 0.0 }
 0x10b   : > { %904 = vst.msk [vmem:[#allocation2 + $0x18] sm:$0xff] %vm322_vm0, %v871_v25  ;;  %v1642_v34 = vpop.f32.mrb[9].mxu0  ;;  %v1598_v35 = vpack.c.bf16 %v2048_v32, %v2048_v32  ;;  %920 = vst.msk [vmem:[#allocation2 + $0x98] sm:$0xff] %vm322_vm0, %v887_v29  ;;  %v1690_v40 = vpop.f32.mrb[9].mxu1 }
 0x10c   : > { %1113 = vst.msk [vmem:[%s2029_s12 + $0x40] sm:$0xf] %vm1096_vm1, %v1597_v28  ;;  %1098 = vst.msk [vmem:[%s2029_s12 + $0x4] sm:$0xf] %vm1096_vm1, %v1582_v30  ;;  %v1643_v37 = vadd.f32 %v1642_v34, %v1641_v31  ;;  %v1644_v38 = vpop.f32.mrb[10].mxu0  ;;  %v1691_v43 = vadd.f32 %v1690_v40, %v1689_v36  ;;  %v1692_v44 = vpop.f32.mrb[10].mxu1 }
 0x10d   : > { %v1645_v42 = vpop.f32.mrb[11].mxu0  ;;  %1114 = vst.msk [vmem:[%s2029_s12 + $0x44] sm:$0xf] %vm1096_vm1, %v1598_v35  ;;  %v1693_v47 = vpop.f32.mrb[11].mxu1  ;;  %v1129_v28 = vsel %vm322_vm0, %v2031_v21, 0.0  ;;  %v1231_v27 = vsel %vm322_vm0, %v1199_v9, 0.0 }
 0x10e   : > { %v872_v45 = vadd.f32 %v1643_v37, %v359_v33  ;;  %v1646_v46 = vadd.f32 %v1645_v42, %v1644_v38  ;;  %v888_v49 = vadd.f32 %v1691_v43, %v375_v39  ;;  %v1694_v50 = vadd.f32 %v1693_v47, %v1692_v44  ;;  %v363_v34 = vld [vmem:[#allocation2 + $0x40] sm:$0xff] }
 0x10f   : > { %v938_v48 = vld [vmem:[#allocation2 + $0x10] sm:$0xff]  ;;  %v1131_v33 = vadd.f32 %v1130_v17, %v1129_v28  ;;  %v1230_v37 = vsel %vm322_vm0, %v1198_v13, 0.0  ;;  %v379_v42 = vld [vmem:[#allocation2 + $0xc0] sm:$0xff] }
 0x110   : > { %v1583_v51 = vpack.c.bf16 %v938_v48, %v938_v48  ;;  %905 = vst.msk [vmem:[#allocation2 + $0x20] sm:$0xff] %vm322_vm0, %v872_v45  ;;  %v873_v52 = vadd.f32 %v1646_v46, %v360_v41  ;;  %v2060_v53 = vld [vmem:[#allocation2 + $0x90] sm:$0xff]  ;;  %921 = vst.msk [vmem:[#allocation2 + $0xa0] sm:$0xff] %vm322_vm0, %v888_v49  ;;  %v889_v6 = vadd.f32 %v1694_v50, %v376_v59  ;;  %v1132_v29 = vsel %vm322_vm0, %v938_v48, 0.0  ;;  %v364_v46 = vld [vmem:[#allocation2 + $0x48] sm:$0xff] }
 0x111   : > { %v1599_v55 = vpack.c.bf16 %v2060_v53, %v2060_v53  ;;  %v1200_v18 = vmul.f32 %v938_v48, %v938_v48  ;;  %v1232_v44 = vadd.f32 %v1231_v27, %v1230_v37  ;;  %v1133_v45 = vadd.f32 %v1132_v29, %v1131_v33  ;;  %v366_v29 = vld [vmem:[#allocation2 + $0x58] sm:$0xff] }
 0x112   : > { %v2062_v54 = vld [vmem:[#allocation2 + $0x18] sm:$0xff]  ;;  %1099 = vst.msk [vmem:[%s2029_s12 + $0x8] sm:$0xf] %vm1096_vm1, %v1583_v51  ;;  %v1647_v57 = vpop.f32.mrb[12].mxu0  ;;  %v1695_v63 = vpop.f32.mrb[12].mxu1 }
 0x113   : > { %v1584_v56 = vpack.c.bf16 %v2062_v54, %v2062_v54  ;;  %906 = vst.msk [vmem:[#allocation2 + $0x28] sm:$0xff] %vm322_vm0, %v873_v52  ;;  %v2072_v58 = vld [vmem:[#allocation2 + $0x98] sm:$0xff]  ;;  %v1648_v61 = vpop.f32.mrb[13].mxu0  ;;  %v1696_v3 = vpop.f32.mrb[13].mxu1  ;;  %922 = vst.msk [vmem:[#allocation2 + $0xa8] sm:$0xff] %vm322_vm0, %v889_v6  ;;  %v1233_v38 = vsel %vm322_vm0, %v1200_v18, 0.0  ;;  %v1201_v39 = vmul.f32 %v2062_v54, %v2062_v54 }
 0x114   : > { %1115 = vst.msk [vmem:[%s2029_s12 + $0x48] sm:$0xf] %vm1096_vm1, %v1599_v55  ;;  %v1600_v62 = vpack.c.bf16 %v2072_v58, %v2072_v58  ;;  %v1649_v0 = vadd.f32 %v1648_v61, %v1647_v57  ;;  %v1650_v1 = vpop.f32.mrb[14].mxu0  ;;  %v1697_v7 = vadd.f32 %v1696_v3, %v1695_v63  ;;  %v1698_v8 = vpop.f32.mrb[14].mxu1  ;;  %v1134_v50 = vsel %vm322_vm0, %v2062_v54, 0.0 }
 0x115   : > { %1100 = vst.msk [vmem:[%s2029_s12 + $0xc] sm:$0xf] %vm1096_vm1, %v1584_v56  ;;  %v1651_v5 = vpop.f32.mrb[15].mxu0  ;;  %v1699_v12 = vpop.f32.mrb[15].mxu1  ;;  %v1234_v59 = vadd.f32 %v1233_v38, %v1232_v44  ;;  %v1235_v63 = vsel %vm322_vm0, %v1201_v39, 0.0  ;;  %v1135_v3 = vadd.f32 %v1134_v50, %v1133_v45 }
 0x116   : > { %1116 = vst.msk [vmem:[%s2029_s12 + $0x4c] sm:$0xf] %vm1096_vm1, %v1600_v62  ;;  %v874_v10 = vadd.f32 %v1649_v0, %v361_v60  ;;  %v1652_v11 = vadd.f32 %v1651_v5, %v1650_v1  ;;  %v890_v15 = vadd.f32 %v1697_v7, %v377_v2  ;;  %v1700_v16 = vadd.f32 %v1699_v12, %v1698_v8  ;;  %v365_v12 = vld [vmem:[#allocation2 + $0x50] sm:$0xff] }
 0x117   : > { %v940_v14 = vld [vmem:[#allocation2 + $0x20] sm:$0xff] }
 0x118   : > { %v1585_v19 = vpack.c.bf16 %v940_v14, %v940_v14  ;;  %907 = vst.msk [vmem:[#allocation2 + $0x30] sm:$0xff] %vm322_vm0, %v874_v10  ;;  %v875_v20 = vadd.f32 %v1652_v11, %v362_v4  ;;  %v2090_v22 = vld [vmem:[#allocation2 + $0xa0] sm:$0xff]  ;;  %923 = vst.msk [vmem:[#allocation2 + $0xb0] sm:$0xff] %vm322_vm0, %v890_v15  ;;  %v891_v36 = vadd.f32 %v1700_v16, %v378_v23  ;;  %v1136_v0 = vsel %vm322_vm0, %v940_v14, 0.0 }
 0x119   : > { %v1601_v25 = vpack.c.bf16 %v2090_v22, %v2090_v22  ;;  %v1202_v51 = vmul.f32 %v940_v14, %v940_v14  ;;  %v1236_v10 = vadd.f32 %v1235_v63, %v1234_v59  ;;  %v1137_v11 = vadd.f32 %v1136_v0, %v1135_v3  ;;  %v380_v14 = vld [vmem:[#allocation2 + $0xc8] sm:$0xff] }
 0x11a   : > { %v2092_v24 = vld [vmem:[#allocation2 + $0x28] sm:$0xff]  ;;  %1101 = vst.msk [vmem:[%s2029_s12 + $0x10] sm:$0xf] %vm1096_vm1, %v1585_v19  ;;  %v1653_v31 = vpop.f32.mrb[16].mxu0  ;;  %v1701_v21 = vpop.f32.mrb[16].mxu1 }
 0x11b   : > { %v1586_v30 = vpack.c.bf16 %v2092_v24, %v2092_v24  ;;  %908 = vst.msk [vmem:[#allocation2 + $0x38] sm:$0xff] %vm322_vm0, %v875_v20  ;;  %v1654_v35 = vpop.f32.mrb[17].mxu0  ;;  %v1702_v43 = vpop.f32.mrb[17].mxu1  ;;  %924 = vst.msk [vmem:[#allocation2 + $0xb8] sm:$0xff] %vm322_vm0, %v891_v36  ;;  %v2117_v56 = vld [vmem:[#allocation2 + $0xa8] sm:$0xff]  ;;  %v1203_v4 = vmul.f32 %v2092_v24, %v2092_v24  ;;  %v1237_v7 = vsel %vm322_vm0, %v1202_v51, 0.0 }
 0x11c   : > { %1117 = vst.msk [vmem:[%s2029_s12 + $0x50] sm:$0xf] %vm1096_vm1, %v1601_v25  ;;  %v1655_v40 = vadd.f32 %v1654_v35, %v1653_v31  ;;  %v1656_v41 = vpop.f32.mrb[18].mxu0  ;;  %v1703_v48 = vadd.f32 %v1702_v43, %v1701_v21  ;;  %v1704_v49 = vpop.f32.mrb[18].mxu1  ;;  %v1602_v61 = vpack.c.bf16 %v2117_v56, %v2117_v56  ;;  %v1138_v17 = vsel %vm322_vm0, %v2092_v24, 0.0  ;;  %v382_v51 = vld [vmem:[#allocation2 + $0xd8] sm:$0xff] }
 0x11d   : > { %1102 = vst.msk [vmem:[%s2029_s12 + $0x14] sm:$0xf] %vm1096_vm1, %v1586_v30  ;;  %v1657_v47 = vpop.f32.mrb[19].mxu0  ;;  %v1705_v57 = vpop.f32.mrb[19].mxu1  ;;  %v1238_v28 = vadd.f32 %v1237_v7, %v1236_v10  ;;  %v1239_v27 = vsel %vm322_vm0, %v1203_v4, 0.0  ;;  %v1139_v37 = vadd.f32 %v1138_v17, %v1137_v11 }
 0x11e   : > { %v876_v52 = vadd.f32 %v1655_v40, %v363_v34  ;;  %v1658_v55 = vadd.f32 %v1657_v47, %v1656_v41  ;;  %v892_v62 = vadd.f32 %v1703_v48, %v379_v42  ;;  %1118 = vst.msk [vmem:[%s2029_s12 + $0x54] sm:$0xf] %vm1096_vm1, %v1602_v61  ;;  %v1706_v15 = vadd.f32 %v1705_v57, %v1704_v49  ;;  %v367_v61 = vld [vmem:[#allocation2 + $0x60] sm:$0xff] }
 0x11f   : > { %v942_v60 = vld [vmem:[#allocation2 + $0x30] sm:$0xff]  ;;  %v1240_v47 = vadd.f32 %v1239_v27, %v1238_v28 }
 0x120   : > { %v1587_v1 = vpack.c.bf16 %v942_v60, %v942_v60  ;;  %909 = vst.msk [vmem:[#allocation2 + $0x40] sm:$0xff] %vm322_vm0, %v876_v52  ;;  %v877_v54 = vadd.f32 %v1658_v55, %v364_v46  ;;  %v2124_v2 = vld [vmem:[#allocation2 + $0xb0] sm:$0xff]  ;;  %925 = vst.msk [vmem:[#allocation2 + $0xc0] sm:$0xff] %vm322_vm0, %v892_v62  ;;  %v1204_v18 = vmul.f32 %v942_v60, %v942_v60  ;;  %v1140_v24 = vsel %vm322_vm0, %v942_v60, 0.0 }
 0x121   : > { %v1603_v6 = vpack.c.bf16 %v2124_v2, %v2124_v2  ;;  %v893_v36 = vadd.f32 %v1706_v15, %v380_v14  ;;  %v381_v46 = vld [vmem:[#allocation2 + $0xd0] sm:$0xff]  ;;  %v1141_v48 = vadd.f32 %v1140_v24, %v1139_v37  ;;  %v384_v24 = vld [vmem:[#allocation2 + $0xe8] sm:$0xff] }
 0x122   : > { %v943_v5 = vld [vmem:[#allocation2 + $0x38] sm:$0xff]  ;;  %1103 = vst.msk [vmem:[%s2029_s12 + $0x18] sm:$0xf] %vm1096_vm1, %v1587_v1  ;;  %v1659_v9 = vpop.f32.mrb[20].mxu0  ;;  %v1707_v16 = vpop.f32.mrb[20].mxu1  ;;  %v1241_v41 = vsel %vm322_vm0, %v1204_v18, 0.0 }
 0x123   : > { %v1588_v8 = vpack.c.bf16 %v943_v5, %v943_v5  ;;  %910 = vst.msk [vmem:[#allocation2 + $0x48] sm:$0xff] %vm322_vm0, %v877_v54  ;;  %v1660_v13 = vpop.f32.mrb[21].mxu0  ;;  %v2143_v23 = vld [vmem:[#allocation2 + $0xb8] sm:$0xff]  ;;  %v1708_v25 = vpop.f32.mrb[21].mxu1  ;;  %v1205_v42 = vmul.f32 %v943_v5, %v943_v5  ;;  %926 = vst.msk [vmem:[#allocation2 + $0xc8] sm:$0xff] %vm322_vm0, %v893_v36  ;;  %v1142_v52 = vsel %vm322_vm0, %v943_v5, 0.0  ;;  %v1242_v60 = vadd.f32 %v1241_v41, %v1240_v47 }
 0x124   : > { %1119 = vst.msk [vmem:[%s2029_s12 + $0x58] sm:$0xf] %vm1096_vm1, %v1603_v6  ;;  %v1661_v19 = vadd.f32 %v1660_v13, %v1659_v9  ;;  %v1662_v20 = vpop.f32.mrb[22].mxu0  ;;  %v1604_v31 = vpack.c.bf16 %v2143_v23, %v2143_v23  ;;  %v1710_v33 = vpop.f32.mrb[22].mxu1  ;;  %v1709_v39 = vadd.f32 %v1708_v25, %v1707_v16  ;;  %v383_v6 = vld [vmem:[#allocation2 + $0xe0] sm:$0xff]  ;;  %v368_v9 = vld [vmem:[#allocation2 + $0x68] sm:$0xff] }
 0x125   : > { %1104 = vst.msk [vmem:[%s2029_s12 + $0x1c] sm:$0xf] %vm1096_vm1, %v1588_v8  ;;  %v1663_v30 = vpop.f32.mrb[23].mxu0  ;;  %v1711_v21 = vpop.f32.mrb[23].mxu1  ;;  %v1243_v1 = vsel %vm322_vm0, %v1205_v42, 0.0  ;;  %v1143_v8 = vadd.f32 %v1142_v52, %v1141_v48  ;;  %v369_v42 = vld [vmem:[#allocation2 + $0x70] sm:$0xff] }
 0x126   : > { %v878_v34 = vadd.f32 %v1661_v19, %v365_v12  ;;  %v1664_v35 = vadd.f32 %v1663_v30, %v1662_v20  ;;  %1120 = vst.msk [vmem:[%s2029_s12 + $0x5c] sm:$0xf] %vm1096_vm1, %v1604_v31  ;;  %v1712_v40 = vadd.f32 %v1711_v21, %v1710_v33  ;;  %v894_v63 = vadd.f32 %v1709_v39, %v381_v46 }
 0x127   : > { %v944_v38 = vld [vmem:[#allocation2 + $0x40] sm:$0xff]  ;;  %v1244_v18 = vadd.f32 %v1243_v1, %v1242_v60 }
 0x128   : > { %v1589_v43 = vpack.c.bf16 %v944_v38, %v944_v38  ;;  %911 = vst.msk [vmem:[#allocation2 + $0x50] sm:$0xff] %vm322_vm0, %v878_v34  ;;  %v879_v44 = vadd.f32 %v1664_v35, %v366_v29  ;;  %v2153_v45 = vld [vmem:[#allocation2 + $0xc0] sm:$0xff]  ;;  %v1206_v55 = vmul.f32 %v944_v38, %v944_v38  ;;  %v1144_v54 = vsel %vm322_vm0, %v944_v38, 0.0  ;;  %927 = vst.msk [vmem:[#allocation2 + $0xd0] sm:$0xff] %vm322_vm0, %v894_v63 }
 0x129   : > { %v1605_v50 = vpack.c.bf16 %v2153_v45, %v2153_v45  ;;  %v895_v5 = vadd.f32 %v1712_v40, %v382_v51  ;;  %v1145_v19 = vadd.f32 %v1144_v54, %v1143_v8 }
 0x12a   : > { %v945_v49 = vld [vmem:[#allocation2 + $0x48] sm:$0xff]  ;;  %1105 = vst.msk [vmem:[%s2029_s12 + $0x20] sm:$0xf] %vm1096_vm1, %v1589_v43  ;;  %v1665_v59 = vpop.f32.mrb[24].mxu0  ;;  %v1713_v0 = vpop.f32.mrb[24].mxu1  ;;  %v1245_v13 = vsel %vm322_vm0, %v1206_v55, 0.0 }
 0x12b   : > { %v1590_v57 = vpack.c.bf16 %v945_v49, %v945_v49  ;;  %912 = vst.msk [vmem:[#allocation2 + $0x58] sm:$0xff] %vm322_vm0, %v879_v44  ;;  %v1666_v62 = vpop.f32.mrb[25].mxu0  ;;  %v1714_v7 = vpop.f32.mrb[25].mxu1  ;;  %v1207_v14 = vmul.f32 %v945_v49, %v945_v49  ;;  %928 = vst.msk [vmem:[#allocation2 + $0xd8] sm:$0xff] %vm322_vm0, %v895_v5  ;;  %v2171_v25 = vld [vmem:[#allocation2 + $0xc8] sm:$0xff]  ;;  %v1146_v29 = vsel %vm322_vm0, %v945_v49, 0.0  ;;  %v1246_v34 = vadd.f32 %v1245_v13, %v1244_v18 }
 0x12c   : > { %1121 = vst.msk [vmem:[%s2029_s12 + $0x60] sm:$0xf] %vm1096_vm1, %v1605_v50  ;;  %v1667_v3 = vadd.f32 %v1666_v62, %v1665_v59  ;;  %v1668_v4 = vpop.f32.mrb[26].mxu0  ;;  %v1715_v11 = vadd.f32 %v1714_v7, %v1713_v0  ;;  %v1716_v12 = vpop.f32.mrb[26].mxu1  ;;  %v1606_v36 = vpack.c.bf16 %v2171_v25, %v2171_v25  ;;  %v1147_v40 = vadd.f32 %v1146_v29, %v1145_v19  ;;  %v386_v18 = vld [vmem:[#allocation2 + $0xf8] sm:$0xff] }
 0x12d   : > { %1106 = vst.msk [vmem:[%s2029_s12 + $0x24] sm:$0xf] %vm1096_vm1, %v1590_v57  ;;  %v1669_v10 = vpop.f32.mrb[27].mxu0  ;;  %v1717_v17 = vpop.f32.mrb[27].mxu1  ;;  %v1247_v21 = vsel %vm322_vm0, %v1207_v14, 0.0  ;;  %v370_v57 = vld [vmem:[#allocation2 + $0x78] sm:$0xff] }
 0x12e   : > { %v880_v15 = vadd.f32 %v1667_v3, %v367_v61  ;;  %v1670_v16 = vadd.f32 %v1669_v10, %v1668_v4  ;;  %v896_v28 = vadd.f32 %v1715_v11, %v383_v6  ;;  %v1718_v27 = vadd.f32 %v1717_v17, %v1716_v12  ;;  %1122 = vst.msk [vmem:[%s2029_s12 + $0x64] sm:$0xf] %vm1096_vm1, %v1606_v36  ;;  %v385_v14 = vld [vmem:[#allocation2 + $0xf0] sm:$0xff] }
 0x12f   : > { %v946_v20 = vld [vmem:[#allocation2 + $0x50] sm:$0xff]  ;;  %v1248_v52 = vadd.f32 %v1247_v21, %v1246_v34 }
 0x130   : > { %v1591_v30 = vpack.c.bf16 %v946_v20, %v946_v20  ;;  %v1208_v31 = vmul.f32 %v946_v20, %v946_v20  ;;  %913 = vst.msk [vmem:[#allocation2 + $0x60] sm:$0xff] %vm322_vm0, %v880_v15  ;;  %v881_v33 = vadd.f32 %v1670_v16, %v368_v9  ;;  %929 = vst.msk [vmem:[#allocation2 + $0xe0] sm:$0xff] %vm322_vm0, %v896_v28  ;;  %v1148_v37 = vsel %vm322_vm0, %v946_v20, 0.0  ;;  %v2188_v50 = vld [vmem:[#allocation2 + $0xd0] sm:$0xff] }
 0x131   : > { %v897_v44 = vadd.f32 %v1718_v27, %v384_v24  ;;  %v1149_v55 = vadd.f32 %v1148_v37, %v1147_v40  ;;  %v1607_v60 = vpack.c.bf16 %v2188_v50, %v2188_v50 }
 0x132   : > { %v947_v35 = vld [vmem:[#allocation2 + $0x58] sm:$0xff]  ;;  %1107 = vst.msk [vmem:[%s2029_s12 + $0x28] sm:$0xf] %vm1096_vm1, %v1591_v30  ;;  %v1671_v39 = vpop.f32.mrb[28].mxu0  ;;  %v1719_v46 = vpop.f32.mrb[28].mxu1  ;;  %v1249_v47 = vsel %vm322_vm0, %v1208_v31, 0.0 }
 0x133   : > { %v1592_v38 = vpack.c.bf16 %v947_v35, %v947_v35  ;;  %914 = vst.msk [vmem:[#allocation2 + $0x68] sm:$0xff] %vm322_vm0, %v881_v33  ;;  %v1209_v41 = vmul.f32 %v947_v35, %v947_v35  ;;  %v1672_v43 = vpop.f32.mrb[29].mxu0  ;;  %v1720_v51 = vpop.f32.mrb[29].mxu1  ;;  %v2192_v61 = vld [vmem:[#allocation2 + $0xd8] sm:$0xff]  ;;  %930 = vst.msk [vmem:[#allocation2 + $0xe8] sm:$0xff] %vm322_vm0, %v897_v44  ;;  %v1150_v63 = vsel %vm322_vm0, %v947_v35, 0.0  ;;  %v1250_v4 = vadd.f32 %v1249_v47, %v1248_v52 }
 0x134   : > { %v1673_v48 = vadd.f32 %v1672_v43, %v1671_v39  ;;  %v1674_v49 = vpop.f32.mrb[30].mxu0  ;;  %v1722_v62 = vpop.f32.mrb[30].mxu1  ;;  %v1608_v54 = vpack.c.bf16 %v2192_v61, %v2192_v61  ;;  %1123 = vst.msk [vmem:[%s2029_s12 + $0x68] sm:$0xf] %vm1096_vm1, %v1607_v60  ;;  %v1721_v7 = vadd.f32 %v1720_v51, %v1719_v46  ;;  %v1151_v15 = vadd.f32 %v1150_v63, %v1149_v55 }
 0x135   : > { %1108 = vst.msk [vmem:[%s2029_s12 + $0x2c] sm:$0xf] %vm1096_vm1, %v1592_v38  ;;  %v1675_v59 = vpop.f32.mrb[31].mxu0  ;;  %v1723_v3 = vpop.f32.mrb[31].mxu1  ;;  %v1251_v5 = vsel %vm322_vm0, %v1209_v41, 0.0  ;;  %v1214_v41 = vmul.f32 %v2036_v26, %v2036_v26  ;;  %v1160_v55 = vsel %vm322_vm0, %v2036_v26, 0.0 }
 0x136   : > { %v882_v0 = vadd.f32 %v1673_v48, %v369_v42  ;;  %v1676_v1 = vadd.f32 %v1675_v59, %v1674_v49  ;;  %v1724_v8 = vadd.f32 %v1723_v3, %v1722_v62  ;;  %1124 = vst.msk [vmem:[%s2029_s12 + $0x6c] sm:$0xf] %vm1096_vm1, %v1608_v54  ;;  %v1252_v27 = vadd.f32 %v1251_v5, %v1250_v4 }
 0x137   : > { %v948_v6 = vld [vmem:[#allocation2 + $0x60] sm:$0xff]  ;;  %v898_v30 = vadd.f32 %v1721_v7, %v385_v14  ;;  %v1261_v54 = vsel %vm322_vm0, %v1214_v41, 0.0  ;;  %v1162_v26 = vsel %vm322_vm0, %v2048_v32, 0.0  ;;  %v1216_v3 = vmul.f32 %v2060_v53, %v2060_v53 }
 0x138   : > { %v1593_v9 = vpack.c.bf16 %v948_v6, %v948_v6  ;;  %v1152_v10 = vsel %vm322_vm0, %v948_v6, 0.0  ;;  %v1210_v11 = vmul.f32 %v948_v6, %v948_v6  ;;  %915 = vst.msk [vmem:[#allocation2 + $0x70] sm:$0xff] %vm322_vm0, %v882_v0  ;;  %v883_v12 = vadd.f32 %v1676_v1, %v370_v57  ;;  %v2205_v13 = vld [vmem:[#allocation2 + $0xe0] sm:$0xff] }
 0x139   : > { %v1609_v17 = vpack.c.bf16 %v2205_v13, %v2205_v13  ;;  %v1153_v29 = vadd.f32 %v1152_v10, %v1151_v15  ;;  %v899_v24 = vadd.f32 %v1724_v8, %v386_v18  ;;  %931 = vst.msk [vmem:[#allocation2 + $0xf0] sm:$0xff] %vm322_vm0, %v898_v30  ;;  %v1215_v57 = vmul.f32 %v2048_v32, %v2048_v32 }
 0x13a   : > { %v949_v16 = vld [vmem:[#allocation2 + $0x68] sm:$0xff]  ;;  %1109 = vst.msk [vmem:[%s2029_s12 + $0x30] sm:$0xf] %vm1096_vm1, %v1593_v9  ;;  %v1253_v19 = vsel %vm322_vm0, %v1210_v11, 0.0  ;;  %v1164_v8 = vsel %vm322_vm0, %v2060_v53, 0.0  ;;  %v1217_v9 = vmul.f32 %v2072_v58, %v2072_v58  ;;  %v1265_v11 = vsel %vm322_vm0, %v1216_v3, 0.0 }
 0x13b   : > { %v1594_v20 = vpack.c.bf16 %v949_v16, %v949_v16  ;;  %v1211_v28 = vmul.f32 %v949_v16, %v949_v16  ;;  %916 = vst.msk [vmem:[#allocation2 + $0x78] sm:$0xff] %vm322_vm0, %v883_v12  ;;  %v1154_v31 = vsel %vm322_vm0, %v949_v16, 0.0  ;;  %v2218_v33 = vld [vmem:[#allocation2 + $0xe8] sm:$0xff]  ;;  %v1254_v34 = vadd.f32 %v1253_v19, %v1252_v27  ;;  %932 = vst.msk [vmem:[#allocation2 + $0xf8] sm:$0xff] %vm322_vm0, %v899_v24 }
 0x13c   : > { %1125 = vst.msk [vmem:[%s2029_s12 + $0x70] sm:$0xf] %vm1096_vm1, %v1609_v17  ;;  %v1610_v35 = vpack.c.bf16 %v2218_v33, %v2218_v33  ;;  %v1155_v21 = vadd.f32 %v1154_v31, %v1153_v29  ;;  %v1263_v7 = vsel %vm322_vm0, %v1215_v57, 0.0  ;;  %v1166_v12 = vsel %vm322_vm0, %v2072_v58, 0.0 }
 0x13d   : > { %1110 = vst.msk [vmem:[%s2029_s12 + $0x34] sm:$0xf] %vm1096_vm1, %v1594_v20  ;;  %v1255_v36 = vsel %vm322_vm0, %v1211_v28, 0.0  ;;  %v1218_v14 = vmul.f32 %v2090_v22, %v2090_v22  ;;  %v1267_v17 = vsel %vm322_vm0, %v1217_v9, 0.0  ;;  %v1168_v53 = vsel %vm322_vm0, %v2090_v22, 0.0 }
 0x13e   : > { %1126 = vst.msk [vmem:[%s2029_s12 + $0x74] sm:$0xf] %vm1096_vm1, %v1610_v35  ;;  %v1256_v42 = vadd.f32 %v1255_v36, %v1254_v34  ;;  %v1219_v18 = vmul.f32 %v2117_v56, %v2117_v56  ;;  %v1170_v58 = vsel %vm322_vm0, %v2117_v56, 0.0  ;;  %v1220_v27 = vmul.f32 %v2124_v2, %v2124_v2 }
 0x13f   : > { %v950_v37 = vld [vmem:[#allocation2 + $0x70] sm:$0xff]  ;;  %v1269_v28 = vsel %vm322_vm0, %v1218_v14, 0.0  ;;  %v1172_v22 = vsel %vm322_vm0, %v2124_v2, 0.0  ;;  %v1221_v24 = vmul.f32 %v2143_v23, %v2143_v23  ;;  %v1174_v56 = vsel %vm322_vm0, %v2143_v23, 0.0 }
 0x140   : > { %v1595_v38 = vpack.c.bf16 %v950_v37, %v950_v37  ;;  %v1156_v39 = vsel %vm322_vm0, %v950_v37, 0.0  ;;  %v1212_v40 = vmul.f32 %v950_v37, %v950_v37  ;;  %v2241_v60 = vld [vmem:[#allocation2 + $0xf0] sm:$0xff]  ;;  %v1271_v31 = vsel %vm322_vm0, %v1219_v18, 0.0 }
 0x141   : > { %v1157_v43 = vadd.f32 %v1156_v39, %v1155_v21  ;;  %v1611_v0 = vpack.c.bf16 %v2241_v60, %v2241_v60  ;;  %v1273_v36 = vsel %vm322_vm0, %v1220_v27, 0.0  ;;  %v1222_v21 = vmul.f32 %v2153_v45, %v2153_v45 }
 0x142   : > { %v951_v44 = vld [vmem:[#allocation2 + $0x78] sm:$0xff]  ;;  %1111 = vst.msk [vmem:[%s2029_s12 + $0x38] sm:$0xf] %vm1096_vm1, %v1595_v38  ;;  %v1257_v46 = vsel %vm322_vm0, %v1212_v40, 0.0  ;;  %v1275_v39 = vsel %vm322_vm0, %v1221_v24, 0.0  ;;  %v1176_v2 = vsel %vm322_vm0, %v2153_v45, 0.0  ;;  %v1223_v40 = vmul.f32 %v2171_v25, %v2171_v25 }
 0x143   : > { %v1596_v47 = vpack.c.bf16 %v951_v44, %v951_v44  ;;  %v1158_v48 = vsel %vm322_vm0, %v951_v44, 0.0  ;;  %v1213_v49 = vmul.f32 %v951_v44, %v951_v44  ;;  %v1258_v51 = vadd.f32 %v1257_v46, %v1256_v42  ;;  %v2245_v1 = vld [vmem:[#allocation2 + $0xf8] sm:$0xff]  ;;  %1127 = vst.msk [vmem:[%s2029_s12 + $0x78] sm:$0xf] %vm1096_vm1, %v1611_v0 }
 0x144   : > { %v1159_v52 = vadd.f32 %v1158_v48, %v1157_v43  ;;  %v1612_v4 = vpack.c.bf16 %v2245_v1, %v2245_v1  ;;  %v1277_v43 = vsel %vm322_vm0, %v1222_v21, 0.0  ;;  %v1178_v23 = vsel %vm322_vm0, %v2171_v25, 0.0 }
 0x145   : > { %1112 = vst.msk [vmem:[%s2029_s12 + $0x3c] sm:$0xf] %vm1096_vm1, %v1596_v47  ;;  %v1259_v59 = vsel %vm322_vm0, %v1213_v49, 0.0  ;;  %v1224_v44 = vmul.f32 %v2188_v50, %v2188_v50  ;;  %v1279_v48 = vsel %vm322_vm0, %v1223_v40, 0.0  ;;  %v1180_v45 = vsel %vm322_vm0, %v2188_v50, 0.0 }
 0x146   : > { %v1161_v62 = vadd.f32 %v1160_v55, %v1159_v52  ;;  %v1260_v63 = vadd.f32 %v1259_v59, %v1258_v51  ;;  %1128 = vst.msk [vmem:[%s2029_s12 + $0x7c] sm:$0xf] %vm1096_vm1, %v1612_v4  ;;  %v1225_v49 = vmul.f32 %v2192_v61, %v2192_v61  ;;  %v1182_v25 = vsel %vm322_vm0, %v2192_v61, 0.0 }
 0x147   : > { %v1281_v55 = vsel %vm322_vm0, %v1224_v44, 0.0  ;;  %v1226_v57 = vmul.f32 %v2205_v13, %v2205_v13  ;;  %v1184_v50 = vsel %vm322_vm0, %v2205_v13, 0.0  ;;  %v1227_v0 = vmul.f32 %v2218_v33, %v2218_v33 }
 0x148   : > { %v1163_v5 = vadd.f32 %v1162_v26, %v1161_v62  ;;  %v1262_v6 = vadd.f32 %v1261_v54, %v1260_v63  ;;  %v1283_v63 = vsel %vm322_vm0, %v1225_v49, 0.0  ;;  %v1228_v54 = vmul.f32 %v2241_v60, %v2241_v60 }
 0x149   : > { %v1285_v61 = vsel %vm322_vm0, %v1226_v57, 0.0  ;;  %v1186_v4 = vsel %vm322_vm0, %v2218_v33, 0.0  ;;  %v1229_v9 = vmul.f32 %v2245_v1, %v2245_v1 }
 0x14a   : > { %v1165_v32 = vadd.f32 %v1164_v8, %v1163_v5  ;;  %v1264_v10 = vadd.f32 %v1263_v7, %v1262_v6  ;;  %v1188_v5 = vsel %vm322_vm0, %v2241_v60, 0.0  ;;  %v1287_v7 = vsel %vm322_vm0, %v1227_v0, 0.0 }
 0x14b   : > { %v1289_v8 = vsel %vm322_vm0, %v1228_v54, 0.0  ;;  %v1291_v14 = vsel %vm322_vm0, %v1229_v9, 0.0 }
 0x14c   : > { %v1167_v15 = vadd.f32 %v1166_v12, %v1165_v32  ;;  %v1266_v16 = vadd.f32 %v1265_v11, %v1264_v10  ;;  %v1190_v11 = vsel %vm322_vm0, %v2245_v1, 0.0 }
 0x14e   : > { %v1268_v19 = vadd.f32 %v1267_v17, %v1266_v16  ;;  %v1169_v20 = vadd.f32 %v1168_v53, %v1167_v15 }
 0x150   : > { %v1171_v29 = vadd.f32 %v1170_v58, %v1169_v20  ;;  %v1270_v30 = vadd.f32 %v1269_v28, %v1268_v19 }
 0x152   : > { %v1173_v34 = vadd.f32 %v1172_v22, %v1171_v29  ;;  %v1272_v35 = vadd.f32 %v1271_v31, %v1270_v30 }
 0x154   : > { %v1175_v37 = vadd.f32 %v1174_v56, %v1173_v34  ;;  %v1274_v38 = vadd.f32 %v1273_v36, %v1272_v35 }
 0x156   : > { %v1177_v41 = vadd.f32 %v1176_v2, %v1175_v37  ;;  %v1276_v42 = vadd.f32 %v1275_v39, %v1274_v38 }
 0x158   : > { %v1278_v46 = vadd.f32 %v1277_v43, %v1276_v42  ;;  %v1179_v47 = vadd.f32 %v1178_v23, %v1177_v41 }
 0x15a   : > { %v1280_v51 = vadd.f32 %v1279_v48, %v1278_v46  ;;  %v1181_v52 = vadd.f32 %v1180_v45, %v1179_v47 }
 0x15c   : > { %v1282_v59 = vadd.f32 %v1281_v55, %v1280_v51  ;;  %v1183_v62 = vadd.f32 %v1182_v25, %v1181_v52 }
 0x15e   : > { %v1284_v26 = vadd.f32 %v1283_v63, %v1282_v59  ;;  %v1185_v3 = vadd.f32 %v1184_v50, %v1183_v62 }
 0x160   : > { %v1286_v6 = vadd.f32 %v1285_v61, %v1284_v26  ;;  %v1187_v13 = vadd.f32 %v1186_v4, %v1185_v3 }
 0x162   : > { %v1288_v32 = vadd.f32 %v1287_v7, %v1286_v6  ;;  %v1189_v10 = vadd.f32 %v1188_v5, %v1187_v13 }
 0x164   : > { %v1290_v12 = vadd.f32 %v1289_v8, %v1288_v32  ;;  %v1191_v33 = vadd.f32 %v1190_v11, %v1189_v10 }
 0x166   : > { %v1192_v60 = vrot.slane %v1191_v33, 4  ;;  %v1292_v15 = vadd.f32 %v1291_v14, %v1290_v12 }
 0x168   : > { %v1193_v16 = vadd.f32 %v1192_v60, %v1191_v33  ;;  %v1293_v17 = vrot.slane %v1292_v15, 4 }
 0x16a   : > { %v1194_v53 = vrot.slane %v1193_v16, 2  ;;  %v1294_v18 = vadd.f32 %v1293_v17, %v1292_v15 }
 0x16c   : > { %v1195_v19 = vadd.f32 %v1194_v53, %v1193_v16  ;;  %v1295_v20 = vrot.slane %v1294_v18, 2 }
 0x16e   : > { %v1196_v28 = vrot.slane %v1195_v19, 1  ;;  %v1296_v58 = vadd.f32 %v1295_v20, %v1294_v18 }
 0x170   : > { %v1197_v1 = vadd.f32 %v1196_v28, %v1195_v19  ;;  %v1297_v27 = vrot.slane %v1296_v58, 1 }
 0x172   : > { %v1298_v29 = vadd.f32 %v1297_v27, %v1296_v58  ;;  %1299 = vst.msk [vmem:[%s309_s19] sm:$0xff] %vm322_vm0, %v1197_v1 }
 0x174   : > { %1300 = vst.msk [vmem:[%s316_s23] sm:$0xff] %vm322_vm0, %v1298_v29 }
 0x175 PF: > { %s15_s17 = sadd.s32 1, %s1852_s17   ;;  %s2351_s15 = smov %s1848_s16 }
 0x176   : > { %p12_p6 = scmp.ge.s32.totalorder %s15_s17, 4   ;;  %s2352_s16 = smov %s2354_s18 }
 0x178   :  { %14 = sbr.rel (!%p12_p6) target bundleno = 2 (0x2), region = 93 }

// kernel: feature_extractor_forward.44
= control target key start
LH: loop header
LB: loop body
LE: loop exit
PB: predicated region body
PF: predicated region fallthrough
CT: control target
= control target key end

     0   :  { %s222_s0 = inlined_call_operand.vmem [shape: bf16[64,128], index: 0, kind: input, shape index: {}]   ;;  %s223_s1 = inlined_call_operand.vmem [shape: f32[1,128], index: 1, kind: input, shape index: {}]   ;;  %s224_s2 = inlined_call_operand.vmem [shape: f32[1,128], index: 2, kind: input, shape index: {}]   ;;  %s225_s3 = inlined_call_operand.vmem [shape: bf16[64,128], index: 3, kind: output, shape index: {}]  }
   0x1   :  { %v131_v0 = vld [vmem:[%s222_s0] sm:$0xff]   ;;  %v166_v4 = vld [vmem:[%s222_s0 + $0x8] sm:$0xff]   ;;  %v167_v5 = vld [vmem:[%s222_s0 + $0x10] sm:$0xff]  }
   0x2   :  { %v112_v1 = vld [vmem:[%s223_s1] ss:$0 sm:$0xff]  ;;  %v132_v2 = vunpack.c.l.bf16 %v131_v0  ;;  %v133_v3 = vunpack.c.h.bf16 %v131_v0  ;;  %v168_v6 = vld [vmem:[%s222_s0 + $0x18] sm:$0xff]   ;;  %v136_v8 = vunpack.c.l.bf16 %v166_v4  ;;  %v137_v9 = vunpack.c.h.bf16 %v166_v4 }
   0x3   :  { %v113_v7 = vld [vmem:[%s224_s2] ss:$0 sm:$0xff]  ;;  %v140_v10 = vunpack.c.l.bf16 %v167_v5  ;;  %v141_v11 = vunpack.c.h.bf16 %v167_v5  ;;  %v144_v14 = vunpack.c.l.bf16 %v168_v6  ;;  %v145_v15 = vunpack.c.h.bf16 %v168_v6 }
   0x4   :  { %v37_v12 = vmul.f32 %v132_v2, %v112_v1  ;;  %v38_v13 = vmul.f32 %v133_v3, %v112_v1  ;;  %v39_v16 = vmul.f32 %v136_v8, %v112_v1  ;;  %v40_v17 = vmul.f32 %v137_v9, %v112_v1 }
   0x5   :  { %v41_v18 = vmul.f32 %v140_v10, %v112_v1  ;;  %v42_v19 = vmul.f32 %v141_v11, %v112_v1  ;;  %v43_v22 = vmul.f32 %v144_v14, %v112_v1  ;;  %v44_v23 = vmul.f32 %v145_v15, %v112_v1 }
   0x6   :  { %v52_v20 = vadd.f32 %v113_v7, %v37_v12  ;;  %v53_v21 = vadd.f32 %v113_v7, %v38_v13  ;;  %v54_v24 = vadd.f32 %v113_v7, %v39_v16  ;;  %v55_v25 = vadd.f32 %v113_v7, %v40_v17 }
   0x7   :  { %v56_v26 = vadd.f32 %v113_v7, %v41_v18  ;;  %v57_v27 = vadd.f32 %v113_v7, %v42_v19  ;;  %v58_v30 = vadd.f32 %v113_v7, %v43_v22  ;;  %v59_v31 = vadd.f32 %v113_v7, %v44_v23 }
   0x8   :  { %v60_v28 = vmax.f32 %v52_v20, 0.0  ;;  %v61_v29 = vmax.f32 %v53_v21, 0.0  ;;  %v62_v32 = vmax.f32 %v54_v24, 0.0  ;;  %v63_v33 = vmax.f32 %v55_v25, 0.0 }
   0x9   :  { %v64_v34 = vmax.f32 %v56_v26, 0.0  ;;  %v65_v35 = vmax.f32 %v57_v27, 0.0  ;;  %v66_v37 = vmax.f32 %v58_v30, 0.0  ;;  %v67_v38 = vmax.f32 %v59_v31, 0.0 }
   0xa   :  { %v149_v36 = vpack.c.bf16 %v61_v29, %v60_v28  ;;  %v154_v39 = vpack.c.bf16 %v63_v33, %v62_v32 }
   0xb   :  { %v159_v40 = vpack.c.bf16 %v65_v35, %v64_v34  ;;  %v164_v41 = vpack.c.bf16 %v67_v38, %v66_v37 }
   0xc   :  { %150 = vst [vmem:[%s225_s3] sm:$0xff] %v149_v36   ;;  %169 = vst [vmem:[%s225_s3 + $0x8] sm:$0xff] %v154_v39  }
   0xd   :  { %170 = vst [vmem:[%s225_s3 + $0x10] sm:$0xff] %v159_v40   ;;  %171 = vst [vmem:[%s225_s3 + $0x18] sm:$0xff] %v164_v41  }

// kernel: feature_extractor_forward.43
= control target key start
LH: loop header
LB: loop body
LE: loop exit
PB: predicated region body
PF: predicated region fallthrough
CT: control target
= control target key end

     0   :  { %s1318_s15 = smov 0   ;;  %s1320_s16 = smov 0   ;;  %s1559_s0 = inlined_call_operand.vmem [shape: bf16[128,640], index: 0, kind: input, shape index: {}]   ;;  %s1560_s1 = inlined_call_operand.vmem [shape: bf16[640,64], index: 1, kind: input, shape index: {}]   ;;  %s1561_s2 = inlined_call_operand.vmem [shape: bf16[128,64], index: 2, kind: output, shape index: {0}]   ;;  %s1562_s3 = inlined_call_operand.vmem [shape: f32[8,64], index: 3, kind: output, shape index: {1}]   ;;  %s1563_s4 = inlined_call_operand.vmem [shape: f32[8,64], index: 4, kind: output, shape index: {2}]  }
   0x1   :  { %s1322_s17 = smov 0   ;;  %s1324_s18 = smov 0  }
   0x2   :  { %s1326_s19 = smov 0  }
   0x3 LB: > { %s27_s20 = sadd.s32 1, %s1286_s18  ;;  %p50_p1 = scmp.ne.s32.totalorder %s1278_s16, %s1274_s15  ;;  %s1290_s19 = sphi %s1326_s19, %s15_s19   ;;  %s1286_s18 = sphi %s1324_s18, %s1567_s18   ;;  %s1282_s17 = sphi %s1322_s17, %s1566_s17   ;;  %s1278_s16 = sphi %s1320_s16, %s1565_s16   ;;  %s1274_s15 = sphi %s1318_s15, %s1564_s15  }
   0x4   : > { %p28_p0 = scmp.ge.s32.totalorder %s27_s20, 5  ;;  %p51_p2 = scmp.eq.s32.totalorder %s1290_s19, 0 }
   0x5   : > { %s43_s22 = sadd.s32 1, %s1278_s16  ;;  %p1068_p5 = scmp.ge.s32.totalorder %s1290_s19, 5 }
   0x6   : > { %s1569_s20 = smov (%p28_p0, %s27_s20), 0  ;;  %p52_p3 = por %p51_p2, %p50_p1 }
   0x7   : > { %s39_s21 = ssub.s32 %s1286_s18, %s1569_s20  ;;  %188 = sbr.rel (%p1068_p5) target bundleno = 28 (0x1c), region = 16 }
   0x8   : > { %p41_p4 = scmp.eq.s32.totalorder %s39_s21, 0 }
   0xa   : > { %s1353_s23 = scalar_select %p41_p4, %s1278_s16, %s43_s22  }
   0xe   : > { %191 = sbr.rel (!%p52_p3) target bundleno = 28 (0x1c), region = 20  ;;  %s193_s24 = sand.u32 (%p52_p3), 1, %s1278_s16  }
   0xf   : > { %s1070_s25 = sshll.u32 (%p52_p3), %s1286_s18, 2  ;;  %s1069_s26 = sshll.u32 (%p52_p3), %s193_s24, 6 }
  0x10   : > { %s1361_s29 = scalar_lea.vmem (%p52_p3), %s1559_s0, %s1070_s25  ;;  %s195_s30 = scalar_lea.vmem (%p52_p3), [#allocation3], %s1069_s26 }
  0x11   : > { %v216_v0 = vld [vmem:[%s1361_s29] sm:$0xf] (%p52_p3)  ;;  %v218_v1 = vld [vmem:[%s1361_s29 + $0x14] sm:$0xf] (%p52_p3)  ;;  %v220_v2 = vld [vmem:[%s1361_s29 + $0x28] sm:$0xf] (%p52_p3) }
  0x12   : > { %217 = vst [vmem:[%s195_s30] sm:$0xf] (%p52_p3), %v216_v0  ;;  %219 = vst [vmem:[%s195_s30 + $0x4] sm:$0xf] (%p52_p3), %v218_v1  ;;  %v222_v3 = vld [vmem:[%s1361_s29 + $0x3c] sm:$0xf] (%p52_p3) }
  0x13   : > { %v224_v4 = vld [vmem:[%s1361_s29 + $0x50] sm:$0xf] (%p52_p3)  ;;  %221 = vst [vmem:[%s195_s30 + $0x8] sm:$0xf] (%p52_p3), %v220_v2  ;;  %223 = vst [vmem:[%s195_s30 + $0xc] sm:$0xf] (%p52_p3), %v222_v3 }
  0x14   : > { %225 = vst [vmem:[%s195_s30 + $0x10] sm:$0xf] (%p52_p3), %v224_v4  ;;  %v226_v5 = vld [vmem:[%s1361_s29 + $0x64] sm:$0xf] (%p52_p3)  ;;  %v228_v6 = vld [vmem:[%s1361_s29 + $0x78] sm:$0xf] (%p52_p3) }
  0x15   : > { %v230_v7 = vld [vmem:[%s1361_s29 + $0x8c] sm:$0xf]  ;;  %227 = vst [vmem:[%s195_s30 + $0x14] sm:$0xf] %v226_v5  ;;  %229 = vst [vmem:[%s195_s30 + $0x18] sm:$0xf] %v228_v6 }
  0x16   : > { %231 = vst [vmem:[%s195_s30 + $0x1c] sm:$0xf] %v230_v7  ;;  %v232_v8 = vld [vmem:[%s1361_s29 + $0xa0] sm:$0xf]  ;;  %v234_v9 = vld [vmem:[%s1361_s29 + $0xb4] sm:$0xf] }
  0x17   : > { %v236_v10 = vld [vmem:[%s1361_s29 + $0xc8] sm:$0xf]  ;;  %233 = vst [vmem:[%s195_s30 + $0x20] sm:$0xf] %v232_v8  ;;  %235 = vst [vmem:[%s195_s30 + $0x24] sm:$0xf] %v234_v9 }
  0x18   : > { %237 = vst [vmem:[%s195_s30 + $0x28] sm:$0xf] %v236_v10  ;;  %v238_v11 = vld [vmem:[%s1361_s29 + $0xdc] sm:$0xf]  ;;  %v240_v12 = vld [vmem:[%s1361_s29 + $0xf0] sm:$0xf] }
  0x19   : > { %v242_v13 = vld [vmem:[%s1361_s29 + $0x104] sm:$0xf]  ;;  %239 = vst [vmem:[%s195_s30 + $0x2c] sm:$0xf] %v238_v11  ;;  %241 = vst [vmem:[%s195_s30 + $0x30] sm:$0xf] %v240_v12 }
  0x1a   : > { %243 = vst [vmem:[%s195_s30 + $0x34] sm:$0xf] %v242_v13  ;;  %v244_v14 = vld [vmem:[%s1361_s29 + $0x118] sm:$0xf]  ;;  %v246_v15 = vld [vmem:[%s1361_s29 + $0x12c] sm:$0xf] }
  0x1b   : > { %245 = vst [vmem:[%s195_s30 + $0x38] sm:$0xf] %v244_v14  ;;  %247 = vst [vmem:[%s195_s30 + $0x3c] sm:$0xf] %v246_v15 }
  0x1c PF: > { %p1071_p6 = scmp.ge.s32.totalorder %s1290_s19, 1  ;;  %p313_p7 = scmp.lt.s32.totalorder %s1290_s19, 6 }
  0x1e   : > { %p314_p8 = pnand %p1071_p6, %p313_p7 }
  0x1f   : > { %s320_s5 = sand.u32 (!%p314_p8), 1, %s1274_s15   ;;  %s1073_s6 = sshll.u32 (!%p314_p8), %s1282_s17, 4 }
  0x20   : > { %317 = sbr.rel (%p314_p8) target bundleno = 353 (0x161), region = 65  ;;  %s1072_s7 = sshll.u32 (!%p314_p8), %s320_s5, 6 }
  0x21   : > { %p372_p9 = scmp.lt.s32.totalorder (!%p314_p8), %s1073_s6, 79  ;;  %s1388_s12 = scalar_lea.vmem (!%p314_p8), [#allocation3], %s1072_s7 }
  0x22   : > { %p1075_p10 = scmp.ne.s32.totalorder (!%p314_p8), %s1282_s17, 0 }
  0x27   : > { %s1571_s6 = smov (!%p372_p9, %s1073_s6), 79  ;;  %407 = sbr.rel (%p1075_p10) target bundleno = 49 (0x31), region = 73 }
  0x28   : > { %s1074_s8 = sshll.u32 %s1571_s6, 2  ;;  %vm408_vm0 = vcmask (!%p1075_p10), 523264   ;;  %v1292_v16 = vmov (!%p1075_p10), 0.0  }
  0x29   : > { %s1386_s11 = scalar_lea.vmem %s1560_s1, %s1074_s8  ;;  %409 = vst.msk [vmem:[#allocation2] sm:$0xff] (!%p1075_p10), %vm408_vm0, %v1292_v16  ;;  %410 = vst.msk [vmem:[#allocation2 + $0x8] sm:$0xff] (!%p1075_p10), %vm408_vm0, %v1292_v16 }
  0x2a   : > { %411 = vst.msk [vmem:[#allocation2 + $0x10] sm:$0xff] (!%p1075_p10), %vm408_vm0, %v1292_v16  ;;  %412 = vst.msk [vmem:[#allocation2 + $0x18] sm:$0xff] (!%p1075_p10), %vm408_vm0, %v1292_v16 }
  0x2b   : > { %413 = vst.msk [vmem:[#allocation2 + $0x20] sm:$0xff] (!%p1075_p10), %vm408_vm0, %v1292_v16  ;;  %414 = vst.msk [vmem:[#allocation2 + $0x28] sm:$0xff] (!%p1075_p10), %vm408_vm0, %v1292_v16 }
  0x2c   : > { %415 = vst.msk [vmem:[#allocation2 + $0x30] sm:$0xff] (!%p1075_p10), %vm408_vm0, %v1292_v16  ;;  %416 = vst.msk [vmem:[#allocation2 + $0x38] sm:$0xff] (!%p1075_p10), %vm408_vm0, %v1292_v16 }
  0x2d   : > { %417 = vst.msk [vmem:[#allocation2 + $0x40] sm:$0xff] (!%p1075_p10), %vm408_vm0, %v1292_v16  ;;  %418 = vst.msk [vmem:[#allocation2 + $0x48] sm:$0xff] (!%p1075_p10), %vm408_vm0, %v1292_v16 }
  0x2e   : > { %419 = vst.msk [vmem:[#allocation2 + $0x50] sm:$0xff] %vm408_vm0, %v1292_v16  ;;  %420 = vst.msk [vmem:[#allocation2 + $0x58] sm:$0xff] %vm408_vm0, %v1292_v16 }
  0x2f   : > { %421 = vst.msk [vmem:[#allocation2 + $0x60] sm:$0xff] %vm408_vm0, %v1292_v16  ;;  %422 = vst.msk [vmem:[#allocation2 + $0x68] sm:$0xff] %vm408_vm0, %v1292_v16 }
  0x30   : > { %423 = vst.msk [vmem:[#allocation2 + $0x70] sm:$0xff] %vm408_vm0, %v1292_v16  ;;  %424 = vst.msk [vmem:[#allocation2 + $0x78] sm:$0xff] %vm408_vm0, %v1292_v16 }
  0x31 PF: > { %v1236_v17 = vld [vmem:[%s1386_s11] sm:$0xff]   ;;  %v1237_v18 = vld [vmem:[%s1386_s11 + $0x8] sm:$0xff]   ;;  %v1238_v19 = vld [vmem:[%s1386_s11 + $0x10] sm:$0xff]   ;;  %vm682_vm1 = vcmask 523264   ;;  %p1092_p11 = scmp.ne.s32.totalorder %s1282_s17, 4 }
  0x32   : > { %1147 = vmatprep.subr.bf16.mxu0 %v1236_v17  ;;  %1179 = vmatprep.subr.bf16.mxu1 %v1236_v17  ;;  %v1239_v20 = vld [vmem:[%s1386_s11 + $0x18] sm:$0xff]   ;;  %v1244_v21 = vld [vmem:[%s1388_s12] sm:$0xff]   ;;  %v1241_v24 = vld [vmem:[%s1386_s11 + $0x28] sm:$0xff]   ;;  %vm783_vm2 = vcmask (!%p1092_p11), 519168  }
  0x33   : > { %1148 = vmatpush3.bf16.msra.mxu0 %v1236_v17  ;;  %1187 = vmatpush3.bf16.msra.mxu1 %v1236_v17  ;;  %v1245_v22 = vld [vmem:[%s1388_s12 + $0x20] sm:$0xff]   ;;  %v1242_v25 = vld [vmem:[%s1386_s11 + $0x30] sm:$0xff]   ;;  %v1243_v26 = vld [vmem:[%s1386_s11 + $0x38] sm:$0xff]  }
  0x34   : > { %1149 = vmatprep.subr.bf16.mxu0 %v1237_v18  ;;  %1180 = vmatprep.subr.bf16.mxu1 %v1237_v18  ;;  %v1240_v23 = vld [vmem:[%s1386_s11 + $0x20] sm:$0xff]   ;;  %v1246_v27 = vld [vmem:[%s1388_s12 + $0x8] sm:$0xff]   ;;  %v1248_v29 = vld [vmem:[%s1388_s12 + $0x10] sm:$0xff]  }
  0x35   : > { %1163 = vmatprep.mubr.bf16.mxu0 %v1244_v21  ;;  %1171 = vmatprep.mubr.bf16.mxu1 %v1245_v22  ;;  %v1247_v28 = vld [vmem:[%s1388_s12 + $0x28] sm:$0xff]   ;;  %v1249_v30 = vld [vmem:[%s1388_s12 + $0x30] sm:$0xff]   ;;  %v1250_v31 = vld [vmem:[%s1388_s12 + $0x18] sm:$0xff]  }
  0x36   : > { %v1251_v32 = vld [vmem:[%s1388_s12 + $0x38] sm:$0xff]   ;;  %v427_v33 = vld [vmem:[#allocation2 + $0x10] sm:$0xff]  ;;  %v425_v35 = vld [vmem:[#allocation2] sm:$0xff] }
  0x37   : > { %1150 = vmatpush3.bf16.msra.mxu0 %v1237_v18  ;;  %1188 = vmatpush3.bf16.msra.mxu1 %v1237_v18  ;;  %v435_v34 = vld [vmem:[#allocation2 + $0x50] sm:$0xff]  ;;  %v433_v36 = vld [vmem:[#allocation2 + $0x40] sm:$0xff]  ;;  %v428_v39 = vld [vmem:[#allocation2 + $0x18] sm:$0xff] }
  0x38   : > { %1151 = vmatprep.subr.bf16.mxu0 %v1238_v19  ;;  %1181 = vmatprep.subr.bf16.mxu1 %v1238_v19  ;;  %v436_v40 = vld [vmem:[#allocation2 + $0x58] sm:$0xff]  ;;  %v426_v45 = vld [vmem:[#allocation2 + $0x8] sm:$0xff]  ;;  %v431_v57 = vld [vmem:[#allocation2 + $0x30] sm:$0xff] }
  0x39   : > { %v434_v46 = vld [vmem:[#allocation2 + $0x48] sm:$0xff]  ;;  %v439_v58 = vld [vmem:[#allocation2 + $0x70] sm:$0xff]  ;;  %v429_v59 = vld [vmem:[#allocation2 + $0x20] sm:$0xff] }
  0x3a   : > { %v437_v60 = vld [vmem:[#allocation2 + $0x60] sm:$0xff]  ;;  %v432_v63 = vld [vmem:[#allocation2 + $0x38] sm:$0xff]  ;;  %v430_v5 = vld [vmem:[#allocation2 + $0x28] sm:$0xff] }
  0x3b   : > { %1152 = vmatpush3.bf16.msra.mxu0 %v1238_v19  ;;  %1189 = vmatpush3.bf16.msra.mxu1 %v1238_v19  ;;  %v440_v0 = vld [vmem:[#allocation2 + $0x78] sm:$0xff]  ;;  %v438_v6 = vld [vmem:[#allocation2 + $0x68] sm:$0xff] }
  0x3c   : > { %1153 = vmatprep.subr.bf16.mxu0 %v1239_v20  ;;  %1182 = vmatprep.subr.bf16.mxu1 %v1239_v20 }
  0x3f   : > { %1154 = vmatpush3.bf16.msra.mxu0 %v1239_v20  ;;  %1190 = vmatpush3.bf16.msra.mxu1 %v1239_v20 }
  0x40   : > { %1155 = vmatprep.subr.bf16.mxu0 %v1240_v23  ;;  %1183 = vmatprep.subr.bf16.mxu1 %v1240_v23 }
  0x43   : > { %1156 = vmatpush3.bf16.msra.mxu0 %v1240_v23  ;;  %1191 = vmatpush3.bf16.msra.mxu1 %v1240_v23 }
  0x44   : > { %1157 = vmatprep.subr.bf16.mxu0 %v1241_v24  ;;  %1184 = vmatprep.subr.bf16.mxu1 %v1241_v24 }
  0x47   : > { %1158 = vmatpush3.bf16.msra.mxu0 %v1241_v24  ;;  %1192 = vmatpush3.bf16.msra.mxu1 %v1241_v24 }
  0x48   : > { %1159 = vmatprep.subr.bf16.mxu0 %v1242_v25  ;;  %1185 = vmatprep.subr.bf16.mxu1 %v1242_v25 }
  0x4b   : > { %1160 = vmatpush3.bf16.msra.mxu0 %v1242_v25  ;;  %1193 = vmatpush3.bf16.msra.mxu1 %v1242_v25 }
  0x4c   : > { %1161 = vmatprep.subr.bf16.mxu0 %v1243_v26  ;;  %1186 = vmatprep.subr.bf16.mxu1 %v1243_v26 }
  0x4f   : > { %1162 = vmatpush3.bf16.msra.mxu0 %v1243_v26  ;;  %1194 = vmatpush3.bf16.msra.mxu1 %v1243_v26 }
  0x52   : > { %1164 = vmatmul.mubr.bf16.vlgmr.msra.gmra.mrb[0].mxu0 %v1246_v27  ;;  %1172 = vmatmul.mubr.bf16.vlgmr.msra.gmra.mrb[0].mxu1 %v1247_v28 }
  0x53   : > { %1167 = vmatprep.mubr.bf16.mxu0 %v1248_v29  ;;  %1175 = vmatprep.mubr.bf16.mxu1 %v1249_v30 }
  0x5a   : > { %1168 = vmatmul.mubr.bf16.gmra.mrb[4].mxu0 %v1250_v31  ;;  %1176 = vmatmul.mubr.bf16.gmra.mrb[4].mxu1 %v1251_v32 }
 0x125   : > { %v1165_v37 = vpop.f32.mrb[0].mxu0  ;;  %v1173_v38 = vpop.f32.mrb[0].mxu1 }
 0x126   : > { %v668_v41 = vadd.f32 %v1165_v37, %v427_v33  ;;  %v676_v42 = vadd.f32 %v1173_v38, %v435_v34  ;;  %v603_v43 = vpop.f32.mrb[1].mxu0  ;;  %v635_v44 = vpop.f32.mrb[1].mxu1 }
 0x127   : > { %v666_v47 = vadd.f32 %v603_v43, %v425_v35  ;;  %v674_v48 = vadd.f32 %v635_v44, %v433_v36  ;;  %v1166_v49 = vpop.f32.mrb[2].mxu0  ;;  %v1174_v50 = vpop.f32.mrb[2].mxu1 }
 0x128   : > { %685 = vst.msk [vmem:[#allocation2 + $0x10] sm:$0xff] %vm682_vm1, %v668_v41  ;;  %693 = vst.msk [vmem:[#allocation2 + $0x50] sm:$0xff] %vm682_vm1, %v676_v42  ;;  %v669_v51 = vadd.f32 %v1166_v49, %v428_v39  ;;  %v677_v52 = vadd.f32 %v1174_v50, %v436_v40  ;;  %v606_v53 = vpop.f32.mrb[3].mxu0  ;;  %v638_v54 = vpop.f32.mrb[3].mxu1 }
 0x129   : > { %683 = vst.msk [vmem:[#allocation2] sm:$0xff] %vm682_vm1, %v666_v47  ;;  %691 = vst.msk [vmem:[#allocation2 + $0x40] sm:$0xff] %vm682_vm1, %v674_v48  ;;  %v667_v55 = vadd.f32 %v606_v53, %v426_v45  ;;  %v675_v56 = vadd.f32 %v638_v54, %v434_v46 }
 0x12a   : > { %686 = vst.msk [vmem:[#allocation2 + $0x18] sm:$0xff] %vm682_vm1, %v669_v51  ;;  %694 = vst.msk [vmem:[#allocation2 + $0x58] sm:$0xff] %vm682_vm1, %v677_v52 }
 0x12b   : > { %684 = vst.msk [vmem:[#allocation2 + $0x8] sm:$0xff] %vm682_vm1, %v667_v55  ;;  %692 = vst.msk [vmem:[#allocation2 + $0x48] sm:$0xff] %vm682_vm1, %v675_v56 }
 0x12d   : > { %v1169_v61 = vpop.f32.mrb[4].mxu0  ;;  %v1177_v62 = vpop.f32.mrb[4].mxu1  ;;  %702 = sbr.rel (%p1092_p11) target bundleno = 353 (0x161), region = 77 }
 0x12e   : > { %v672_v1 = vadd.f32 %v1169_v61, %v431_v57  ;;  %v680_v2 = vadd.f32 %v1177_v62, %v439_v58  ;;  %v619_v3 = vpop.f32.mrb[5].mxu0  ;;  %v651_v4 = vpop.f32.mrb[5].mxu1 }
 0x12f   : > { %v670_v7 = vadd.f32 %v619_v3, %v429_v59  ;;  %v678_v8 = vadd.f32 %v651_v4, %v437_v60  ;;  %v1170_v9 = vpop.f32.mrb[6].mxu0  ;;  %v1178_v10 = vpop.f32.mrb[6].mxu1  ;;  %v705_v19 = vld [vmem:[#allocation2 + $0x10] sm:$0xff] (!%p1092_p11) }
 0x130   : > { %689 = vst.msk [vmem:[#allocation2 + $0x30] sm:$0xff] %vm682_vm1, %v672_v1  ;;  %697 = vst.msk [vmem:[#allocation2 + $0x70] sm:$0xff] %vm682_vm1, %v680_v2  ;;  %v673_v11 = vadd.f32 %v1170_v9, %v432_v63  ;;  %v681_v12 = vadd.f32 %v1178_v10, %v440_v0  ;;  %v622_v13 = vpop.f32.mrb[7].mxu0  ;;  %v654_v14 = vpop.f32.mrb[7].mxu1  ;;  %v703_v17 = vld [vmem:[#allocation2] sm:$0xff] (!%p1092_p11)  ;;  %v1117_v27 = vpack.c.bf16 (!%p1092_p11), %v705_v19, %v705_v19  ;;  %v803_v28 = vsel (!%p1092_p11), %vm682_vm1, %v705_v19, 0.0 }
 0x131   : > { %687 = vst.msk [vmem:[#allocation2 + $0x20] sm:$0xff] %vm682_vm1, %v670_v7  ;;  %695 = vst.msk [vmem:[#allocation2 + $0x60] sm:$0xff] %vm682_vm1, %v678_v8  ;;  %v671_v15 = vadd.f32 %v622_v13, %v430_v5  ;;  %v679_v16 = vadd.f32 %v654_v14, %v438_v6  ;;  %v1115_v20 = vpack.c.bf16 (!%p1092_p11), %v703_v17, %v703_v17  ;;  %v800_v21 = vsel (!%p1092_p11), %vm682_vm1, %v703_v17, 0.0  ;;  %v706_v24 = vld [vmem:[#allocation2 + $0x18] sm:$0xff] (!%p1092_p11)  ;;  %v711_v58 = vld [vmem:[#allocation2 + $0x40] sm:$0xff] (!%p1092_p11) }
 0x132   : > { %690 = vst.msk [vmem:[#allocation2 + $0x38] sm:$0xff] %vm682_vm1, %v673_v11  ;;  %698 = vst.msk [vmem:[#allocation2 + $0x78] sm:$0xff] %vm682_vm1, %v681_v12  ;;  %v704_v18 = vld [vmem:[#allocation2 + $0x8] sm:$0xff] (!%p1092_p11)  ;;  %v837_v22 = vmul.f32 (!%p1092_p11), %v703_v17, %v703_v17  ;;  %v839_v31 = vmul.f32 (!%p1092_p11), %v705_v19, %v705_v19  ;;  %v1118_v32 = vpack.c.bf16 (!%p1092_p11), %v706_v24, %v706_v24  ;;  %v805_v35 = vsel (!%p1092_p11), %vm682_vm1, %v706_v24, 0.0  ;;  %v713_v3 = vld [vmem:[#allocation2 + $0x50] sm:$0xff] (!%p1092_p11) }
 0x133   : > { %688 = vst.msk [vmem:[#allocation2 + $0x28] sm:$0xff] %vm682_vm1, %v671_v15  ;;  %696 = vst.msk [vmem:[#allocation2 + $0x68] sm:$0xff] %vm682_vm1, %v679_v16  ;;  %v1116_v23 = vpack.c.bf16 (!%p1092_p11), %v704_v18, %v704_v18  ;;  %v801_v25 = vsel (!%p1092_p11), %vm682_vm1, %v704_v18, 0.0  ;;  %v838_v26 = vmul.f32 (!%p1092_p11), %v704_v18, %v704_v18  ;;  %v840_v36 = vmul.f32 (!%p1092_p11), %v706_v24, %v706_v24  ;;  %v712_v63 = vld [vmem:[#allocation2 + $0x48] sm:$0xff] (!%p1092_p11)  ;;  %v714_v10 = vld [vmem:[#allocation2 + $0x58] sm:$0xff] (!%p1092_p11) }
 0x134   : > { %784 = vst.msk [vmem:[%s1561_s2] sm:$0xf] %vm783_vm2, %v1115_v20  ;;  %v853_v29 = vsel %vm682_vm1, %v837_v22, 0.0  ;;  %v802_v30 = vadd.f32 %v801_v25, %v800_v21  ;;  %786 = vst.msk [vmem:[%s1561_s2 + $0x8] sm:$0xf] %vm783_vm2, %v1117_v27  ;;  %v856_v41 = vsel %vm682_vm1, %v839_v31, 0.0  ;;  %v1123_v62 = vpack.c.bf16 %v711_v58, %v711_v58 }
 0x135   : > { %785 = vst.msk [vmem:[%s1561_s2 + $0x4] sm:$0xf] %vm783_vm2, %v1116_v23  ;;  %v854_v34 = vsel %vm682_vm1, %v838_v26, 0.0  ;;  %787 = vst.msk [vmem:[%s1561_s2 + $0xc] sm:$0xf] %vm783_vm2, %v1118_v32  ;;  %v858_v43 = vsel %vm682_vm1, %v840_v36, 0.0  ;;  %v1124_v2 = vpack.c.bf16 %v712_v63, %v712_v63  ;;  %v845_v6 = vmul.f32 %v711_v58, %v711_v58 }
 0x136   : > { %v855_v39 = vadd.f32 %v854_v34, %v853_v29  ;;  %v804_v40 = vadd.f32 %v803_v28, %v802_v30  ;;  %792 = vst.msk [vmem:[%s1561_s2 + $0x20] sm:$0xf] %vm783_vm2, %v1123_v62  ;;  %v1125_v7 = vpack.c.bf16 %v713_v3, %v713_v3  ;;  %v815_v12 = vsel %vm682_vm1, %v711_v58, 0.0 }
 0x137   : > { %v709_v42 = vld [vmem:[#allocation2 + $0x30] sm:$0xff]  ;;  %793 = vst.msk [vmem:[%s1561_s2 + $0x24] sm:$0xf] %vm783_vm2, %v1124_v2  ;;  %v846_v13 = vmul.f32 %v712_v63, %v712_v63  ;;  %v1126_v14 = vpack.c.bf16 %v714_v10, %v714_v10  ;;  %v868_v20 = vsel %vm682_vm1, %v845_v6, 0.0  ;;  %v817_v21 = vsel %vm682_vm1, %v712_v63, 0.0 }
 0x138   : > { %v707_v33 = vld [vmem:[#allocation2 + $0x20] sm:$0xff]  ;;  %v857_v47 = vadd.f32 %v856_v41, %v855_v39  ;;  %v806_v48 = vadd.f32 %v805_v35, %v804_v40  ;;  %v1121_v50 = vpack.c.bf16 %v709_v42, %v709_v42  ;;  %v843_v54 = vmul.f32 %v709_v42, %v709_v42  ;;  %794 = vst.msk [vmem:[%s1561_s2 + $0x28] sm:$0xf] %vm783_vm2, %v1125_v7  ;;  %v717_v26 = vld [vmem:[#allocation2 + $0x70] sm:$0xff] }
 0x139   : > { %v1119_v37 = vpack.c.bf16 %v707_v33, %v707_v33  ;;  %v807_v44 = vsel %vm682_vm1, %v707_v33, 0.0  ;;  %v841_v45 = vmul.f32 %v707_v33, %v707_v33  ;;  %v710_v51 = vld [vmem:[#allocation2 + $0x38] sm:$0xff]  ;;  %v811_v60 = vsel %vm682_vm1, %v709_v42, 0.0  ;;  %v715_v15 = vld [vmem:[#allocation2 + $0x60] sm:$0xff]  ;;  %795 = vst.msk [vmem:[%s1561_s2 + $0x2c] sm:$0xf] %vm783_vm2, %v1126_v14 }
 0x13a   : > { %v708_v38 = vld [vmem:[#allocation2 + $0x28] sm:$0xff]  ;;  %v1122_v55 = vpack.c.bf16 %v710_v51, %v710_v51  ;;  %v859_v56 = vadd.f32 %v858_v43, %v857_v47  ;;  %v808_v57 = vadd.f32 %v807_v44, %v806_v48  ;;  %790 = vst.msk [vmem:[%s1561_s2 + $0x18] sm:$0xf] %vm783_vm2, %v1121_v50  ;;  %v844_v61 = vmul.f32 %v710_v51, %v710_v51  ;;  %v718_v31 = vld [vmem:[#allocation2 + $0x78] sm:$0xff] }
 0x13b   : > { %788 = vst.msk [vmem:[%s1561_s2 + $0x10] sm:$0xf] %vm783_vm2, %v1119_v37  ;;  %v1120_v46 = vpack.c.bf16 %v708_v38, %v708_v38  ;;  %v842_v49 = vmul.f32 %v708_v38, %v708_v38  ;;  %v860_v52 = vsel %vm682_vm1, %v841_v45, 0.0  ;;  %v809_v53 = vsel %vm682_vm1, %v708_v38, 0.0  ;;  %v716_v19 = vld [vmem:[#allocation2 + $0x68] sm:$0xff] }
 0x13c   : > { %791 = vst.msk [vmem:[%s1561_s2 + $0x1c] sm:$0xf] %vm783_vm2, %v1122_v55  ;;  %v861_v0 = vadd.f32 %v860_v52, %v859_v56  ;;  %v810_v1 = vadd.f32 %v809_v53, %v808_v57  ;;  %v864_v4 = vsel %vm682_vm1, %v843_v54, 0.0  ;;  %v813_v5 = vsel %vm682_vm1, %v710_v51, 0.0 }
 0x13d   : > { %789 = vst.msk [vmem:[%s1561_s2 + $0x14] sm:$0xf] %vm783_vm2, %v1120_v46  ;;  %v862_v59 = vsel %vm682_vm1, %v842_v49, 0.0  ;;  %v866_v11 = vsel %vm682_vm1, %v844_v61, 0.0  ;;  %v1127_v18 = vpack.c.bf16 %v715_v15, %v715_v15  ;;  %v847_v22 = vmul.f32 %v713_v3, %v713_v3 }
 0x13e   : > { %v863_v8 = vadd.f32 %v862_v59, %v861_v0  ;;  %v812_v9 = vadd.f32 %v811_v60, %v810_v1  ;;  %v1128_v23 = vpack.c.bf16 %v716_v19, %v716_v19  ;;  %v870_v27 = vsel %vm682_vm1, %v846_v13, 0.0 }
 0x13f   : > { %796 = vst.msk [vmem:[%s1561_s2 + $0x30] sm:$0xf] %vm783_vm2, %v1127_v18  ;;  %v819_v28 = vsel %vm682_vm1, %v713_v3, 0.0  ;;  %v848_v29 = vmul.f32 %v714_v10, %v714_v10  ;;  %v1129_v30 = vpack.c.bf16 %v717_v26, %v717_v26  ;;  %v1130_v34 = vpack.c.bf16 %v718_v31, %v718_v31 }
 0x140   : > { %v865_v16 = vadd.f32 %v864_v4, %v863_v8  ;;  %v814_v17 = vadd.f32 %v813_v5, %v812_v9  ;;  %797 = vst.msk [vmem:[%s1561_s2 + $0x34] sm:$0xf] %vm783_vm2, %v1128_v23  ;;  %v872_v35 = vsel %vm682_vm1, %v847_v22, 0.0  ;;  %v821_v36 = vsel %vm682_vm1, %v714_v10, 0.0 }
 0x141   : > { %v849_v37 = vmul.f32 %v715_v15, %v715_v15  ;;  %798 = vst.msk [vmem:[%s1561_s2 + $0x38] sm:$0xf] %vm783_vm2, %v1129_v30  ;;  %799 = vst.msk [vmem:[%s1561_s2 + $0x3c] sm:$0xf] %vm783_vm2, %v1130_v34  ;;  %v874_v40 = vsel %vm682_vm1, %v848_v29, 0.0  ;;  %v823_v41 = vsel %vm682_vm1, %v715_v15, 0.0  ;;  %v850_v42 = vmul.f32 %v716_v19, %v716_v19 }
 0x142   : > { %v867_v24 = vadd.f32 %v866_v11, %v865_v16  ;;  %v816_v25 = vadd.f32 %v815_v12, %v814_v17  ;;  %v825_v46 = vsel %vm682_vm1, %v716_v19, 0.0  ;;  %v851_v47 = vmul.f32 %v717_v26, %v717_v26 }
 0x143   : > { %v876_v45 = vsel %vm682_vm1, %v849_v37, 0.0  ;;  %v878_v50 = vsel %vm682_vm1, %v850_v42, 0.0  ;;  %v827_v51 = vsel %vm682_vm1, %v717_v26, 0.0  ;;  %v852_v52 = vmul.f32 %v718_v31, %v718_v31 }
 0x144   : > { %v869_v32 = vadd.f32 %v868_v20, %v867_v24  ;;  %v818_v33 = vadd.f32 %v817_v21, %v816_v25  ;;  %v880_v55 = vsel %vm682_vm1, %v851_v47, 0.0  ;;  %v829_v56 = vsel %vm682_vm1, %v718_v31, 0.0 }
 0x145   : > { %v882_v59 = vsel %vm682_vm1, %v852_v52, 0.0 }
 0x146   : > { %v871_v38 = vadd.f32 %v870_v27, %v869_v32  ;;  %v820_v39 = vadd.f32 %v819_v28, %v818_v33 }
 0x148   : > { %v873_v43 = vadd.f32 %v872_v35, %v871_v38  ;;  %v822_v44 = vadd.f32 %v821_v36, %v820_v39 }
 0x14a   : > { %v875_v48 = vadd.f32 %v874_v40, %v873_v43  ;;  %v824_v49 = vadd.f32 %v823_v41, %v822_v44 }
 0x14c   : > { %v877_v53 = vadd.f32 %v876_v45, %v875_v48  ;;  %v826_v54 = vadd.f32 %v825_v46, %v824_v49 }
 0x14e   : > { %v879_v57 = vadd.f32 %v878_v50, %v877_v53  ;;  %v828_v58 = vadd.f32 %v827_v51, %v826_v54 }
 0x150   : > { %v881_v60 = vadd.f32 %v880_v55, %v879_v57  ;;  %v830_v61 = vadd.f32 %v829_v56, %v828_v58 }
 0x152   : > { %v831_v62 = vrot.slane %v830_v61, 4  ;;  %v883_v63 = vadd.f32 %v882_v59, %v881_v60 }
 0x154   : > { %v832_v0 = vadd.f32 %v831_v62, %v830_v61  ;;  %v884_v1 = vrot.slane %v883_v63, 4 }
 0x156   : > { %v833_v2 = vrot.slane %v832_v0, 2  ;;  %v885_v3 = vadd.f32 %v884_v1, %v883_v63 }
 0x158   : > { %v834_v4 = vadd.f32 %v833_v2, %v832_v0  ;;  %v886_v5 = vrot.slane %v885_v3, 2 }
 0x15a   : > { %v835_v6 = vrot.slane %v834_v4, 1  ;;  %v887_v7 = vadd.f32 %v886_v5, %v885_v3 }
 0x15c   : > { %v836_v8 = vadd.f32 %v835_v6, %v834_v4  ;;  %v888_v9 = vrot.slane %v887_v7, 1 }
 0x15e   : > { %890 = vst.msk [vmem:[%s1562_s3] sm:$0xff] %vm682_vm1, %v836_v8  ;;  %v889_v10 = vadd.f32 %v888_v9, %v887_v7 }
 0x160   : > { %891 = vst.msk [vmem:[%s1563_s4] sm:$0xff] %vm682_vm1, %v889_v10 }
 0x161 PF: > { %s15_s19 = sadd.s32 1, %s1290_s19   ;;  %s1564_s15 = smov %s1278_s16 }
 0x162   : > { %p12_p12 = scmp.ge.s32.totalorder %s15_s19, 7   ;;  %s1565_s16 = smov %s1353_s23 }
 0x163   : > { %s1566_s17 = smov %s1286_s18  ;;  %s1567_s18 = smov %s1569_s20 }
 0x164   :  { %14 = sbr.rel (!%p12_p12) target bundleno = 3 (0x3), region = 139 }

// kernel: feature_extractor_forward.46
= control target key start
LH: loop header
LB: loop body
LE: loop exit
PB: predicated region body
PF: predicated region fallthrough
CT: control target
= control target key end

     0   :  { %s285_s0 = inlined_call_operand.vmem [shape: bf16[64,128], index: 0, kind: input, shape index: {}]   ;;  %s286_s1 = inlined_call_operand.vmem [shape: bf16[64,128], index: 1, kind: input, shape index: {}]   ;;  %s287_s2 = inlined_call_operand.vmem [shape: f32[1,128], index: 2, kind: input, shape index: {}]   ;;  %s288_s3 = inlined_call_operand.vmem [shape: f32[1,128], index: 3, kind: input, shape index: {}]   ;;  %s289_s4 = inlined_call_operand.vmem [shape: bf16[64,128], index: 4, kind: output, shape index: {}]  }
   0x1   :  { %v158_v0 = vld [vmem:[%s285_s0] sm:$0xff]   ;;  %v209_v5 = vld [vmem:[%s285_s0 + $0x8] sm:$0xff]   ;;  %v210_v12 = vld [vmem:[%s285_s0 + $0x10] sm:$0xff]  }
   0x2   :  { %v139_v1 = vld [vmem:[%s287_s2] ss:$0 sm:$0xff]  ;;  %v159_v2 = vunpack.c.l.bf16 %v158_v0  ;;  %v160_v3 = vunpack.c.h.bf16 %v158_v0  ;;  %v212_v6 = vld [vmem:[%s286_s1 + $0x8] sm:$0xff]   ;;  %v163_v10 = vunpack.c.l.bf16 %v209_v5  ;;  %v164_v11 = vunpack.c.h.bf16 %v209_v5  ;;  %v213_v13 = vld [vmem:[%s286_s1 + $0x10] sm:$0xff]  }
   0x3   :  { %v174_v4 = vld [vmem:[%s286_s1] sm:$0xff]   ;;  %v179_v16 = vunpack.c.l.bf16 %v212_v6  ;;  %v180_v17 = vunpack.c.h.bf16 %v212_v6  ;;  %v167_v20 = vunpack.c.l.bf16 %v210_v12  ;;  %v168_v21 = vunpack.c.h.bf16 %v210_v12  ;;  %v211_v22 = vld [vmem:[%s285_s0 + $0x18] sm:$0xff]  }
   0x4   :  { %v140_v7 = vld [vmem:[%s288_s3] ss:$0 sm:$0xff]  ;;  %v175_v8 = vunpack.c.l.bf16 %v174_v4  ;;  %v176_v9 = vunpack.c.h.bf16 %v174_v4  ;;  %v40_v14 = vmul.f32 %v159_v2, %v139_v1  ;;  %v41_v15 = vmul.f32 %v160_v3, %v139_v1  ;;  %v214_v39 = vld [vmem:[%s286_s1 + $0x18] sm:$0xff]  }
   0x5   :  { %v42_v18 = vmul.f32 %v163_v10, %v139_v1  ;;  %v43_v19 = vmul.f32 %v164_v11, %v139_v1  ;;  %v183_v25 = vunpack.c.l.bf16 %v213_v13  ;;  %v184_v26 = vunpack.c.h.bf16 %v213_v13 }
   0x6   :  { %v55_v23 = vadd.f32 %v140_v7, %v40_v14  ;;  %v56_v24 = vadd.f32 %v140_v7, %v41_v15  ;;  %v44_v29 = vmul.f32 %v167_v20, %v139_v1  ;;  %v45_v30 = vmul.f32 %v168_v21, %v139_v1 }
   0x7   :  { %v57_v27 = vadd.f32 %v140_v7, %v42_v18  ;;  %v58_v28 = vadd.f32 %v140_v7, %v43_v19  ;;  %v171_v33 = vunpack.c.l.bf16 %v211_v22  ;;  %v172_v34 = vunpack.c.h.bf16 %v211_v22 }
   0x8   :  { %v79_v31 = vadd.f32 %v175_v8, %v55_v23  ;;  %v80_v32 = vadd.f32 %v176_v9, %v56_v24  ;;  %v59_v37 = vadd.f32 %v140_v7, %v44_v29  ;;  %v60_v38 = vadd.f32 %v140_v7, %v45_v30 }
   0x9   :  { %v81_v35 = vadd.f32 %v179_v16, %v57_v27  ;;  %v82_v36 = vadd.f32 %v180_v17, %v58_v28  ;;  %v46_v42 = vmul.f32 %v171_v33, %v139_v1  ;;  %v47_v43 = vmul.f32 %v172_v34, %v139_v1 }
   0xa   :  { %v87_v40 = vmax.f32 %v79_v31, 0.0  ;;  %v88_v41 = vmax.f32 %v80_v32, 0.0  ;;  %v83_v46 = vadd.f32 %v183_v25, %v59_v37  ;;  %v84_v47 = vadd.f32 %v184_v26, %v60_v38 }
   0xb   :  { %v89_v44 = vmax.f32 %v81_v35, 0.0  ;;  %v90_v45 = vmax.f32 %v82_v36, 0.0  ;;  %v61_v49 = vadd.f32 %v140_v7, %v46_v42  ;;  %v62_v50 = vadd.f32 %v140_v7, %v47_v43 }
   0xc   :  { %v192_v48 = vpack.c.bf16 %v88_v41, %v87_v40  ;;  %v187_v51 = vunpack.c.l.bf16 %v214_v39  ;;  %v91_v53 = vmax.f32 %v83_v46, 0.0  ;;  %v92_v54 = vmax.f32 %v84_v47, 0.0 }
   0xd   :  { %v197_v52 = vpack.c.bf16 %v90_v45, %v89_v44  ;;  %v188_v55 = vunpack.c.h.bf16 %v214_v39 }
   0xe   :  { %193 = vst [vmem:[%s289_s4] sm:$0xff] %v192_v48   ;;  %v85_v56 = vadd.f32 %v187_v51, %v61_v49  ;;  %v202_v57 = vpack.c.bf16 %v92_v54, %v91_v53 }
   0xf   :  { %215 = vst [vmem:[%s289_s4 + $0x8] sm:$0xff] %v197_v52   ;;  %v86_v58 = vadd.f32 %v188_v55, %v62_v50 }
  0x10   :  { %v93_v59 = vmax.f32 %v85_v56, 0.0  ;;  %216 = vst [vmem:[%s289_s4 + $0x10] sm:$0xff] %v202_v57  }
  0x11   :  { %v94_v60 = vmax.f32 %v86_v58, 0.0 }
  0x13   :  { %v207_v61 = vpack.c.bf16 %v94_v60, %v93_v59 }
  0x15   :  { %217 = vst [vmem:[%s289_s4 + $0x18] sm:$0xff] %v207_v61  }

// kernel: feature_extractor_forward.51
= control target key start
LH: loop header
LB: loop body
LE: loop exit
PB: predicated region body
PF: predicated region fallthrough
CT: control target
= control target key end

     0   :  { %s924_s15 = smov 0   ;;  %s926_s16 = smov 0   ;;  %s1020_s0 = inlined_call_operand.vmem [shape: bf16[32,640], index: 0, kind: input, shape index: {}]   ;;  %s1021_s1 = inlined_call_operand.vmem [shape: bf16[640,128], index: 1, kind: input, shape index: {}]   ;;  %s1022_s2 = inlined_call_operand.vmem [shape: bf16[32,128], index: 2, kind: output, shape index: {0}]   ;;  %s1023_s3 = inlined_call_operand.vmem [shape: f32[8,128], index: 3, kind: output, shape index: {1}]   ;;  %s1024_s4 = inlined_call_operand.vmem [shape: f32[8,128], index: 4, kind: output, shape index: {2}]  }
   0x1   :  { %s928_s17 = smov 0   ;;  %s930_s18 = smov 0  }
   0x2   :  { %s932_s19 = smov 0  }
   0x3 LB: > { %s27_s20 = sadd.s32 1, %s892_s18  ;;  %p50_p1 = scmp.ne.s32.totalorder %s884_s16, %s880_s15  ;;  %s896_s19 = sphi %s932_s19, %s15_s19   ;;  %s892_s18 = sphi %s930_s18, %s1028_s18   ;;  %s888_s17 = sphi %s928_s17, %s1027_s17   ;;  %s884_s16 = sphi %s926_s16, %s1026_s16   ;;  %s880_s15 = sphi %s924_s15, %s1025_s15  }
   0x4   : > { %p28_p0 = scmp.ge.s32.totalorder %s27_s20, 5  ;;  %p51_p2 = scmp.eq.s32.totalorder %s896_s19, 0 }
   0x5   : > { %s43_s22 = sadd.s32 1, %s884_s16  ;;  %p733_p5 = scmp.ge.s32.totalorder %s896_s19, 5 }
   0x6   : > { %s1030_s20 = smov (%p28_p0, %s27_s20), 0  ;;  %p52_p3 = por %p51_p2, %p50_p1 }
   0x7   : > { %s39_s21 = ssub.s32 %s892_s18, %s1030_s20  ;;  %188 = sbr.rel (%p733_p5) target bundleno = 21 (0x15), region = 16 }
   0x8   : > { %p41_p4 = scmp.eq.s32.totalorder %s39_s21, 0 }
   0xa   : > { %s959_s23 = scalar_select %p41_p4, %s884_s16, %s43_s22  }
   0xe   : > { %191 = sbr.rel (!%p52_p3) target bundleno = 21 (0x15), region = 20  ;;  %s193_s24 = sand.u32 (%p52_p3), 1, %s884_s16  }
   0xf   : > { %s735_s25 = sshll.u32 (%p52_p3), %s892_s18, 2  ;;  %s734_s26 = sshll.u32 (%p52_p3), %s193_s24, 4 }
  0x10   : > { %s200_s29 = scalar_lea.vmem (%p52_p3), %s1020_s0, %s735_s25  ;;  %s195_s30 = scalar_lea.vmem (%p52_p3), [#allocation3], %s734_s26 }
  0x11   : > { %v216_v0 = vld [vmem:[%s200_s29] sm:$0xf] (%p52_p3)  ;;  %v218_v1 = vld [vmem:[%s200_s29 + $0x14] sm:$0xf] (%p52_p3)  ;;  %v220_v2 = vld [vmem:[%s200_s29 + $0x28] sm:$0xf] (%p52_p3) }
  0x12   : > { %217 = vst [vmem:[%s195_s30] sm:$0xf] (%p52_p3), %v216_v0  ;;  %219 = vst [vmem:[%s195_s30 + $0x4] sm:$0xf] (%p52_p3), %v218_v1  ;;  %v222_v3 = vld [vmem:[%s200_s29 + $0x3c] sm:$0xf] (%p52_p3) }
  0x13   : > { %221 = vst [vmem:[%s195_s30 + $0x8] sm:$0xf] (%p52_p3), %v220_v2  ;;  %223 = vst [vmem:[%s195_s30 + $0xc] sm:$0xf] (%p52_p3), %v222_v3 }
  0x15 PF: > { %p736_p6 = scmp.ge.s32.totalorder %s896_s19, 1  ;;  %p265_p7 = scmp.lt.s32.totalorder %s896_s19, 6 }
  0x17   : > { %p266_p8 = pnand %p736_p6, %p265_p7 }
  0x18   : > { %s272_s5 = sand.u32 (!%p266_p8), 1, %s880_s15   ;;  %s738_s6 = sshll.u32 (!%p266_p8), %s888_s17, 4 }
  0x19   : > { %269 = sbr.rel (%p266_p8) target bundleno = 318 (0x13e), region = 65  ;;  %s971_s7 = sshll.u32 (!%p266_p8), %s272_s5, 4 }
  0x1a   : > { %p324_p9 = scmp.lt.s32.totalorder (!%p266_p8), %s738_s6, 79  ;;  %s274_s12 = scalar_lea.vmem (!%p266_p8), [#allocation3], %s971_s7 }
  0x1b   : > { %p740_p10 = scmp.ne.s32.totalorder (!%p266_p8), %s888_s17, 0 }
  0x20   : > { %s1032_s6 = smov (!%p324_p9, %s738_s6), 79  ;;  %359 = sbr.rel (%p740_p10) target bundleno = 39 (0x27), region = 73 }
  0x21   : > { %s739_s8 = sshll.u32 %s1032_s6, 2  ;;  %v898_v4 = vmov (!%p740_p10), 0.0  }
  0x22   : > { %s976_s11 = scalar_lea.vmem %s1021_s1, %s739_s8  ;;  %360 = vst [vmem:[#allocation2] sm:$0xff] (!%p740_p10), %v898_v4  ;;  %361 = vst [vmem:[#allocation2 + $0x8] sm:$0xff] (!%p740_p10), %v898_v4 }
  0x23   : > { %362 = vst [vmem:[#allocation2 + $0x10] sm:$0xff] (!%p740_p10), %v898_v4  ;;  %363 = vst [vmem:[#allocation2 + $0x18] sm:$0xff] (!%p740_p10), %v898_v4 }
  0x27 PF: > { %v848_v5 = vld [vmem:[%s976_s11] sm:$0xff]   ;;  %v849_v6 = vld [vmem:[%s976_s11 + $0x8] sm:$0xff]   ;;  %v850_v7 = vld [vmem:[%s976_s11 + $0x10] sm:$0xff]   ;;  %p751_p11 = scmp.ne.s32.totalorder %s888_s17, 4 }
  0x28   : > { %787 = vmatprep.subr.bf16.mxu0 %v848_v5  ;;  %v851_v8 = vld [vmem:[%s976_s11 + $0x18] sm:$0xff]   ;;  %v856_v9 = vld [vmem:[%s274_s12] sm:$0xff]   ;;  %v853_v11 = vld [vmem:[%s976_s11 + $0x28] sm:$0xff]  }
  0x29   : > { %788 = vmatpush3.bf16.msra.mxu0 %v848_v5  ;;  %803 = vmatprep.mubr.bf16.mxu0 %v856_v9  ;;  %v852_v10 = vld [vmem:[%s976_s11 + $0x20] sm:$0xff]   ;;  %v854_v12 = vld [vmem:[%s976_s11 + $0x30] sm:$0xff]   ;;  %v855_v13 = vld [vmem:[%s976_s11 + $0x38] sm:$0xff]  }
  0x2a   : > { %789 = vmatprep.subr.bf16.mxu0 %v849_v6  ;;  %v857_v14 = vld [vmem:[%s274_s12 + $0x8] sm:$0xff]   ;;  %v366_v15 = vld [vmem:[#allocation2 + $0x10] sm:$0xff]  ;;  %v364_v16 = vld [vmem:[#allocation2] sm:$0xff] }
  0x2b   : > { %v367_v18 = vld [vmem:[#allocation2 + $0x18] sm:$0xff]  ;;  %v365_v21 = vld [vmem:[#allocation2 + $0x8] sm:$0xff] }
  0x2d   : > { %790 = vmatpush3.bf16.msra.mxu0 %v849_v6 }
  0x2e   : > { %791 = vmatprep.subr.bf16.mxu0 %v850_v7 }
  0x31   : > { %792 = vmatpush3.bf16.msra.mxu0 %v850_v7 }
  0x32   : > { %793 = vmatprep.subr.bf16.mxu0 %v851_v8 }
  0x35   : > { %794 = vmatpush3.bf16.msra.mxu0 %v851_v8 }
  0x36   : > { %795 = vmatprep.subr.bf16.mxu0 %v852_v10 }
  0x39   : > { %796 = vmatpush3.bf16.msra.mxu0 %v852_v10 }
  0x3a   : > { %797 = vmatprep.subr.bf16.mxu0 %v853_v11 }
  0x3d   : > { %798 = vmatpush3.bf16.msra.mxu0 %v853_v11 }
  0x3e   : > { %799 = vmatprep.subr.bf16.mxu0 %v854_v12 }
  0x41   : > { %800 = vmatpush3.bf16.msra.mxu0 %v854_v12 }
  0x42   : > { %801 = vmatprep.subr.bf16.mxu0 %v855_v13 }
  0x45   : > { %802 = vmatpush3.bf16.msra.mxu0 %v855_v13 }
  0x48   : > { %804 = vmatmul.mubr.bf16.vlgmr.msra.gmra.mrb[0].mxu0 %v857_v14 }
 0x11b   : > { %v805_v17 = vpop.f32.mrb[0].mxu0  ;;  %508 = sbr.rel (%p751_p11) target bundleno = 318 (0x13e), region = 77 }
 0x11c   : > { %v499_v19 = vadd.f32 %v805_v17, %v366_v15  ;;  %v482_v20 = vpop.f32.mrb[1].mxu0 }
 0x11d   : > { %v497_v22 = vadd.f32 %v482_v20, %v364_v16  ;;  %v806_v23 = vpop.f32.mrb[2].mxu0 }
 0x11e   : > { %503 = vst [vmem:[#allocation2 + $0x10] sm:$0xff] %v499_v19  ;;  %v500_v24 = vadd.f32 %v806_v23, %v367_v18  ;;  %v485_v25 = vpop.f32.mrb[3].mxu0 }
 0x11f   : > { %501 = vst [vmem:[#allocation2] sm:$0xff] %v497_v22  ;;  %v498_v26 = vadd.f32 %v485_v25, %v365_v21 }
 0x120   : > { %504 = vst [vmem:[#allocation2 + $0x18] sm:$0xff] %v500_v24 }
 0x121   : > { %502 = vst [vmem:[#allocation2 + $0x8] sm:$0xff] %v498_v26 }
 0x125   : > { %v511_v29 = vld [vmem:[#allocation2 + $0x10] sm:$0xff] }
 0x126   : > { %v509_v27 = vld [vmem:[#allocation2] sm:$0xff]  ;;  %v544_v36 = vmul.f32 %v511_v29, %v511_v29 }
 0x127   : > { %v542_v32 = vmul.f32 %v509_v27, %v509_v27  ;;  %v512_v34 = vld [vmem:[#allocation2 + $0x18] sm:$0xff] }
 0x128   : > { %v510_v28 = vld [vmem:[#allocation2 + $0x8] sm:$0xff]  ;;  %v774_v35 = vpack.c.bf16 %v512_v34, %v511_v29  ;;  %v545_v39 = vmul.f32 %v512_v34, %v512_v34 }
 0x129   : > { %v769_v30 = vpack.c.bf16 %v510_v28, %v509_v27  ;;  %v533_v31 = vadd.f32 %v510_v28, %v509_v27  ;;  %v543_v33 = vmul.f32 %v510_v28, %v510_v28 }
 0x12a   : > { %776 = vst [vmem:[%s1022_s2 + $0x8] sm:$0xff] %v774_v35  }
 0x12b   : > { %770 = vst [vmem:[%s1022_s2] sm:$0xff] %v769_v30   ;;  %v546_v37 = vadd.f32 %v543_v33, %v542_v32  ;;  %v534_v38 = vadd.f32 %v533_v31, %v511_v29 }
 0x12d   : > { %v535_v40 = vadd.f32 %v534_v38, %v512_v34  ;;  %v547_v41 = vadd.f32 %v546_v37, %v544_v36 }
 0x12f   : > { %v536_v42 = vrot.slane %v535_v40, 4  ;;  %v548_v43 = vadd.f32 %v547_v41, %v545_v39 }
 0x131   : > { %v537_v44 = vadd.f32 %v536_v42, %v535_v40  ;;  %v549_v45 = vrot.slane %v548_v43, 4 }
 0x133   : > { %v538_v46 = vrot.slane %v537_v44, 2  ;;  %v550_v47 = vadd.f32 %v549_v45, %v548_v43 }
 0x135   : > { %v539_v48 = vadd.f32 %v538_v46, %v537_v44  ;;  %v551_v49 = vrot.slane %v550_v47, 2 }
 0x137   : > { %v540_v50 = vrot.slane %v539_v48, 1  ;;  %v552_v51 = vadd.f32 %v551_v49, %v550_v47 }
 0x139   : > { %v541_v52 = vadd.f32 %v540_v50, %v539_v48  ;;  %v553_v53 = vrot.slane %v552_v51, 1 }
 0x13b   : > { %555 = vst [vmem:[%s1023_s3] sm:$0xff] %v541_v52  ;;  %v554_v54 = vadd.f32 %v553_v53, %v552_v51 }
 0x13d   : > { %556 = vst [vmem:[%s1024_s4] sm:$0xff] %v554_v54 }
 0x13e PF: > { %s15_s19 = sadd.s32 1, %s896_s19   ;;  %s1025_s15 = smov %s884_s16 }
 0x13f   : > { %p12_p12 = scmp.ge.s32.totalorder %s15_s19, 7   ;;  %s1026_s16 = smov %s959_s23 }
 0x140   : > { %s1027_s17 = smov %s892_s18  ;;  %s1028_s18 = smov %s1030_s20 }
 0x141   :  { %14 = sbr.rel (!%p12_p12) target bundleno = 3 (0x3), region = 139 }

// kernel: feature_extractor_forward.52
= control target key start
LH: loop header
LB: loop body
LE: loop exit
PB: predicated region body
PF: predicated region fallthrough
CT: control target
= control target key end

     0   :  { %s140_s0 = inlined_call_operand.vmem [shape: bf16[32,128], index: 0, kind: input, shape index: {}]   ;;  %s141_s1 = inlined_call_operand.vmem [shape: f32[1,128], index: 1, kind: input, shape index: {}]   ;;  %s142_s2 = inlined_call_operand.vmem [shape: f32[1,128], index: 2, kind: input, shape index: {}]   ;;  %s143_s3 = inlined_call_operand.vmem [shape: bf16[32,128], index: 3, kind: output, shape index: {}]  }
   0x1   :  { %v83_v0 = vld [vmem:[%s140_s0] sm:$0xff]   ;;  %v100_v4 = vld [vmem:[%s140_s0 + $0x8] sm:$0xff]  }
   0x2   :  { %v72_v1 = vld [vmem:[%s141_s1] ss:$0 sm:$0xff]  ;;  %v84_v2 = vunpack.c.l.bf16 %v83_v0  ;;  %v85_v3 = vunpack.c.h.bf16 %v83_v0  ;;  %v88_v6 = vunpack.c.l.bf16 %v100_v4  ;;  %v89_v7 = vunpack.c.h.bf16 %v100_v4 }
   0x3   :  { %v73_v5 = vld [vmem:[%s142_s2] ss:$0 sm:$0xff] }
   0x4   :  { %v29_v8 = vmul.f32 %v84_v2, %v72_v1  ;;  %v30_v9 = vmul.f32 %v85_v3, %v72_v1  ;;  %v31_v10 = vmul.f32 %v88_v6, %v72_v1  ;;  %v32_v11 = vmul.f32 %v89_v7, %v72_v1 }
   0x6   :  { %v40_v12 = vadd.f32 %v73_v5, %v29_v8  ;;  %v41_v13 = vadd.f32 %v73_v5, %v30_v9  ;;  %v42_v14 = vadd.f32 %v73_v5, %v31_v10  ;;  %v43_v15 = vadd.f32 %v73_v5, %v32_v11 }
   0x8   :  { %v44_v16 = vmax.f32 %v40_v12, 0.0  ;;  %v45_v17 = vmax.f32 %v41_v13, 0.0  ;;  %v46_v18 = vmax.f32 %v42_v14, 0.0  ;;  %v47_v19 = vmax.f32 %v43_v15, 0.0 }
   0xa   :  { %v93_v20 = vpack.c.bf16 %v45_v17, %v44_v16  ;;  %v98_v21 = vpack.c.bf16 %v47_v19, %v46_v18 }
   0xc   :  { %94 = vst [vmem:[%s143_s3] sm:$0xff] %v93_v20   ;;  %101 = vst [vmem:[%s143_s3 + $0x8] sm:$0xff] %v98_v21  }

// kernel: feature_extractor_forward.54
= control target key start
LH: loop header
LB: loop body
LE: loop exit
PB: predicated region body
PF: predicated region fallthrough
CT: control target
= control target key end

     0   :  { %vm73_vm0 = vcmask 523264   ;;  %s306_s1 = inlined_call_operand.vmem [shape: bf16[64,128], index: 1, kind: input, shape index: {}]   ;;  %s307_s0 = inlined_call_operand.vmem [shape: bf16[32,64], index: 0, kind: input, shape index: {}]   ;;  %s308_s2 = inlined_call_operand.vmem [shape: bf16[32,128], index: 2, kind: output, shape index: {0}]   ;;  %s309_s3 = inlined_call_operand.vmem [shape: f32[8,128], index: 3, kind: output, shape index: {1}]   ;;  %s310_s4 = inlined_call_operand.vmem [shape: f32[8,128], index: 4, kind: output, shape index: {2}]  }
   0x1   :  { %v245_v0 = vld [vmem:[%s306_s1] sm:$0xff]   ;;  %v246_v1 = vld [vmem:[%s306_s1 + $0x8] sm:$0xff]   ;;  %v247_v2 = vld [vmem:[%s306_s1 + $0x10] sm:$0xff]  }
   0x2   :  { %233 = vmatprep.subr.bf16.mxu0 %v245_v0  ;;  %v249_v3 = vld [vmem:[%s307_s0] sm:$0xff]   ;;  %v248_v4 = vld [vmem:[%s306_s1 + $0x18] sm:$0xff]   ;;  %v250_v5 = vld [vmem:[%s307_s0 + $0x8] sm:$0xff]  }
   0x3   :  { %234 = vmatpush3.bf16.msra.mxu0 %v245_v0  ;;  %241 = vmatprep.mubr.msk.bf16.mxu0 %vm73_vm0, %v249_v3 }
   0x4   :  { %235 = vmatprep.subr.bf16.mxu0 %v246_v1 }
   0x7   :  { %236 = vmatpush3.bf16.msra.mxu0 %v246_v1 }
   0x8   :  { %237 = vmatprep.subr.bf16.mxu0 %v247_v2 }
   0xb   :  { %238 = vmatpush3.bf16.msra.mxu0 %v247_v2 }
   0xc   :  { %239 = vmatprep.subr.bf16.mxu0 %v248_v4 }
   0xf   :  { %240 = vmatpush3.bf16.msra.mxu0 %v248_v4 }
  0x12   :  { %242 = vmatmul.mubr.msk.bf16.vlgmr.msra.gmra.mrb[0].mxu0 %vm73_vm0, %v250_v5 }
  0xe5   :  { %v243_v6 = vpop.f32.mrb[0].mxu0 }
  0xe6   :  { %v114_v7 = vpop.f32.mrb[1].mxu0  ;;  %v175_v15 = vmul.f32 %v243_v6, %v243_v6 }
  0xe7   :  { %v244_v8 = vpop.f32.mrb[2].mxu0  ;;  %v173_v11 = vmul.f32 %v114_v7, %v114_v7 }
  0xe8   :  { %v224_v9 = vpack.c.bf16 %v244_v8, %v243_v6  ;;  %v117_v10 = vpop.f32.mrb[3].mxu0  ;;  %v176_v18 = vmul.f32 %v244_v8, %v244_v8 }
  0xe9   :  { %v219_v12 = vpack.c.bf16 %v117_v10, %v114_v7  ;;  %v164_v13 = vadd.f32 %v117_v10, %v114_v7  ;;  %v174_v14 = vmul.f32 %v117_v10, %v117_v10 }
  0xea   :  { %226 = vst [vmem:[%s308_s2 + $0x8] sm:$0xff] %v224_v9  }
  0xeb   :  { %220 = vst [vmem:[%s308_s2] sm:$0xff] %v219_v12   ;;  %v165_v16 = vadd.f32 %v243_v6, %v164_v13  ;;  %v177_v17 = vadd.f32 %v174_v14, %v173_v11 }
  0xed   :  { %v166_v19 = vadd.f32 %v244_v8, %v165_v16  ;;  %v178_v20 = vadd.f32 %v177_v17, %v175_v15 }
  0xef   :  { %v167_v21 = vrot.slane %v166_v19, 4  ;;  %v179_v22 = vadd.f32 %v178_v20, %v176_v18 }
  0xf1   :  { %v168_v23 = vadd.f32 %v167_v21, %v166_v19  ;;  %v180_v24 = vrot.slane %v179_v22, 4 }
  0xf3   :  { %v169_v25 = vrot.slane %v168_v23, 2  ;;  %v181_v26 = vadd.f32 %v180_v24, %v179_v22 }
  0xf5   :  { %v170_v27 = vadd.f32 %v169_v25, %v168_v23  ;;  %v182_v28 = vrot.slane %v181_v26, 2 }
  0xf7   :  { %v171_v29 = vrot.slane %v170_v27, 1  ;;  %v183_v30 = vadd.f32 %v182_v28, %v181_v26 }
  0xf9   :  { %v172_v31 = vadd.f32 %v171_v29, %v170_v27  ;;  %v184_v32 = vrot.slane %v183_v30, 1 }
  0xfb   :  { %v185_v33 = vadd.f32 %v184_v32, %v183_v30  ;;  %186 = vst [vmem:[%s309_s3] sm:$0xff] %v172_v31 }
  0xfd   :  { %187 = vst [vmem:[%s310_s4] sm:$0xff] %v185_v33 }

// kernel: feature_extractor_forward.53
= control target key start
LH: loop header
LB: loop body
LE: loop exit
PB: predicated region body
PF: predicated region fallthrough
CT: control target
= control target key end

     0   :  { %s1199_s15 = smov 0   ;;  %s1201_s16 = smov 0   ;;  %s1312_s0 = inlined_call_operand.vmem [shape: bf16[32,1152], index: 0, kind: input, shape index: {}]   ;;  %s1313_s1 = inlined_call_operand.vmem [shape: bf16[1152,128], index: 1, kind: input, shape index: {}]   ;;  %s1314_s2 = inlined_call_operand.vmem [shape: bf16[32,128], index: 2, kind: output, shape index: {0}]   ;;  %s1315_s3 = inlined_call_operand.vmem [shape: f32[8,128], index: 3, kind: output, shape index: {1}]   ;;  %s1316_s4 = inlined_call_operand.vmem [shape: f32[8,128], index: 4, kind: output, shape index: {2}]  }
   0x1   :  { %s1203_s17 = smov 0   ;;  %s1205_s18 = smov 0  }
   0x2   :  { %s1207_s19 = smov 0  }
   0x3 LB: > { %s27_s20 = sadd.s32 1, %s1167_s18  ;;  %p50_p1 = scmp.ne.s32.totalorder %s1159_s16, %s1155_s15  ;;  %s1171_s19 = sphi %s1207_s19, %s15_s19   ;;  %s1167_s18 = sphi %s1205_s18, %s1320_s18   ;;  %s1163_s17 = sphi %s1203_s17, %s1319_s17   ;;  %s1159_s16 = sphi %s1201_s16, %s1318_s16   ;;  %s1155_s15 = sphi %s1199_s15, %s1317_s15  }
   0x4   : > { %p28_p0 = scmp.ge.s32.totalorder %s27_s20, 3  ;;  %p51_p2 = scmp.eq.s32.totalorder %s1171_s19, 0 }
   0x5   : > { %s43_s22 = sadd.s32 1, %s1159_s16  ;;  %p930_p5 = scmp.ge.s32.totalorder %s1171_s19, 3 }
   0x6   : > { %s1322_s20 = smov (%p28_p0, %s27_s20), 0  ;;  %p52_p3 = por %p51_p2, %p50_p1 }
   0x7   : > { %s39_s21 = ssub.s32 %s1167_s18, %s1322_s20  ;;  %188 = sbr.rel (%p930_p5) target bundleno = 23 (0x17), region = 16 }
   0x8   : > { %p41_p4 = scmp.eq.s32.totalorder %s39_s21, 0 }
   0xa   : > { %s1234_s23 = scalar_select %p41_p4, %s1159_s16, %s43_s22  }
   0xe   : > { %191 = sbr.rel (!%p52_p3) target bundleno = 23 (0x17), region = 20  ;;  %s193_s24 = sand.u32 (%p52_p3), 1, %s1159_s16  }
   0xf   : > { %s984_s25 = smul.u32 (%p52_p3), 12, %s1167_s18 }
  0x10   : > { %s1058_s26 = smul.u32 (%p52_p3), 48, %s193_s24 }
  0x11   : > { %s201_s29 = scalar_lea.vmem (%p52_p3), %s1312_s0, %s984_s25 }
  0x12   : > { %v216_v0 = vld [vmem:[%s201_s29] sm:$0xff] (%p52_p3)  ;;  %v220_v2 = vld [vmem:[%s201_s29 + $0x48] sm:$0xff] (%p52_p3)  ;;  %s195_s30 = scalar_lea.vmem (%p52_p3), [#allocation3], %s1058_s26  ;;  %v936_v6 = vld [vmem:[%s201_s29 + $0x50] sm:$0xf] (%p52_p3) }
  0x13   : > { %v218_v1 = vld [vmem:[%s201_s29 + $0x24] sm:$0xff] (%p52_p3)  ;;  %217 = vst [vmem:[%s195_s30] sm:$0xff] (%p52_p3), %v216_v0  ;;  %221 = vst [vmem:[%s195_s30 + $0x18] sm:$0xff] (%p52_p3), %v220_v2  ;;  %v222_v3 = vld [vmem:[%s201_s29 + $0x6c] sm:$0xff] (%p52_p3) }
  0x14   : > { %219 = vst [vmem:[%s195_s30 + $0xc] sm:$0xff] (%p52_p3), %v218_v1  ;;  %v932_v4 = vld [vmem:[%s201_s29 + $0x8] sm:$0xf] (%p52_p3)  ;;  %v934_v5 = vld [vmem:[%s201_s29 + $0x2c] sm:$0xf] (%p52_p3)  ;;  %223 = vst [vmem:[%s195_s30 + $0x24] sm:$0xff] (%p52_p3), %v222_v3 }
  0x15   : > { %933 = vst [vmem:[%s195_s30 + $0x8] sm:$0xf] %v932_v4  ;;  %935 = vst [vmem:[%s195_s30 + $0x14] sm:$0xf] %v934_v5  ;;  %v938_v7 = vld [vmem:[%s201_s29 + $0x74] sm:$0xf] }
  0x16   : > { %937 = vst [vmem:[%s195_s30 + $0x20] sm:$0xf] %v936_v6  ;;  %939 = vst [vmem:[%s195_s30 + $0x2c] sm:$0xf] %v938_v7 }
  0x17 PF: > { %p940_p6 = scmp.ge.s32.totalorder %s1171_s19, 1  ;;  %p255_p7 = scmp.lt.s32.totalorder %s1171_s19, 4 }
  0x19   : > { %p256_p8 = pnand %p940_p6, %p255_p7 }
  0x1a   : > { %s262_s5 = sand.u32 (!%p256_p8), 1, %s1155_s15   ;;  %s314_s6 = smul.u32 (!%p256_p8), 48, %s1163_s17 }
  0x1b   : > { %259 = sbr.rel (%p256_p8) target bundleno = 328 (0x148), region = 50  ;;  %p942_p10 = scmp.ne.s32.totalorder (!%p256_p8), %s1163_s17, 0 }
  0x1c   : > { %s1059_s7 = smul.u32 (!%p256_p8), 48, %s262_s5  ;;  %p315_p9 = scmp.lt.s32.totalorder (!%p256_p8), %s314_s6, 143 }
  0x1e   : > { %s1251_s12 = scalar_lea.vmem (!%p256_p8), [#allocation3], %s1059_s7 }
  0x22   : > { %s1324_s6 = smov (!%p315_p9, %s314_s6), 143  ;;  %350 = sbr.rel (%p942_p10) target bundleno = 41 (0x29), region = 58 }
  0x23   : > { %s941_s8 = sshll.u32 %s1324_s6, 2  ;;  %v1173_v8 = vmov (!%p942_p10), 0.0  }
  0x24   : > { %s1249_s11 = scalar_lea.vmem %s1313_s1, %s941_s8  ;;  %351 = vst [vmem:[#allocation2] sm:$0xff] (!%p942_p10), %v1173_v8  ;;  %352 = vst [vmem:[#allocation2 + $0x8] sm:$0xff] (!%p942_p10), %v1173_v8 }
  0x25   : > { %353 = vst [vmem:[#allocation2 + $0x10] sm:$0xff] (!%p942_p10), %v1173_v8  ;;  %354 = vst [vmem:[#allocation2 + $0x18] sm:$0xff] (!%p942_p10), %v1173_v8 }
  0x29 PF: > { %v1101_v9 = vld [vmem:[%s1249_s11 + $0x40] sm:$0xff]   ;;  %v1104_v12 = vld [vmem:[%s1249_s11 + $0x48] sm:$0xff]   ;;  %v1107_v15 = vld [vmem:[%s1249_s11 + $0x50] sm:$0xff]   ;;  %p973_p11 = scmp.ne.s32.totalorder %s1163_s17, 2 }
  0x2a   : > { %v1102_v10 = vld [vmem:[%s1249_s11] sm:$0xff]   ;;  %1000 = vmatprep.subr.bf16.mxu0 %v1101_v9  ;;  %v1105_v13 = vld [vmem:[%s1249_s11 + $0x8] sm:$0xff]   ;;  %v1108_v16 = vld [vmem:[%s1249_s11 + $0x10] sm:$0xff]  }
  0x2b   : > { %v1103_v11 = vld [vmem:[%s1249_s11 + $0x80] sm:$0xff]   ;;  %1001 = vmatpush3.bf16.msra.mxu0 %v1102_v10  ;;  %v1106_v14 = vld [vmem:[%s1249_s11 + $0x88] sm:$0xff]   ;;  %v1109_v17 = vld [vmem:[%s1249_s11 + $0x90] sm:$0xff]  }
  0x2c   : > { %1038 = vmatprep.subr.bf16.mxu1 %v1103_v11  ;;  %1002 = vmatprep.subr.bf16.mxu0 %v1104_v12  ;;  %v1110_v18 = vld [vmem:[%s1249_s11 + $0x58] sm:$0xff]   ;;  %v1113_v21 = vld [vmem:[%s1249_s11 + $0x60] sm:$0xff]   ;;  %v1116_v24 = vld [vmem:[%s1249_s11 + $0x68] sm:$0xff]  }
  0x2d   : > { %1039 = vmatpush3.bf16.msra.mxu1 %v1103_v11  ;;  %v1111_v19 = vld [vmem:[%s1249_s11 + $0x18] sm:$0xff]   ;;  %v1115_v22 = vld [vmem:[%s1249_s11 + $0xa0] sm:$0xff]   ;;  %v1118_v25 = vld [vmem:[%s1249_s11 + $0xa8] sm:$0xff]  }
  0x2e   : > { %1040 = vmatprep.subr.bf16.mxu1 %v1106_v14  ;;  %v1112_v20 = vld [vmem:[%s1249_s11 + $0x98] sm:$0xff]   ;;  %v1114_v23 = vld [vmem:[%s1249_s11 + $0x20] sm:$0xff]   ;;  %v1117_v26 = vld [vmem:[%s1249_s11 + $0x28] sm:$0xff]  }
  0x2f   : > { %1003 = vmatpush3.bf16.msra.mxu0 %v1105_v13  ;;  %v1119_v27 = vld [vmem:[%s1249_s11 + $0x70] sm:$0xff]   ;;  %v1122_v30 = vld [vmem:[%s1249_s11 + $0x78] sm:$0xff]   ;;  %v355_v45 = vld [vmem:[#allocation2] sm:$0xff] }
  0x30   : > { %1004 = vmatprep.subr.bf16.mxu0 %v1107_v15  ;;  %v1120_v28 = vld [vmem:[%s1249_s11 + $0x30] sm:$0xff]   ;;  %v1124_v31 = vld [vmem:[%s1249_s11 + $0xb8] sm:$0xff]   ;;  %v356_v50 = vld [vmem:[#allocation2 + $0x8] sm:$0xff] }
  0x31   : > { %1041 = vmatpush3.bf16.msra.mxu1 %v1106_v14  ;;  %v1121_v29 = vld [vmem:[%s1249_s11 + $0xb0] sm:$0xff]   ;;  %v1123_v34 = vld [vmem:[%s1249_s11 + $0x38] sm:$0xff]  }
  0x32   : > { %1042 = vmatprep.subr.bf16.mxu1 %v1109_v17  ;;  %v1127_v32 = vld [vmem:[%s1251_s12 + $0x4] ss:$12 sps:$4 sm:$0xff]   ;;  %v1128_v33 = vld [vmem:[%s1251_s12 + $0x8] ss:$12 sps:$4 sm:$0xff]   ;;  %v1125_v35 = vld [vmem:[%s1251_s12] ss:$12 sps:$4 sm:$0xff]  }
  0x33   : > { %1005 = vmatpush3.bf16.msra.mxu0 %v1108_v16  ;;  %623 = vmatprep.mubr.bf16.mxu0 %v1127_v32  ;;  %v1130_v36 = vld [vmem:[%s1251_s12 + $0x1c] ss:$12 sps:$4 sm:$0xff]   ;;  %v1129_v37 = vld [vmem:[%s1251_s12 + $0x20] ss:$12 sps:$4 sm:$0xff]   ;;  %v1132_v38 = vld [vmem:[%s1251_s12 + $0x18] ss:$12 sps:$4 sm:$0xff]  }
  0x34   : > { %1006 = vmatprep.subr.bf16.mxu0 %v1110_v18  ;;  %1054 = vmatprep.mubr.bf16.mxu1 %v1128_v33  ;;  %v357_v59 = vld [vmem:[#allocation2 + $0x10] sm:$0xff]  ;;  %v358_v63 = vld [vmem:[#allocation2 + $0x18] sm:$0xff] }
  0x35   : > { %1043 = vmatpush3.bf16.msra.mxu1 %v1109_v17 }
  0x36   : > { %1044 = vmatprep.subr.bf16.mxu1 %v1112_v20 }
  0x37   : > { %1007 = vmatpush3.bf16.msra.mxu0 %v1111_v19 }
  0x38   : > { %1008 = vmatprep.subr.bf16.mxu0 %v1113_v21 }
  0x39   : > { %1045 = vmatpush3.bf16.msra.mxu1 %v1112_v20 }
  0x3a   : > { %1046 = vmatprep.subr.bf16.mxu1 %v1115_v22 }
  0x3b   : > { %1009 = vmatpush3.bf16.msra.mxu0 %v1114_v23 }
  0x3c   : > { %1010 = vmatprep.subr.bf16.mxu0 %v1116_v24 }
  0x3d   : > { %1047 = vmatpush3.bf16.msra.mxu1 %v1115_v22 }
  0x3e   : > { %1048 = vmatprep.subr.bf16.mxu1 %v1118_v25 }
  0x3f   : > { %1011 = vmatpush3.bf16.msra.mxu0 %v1117_v26 }
  0x40   : > { %1012 = vmatprep.subr.bf16.mxu0 %v1119_v27 }
  0x41   : > { %1049 = vmatpush3.bf16.msra.mxu1 %v1118_v25 }
  0x42   : > { %1050 = vmatprep.subr.bf16.mxu1 %v1121_v29 }
  0x43   : > { %1013 = vmatpush3.bf16.msra.mxu0 %v1120_v28 }
  0x44   : > { %1014 = vmatprep.subr.bf16.mxu0 %v1122_v30 }
  0x45   : > { %1051 = vmatpush3.bf16.msra.mxu1 %v1121_v29 }
  0x46   : > { %1052 = vmatprep.subr.bf16.mxu1 %v1124_v31 }
  0x47   : > { %1015 = vmatpush3.bf16.msra.mxu0 %v1123_v34 }
  0x49   : > { %1053 = vmatpush3.bf16.msra.mxu1 %v1124_v31 }
  0x4a   : > { %624 = vmatmul.mubr.bf16.vlgmr.msra.gmra.mrb[0].mxu0 %v1125_v35 }
  0x4b   : > { %631 = vmatprep.mubr.bf16.mxu0 %v1130_v36 }
  0x4c   : > { %1055 = vmatmul.mubr.bf16.vlgmr.msra.gmra.mrb[0].mxu1 %v1129_v37 }
  0x52   : > { %632 = vmatmul.mubr.bf16.gmra.mrb[4].mxu0 %v1132_v38 }
 0x11d   : > { %v1016_v39 = vpop.f32.mrb[0].mxu0 }
 0x11e   : > { %v1017_v40 = vpop.f32.mrb[1].mxu0 }
 0x11f   : > { %v1018_v41 = vadd.f32 %v1017_v40, %v1016_v39  ;;  %v1019_v42 = vpop.f32.mrb[2].mxu0  ;;  %v1056_v43 = vpop.f32.mrb[0].mxu1 }
 0x120   : > { %v1020_v44 = vpop.f32.mrb[3].mxu0  ;;  %v674_v46 = vpop.f32.mrb[1].mxu1 }
 0x121   : > { %v1021_v47 = vadd.f32 %v1020_v44, %v1019_v42  ;;  %v675_v48 = vadd.f32 %v1018_v41, %v674_v46  ;;  %v1057_v49 = vpop.f32.mrb[2].mxu1 }
 0x122   : > { %v677_v51 = vpop.f32.mrb[3].mxu1 }
 0x123   : > { %v689_v52 = vadd.f32 %v675_v48, %v355_v45  ;;  %v678_v53 = vadd.f32 %v1021_v47, %v677_v51 }
 0x125   : > { %693 = vst [vmem:[#allocation2] sm:$0xff] %v689_v52  ;;  %v690_v54 = vadd.f32 %v678_v53, %v356_v50  ;;  %v1022_v55 = vpop.f32.mrb[4].mxu0 }
 0x126   : > { %v1023_v56 = vpop.f32.mrb[5].mxu0 }
 0x127   : > { %694 = vst [vmem:[#allocation2 + $0x8] sm:$0xff] %v690_v54  ;;  %v1024_v57 = vadd.f32 %v1023_v56, %v1022_v55  ;;  %v1025_v58 = vpop.f32.mrb[6].mxu0 }
 0x128   : > { %v1026_v60 = vpop.f32.mrb[7].mxu0 }
 0x129   : > { %v683_v61 = vadd.f32 %v1056_v43, %v1024_v57  ;;  %v1027_v62 = vadd.f32 %v1026_v60, %v1025_v58  ;;  %700 = sbr.rel (%p973_p11) target bundleno = 328 (0x148), region = 62 }
 0x12b   : > { %v691_v0 = vadd.f32 %v683_v61, %v357_v59  ;;  %v686_v1 = vadd.f32 %v1057_v49, %v1027_v62 }
 0x12c   : > { %v701_v3 = vld [vmem:[#allocation2] sm:$0xff] (!%p973_p11) }
 0x12d   : > { %695 = vst [vmem:[#allocation2 + $0x10] sm:$0xff] %v691_v0  ;;  %v692_v2 = vadd.f32 %v686_v1, %v358_v63  ;;  %v734_v8 = vmul.f32 (!%p973_p11), %v701_v3, %v701_v3 }
 0x12e   : > { %v702_v4 = vld [vmem:[#allocation2 + $0x8] sm:$0xff] (!%p973_p11) }
 0x12f   : > { %696 = vst [vmem:[#allocation2 + $0x18] sm:$0xff] %v692_v2  ;;  %v992_v6 = vpack.c.bf16 (!%p973_p11), %v702_v4, %v701_v3  ;;  %v725_v7 = vadd.f32 (!%p973_p11), %v702_v4, %v701_v3  ;;  %v735_v9 = vmul.f32 (!%p973_p11), %v702_v4, %v702_v4 }
 0x131   : > { %993 = vst [vmem:[%s1314_s2] sm:$0xff] %v992_v6   ;;  %v738_v13 = vadd.f32 %v735_v9, %v734_v8 }
 0x134   : > { %v703_v5 = vld [vmem:[#allocation2 + $0x10] sm:$0xff] }
 0x135   : > { %v736_v12 = vmul.f32 %v703_v5, %v703_v5  ;;  %v726_v14 = vadd.f32 %v725_v7, %v703_v5 }
 0x136   : > { %v704_v10 = vld [vmem:[#allocation2 + $0x18] sm:$0xff] }
 0x137   : > { %v997_v11 = vpack.c.bf16 %v704_v10, %v703_v5  ;;  %v737_v15 = vmul.f32 %v704_v10, %v704_v10  ;;  %v727_v16 = vadd.f32 %v726_v14, %v704_v10  ;;  %v739_v17 = vadd.f32 %v738_v13, %v736_v12 }
 0x139   : > { %999 = vst [vmem:[%s1314_s2 + $0x8] sm:$0xff] %v997_v11   ;;  %v728_v18 = vrot.slane %v727_v16, 4  ;;  %v740_v19 = vadd.f32 %v739_v17, %v737_v15 }
 0x13b   : > { %v729_v20 = vadd.f32 %v728_v18, %v727_v16  ;;  %v741_v21 = vrot.slane %v740_v19, 4 }
 0x13d   : > { %v730_v22 = vrot.slane %v729_v20, 2  ;;  %v742_v23 = vadd.f32 %v741_v21, %v740_v19 }
 0x13f   : > { %v731_v24 = vadd.f32 %v730_v22, %v729_v20  ;;  %v743_v25 = vrot.slane %v742_v23, 2 }
 0x141   : > { %v732_v26 = vrot.slane %v731_v24, 1  ;;  %v744_v27 = vadd.f32 %v743_v25, %v742_v23 }
 0x143   : > { %v733_v28 = vadd.f32 %v732_v26, %v731_v24  ;;  %v745_v29 = vrot.slane %v744_v27, 1 }
 0x145   : > { %747 = vst [vmem:[%s1315_s3] sm:$0xff] %v733_v28  ;;  %v746_v30 = vadd.f32 %v745_v29, %v744_v27 }
 0x147   : > { %748 = vst [vmem:[%s1316_s4] sm:$0xff] %v746_v30 }
 0x148 PF: > { %s15_s19 = sadd.s32 1, %s1171_s19   ;;  %s1317_s15 = smov %s1159_s16 }
 0x149   : > { %p12_p12 = scmp.ge.s32.totalorder %s15_s19, 5   ;;  %s1318_s16 = smov %s1234_s23 }
 0x14a   : > { %s1319_s17 = smov %s1167_s18  ;;  %s1320_s18 = smov %s1322_s20 }
 0x14b   :  { %14 = sbr.rel (!%p12_p12) target bundleno = 3 (0x3), region = 130 }

// kernel: feature_extractor_forward.55
= control target key start
LH: loop header
LB: loop body
LE: loop exit
PB: predicated region body
PF: predicated region fallthrough
CT: control target
= control target key end

     0   :  { %s136_s0 = inlined_call_operand.vmem [shape: bf16[32,128], index: 0, kind: input, shape index: {}]   ;;  %s137_s1 = inlined_call_operand.vmem [shape: f32[1,128], index: 1, kind: input, shape index: {}]   ;;  %s138_s2 = inlined_call_operand.vmem [shape: f32[1,128], index: 2, kind: input, shape index: {}]   ;;  %s139_s3 = inlined_call_operand.vmem [shape: bf16[32,128], index: 3, kind: output, shape index: {}]  }
   0x1   :  { %v79_v0 = vld [vmem:[%s136_s0] sm:$0xff]   ;;  %v96_v4 = vld [vmem:[%s136_s0 + $0x8] sm:$0xff]  }
   0x2   :  { %v68_v1 = vld [vmem:[%s137_s1] ss:$0 sm:$0xff]  ;;  %v80_v2 = vunpack.c.l.bf16 %v79_v0  ;;  %v81_v3 = vunpack.c.h.bf16 %v79_v0  ;;  %v84_v6 = vunpack.c.l.bf16 %v96_v4  ;;  %v85_v7 = vunpack.c.h.bf16 %v96_v4 }
   0x3   :  { %v69_v5 = vld [vmem:[%s138_s2] ss:$0 sm:$0xff] }
   0x4   :  { %v29_v8 = vmul.f32 %v80_v2, %v68_v1  ;;  %v30_v9 = vmul.f32 %v81_v3, %v68_v1  ;;  %v31_v10 = vmul.f32 %v84_v6, %v68_v1  ;;  %v32_v11 = vmul.f32 %v85_v7, %v68_v1 }
   0x6   :  { %v40_v12 = vadd.f32 %v69_v5, %v29_v8  ;;  %v41_v13 = vadd.f32 %v69_v5, %v30_v9  ;;  %v42_v14 = vadd.f32 %v69_v5, %v31_v10  ;;  %v43_v15 = vadd.f32 %v69_v5, %v32_v11 }
   0x8   :  { %v89_v16 = vpack.c.bf16 %v41_v13, %v40_v12  ;;  %v94_v17 = vpack.c.bf16 %v43_v15, %v42_v14 }
   0xa   :  { %90 = vst [vmem:[%s139_s3] sm:$0xff] %v89_v16   ;;  %97 = vst [vmem:[%s139_s3 + $0x8] sm:$0xff] %v94_v17  }

// kernel: feature_extractor_forward.56
= control target key start
LH: loop header
LB: loop body
LE: loop exit
PB: predicated region body
PF: predicated region fallthrough
CT: control target
= control target key end

     0   :  { %s175_s0 = inlined_call_operand.vmem [shape: bf16[32,128], index: 0, kind: input, shape index: {}]   ;;  %s176_s1 = inlined_call_operand.vmem [shape: bf16[32,128], index: 1, kind: input, shape index: {}]   ;;  %s177_s2 = inlined_call_operand.vmem [shape: f32[1,128], index: 2, kind: input, shape index: {}]   ;;  %s178_s3 = inlined_call_operand.vmem [shape: f32[1,128], index: 3, kind: input, shape index: {}]   ;;  %s179_s4 = inlined_call_operand.vmem [shape: bf16[32,128], index: 4, kind: output, shape index: {}]  }
   0x1   :  { %v98_v0 = vld [vmem:[%s175_s0] sm:$0xff]   ;;  %v123_v5 = vld [vmem:[%s175_s0 + $0x8] sm:$0xff]  }
   0x2   :  { %v87_v1 = vld [vmem:[%s177_s2] ss:$0 sm:$0xff]  ;;  %v99_v2 = vunpack.c.l.bf16 %v98_v0  ;;  %v100_v3 = vunpack.c.h.bf16 %v98_v0  ;;  %v124_v6 = vld [vmem:[%s176_s1 + $0x8] sm:$0xff]   ;;  %v103_v8 = vunpack.c.l.bf16 %v123_v5  ;;  %v104_v9 = vunpack.c.h.bf16 %v123_v5 }
   0x3   :  { %v106_v4 = vld [vmem:[%s176_s1] sm:$0xff]   ;;  %v111_v16 = vunpack.c.l.bf16 %v124_v6  ;;  %v112_v17 = vunpack.c.h.bf16 %v124_v6 }
   0x4   :  { %v88_v7 = vld [vmem:[%s178_s3] ss:$0 sm:$0xff]  ;;  %v32_v10 = vmul.f32 %v99_v2, %v87_v1  ;;  %v33_v11 = vmul.f32 %v100_v3, %v87_v1  ;;  %v107_v12 = vunpack.c.l.bf16 %v106_v4  ;;  %v108_v13 = vunpack.c.h.bf16 %v106_v4 }
   0x5   :  { %v34_v14 = vmul.f32 %v103_v8, %v87_v1  ;;  %v35_v15 = vmul.f32 %v104_v9, %v87_v1 }
   0x6   :  { %v43_v18 = vadd.f32 %v88_v7, %v32_v10  ;;  %v44_v19 = vadd.f32 %v88_v7, %v33_v11 }
   0x7   :  { %v45_v20 = vadd.f32 %v88_v7, %v34_v14  ;;  %v46_v21 = vadd.f32 %v88_v7, %v35_v15 }
   0x8   :  { %v55_v22 = vadd.f32 %v107_v12, %v43_v18  ;;  %v56_v23 = vadd.f32 %v108_v13, %v44_v19 }
   0x9   :  { %v57_v24 = vadd.f32 %v111_v16, %v45_v20  ;;  %v58_v25 = vadd.f32 %v112_v17, %v46_v21 }
   0xa   :  { %v59_v26 = vmax.f32 %v55_v22, 0.0  ;;  %v60_v27 = vmax.f32 %v56_v23, 0.0 }
   0xb   :  { %v61_v28 = vmax.f32 %v57_v24, 0.0  ;;  %v62_v29 = vmax.f32 %v58_v25, 0.0 }
   0xc   :  { %v116_v30 = vpack.c.bf16 %v60_v27, %v59_v26 }
   0xd   :  { %v121_v31 = vpack.c.bf16 %v62_v29, %v61_v28 }
   0xe   :  { %117 = vst [vmem:[%s179_s4] sm:$0xff] %v116_v30  }
   0xf   :  { %125 = vst [vmem:[%s179_s4 + $0x8] sm:$0xff] %v121_v31  }

// kernel: feature_extractor_forward.62
= control target key start
LH: loop header
LB: loop body
LE: loop exit
PB: predicated region body
PF: predicated region fallthrough
CT: control target
= control target key end

     0   :  { %v19_v0 = vlaneseq  ;;  %s94_s0 = inlined_call_operand.vmem [shape: bf16[8,256], index: 0, kind: input, shape index: {}]   ;;  %s95_s1 = inlined_call_operand.vmem [shape: f32[1,256], index: 1, kind: input, shape index: {}]   ;;  %s96_s2 = inlined_call_operand.vmem [shape: f32[1,256], index: 2, kind: input, shape index: {}]   ;;  %s97_s3 = inlined_call_operand.vmem [shape: bf16[8,256], index: 3, kind: output, shape index: {}]  }
   0x1   :  { %v14_v1 = vld [vmem:[%s94_s0] sm:$0xff] }
   0x2   :  { %v20_v2 = vshrl.u32 %v19_v0, 7  ;;  %v17_v3 = vld [vmem:[%s95_s1] sm:$0x3]  ;;  %v15_v5 = vunpack.c.l.bf16 %v14_v1  ;;  %v16_v6 = vunpack.c.h.bf16 %v14_v1 }
   0x3   :  { %v31_v4 = vld [vmem:[%s96_s2] sm:$0x3] }
   0x4   :  { %v21_v7 = vsub.s32 0, %v20_v2  ;;  %v25_v8 = vsub.s32 1, %v20_v2 }
   0x6   :  { %v22_v9 = vrot.slane %v17_v3, %v21_v7  ;;  %v26_v10 = vrot.slane %v17_v3, %v25_v8  ;;  %v36_v11 = vrot.slane %v31_v4, %v21_v7  ;;  %v40_v12 = vrot.slane %v31_v4, %v25_v8 }
   0x8   :  { %v29_v13 = vmul.f32 %v22_v9, %v15_v5  ;;  %v30_v14 = vmul.f32 %v26_v10, %v16_v6 }
   0xa   :  { %v43_v15 = vadd.f32 %v36_v11, %v29_v13  ;;  %v44_v16 = vadd.f32 %v40_v12, %v30_v14 }
   0xc   :  { %v45_v17 = vmax.f32 %v43_v15, 0.0  ;;  %v46_v18 = vmax.f32 %v44_v16, 0.0 }
   0xe   :  { %v61_v19 = vpack.c.bf16 %v46_v18, %v45_v17 }
  0x10   :  { %55 = vst [vmem:[%s97_s3] sm:$0xff] %v61_v19 }

// kernel: feature_extractor_forward.63
= control target key start
LH: loop header
LB: loop body
LE: loop exit
PB: predicated region body
PF: predicated region fallthrough
CT: control target
= control target key end

     0   :  { %s1195_s15 = smov 0   ;;  %s1197_s16 = smov 0   ;;  %s1303_s0 = inlined_call_operand.vmem [shape: bf16[8,2304], index: 0, kind: input, shape index: {}]   ;;  %s1304_s1 = inlined_call_operand.vmem [shape: bf16[2304,256], index: 1, kind: input, shape index: {}]   ;;  %s1305_s2 = inlined_call_operand.vmem [shape: bf16[8,256], index: 2, kind: output, shape index: {0}]   ;;  %s1306_s3 = inlined_call_operand.vmem [shape: f32[8,256], index: 3, kind: output, shape index: {1}]   ;;  %s1307_s4 = inlined_call_operand.vmem [shape: f32[8,256], index: 4, kind: output, shape index: {2}]  }
   0x1   :  { %s1199_s17 = smov 0  }
   0x2 LB: > { %s27_s18 = sadd.s32 1, %s1162_s16  ;;  %p975_p0 = scmp.ge.s32.totalorder %s1166_s17, 1  ;;  %s1166_s17 = sphi %s1199_s17, %s15_s17   ;;  %s1162_s16 = sphi %s1197_s16, %s1309_s16   ;;  %s1158_s15 = sphi %s1195_s15, %s1308_s15  }
   0x3   : > { %p28_p1 = scmp.ge.s32.totalorder %s27_s18, 6  ;;  %p218_p2 = scmp.lt.s32.totalorder %s1166_s17, 7 }
   0x5   : > { %s1311_s18 = smov (%p28_p1, %s27_s18), 0  ;;  %p219_p3 = pnand %p975_p0, %p218_p2 }
   0x6   : > { %s280_s19 = smul.u32 (!%p219_p3), 3, %s1158_s15  ;;  %p979_p6 = scmp.ne.s32.totalorder (!%p219_p3), %s1158_s15, 0 }
   0x7   : > { %222 = sbr.rel (%p219_p3) target bundleno = 329 (0x149), region = 28 }
   0x8   : > { %s290_s20 = smul.u32 (!%p219_p3), 48, %s1158_s15  ;;  %p283_p4 = scmp.lt.s32.totalorder (!%p219_p3), %s280_s19, 17 }
   0xa   : > { %p292_p5 = scmp.lt.s32.totalorder (!%p219_p3), %s290_s20, 287 }
   0xe   : > { %s1313_s19 = smov (!%p283_p4, %s280_s19), 17  ;;  %s1315_s20 = smov (!%p292_p5, %s290_s20), 287 }
   0xf   : > { %s976_s21 = sshll.u32 %s1313_s19, 2  ;;  %s1041_s25 = sshll.u32 %s1315_s20, 3  ;;  %v1168_v0 = vmov (!%p979_p6), 0.0  }
  0x10   : > { %s1220_s24 = scalar_lea.vmem %s1303_s0, %s976_s21  ;;  %s1225_s28 = scalar_lea.vmem %s1304_s1, %s1041_s25  ;;  %337 = vst [vmem:[#allocation2] sm:$0xff] (!%p979_p6), %v1168_v0  ;;  %338 = vst [vmem:[#allocation2 + $0x8] sm:$0xff] (!%p979_p6), %v1168_v0 }
  0x11   : > { %336 = sbr.rel (%p979_p6) target bundleno = 24 (0x18), region = 32 }
  0x18 PF: > { %v1069_v1 = vld [vmem:[%s1225_s28 + $0x4] ss:$8 sps:$4 sm:$0xff]   ;;  %v1071_v2 = vld [vmem:[%s1225_s28] ss:$8 sps:$4 sm:$0xff]   ;;  %v1169_v3 = vmov 0   ;;  %p1031_p7 = scmp.ne.s32.totalorder %s1158_s15, 5 }
  0x19   : > { %715 = vmatprep.mubr.bf16.mxu1 %v1169_v3  ;;  %642 = vmatprep.subr.bf16.mxu0 %v1069_v1  ;;  %v1072_v4 = vld [vmem:[%s1225_s28 + $0x14] ss:$8 sps:$4 sm:$0xff]   ;;  %v1074_v5 = vld [vmem:[%s1225_s28 + $0x10] ss:$8 sps:$4 sm:$0xff]   ;;  %v1075_v6 = vld [vmem:[%s1225_s28 + $0x24] ss:$8 sps:$4 sm:$0xff]  }
  0x1a   : > { %643 = vmatpush1.bf16.msra.mxu0 %v1071_v2  ;;  %v1077_v7 = vld [vmem:[%s1225_s28 + $0x20] ss:$8 sps:$4 sm:$0xff]   ;;  %v1078_v8 = vld [vmem:[%s1225_s28 + $0x34] ss:$8 sps:$4 sm:$0xff]   ;;  %v1080_v9 = vld [vmem:[%s1225_s28 + $0x30] ss:$8 sps:$4 sm:$0xff]  }
  0x1b   : > { %644 = vmatprep.subr.bf16.mxu0 %v1072_v4  ;;  %v1093_v10 = vld [vmem:[%s1225_s28 + $0x104] ss:$8 sps:$4 sm:$0xff]   ;;  %v1095_v11 = vld [vmem:[%s1225_s28 + $0x100] ss:$8 sps:$4 sm:$0xff]   ;;  %v1099_v13 = vld [vmem:[%s1225_s28 + $0x114] ss:$8 sps:$4 sm:$0xff]  }
  0x1c   : > { %v1081_v12 = vld [vmem:[%s1225_s28 + $0x44] ss:$8 sps:$4 sm:$0xff]   ;;  %683 = vmatprep.subr.bf16.mxu1 %v1093_v10  ;;  %v1101_v14 = vld [vmem:[%s1225_s28 + $0x110] ss:$8 sps:$4 sm:$0xff]   ;;  %v1083_v15 = vld [vmem:[%s1225_s28 + $0x40] ss:$8 sps:$4 sm:$0xff]  }
  0x1d   : > { %684 = vmatpush1.bf16.msra.mxu1 %v1095_v11  ;;  %v1084_v16 = vld [vmem:[%s1225_s28 + $0x54] ss:$8 sps:$4 sm:$0xff]   ;;  %v1105_v17 = vld [vmem:[%s1225_s28 + $0x124] ss:$8 sps:$4 sm:$0xff]   ;;  %v1107_v18 = vld [vmem:[%s1225_s28 + $0x120] ss:$8 sps:$4 sm:$0xff]  }
  0x1e   : > { %645 = vmatpush1.bf16.msra.mxu0 %v1074_v5  ;;  %685 = vmatprep.subr.bf16.mxu1 %v1099_v13  ;;  %v1086_v19 = vld [vmem:[%s1225_s28 + $0x50] ss:$8 sps:$4 sm:$0xff]   ;;  %v1111_v20 = vld [vmem:[%s1225_s28 + $0x134] ss:$8 sps:$4 sm:$0xff]   ;;  %v1087_v21 = vld [vmem:[%s1225_s28 + $0x64] ss:$8 sps:$4 sm:$0xff]  }
  0x1f   : > { %646 = vmatprep.subr.bf16.mxu0 %v1075_v6  ;;  %v1113_v22 = vld [vmem:[%s1225_s28 + $0x130] ss:$8 sps:$4 sm:$0xff]   ;;  %v1089_v23 = vld [vmem:[%s1225_s28 + $0x60] ss:$8 sps:$4 sm:$0xff]   ;;  %v1117_v24 = vld [vmem:[%s1225_s28 + $0x144] ss:$8 sps:$4 sm:$0xff]  }
  0x20   : > { %v1090_v25 = vld [vmem:[%s1225_s28 + $0x74] ss:$8 sps:$4 sm:$0xff]   ;;  %v1119_v26 = vld [vmem:[%s1225_s28 + $0x140] ss:$8 sps:$4 sm:$0xff]   ;;  %v1092_v27 = vld [vmem:[%s1225_s28 + $0x70] ss:$8 sps:$4 sm:$0xff]  }
  0x21   : > { %686 = vmatpush1.bf16.msra.mxu1 %v1101_v14  ;;  %v1123_v28 = vld [vmem:[%s1225_s28 + $0x154] ss:$8 sps:$4 sm:$0xff]   ;;  %v1096_v29 = vld [vmem:[%s1225_s28 + $0x84] ss:$8 sps:$4 sm:$0xff]   ;;  %v1125_v30 = vld [vmem:[%s1225_s28 + $0x150] ss:$8 sps:$4 sm:$0xff]  }
  0x22   : > { %647 = vmatpush1.bf16.msra.mxu0 %v1077_v7  ;;  %687 = vmatprep.subr.bf16.mxu1 %v1105_v17  ;;  %v1098_v31 = vld [vmem:[%s1225_s28 + $0x80] ss:$8 sps:$4 sm:$0xff]   ;;  %v1129_v32 = vld [vmem:[%s1225_s28 + $0x164] ss:$8 sps:$4 sm:$0xff]   ;;  %v1102_v33 = vld [vmem:[%s1225_s28 + $0x94] ss:$8 sps:$4 sm:$0xff]  }
  0x23   : > { %648 = vmatprep.subr.bf16.mxu0 %v1078_v8  ;;  %v341_v34 = vld [vmem:[%s1220_s24] sm:$0xff]  ;;  %v1104_v37 = vld [vmem:[%s1225_s28 + $0x90] ss:$8 sps:$4 sm:$0xff]   ;;  %v1135_v38 = vld [vmem:[%s1225_s28 + $0x174] ss:$8 sps:$4 sm:$0xff]  }
  0x24   : > { %v981_v35 = vcombine.high %v341_v34, %v341_v34  ;;  %v1131_v36 = vld [vmem:[%s1225_s28 + $0x160] ss:$8 sps:$4 sm:$0xff]   ;;  %v1108_v39 = vld [vmem:[%s1225_s28 + $0xa4] ss:$8 sps:$4 sm:$0xff]   ;;  %v1137_v40 = vld [vmem:[%s1225_s28 + $0x170] ss:$8 sps:$4 sm:$0xff]   ;;  %v980_v53 = vcombine.low %v341_v34, %v341_v34 }
  0x25   : > { %688 = vmatpush1.bf16.msra.mxu1 %v1107_v18  ;;  %v1110_v41 = vld [vmem:[%s1225_s28 + $0xa0] ss:$8 sps:$4 sm:$0xff]   ;;  %v1114_v42 = vld [vmem:[%s1225_s28 + $0xb4] ss:$8 sps:$4 sm:$0xff]   ;;  %v1116_v44 = vld [vmem:[%s1225_s28 + $0xb0] ss:$8 sps:$4 sm:$0xff]  }
  0x26   : > { %649 = vmatpush1.bf16.msra.mxu0 %v1080_v9  ;;  %689 = vmatprep.subr.bf16.mxu1 %v1111_v20  ;;  %v1141_v43 = vld [vmem:[%s1220_s24 + $0x8] ss:$0 sps:$4 sm:$0xff]   ;;  %v1120_v45 = vld [vmem:[%s1225_s28 + $0xc4] ss:$8 sps:$4 sm:$0xff]   ;;  %v1126_v47 = vld [vmem:[%s1225_s28 + $0xd4] ss:$8 sps:$4 sm:$0xff]  }
  0x27   : > { %650 = vmatprep.subr.bf16.mxu0 %v1081_v12  ;;  %674 = vmatprep.mubr.bf16.mxu0 %v981_v35  ;;  %v1122_v46 = vld [vmem:[%s1225_s28 + $0xc0] ss:$8 sps:$4 sm:$0xff]   ;;  %v1128_v48 = vld [vmem:[%s1225_s28 + $0xd0] ss:$8 sps:$4 sm:$0xff]   ;;  %v1132_v49 = vld [vmem:[%s1225_s28 + $0xe4] ss:$8 sps:$4 sm:$0xff]  }
  0x28   : > { %v1134_v50 = vld [vmem:[%s1225_s28 + $0xe0] ss:$8 sps:$4 sm:$0xff]   ;;  %v1138_v51 = vld [vmem:[%s1225_s28 + $0xf4] ss:$8 sps:$4 sm:$0xff]   ;;  %v1140_v52 = vld [vmem:[%s1225_s28 + $0xf0] ss:$8 sps:$4 sm:$0xff]  }
  0x29   : > { %690 = vmatpush1.bf16.msra.mxu1 %v1113_v22  ;;  %v339_v58 = vld [vmem:[#allocation2] sm:$0xff]  ;;  %v340_v61 = vld [vmem:[#allocation2 + $0x8] sm:$0xff] }
  0x2a   : > { %651 = vmatpush1.bf16.msra.mxu0 %v1083_v15  ;;  %691 = vmatprep.subr.bf16.mxu1 %v1117_v24 }
  0x2b   : > { %652 = vmatprep.subr.bf16.mxu0 %v1084_v16 }
  0x2d   : > { %692 = vmatpush1.bf16.msra.mxu1 %v1119_v26 }
  0x2e   : > { %653 = vmatpush1.bf16.msra.mxu0 %v1086_v19  ;;  %693 = vmatprep.subr.bf16.mxu1 %v1123_v28 }
  0x2f   : > { %654 = vmatprep.subr.bf16.mxu0 %v1087_v21 }
  0x31   : > { %694 = vmatpush1.bf16.msra.mxu1 %v1125_v30 }
  0x32   : > { %655 = vmatpush1.bf16.msra.mxu0 %v1089_v23  ;;  %695 = vmatprep.subr.bf16.mxu1 %v1129_v32 }
  0x33   : > { %656 = vmatprep.subr.bf16.mxu0 %v1090_v25 }
  0x35   : > { %696 = vmatpush1.bf16.msra.mxu1 %v1131_v36 }
  0x36   : > { %657 = vmatpush1.bf16.msra.mxu0 %v1092_v27  ;;  %697 = vmatprep.subr.bf16.mxu1 %v1135_v38 }
  0x37   : > { %658 = vmatprep.subr.bf16.mxu0 %v1096_v29 }
  0x39   : > { %698 = vmatpush1.bf16.msra.mxu1 %v1137_v40 }
  0x3a   : > { %659 = vmatpush1.bf16.msra.mxu0 %v1098_v31 }
  0x3b   : > { %660 = vmatprep.subr.bf16.mxu0 %v1102_v33 }
  0x3c   : > { %716 = vmatmul.mubr.bf16.vlgmr.msra.gmra.mrb[0].mxu1 %v1141_v43 }
  0x3e   : > { %661 = vmatpush1.bf16.msra.mxu0 %v1104_v37 }
  0x3f   : > { %662 = vmatprep.subr.bf16.mxu0 %v1108_v39 }
  0x42   : > { %663 = vmatpush1.bf16.msra.mxu0 %v1110_v41 }
  0x43   : > { %664 = vmatprep.subr.bf16.mxu0 %v1114_v42 }
  0x46   : > { %665 = vmatpush1.bf16.msra.mxu0 %v1116_v44 }
  0x47   : > { %666 = vmatprep.subr.bf16.mxu0 %v1120_v45 }
  0x4a   : > { %667 = vmatpush1.bf16.msra.mxu0 %v1122_v46 }
  0x4b   : > { %668 = vmatprep.subr.bf16.mxu0 %v1126_v47 }
  0x4e   : > { %669 = vmatpush1.bf16.msra.mxu0 %v1128_v48 }
  0x4f   : > { %670 = vmatprep.subr.bf16.mxu0 %v1132_v49 }
  0x52   : > { %671 = vmatpush1.bf16.msra.mxu0 %v1134_v50 }
  0x53   : > { %672 = vmatprep.subr.bf16.mxu0 %v1138_v51 }
  0x56   : > { %673 = vmatpush1.bf16.msra.mxu0 %v1140_v52 }
  0x59   : > { %675 = vmatmul.mubr.bf16.vlgmr.msra.gmra.mrb[0].mxu0 %v980_v53 }
 0x10f   : > { %v717_v54 = vpop.f32.mrb[0].mxu1 }
 0x110   : > { %v719_v55 = vpop.f32.mrb[1].mxu1 }
 0x111   : > { %v721_v56 = vpop.f32.mrb[2].mxu1 }
 0x112   : > { %v722_v57 = vpop.f32.mrb[3].mxu1 }
 0x12c   : > { %v676_v59 = vpop.f32.mrb[0].mxu0  ;;  %731 = sbr.rel (%p1031_p7) target bundleno = 329 (0x149), region = 36 }
 0x12d   : > { %v718_v60 = vadd.f32 %v717_v54, %v676_v59  ;;  %v678_v62 = vpop.f32.mrb[1].mxu0 }
 0x12e   : > { %v720_v63 = vadd.f32 %v719_v55, %v678_v62  ;;  %v680_v0 = vpop.f32.mrb[2].mxu0 }
 0x12f   : > { %v724_v1 = vadd.f32 %v718_v60, %v339_v58  ;;  %v681_v2 = vpop.f32.mrb[3].mxu0 }
 0x130   : > { %v725_v3 = vadd.f32 %v720_v63, %v340_v61 }
 0x131   : > { %726 = vst [vmem:[#allocation2] sm:$0xff] %v724_v1 }
 0x132   : > { %727 = vst [vmem:[#allocation2 + $0x8] sm:$0xff] %v725_v3 }
 0x138   : > { %v732_v4 = vld [vmem:[#allocation2] sm:$0xff] }
 0x139   : > { %v733_v5 = vld [vmem:[#allocation2 + $0x8] sm:$0xff]  ;;  %v743_v7 = vrot.slane %v732_v4, 4  ;;  %v755_v9 = vmul.f32 %v732_v4, %v732_v4 }
 0x13a   : > { %v1042_v6 = vpack.c.bf16 %v733_v5, %v732_v4  ;;  %v749_v8 = vrot.slane %v733_v5, 4  ;;  %v756_v10 = vmul.f32 %v733_v5, %v733_v5 }
 0x13b   : > { %v744_v11 = vadd.f32 %v743_v7, %v732_v4  ;;  %v757_v13 = vrot.slane %v755_v9, 4 }
 0x13c   : > { %742 = vst [vmem:[%s1305_s2] sm:$0xff] %v1042_v6  ;;  %v750_v12 = vadd.f32 %v749_v8, %v733_v5  ;;  %v763_v14 = vrot.slane %v756_v10, 4 }
 0x13d   : > { %v745_v15 = vrot.slane %v744_v11, 2  ;;  %v758_v17 = vadd.f32 %v757_v13, %v755_v9 }
 0x13e   : > { %v751_v16 = vrot.slane %v750_v12, 2  ;;  %v764_v18 = vadd.f32 %v763_v14, %v756_v10 }
 0x13f   : > { %v746_v19 = vadd.f32 %v745_v15, %v744_v11  ;;  %v759_v21 = vrot.slane %v758_v17, 2 }
 0x140   : > { %v752_v20 = vadd.f32 %v751_v16, %v750_v12  ;;  %v765_v22 = vrot.slane %v764_v18, 2 }
 0x141   : > { %v747_v23 = vrot.slane %v746_v19, 1  ;;  %v760_v25 = vadd.f32 %v759_v21, %v758_v17 }
 0x142   : > { %v753_v24 = vrot.slane %v752_v20, 1  ;;  %v766_v26 = vadd.f32 %v765_v22, %v764_v18 }
 0x143   : > { %v748_v27 = vadd.f32 %v747_v23, %v746_v19  ;;  %v761_v29 = vrot.slane %v760_v25, 1 }
 0x144   : > { %v754_v28 = vadd.f32 %v753_v24, %v752_v20  ;;  %v767_v30 = vrot.slane %v766_v26, 1 }
 0x145   : > { %769 = vst [vmem:[%s1306_s3] sm:$0xff] %v748_v27  ;;  %v762_v31 = vadd.f32 %v761_v29, %v760_v25 }
 0x146   : > { %770 = vst [vmem:[%s1306_s3 + $0x8] sm:$0xff] %v754_v28  ;;  %v768_v32 = vadd.f32 %v767_v30, %v766_v26 }
 0x147   : > { %771 = vst [vmem:[%s1307_s4] sm:$0xff] %v762_v31 }
 0x148   : > { %772 = vst [vmem:[%s1307_s4 + $0x8] sm:$0xff] %v768_v32 }
 0x149 PF: > { %s15_s17 = sadd.s32 1, %s1166_s17   ;;  %s1308_s15 = smov %s1162_s16 }
 0x14a   : > { %p12_p8 = scmp.ge.s32.totalorder %s15_s17, 8   ;;  %s1309_s16 = smov %s1311_s18 }
 0x14c   :  { %14 = sbr.rel (!%p12_p8) target bundleno = 2 (0x2), region = 93 }

// kernel: feature_extractor_forward.61
= control target key start
LH: loop header
LB: loop body
LE: loop exit
PB: predicated region body
PF: predicated region fallthrough
CT: control target
= control target key end

     0   :  { %s1195_s15 = smov 0   ;;  %s1197_s16 = smov 0   ;;  %s1303_s0 = inlined_call_operand.vmem [shape: bf16[8,1152], index: 0, kind: input, shape index: {}]   ;;  %s1304_s1 = inlined_call_operand.vmem [shape: bf16[1152,256], index: 1, kind: input, shape index: {}]   ;;  %s1305_s2 = inlined_call_operand.vmem [shape: bf16[8,256], index: 2, kind: output, shape index: {0}]   ;;  %s1306_s3 = inlined_call_operand.vmem [shape: f32[8,256], index: 3, kind: output, shape index: {1}]   ;;  %s1307_s4 = inlined_call_operand.vmem [shape: f32[8,256], index: 4, kind: output, shape index: {2}]  }
   0x1   :  { %s1199_s17 = smov 0  }
   0x2 LB: > { %s27_s18 = sadd.s32 1, %s1162_s16  ;;  %p975_p0 = scmp.ge.s32.totalorder %s1166_s17, 1  ;;  %s1166_s17 = sphi %s1199_s17, %s15_s17   ;;  %s1162_s16 = sphi %s1197_s16, %s1309_s16   ;;  %s1158_s15 = sphi %s1195_s15, %s1308_s15  }
   0x3   : > { %p28_p1 = scmp.ge.s32.totalorder %s27_s18, 3  ;;  %p218_p2 = scmp.lt.s32.totalorder %s1166_s17, 4 }
   0x5   : > { %s1311_s18 = smov (%p28_p1, %s27_s18), 0  ;;  %p219_p3 = pnand %p975_p0, %p218_p2 }
   0x6   : > { %s280_s19 = smul.u32 (!%p219_p3), 3, %s1158_s15  ;;  %p979_p6 = scmp.ne.s32.totalorder (!%p219_p3), %s1158_s15, 0 }
   0x7   : > { %222 = sbr.rel (%p219_p3) target bundleno = 329 (0x149), region = 28 }
   0x8   : > { %s290_s20 = smul.u32 (!%p219_p3), 48, %s1158_s15  ;;  %p283_p4 = scmp.lt.s32.totalorder (!%p219_p3), %s280_s19, 8 }
   0xa   : > { %p292_p5 = scmp.lt.s32.totalorder (!%p219_p3), %s290_s20, 143 }
   0xe   : > { %s1313_s19 = smov (!%p283_p4, %s280_s19), 8  ;;  %s1315_s20 = smov (!%p292_p5, %s290_s20), 143 }
   0xf   : > { %s976_s21 = sshll.u32 %s1313_s19, 2  ;;  %s1041_s25 = sshll.u32 %s1315_s20, 3  ;;  %v1168_v0 = vmov (!%p979_p6), 0.0  }
  0x10   : > { %s1220_s24 = scalar_lea.vmem %s1303_s0, %s976_s21  ;;  %s1225_s28 = scalar_lea.vmem %s1304_s1, %s1041_s25  ;;  %337 = vst [vmem:[#allocation2] sm:$0xff] (!%p979_p6), %v1168_v0  ;;  %338 = vst [vmem:[#allocation2 + $0x8] sm:$0xff] (!%p979_p6), %v1168_v0 }
  0x11   : > { %336 = sbr.rel (%p979_p6) target bundleno = 24 (0x18), region = 32 }
  0x18 PF: > { %v1069_v1 = vld [vmem:[%s1225_s28 + $0x4] ss:$8 sps:$4 sm:$0xff]   ;;  %v1071_v2 = vld [vmem:[%s1225_s28] ss:$8 sps:$4 sm:$0xff]   ;;  %v1169_v3 = vmov 0   ;;  %p1031_p7 = scmp.ne.s32.totalorder %s1158_s15, 2 }
  0x19   : > { %715 = vmatprep.mubr.bf16.mxu1 %v1169_v3  ;;  %642 = vmatprep.subr.bf16.mxu0 %v1069_v1  ;;  %v1072_v4 = vld [vmem:[%s1225_s28 + $0x14] ss:$8 sps:$4 sm:$0xff]   ;;  %v1074_v5 = vld [vmem:[%s1225_s28 + $0x10] ss:$8 sps:$4 sm:$0xff]   ;;  %v1075_v6 = vld [vmem:[%s1225_s28 + $0x24] ss:$8 sps:$4 sm:$0xff]  }
  0x1a   : > { %643 = vmatpush1.bf16.msra.mxu0 %v1071_v2  ;;  %v1077_v7 = vld [vmem:[%s1225_s28 + $0x20] ss:$8 sps:$4 sm:$0xff]   ;;  %v1078_v8 = vld [vmem:[%s1225_s28 + $0x34] ss:$8 sps:$4 sm:$0xff]   ;;  %v1080_v9 = vld [vmem:[%s1225_s28 + $0x30] ss:$8 sps:$4 sm:$0xff]  }
  0x1b   : > { %644 = vmatprep.subr.bf16.mxu0 %v1072_v4  ;;  %v1093_v10 = vld [vmem:[%s1225_s28 + $0x104] ss:$8 sps:$4 sm:$0xff]   ;;  %v1095_v11 = vld [vmem:[%s1225_s28 + $0x100] ss:$8 sps:$4 sm:$0xff]   ;;  %v1099_v13 = vld [vmem:[%s1225_s28 + $0x114] ss:$8 sps:$4 sm:$0xff]  }
  0x1c   : > { %v1081_v12 = vld [vmem:[%s1225_s28 + $0x44] ss:$8 sps:$4 sm:$0xff]   ;;  %683 = vmatprep.subr.bf16.mxu1 %v1093_v10  ;;  %v1101_v14 = vld [vmem:[%s1225_s28 + $0x110] ss:$8 sps:$4 sm:$0xff]   ;;  %v1083_v15 = vld [vmem:[%s1225_s28 + $0x40] ss:$8 sps:$4 sm:$0xff]  }
  0x1d   : > { %684 = vmatpush1.bf16.msra.mxu1 %v1095_v11  ;;  %v1084_v16 = vld [vmem:[%s1225_s28 + $0x54] ss:$8 sps:$4 sm:$0xff]   ;;  %v1105_v17 = vld [vmem:[%s1225_s28 + $0x124] ss:$8 sps:$4 sm:$0xff]   ;;  %v1107_v18 = vld [vmem:[%s1225_s28 + $0x120] ss:$8 sps:$4 sm:$0xff]  }
  0x1e   : > { %645 = vmatpush1.bf16.msra.mxu0 %v1074_v5  ;;  %685 = vmatprep.subr.bf16.mxu1 %v1099_v13  ;;  %v1086_v19 = vld [vmem:[%s1225_s28 + $0x50] ss:$8 sps:$4 sm:$0xff]   ;;  %v1111_v20 = vld [vmem:[%s1225_s28 + $0x134] ss:$8 sps:$4 sm:$0xff]   ;;  %v1087_v21 = vld [vmem:[%s1225_s28 + $0x64] ss:$8 sps:$4 sm:$0xff]  }
  0x1f   : > { %646 = vmatprep.subr.bf16.mxu0 %v1075_v6  ;;  %v1113_v22 = vld [vmem:[%s1225_s28 + $0x130] ss:$8 sps:$4 sm:$0xff]   ;;  %v1089_v23 = vld [vmem:[%s1225_s28 + $0x60] ss:$8 sps:$4 sm:$0xff]   ;;  %v1117_v24 = vld [vmem:[%s1225_s28 + $0x144] ss:$8 sps:$4 sm:$0xff]  }
  0x20   : > { %v1090_v25 = vld [vmem:[%s1225_s28 + $0x74] ss:$8 sps:$4 sm:$0xff]   ;;  %v1119_v26 = vld [vmem:[%s1225_s28 + $0x140] ss:$8 sps:$4 sm:$0xff]   ;;  %v1092_v27 = vld [vmem:[%s1225_s28 + $0x70] ss:$8 sps:$4 sm:$0xff]  }
  0x21   : > { %686 = vmatpush1.bf16.msra.mxu1 %v1101_v14  ;;  %v1123_v28 = vld [vmem:[%s1225_s28 + $0x154] ss:$8 sps:$4 sm:$0xff]   ;;  %v1096_v29 = vld [vmem:[%s1225_s28 + $0x84] ss:$8 sps:$4 sm:$0xff]   ;;  %v1125_v30 = vld [vmem:[%s1225_s28 + $0x150] ss:$8 sps:$4 sm:$0xff]  }
  0x22   : > { %647 = vmatpush1.bf16.msra.mxu0 %v1077_v7  ;;  %687 = vmatprep.subr.bf16.mxu1 %v1105_v17  ;;  %v1098_v31 = vld [vmem:[%s1225_s28 + $0x80] ss:$8 sps:$4 sm:$0xff]   ;;  %v1129_v32 = vld [vmem:[%s1225_s28 + $0x164] ss:$8 sps:$4 sm:$0xff]   ;;  %v1102_v33 = vld [vmem:[%s1225_s28 + $0x94] ss:$8 sps:$4 sm:$0xff]  }
  0x23   : > { %648 = vmatprep.subr.bf16.mxu0 %v1078_v8  ;;  %v341_v34 = vld [vmem:[%s1220_s24] sm:$0xff]  ;;  %v1104_v37 = vld [vmem:[%s1225_s28 + $0x90] ss:$8 sps:$4 sm:$0xff]   ;;  %v1135_v38 = vld [vmem:[%s1225_s28 + $0x174] ss:$8 sps:$4 sm:$0xff]  }
  0x24   : > { %v981_v35 = vcombine.high %v341_v34, %v341_v34  ;;  %v1131_v36 = vld [vmem:[%s1225_s28 + $0x160] ss:$8 sps:$4 sm:$0xff]   ;;  %v1108_v39 = vld [vmem:[%s1225_s28 + $0xa4] ss:$8 sps:$4 sm:$0xff]   ;;  %v1137_v40 = vld [vmem:[%s1225_s28 + $0x170] ss:$8 sps:$4 sm:$0xff]   ;;  %v980_v53 = vcombine.low %v341_v34, %v341_v34 }
  0x25   : > { %688 = vmatpush1.bf16.msra.mxu1 %v1107_v18  ;;  %v1110_v41 = vld [vmem:[%s1225_s28 + $0xa0] ss:$8 sps:$4 sm:$0xff]   ;;  %v1114_v42 = vld [vmem:[%s1225_s28 + $0xb4] ss:$8 sps:$4 sm:$0xff]   ;;  %v1116_v44 = vld [vmem:[%s1225_s28 + $0xb0] ss:$8 sps:$4 sm:$0xff]  }
  0x26   : > { %649 = vmatpush1.bf16.msra.mxu0 %v1080_v9  ;;  %689 = vmatprep.subr.bf16.mxu1 %v1111_v20  ;;  %v1141_v43 = vld [vmem:[%s1220_s24 + $0x8] ss:$0 sps:$4 sm:$0xff]   ;;  %v1120_v45 = vld [vmem:[%s1225_s28 + $0xc4] ss:$8 sps:$4 sm:$0xff]   ;;  %v1126_v47 = vld [vmem:[%s1225_s28 + $0xd4] ss:$8 sps:$4 sm:$0xff]  }
  0x27   : > { %650 = vmatprep.subr.bf16.mxu0 %v1081_v12  ;;  %674 = vmatprep.mubr.bf16.mxu0 %v981_v35  ;;  %v1122_v46 = vld [vmem:[%s1225_s28 + $0xc0] ss:$8 sps:$4 sm:$0xff]   ;;  %v1128_v48 = vld [vmem:[%s1225_s28 + $0xd0] ss:$8 sps:$4 sm:$0xff]   ;;  %v1132_v49 = vld [vmem:[%s1225_s28 + $0xe4] ss:$8 sps:$4 sm:$0xff]  }
  0x28   : > { %v1134_v50 = vld [vmem:[%s1225_s28 + $0xe0] ss:$8 sps:$4 sm:$0xff]   ;;  %v1138_v51 = vld [vmem:[%s1225_s28 + $0xf4] ss:$8 sps:$4 sm:$0xff]   ;;  %v1140_v52 = vld [vmem:[%s1225_s28 + $0xf0] ss:$8 sps:$4 sm:$0xff]  }
  0x29   : > { %690 = vmatpush1.bf16.msra.mxu1 %v1113_v22  ;;  %v339_v58 = vld [vmem:[#allocation2] sm:$0xff]  ;;  %v340_v61 = vld [vmem:[#allocation2 + $0x8] sm:$0xff] }
  0x2a   : > { %651 = vmatpush1.bf16.msra.mxu0 %v1083_v15  ;;  %691 = vmatprep.subr.bf16.mxu1 %v1117_v24 }
  0x2b   : > { %652 = vmatprep.subr.bf16.mxu0 %v1084_v16 }
  0x2d   : > { %692 = vmatpush1.bf16.msra.mxu1 %v1119_v26 }
  0x2e   : > { %653 = vmatpush1.bf16.msra.mxu0 %v1086_v19  ;;  %693 = vmatprep.subr.bf16.mxu1 %v1123_v28 }
  0x2f   : > { %654 = vmatprep.subr.bf16.mxu0 %v1087_v21 }
  0x31   : > { %694 = vmatpush1.bf16.msra.mxu1 %v1125_v30 }
  0x32   : > { %655 = vmatpush1.bf16.msra.mxu0 %v1089_v23  ;;  %695 = vmatprep.subr.bf16.mxu1 %v1129_v32 }
  0x33   : > { %656 = vmatprep.subr.bf16.mxu0 %v1090_v25 }
  0x35   : > { %696 = vmatpush1.bf16.msra.mxu1 %v1131_v36 }
  0x36   : > { %657 = vmatpush1.bf16.msra.mxu0 %v1092_v27  ;;  %697 = vmatprep.subr.bf16.mxu1 %v1135_v38 }
  0x37   : > { %658 = vmatprep.subr.bf16.mxu0 %v1096_v29 }
  0x39   : > { %698 = vmatpush1.bf16.msra.mxu1 %v1137_v40 }
  0x3a   : > { %659 = vmatpush1.bf16.msra.mxu0 %v1098_v31 }
  0x3b   : > { %660 = vmatprep.subr.bf16.mxu0 %v1102_v33 }
  0x3c   : > { %716 = vmatmul.mubr.bf16.vlgmr.msra.gmra.mrb[0].mxu1 %v1141_v43 }
  0x3e   : > { %661 = vmatpush1.bf16.msra.mxu0 %v1104_v37 }
  0x3f   : > { %662 = vmatprep.subr.bf16.mxu0 %v1108_v39 }
  0x42   : > { %663 = vmatpush1.bf16.msra.mxu0 %v1110_v41 }
  0x43   : > { %664 = vmatprep.subr.bf16.mxu0 %v1114_v42 }
  0x46   : > { %665 = vmatpush1.bf16.msra.mxu0 %v1116_v44 }
  0x47   : > { %666 = vmatprep.subr.bf16.mxu0 %v1120_v45 }
  0x4a   : > { %667 = vmatpush1.bf16.msra.mxu0 %v1122_v46 }
  0x4b   : > { %668 = vmatprep.subr.bf16.mxu0 %v1126_v47 }
  0x4e   : > { %669 = vmatpush1.bf16.msra.mxu0 %v1128_v48 }
  0x4f   : > { %670 = vmatprep.subr.bf16.mxu0 %v1132_v49 }
  0x52   : > { %671 = vmatpush1.bf16.msra.mxu0 %v1134_v50 }
  0x53   : > { %672 = vmatprep.subr.bf16.mxu0 %v1138_v51 }
  0x56   : > { %673 = vmatpush1.bf16.msra.mxu0 %v1140_v52 }
  0x59   : > { %675 = vmatmul.mubr.bf16.vlgmr.msra.gmra.mrb[0].mxu0 %v980_v53 }
 0x10f   : > { %v717_v54 = vpop.f32.mrb[0].mxu1 }
 0x110   : > { %v719_v55 = vpop.f32.mrb[1].mxu1 }
 0x111   : > { %v721_v56 = vpop.f32.mrb[2].mxu1 }
 0x112   : > { %v722_v57 = vpop.f32.mrb[3].mxu1 }
 0x12c   : > { %v676_v59 = vpop.f32.mrb[0].mxu0  ;;  %731 = sbr.rel (%p1031_p7) target bundleno = 329 (0x149), region = 36 }
 0x12d   : > { %v718_v60 = vadd.f32 %v717_v54, %v676_v59  ;;  %v678_v62 = vpop.f32.mrb[1].mxu0 }
 0x12e   : > { %v720_v63 = vadd.f32 %v719_v55, %v678_v62  ;;  %v680_v0 = vpop.f32.mrb[2].mxu0 }
 0x12f   : > { %v724_v1 = vadd.f32 %v718_v60, %v339_v58  ;;  %v681_v2 = vpop.f32.mrb[3].mxu0 }
 0x130   : > { %v725_v3 = vadd.f32 %v720_v63, %v340_v61 }
 0x131   : > { %726 = vst [vmem:[#allocation2] sm:$0xff] %v724_v1 }
 0x132   : > { %727 = vst [vmem:[#allocation2 + $0x8] sm:$0xff] %v725_v3 }
 0x138   : > { %v732_v4 = vld [vmem:[#allocation2] sm:$0xff] }
 0x139   : > { %v733_v5 = vld [vmem:[#allocation2 + $0x8] sm:$0xff]  ;;  %v743_v7 = vrot.slane %v732_v4, 4  ;;  %v755_v9 = vmul.f32 %v732_v4, %v732_v4 }
 0x13a   : > { %v1042_v6 = vpack.c.bf16 %v733_v5, %v732_v4  ;;  %v749_v8 = vrot.slane %v733_v5, 4  ;;  %v756_v10 = vmul.f32 %v733_v5, %v733_v5 }
 0x13b   : > { %v744_v11 = vadd.f32 %v743_v7, %v732_v4  ;;  %v757_v13 = vrot.slane %v755_v9, 4 }
 0x13c   : > { %742 = vst [vmem:[%s1305_s2] sm:$0xff] %v1042_v6  ;;  %v750_v12 = vadd.f32 %v749_v8, %v733_v5  ;;  %v763_v14 = vrot.slane %v756_v10, 4 }
 0x13d   : > { %v745_v15 = vrot.slane %v744_v11, 2  ;;  %v758_v17 = vadd.f32 %v757_v13, %v755_v9 }
 0x13e   : > { %v751_v16 = vrot.slane %v750_v12, 2  ;;  %v764_v18 = vadd.f32 %v763_v14, %v756_v10 }
 0x13f   : > { %v746_v19 = vadd.f32 %v745_v15, %v744_v11  ;;  %v759_v21 = vrot.slane %v758_v17, 2 }
 0x140   : > { %v752_v20 = vadd.f32 %v751_v16, %v750_v12  ;;  %v765_v22 = vrot.slane %v764_v18, 2 }
 0x141   : > { %v747_v23 = vrot.slane %v746_v19, 1  ;;  %v760_v25 = vadd.f32 %v759_v21, %v758_v17 }
 0x142   : > { %v753_v24 = vrot.slane %v752_v20, 1  ;;  %v766_v26 = vadd.f32 %v765_v22, %v764_v18 }
 0x143   : > { %v748_v27 = vadd.f32 %v747_v23, %v746_v19  ;;  %v761_v29 = vrot.slane %v760_v25, 1 }
 0x144   : > { %v754_v28 = vadd.f32 %v753_v24, %v752_v20  ;;  %v767_v30 = vrot.slane %v766_v26, 1 }
 0x145   : > { %769 = vst [vmem:[%s1306_s3] sm:$0xff] %v748_v27  ;;  %v762_v31 = vadd.f32 %v761_v29, %v760_v25 }
 0x146   : > { %770 = vst [vmem:[%s1306_s3 + $0x8] sm:$0xff] %v754_v28  ;;  %v768_v32 = vadd.f32 %v767_v30, %v766_v26 }
 0x147   : > { %771 = vst [vmem:[%s1307_s4] sm:$0xff] %v762_v31 }
 0x148   : > { %772 = vst [vmem:[%s1307_s4 + $0x8] sm:$0xff] %v768_v32 }
 0x149 PF: > { %s15_s17 = sadd.s32 1, %s1166_s17   ;;  %s1308_s15 = smov %s1162_s16 }
 0x14a   : > { %p12_p8 = scmp.ge.s32.totalorder %s15_s17, 5   ;;  %s1309_s16 = smov %s1311_s18 }
 0x14c   :  { %14 = sbr.rel (!%p12_p8) target bundleno = 2 (0x2), region = 93 }

// kernel: feature_extractor_forward.65
= control target key start
LH: loop header
LB: loop body
LE: loop exit
PB: predicated region body
PF: predicated region fallthrough
CT: control target
= control target key end

     0   :  { %v19_v0 = vlaneseq  ;;  %s92_s0 = inlined_call_operand.vmem [shape: bf16[8,256], index: 0, kind: input, shape index: {}]   ;;  %s93_s1 = inlined_call_operand.vmem [shape: f32[1,256], index: 1, kind: input, shape index: {}]   ;;  %s94_s2 = inlined_call_operand.vmem [shape: f32[1,256], index: 2, kind: input, shape index: {}]   ;;  %s95_s3 = inlined_call_operand.vmem [shape: bf16[8,256], index: 3, kind: output, shape index: {}]  }
   0x1   :  { %v14_v1 = vld [vmem:[%s92_s0] sm:$0xff] }
   0x2   :  { %v20_v2 = vshrl.u32 %v19_v0, 7  ;;  %v17_v3 = vld [vmem:[%s93_s1] sm:$0x3]  ;;  %v15_v5 = vunpack.c.l.bf16 %v14_v1  ;;  %v16_v6 = vunpack.c.h.bf16 %v14_v1 }
   0x3   :  { %v31_v4 = vld [vmem:[%s94_s2] sm:$0x3] }
   0x4   :  { %v21_v7 = vsub.s32 0, %v20_v2  ;;  %v25_v8 = vsub.s32 1, %v20_v2 }
   0x6   :  { %v22_v9 = vrot.slane %v17_v3, %v21_v7  ;;  %v26_v10 = vrot.slane %v17_v3, %v25_v8  ;;  %v36_v11 = vrot.slane %v31_v4, %v21_v7  ;;  %v40_v12 = vrot.slane %v31_v4, %v25_v8 }
   0x8   :  { %v29_v13 = vmul.f32 %v22_v9, %v15_v5  ;;  %v30_v14 = vmul.f32 %v26_v10, %v16_v6 }
   0xa   :  { %v43_v15 = vadd.f32 %v36_v11, %v29_v13  ;;  %v44_v16 = vadd.f32 %v40_v12, %v30_v14 }
   0xc   :  { %v59_v17 = vpack.c.bf16 %v44_v16, %v43_v15 }
   0xe   :  { %53 = vst [vmem:[%s95_s3] sm:$0xff] %v59_v17 }

// kernel: feature_extractor_forward.64
= control target key start
LH: loop header
LB: loop body
LE: loop exit
PB: predicated region body
PF: predicated region fallthrough
CT: control target
= control target key end

     0   :  { %v264_v1 = vmov 0   ;;  %s356_s1 = inlined_call_operand.vmem [shape: bf16[128,256], index: 1, kind: input, shape index: {}]   ;;  %s357_s0 = inlined_call_operand.vmem [shape: bf16[8,128], index: 0, kind: input, shape index: {}]   ;;  %s358_s2 = inlined_call_operand.vmem [shape: bf16[8,256], index: 2, kind: output, shape index: {0}]   ;;  %s359_s3 = inlined_call_operand.vmem [shape: f32[8,256], index: 3, kind: output, shape index: {1}]   ;;  %s360_s4 = inlined_call_operand.vmem [shape: f32[8,256], index: 4, kind: output, shape index: {2}]  }
   0x1   :  { %v240_v0 = vld [vmem:[%s356_s1 + $0x4] ss:$8 sps:$4 sm:$0xff]   ;;  %152 = vmatprep.mubr.bf16.mxu0 %v264_v1  ;;  %v242_v2 = vld [vmem:[%s356_s1] ss:$8 sps:$4 sm:$0xff]   ;;  %v243_v3 = vld [vmem:[%s356_s1 + $0x14] ss:$8 sps:$4 sm:$0xff]  }
   0x2   :  { %120 = vmatprep.subr.bf16.mxu0 %v240_v0  ;;  %v245_v4 = vld [vmem:[%s356_s1 + $0x10] ss:$8 sps:$4 sm:$0xff]   ;;  %v246_v5 = vld [vmem:[%s356_s1 + $0x24] ss:$8 sps:$4 sm:$0xff]   ;;  %v248_v6 = vld [vmem:[%s356_s1 + $0x20] ss:$8 sps:$4 sm:$0xff]  }
   0x3   :  { %121 = vmatpush1.bf16.msra.mxu0 %v242_v2  ;;  %v249_v7 = vld [vmem:[%s356_s1 + $0x34] ss:$8 sps:$4 sm:$0xff]   ;;  %v251_v8 = vld [vmem:[%s356_s1 + $0x30] ss:$8 sps:$4 sm:$0xff]   ;;  %v252_v9 = vld [vmem:[%s356_s1 + $0x44] ss:$8 sps:$4 sm:$0xff]  }
   0x4   :  { %122 = vmatprep.subr.bf16.mxu0 %v243_v3  ;;  %v254_v10 = vld [vmem:[%s356_s1 + $0x40] ss:$8 sps:$4 sm:$0xff]   ;;  %v255_v11 = vld [vmem:[%s356_s1 + $0x54] ss:$8 sps:$4 sm:$0xff]   ;;  %v257_v12 = vld [vmem:[%s356_s1 + $0x50] ss:$8 sps:$4 sm:$0xff]  }
   0x5   :  { %v258_v13 = vld [vmem:[%s356_s1 + $0x64] ss:$8 sps:$4 sm:$0xff]   ;;  %v260_v14 = vld [vmem:[%s356_s1 + $0x60] ss:$8 sps:$4 sm:$0xff]   ;;  %v261_v15 = vld [vmem:[%s356_s1 + $0x74] ss:$8 sps:$4 sm:$0xff]  }
   0x6   :  { %v263_v16 = vld [vmem:[%s356_s1 + $0x70] ss:$8 sps:$4 sm:$0xff]   ;;  %v23_v17 = vld [vmem:[%s357_s0] sm:$0xf] }
   0x7   :  { %123 = vmatpush1.bf16.msra.mxu0 %v245_v4 }
   0x8   :  { %124 = vmatprep.subr.bf16.mxu0 %v246_v5 }
   0xb   :  { %125 = vmatpush1.bf16.msra.mxu0 %v248_v6 }
   0xc   :  { %126 = vmatprep.subr.bf16.mxu0 %v249_v7 }
   0xf   :  { %127 = vmatpush1.bf16.msra.mxu0 %v251_v8 }
  0x10   :  { %128 = vmatprep.subr.bf16.mxu0 %v252_v9 }
  0x13   :  { %129 = vmatpush1.bf16.msra.mxu0 %v254_v10 }
  0x14   :  { %130 = vmatprep.subr.bf16.mxu0 %v255_v11 }
  0x17   :  { %131 = vmatpush1.bf16.msra.mxu0 %v257_v12 }
  0x18   :  { %132 = vmatprep.subr.bf16.mxu0 %v258_v13 }
  0x1b   :  { %133 = vmatpush1.bf16.msra.mxu0 %v260_v14 }
  0x1c   :  { %134 = vmatprep.subr.bf16.mxu0 %v261_v15 }
  0x1f   :  { %135 = vmatpush1.bf16.msra.mxu0 %v263_v16 }
  0x22   :  { %153 = vmatmul.mubr.bf16.vlgmr.msra.gmra.mrb[0].mxu0 %v23_v17 }
  0xf5   :  { %v154_v18 = vpop.f32.mrb[0].mxu0 }
  0xf6   :  { %v179_v19 = vrot.slane %v154_v18, 4  ;;  %v191_v20 = vmul.f32 %v154_v18, %v154_v18  ;;  %v156_v21 = vpop.f32.mrb[1].mxu0 }
  0xf7   :  { %v238_v22 = vpack.c.bf16 %v156_v21, %v154_v18  ;;  %v185_v23 = vrot.slane %v156_v21, 4  ;;  %v192_v24 = vmul.f32 %v156_v21, %v156_v21  ;;  %v158_v25 = vpop.f32.mrb[2].mxu0 }
  0xf8   :  { %v180_v26 = vadd.f32 %v179_v19, %v154_v18  ;;  %v193_v27 = vrot.slane %v191_v20, 4  ;;  %v159_v28 = vpop.f32.mrb[3].mxu0 }
  0xf9   :  { %178 = vst [vmem:[%s358_s2] sm:$0xff] %v238_v22  ;;  %v186_v29 = vadd.f32 %v185_v23, %v156_v21  ;;  %v199_v30 = vrot.slane %v192_v24, 4 }
  0xfa   :  { %v181_v31 = vrot.slane %v180_v26, 2  ;;  %v194_v32 = vadd.f32 %v193_v27, %v191_v20 }
  0xfb   :  { %v187_v33 = vrot.slane %v186_v29, 2  ;;  %v200_v34 = vadd.f32 %v199_v30, %v192_v24 }
  0xfc   :  { %v182_v35 = vadd.f32 %v181_v31, %v180_v26  ;;  %v195_v36 = vrot.slane %v194_v32, 2 }
  0xfd   :  { %v188_v37 = vadd.f32 %v187_v33, %v186_v29  ;;  %v201_v38 = vrot.slane %v200_v34, 2 }
  0xfe   :  { %v183_v39 = vrot.slane %v182_v35, 1  ;;  %v196_v40 = vadd.f32 %v195_v36, %v194_v32 }
  0xff   :  { %v189_v41 = vrot.slane %v188_v37, 1  ;;  %v202_v42 = vadd.f32 %v201_v38, %v200_v34 }
 0x100   :  { %v184_v43 = vadd.f32 %v183_v39, %v182_v35  ;;  %v197_v44 = vrot.slane %v196_v40, 1 }
 0x101   :  { %v190_v45 = vadd.f32 %v189_v41, %v188_v37  ;;  %v203_v46 = vrot.slane %v202_v42, 1 }
 0x102   :  { %v198_v47 = vadd.f32 %v197_v44, %v196_v40  ;;  %205 = vst [vmem:[%s359_s3] sm:$0xff] %v184_v43 }
 0x103   :  { %v204_v48 = vadd.f32 %v203_v46, %v202_v42  ;;  %206 = vst [vmem:[%s359_s3 + $0x8] sm:$0xff] %v190_v45 }
 0x104   :  { %207 = vst [vmem:[%s360_s4] sm:$0xff] %v198_v47 }
 0x105   :  { %208 = vst [vmem:[%s360_s4 + $0x8] sm:$0xff] %v204_v48 }

// kernel: feature_extractor_forward.66
= control target key start
LH: loop header
LB: loop body
LE: loop exit
PB: predicated region body
PF: predicated region fallthrough
CT: control target
= control target key end

     0   :  { %v22_v0 = vlaneseq  ;;  %s110_s0 = inlined_call_operand.vmem [shape: bf16[8,256], index: 0, kind: input, shape index: {}]   ;;  %s111_s2 = inlined_call_operand.vmem [shape: f32[1,256], index: 2, kind: input, shape index: {}]   ;;  %s112_s3 = inlined_call_operand.vmem [shape: f32[1,256], index: 3, kind: input, shape index: {}]   ;;  %s113_s1 = inlined_call_operand.vmem [shape: bf16[8,256], index: 1, kind: input, shape index: {}]   ;;  %s114_s4 = inlined_call_operand.vmem [shape: bf16[8,256], index: 4, kind: output, shape index: {}]  }
   0x1   :  { %v17_v1 = vld [vmem:[%s110_s0] sm:$0xff] }
   0x2   :  { %v23_v2 = vshrl.u32 %v22_v0, 7  ;;  %v20_v3 = vld [vmem:[%s111_s2] sm:$0x3]  ;;  %v18_v5 = vunpack.c.l.bf16 %v17_v1  ;;  %v19_v6 = vunpack.c.h.bf16 %v17_v1 }
   0x3   :  { %v34_v4 = vld [vmem:[%s112_s3] sm:$0x3] }
   0x4   :  { %v24_v7 = vsub.s32 0, %v23_v2  ;;  %v28_v8 = vsub.s32 1, %v23_v2  ;;  %v48_v9 = vld [vmem:[%s113_s1] sm:$0xff] }
   0x5   :  { %v49_v16 = vunpack.c.l.bf16 %v48_v9  ;;  %v50_v17 = vunpack.c.h.bf16 %v48_v9 }
   0x6   :  { %v25_v10 = vrot.slane %v20_v3, %v24_v7  ;;  %v29_v11 = vrot.slane %v20_v3, %v28_v8  ;;  %v39_v12 = vrot.slane %v34_v4, %v24_v7  ;;  %v43_v13 = vrot.slane %v34_v4, %v28_v8 }
   0x8   :  { %v32_v14 = vmul.f32 %v25_v10, %v18_v5  ;;  %v33_v15 = vmul.f32 %v29_v11, %v19_v6 }
   0xa   :  { %v46_v18 = vadd.f32 %v39_v12, %v32_v14  ;;  %v47_v19 = vadd.f32 %v43_v13, %v33_v15 }
   0xc   :  { %v51_v20 = vadd.f32 %v49_v16, %v46_v18  ;;  %v52_v21 = vadd.f32 %v50_v17, %v47_v19 }
   0xe   :  { %v53_v22 = vmax.f32 %v51_v20, 0.0  ;;  %v54_v23 = vmax.f32 %v52_v21, 0.0 }
  0x10   :  { %v69_v24 = vpack.c.bf16 %v54_v23, %v53_v22 }
  0x12   :  { %63 = vst [vmem:[%s114_s4] sm:$0xff] %v69_v24 }

// kernel: feature_extractor_forward.72
= control target key start
LH: loop header
LB: loop body
LE: loop exit
PB: predicated region body
PF: predicated region fallthrough
CT: control target
= control target key end

     0   :  { %v22_v0 = vlaneseq  ;;  %s140_s0 = inlined_call_operand.vmem [shape: bf16[8,512], index: 0, kind: input, shape index: {}]   ;;  %s141_s1 = inlined_call_operand.vmem [shape: f32[1,512], index: 1, kind: input, shape index: {}]   ;;  %s142_s2 = inlined_call_operand.vmem [shape: f32[1,512], index: 2, kind: input, shape index: {}]   ;;  %s143_s3 = inlined_call_operand.vmem [shape: bf16[8,512], index: 3, kind: output, shape index: {}]  }
   0x1   :  { %v14_v1 = vld [vmem:[%s140_s0] sm:$0xff]  ;;  %v15_v3 = vld [vmem:[%s140_s0 + $0x8] sm:$0xff] }
   0x2   :  { %v23_v2 = vshrl.u32 %v22_v0, 7  ;;  %v16_v4 = vunpack.c.l.bf16 %v14_v1  ;;  %v17_v5 = vunpack.c.h.bf16 %v14_v1  ;;  %v20_v6 = vld [vmem:[%s141_s1] sm:$0xf]  ;;  %v18_v12 = vunpack.c.l.bf16 %v15_v3 }
   0x3   :  { %v46_v7 = vld [vmem:[%s142_s2] sm:$0xf]  ;;  %v19_v13 = vunpack.c.h.bf16 %v15_v3 }
   0x4   :  { %v24_v8 = vsub.s32 0, %v23_v2  ;;  %v28_v9 = vsub.s32 1, %v23_v2  ;;  %v32_v10 = vsub.s32 2, %v23_v2  ;;  %v36_v11 = vsub.s32 3, %v23_v2 }
   0x6   :  { %v25_v14 = vrot.slane %v20_v6, %v24_v8  ;;  %v29_v15 = vrot.slane %v20_v6, %v28_v9  ;;  %v51_v16 = vrot.slane %v46_v7, %v24_v8  ;;  %v55_v17 = vrot.slane %v46_v7, %v28_v9 }
   0x7   :  { %v33_v18 = vrot.slane %v20_v6, %v32_v10  ;;  %v37_v19 = vrot.slane %v20_v6, %v36_v11  ;;  %v59_v20 = vrot.slane %v46_v7, %v32_v10  ;;  %v63_v21 = vrot.slane %v46_v7, %v36_v11 }
   0x8   :  { %v42_v22 = vmul.f32 %v25_v14, %v16_v4  ;;  %v43_v23 = vmul.f32 %v29_v15, %v17_v5 }
   0x9   :  { %v44_v24 = vmul.f32 %v33_v18, %v18_v12  ;;  %v45_v25 = vmul.f32 %v37_v19, %v19_v13 }
   0xa   :  { %v68_v26 = vadd.f32 %v51_v16, %v42_v22  ;;  %v69_v27 = vadd.f32 %v55_v17, %v43_v23 }
   0xb   :  { %v70_v28 = vadd.f32 %v59_v20, %v44_v24  ;;  %v71_v29 = vadd.f32 %v63_v21, %v45_v25 }
   0xc   :  { %v72_v30 = vmax.f32 %v68_v26, 0.0  ;;  %v73_v31 = vmax.f32 %v69_v27, 0.0 }
   0xd   :  { %v74_v32 = vmax.f32 %v70_v28, 0.0  ;;  %v75_v33 = vmax.f32 %v71_v29, 0.0 }
   0xe   :  { %v100_v34 = vpack.c.bf16 %v73_v31, %v72_v30 }
   0xf   :  { %v101_v35 = vpack.c.bf16 %v75_v33, %v74_v32 }
  0x10   :  { %92 = vst [vmem:[%s143_s3] sm:$0xff] %v100_v34 }
  0x11   :  { %93 = vst [vmem:[%s143_s3 + $0x8] sm:$0xff] %v101_v35 }

// kernel: feature_extractor_forward.74
= control target key start
LH: loop header
LB: loop body
LE: loop exit
PB: predicated region body
PF: predicated region fallthrough
CT: control target
= control target key end

     0   :  { %s1198_s15 = smov 0   ;;  %s1200_s16 = smov 0   ;;  %s1384_s0 = inlined_call_operand.vmem [shape: bf16[8,256], index: 0, kind: input, shape index: {}]   ;;  %s1385_s1 = inlined_call_operand.vmem [shape: bf16[256,512], index: 1, kind: input, shape index: {}]   ;;  %s1386_s2 = inlined_call_operand.vmem [shape: bf16[8,512], index: 2, kind: output, shape index: {0}]   ;;  %s1387_s3 = inlined_call_operand.vmem [shape: f32[8,512], index: 3, kind: output, shape index: {1}]   ;;  %s1388_s4 = inlined_call_operand.vmem [shape: f32[8,512], index: 4, kind: output, shape index: {2}]  }
   0x1   :  { %s1202_s17 = smov 0   ;;  %s1204_s18 = smov 0  }
   0x2   :  { %s1206_s19 = smov 0  }
   0x3 LB: > { %s30_s20 = sadd.s32 1, %s1167_s18  ;;  %p78_p1 = scmp.ne.s32.totalorder %s1159_s16, %s1155_s15  ;;  %s1171_s19 = sphi %s1206_s19, %s15_s19   ;;  %s1167_s18 = sphi %s1204_s18, %s1392_s18   ;;  %s1163_s17 = sphi %s1202_s17, %s1391_s17   ;;  %s1159_s16 = sphi %s1200_s16, %s1390_s16   ;;  %s1155_s15 = sphi %s1198_s15, %s1389_s15  }
   0x4   : > { %p32_p0 = scmp.ge.s32.totalorder %s30_s20, 2  ;;  %p79_p2 = scmp.eq.s32.totalorder %s1171_s19, 0 }
   0x5   : > { %s71_s22 = sadd.s32 1, %s1159_s16  ;;  %p992_p5 = scmp.ge.s32.totalorder %s1171_s19, 2 }
   0x6   : > { %s1394_s20 = smov (%p32_p0, %s30_s20), 0  ;;  %p80_p3 = por %p79_p2, %p78_p1 }
   0x7   : > { %s67_s21 = ssub.s32 %s1167_s18, %s1394_s20  ;;  %201 = sbr.rel (%p992_p5) target bundleno = 34 (0x22), region = 20 }
   0x8   : > { %p69_p4 = scmp.eq.s32.totalorder %s67_s21, 0 }
   0xa   : > { %s1233_s23 = scalar_select %p69_p4, %s1159_s16, %s71_s22  }
   0xe   : > { %204 = sbr.rel (!%p80_p3) target bundleno = 34 (0x22), region = 24  ;;  %s206_s24 = sand.u32 (%p80_p3), 1, %s1159_s16  }
   0xf   : > { %s1041_s25 = sshll.u32 (%p80_p3), %s1167_s18, 3  ;;  %s993_s26 = sshll.u32 (%p80_p3), %s206_s24, 8 }
  0x10   : > { %s1241_s29 = scalar_lea.vmem (%p80_p3), %s1385_s1, %s1041_s25  ;;  %s1246_s30 = scalar_lea.vmem (%p80_p3), [#allocation3], %s993_s26 }
  0x11   : > { %v304_v0 = vld [vmem:[%s1241_s29] sm:$0xff] (%p80_p3)  ;;  %v306_v1 = vld [vmem:[%s1241_s29 + $0x10] sm:$0xff] (%p80_p3) }
  0x12   : > { %v308_v2 = vld [vmem:[%s1241_s29 + $0x20] sm:$0xff] (%p80_p3)  ;;  %305 = vst [vmem:[%s1246_s30] sm:$0xff] (%p80_p3), %v304_v0  ;;  %307 = vst [vmem:[%s1246_s30 + $0x8] sm:$0xff] (%p80_p3), %v306_v1  ;;  %v310_v3 = vld [vmem:[%s1241_s29 + $0x30] sm:$0xff] (%p80_p3) }
  0x13   : > { %309 = vst [vmem:[%s1246_s30 + $0x10] sm:$0xff] (%p80_p3), %v308_v2  ;;  %v312_v4 = vld [vmem:[%s1241_s29 + $0x40] sm:$0xff] (%p80_p3)  ;;  %v314_v5 = vld [vmem:[%s1241_s29 + $0x50] sm:$0xff] (%p80_p3)  ;;  %311 = vst [vmem:[%s1246_s30 + $0x18] sm:$0xff] (%p80_p3), %v310_v3 }
  0x14   : > { %313 = vst [vmem:[%s1246_s30 + $0x20] sm:$0xff] (%p80_p3), %v312_v4  ;;  %315 = vst [vmem:[%s1246_s30 + $0x28] sm:$0xff] (%p80_p3), %v314_v5  ;;  %v316_v6 = vld [vmem:[%s1241_s29 + $0x60] sm:$0xff] (%p80_p3)  ;;  %v318_v7 = vld [vmem:[%s1241_s29 + $0x70] sm:$0xff] (%p80_p3) }
  0x15   : > { %v320_v8 = vld [vmem:[%s1241_s29 + $0x80] sm:$0xff]  ;;  %317 = vst [vmem:[%s1246_s30 + $0x30] sm:$0xff] %v316_v6  ;;  %319 = vst [vmem:[%s1246_s30 + $0x38] sm:$0xff] %v318_v7  ;;  %v322_v9 = vld [vmem:[%s1241_s29 + $0x90] sm:$0xff] }
  0x16   : > { %321 = vst [vmem:[%s1246_s30 + $0x40] sm:$0xff] %v320_v8  ;;  %v324_v10 = vld [vmem:[%s1241_s29 + $0xa0] sm:$0xff]  ;;  %v326_v11 = vld [vmem:[%s1241_s29 + $0xb0] sm:$0xff]  ;;  %323 = vst [vmem:[%s1246_s30 + $0x48] sm:$0xff] %v322_v9 }
  0x17   : > { %325 = vst [vmem:[%s1246_s30 + $0x50] sm:$0xff] %v324_v10  ;;  %327 = vst [vmem:[%s1246_s30 + $0x58] sm:$0xff] %v326_v11  ;;  %v328_v12 = vld [vmem:[%s1241_s29 + $0xc0] sm:$0xff]  ;;  %v330_v13 = vld [vmem:[%s1241_s29 + $0xd0] sm:$0xff] }
  0x18   : > { %v332_v14 = vld [vmem:[%s1241_s29 + $0xe0] sm:$0xff]  ;;  %329 = vst [vmem:[%s1246_s30 + $0x60] sm:$0xff] %v328_v12  ;;  %331 = vst [vmem:[%s1246_s30 + $0x68] sm:$0xff] %v330_v13  ;;  %v334_v15 = vld [vmem:[%s1241_s29 + $0xf0] sm:$0xff] }
  0x19   : > { %333 = vst [vmem:[%s1246_s30 + $0x70] sm:$0xff] %v332_v14  ;;  %v336_v16 = vld [vmem:[%s1241_s29 + $0x100] sm:$0xff]  ;;  %v338_v17 = vld [vmem:[%s1241_s29 + $0x110] sm:$0xff]  ;;  %335 = vst [vmem:[%s1246_s30 + $0x78] sm:$0xff] %v334_v15 }
  0x1a   : > { %337 = vst [vmem:[%s1246_s30 + $0x80] sm:$0xff] %v336_v16  ;;  %339 = vst [vmem:[%s1246_s30 + $0x88] sm:$0xff] %v338_v17  ;;  %v340_v18 = vld [vmem:[%s1241_s29 + $0x120] sm:$0xff]  ;;  %v342_v19 = vld [vmem:[%s1241_s29 + $0x130] sm:$0xff] }
  0x1b   : > { %v344_v20 = vld [vmem:[%s1241_s29 + $0x140] sm:$0xff]  ;;  %341 = vst [vmem:[%s1246_s30 + $0x90] sm:$0xff] %v340_v18  ;;  %343 = vst [vmem:[%s1246_s30 + $0x98] sm:$0xff] %v342_v19  ;;  %v346_v21 = vld [vmem:[%s1241_s29 + $0x150] sm:$0xff] }
  0x1c   : > { %345 = vst [vmem:[%s1246_s30 + $0xa0] sm:$0xff] %v344_v20  ;;  %v348_v22 = vld [vmem:[%s1241_s29 + $0x160] sm:$0xff]  ;;  %v350_v23 = vld [vmem:[%s1241_s29 + $0x170] sm:$0xff]  ;;  %347 = vst [vmem:[%s1246_s30 + $0xa8] sm:$0xff] %v346_v21 }
  0x1d   : > { %349 = vst [vmem:[%s1246_s30 + $0xb0] sm:$0xff] %v348_v22  ;;  %351 = vst [vmem:[%s1246_s30 + $0xb8] sm:$0xff] %v350_v23  ;;  %v352_v24 = vld [vmem:[%s1241_s29 + $0x180] sm:$0xff]  ;;  %v354_v25 = vld [vmem:[%s1241_s29 + $0x190] sm:$0xff] }
  0x1e   : > { %v356_v26 = vld [vmem:[%s1241_s29 + $0x1a0] sm:$0xff]  ;;  %353 = vst [vmem:[%s1246_s30 + $0xc0] sm:$0xff] %v352_v24  ;;  %355 = vst [vmem:[%s1246_s30 + $0xc8] sm:$0xff] %v354_v25  ;;  %v358_v27 = vld [vmem:[%s1241_s29 + $0x1b0] sm:$0xff] }
  0x1f   : > { %357 = vst [vmem:[%s1246_s30 + $0xd0] sm:$0xff] %v356_v26  ;;  %v360_v28 = vld [vmem:[%s1241_s29 + $0x1c0] sm:$0xff]  ;;  %v362_v29 = vld [vmem:[%s1241_s29 + $0x1d0] sm:$0xff]  ;;  %359 = vst [vmem:[%s1246_s30 + $0xd8] sm:$0xff] %v358_v27 }
  0x20   : > { %361 = vst [vmem:[%s1246_s30 + $0xe0] sm:$0xff] %v360_v28  ;;  %363 = vst [vmem:[%s1246_s30 + $0xe8] sm:$0xff] %v362_v29  ;;  %v364_v30 = vld [vmem:[%s1241_s29 + $0x1e0] sm:$0xff]  ;;  %v366_v31 = vld [vmem:[%s1241_s29 + $0x1f0] sm:$0xff] }
  0x21   : > { %365 = vst [vmem:[%s1246_s30 + $0xf0] sm:$0xff] %v364_v30  ;;  %367 = vst [vmem:[%s1246_s30 + $0xf8] sm:$0xff] %v366_v31 }
  0x22 PF: > { %p996_p6 = scmp.ge.s32.totalorder %s1171_s19, 1  ;;  %p372_p7 = scmp.lt.s32.totalorder %s1171_s19, 3 }
  0x24   : > { %p373_p8 = pnand %p996_p6, %p372_p7 }
  0x25   : > { %s379_s5 = sand.u32 (!%p373_p8), 1, %s1155_s15   ;;  %v1315_v32 = vld [vmem:[%s1384_s0] sm:$0xff] (!%p373_p8)  ;;  %s998_s10 = sshll.u32 (!%p373_p8), %s1163_s17, 1 }
  0x26   : > { %376 = sbr.rel (%p373_p8) target bundleno = 333 (0x14d), region = 62  ;;  %s997_s8 = sshll.u32 (!%p373_p8), %s379_s5, 8  ;;  %v1005_v33 = vcombine.high (!%p373_p8), %v1315_v32, %v1315_v32  ;;  %v1004_v2 = vcombine.low (!%p373_p8), %v1315_v32, %v1315_v32 }
  0x27   : > { %s1319_s9 = scalar_lea.vmem (!%p373_p8), [#allocation3], %s997_s8  ;;  %p450_p9 = scmp.lt.s32.totalorder (!%p373_p8), %s998_s10, 3 }
  0x28   : > { %v1083_v34 = vld [vmem:[%s1319_s9 + $0x4] ss:$8 sps:$4 sm:$0xff] (!%p373_p8)   ;;  %717 = vmatprep.mubr.bf16.mxu0 (!%p373_p8), %v1005_v33  ;;  %v1085_v35 = vld [vmem:[%s1319_s9] ss:$8 sps:$4 sm:$0xff] (!%p373_p8)   ;;  %v1086_v36 = vld [vmem:[%s1319_s9 + $0x14] ss:$8 sps:$4 sm:$0xff] (!%p373_p8)  }
  0x29   : > { %685 = vmatprep.subr.bf16.mxu0 (!%p373_p8), %v1083_v34  ;;  %v1088_v37 = vld [vmem:[%s1319_s9 + $0x10] ss:$8 sps:$4 sm:$0xff] (!%p373_p8)   ;;  %v1089_v38 = vld [vmem:[%s1319_s9 + $0x24] ss:$8 sps:$4 sm:$0xff] (!%p373_p8)   ;;  %v1091_v39 = vld [vmem:[%s1319_s9 + $0x20] ss:$8 sps:$4 sm:$0xff] (!%p373_p8)  }
  0x2a   : > { %686 = vmatpush1.bf16.msra.mxu0 (!%p373_p8), %v1085_v35  ;;  %v1092_v40 = vld [vmem:[%s1319_s9 + $0x34] ss:$8 sps:$4 sm:$0xff] (!%p373_p8)   ;;  %v1094_v41 = vld [vmem:[%s1319_s9 + $0x30] ss:$8 sps:$4 sm:$0xff] (!%p373_p8)   ;;  %v1095_v42 = vld [vmem:[%s1319_s9 + $0x44] ss:$8 sps:$4 sm:$0xff] (!%p373_p8)  }
  0x2b   : > { %687 = vmatprep.subr.bf16.mxu0 (!%p373_p8), %v1086_v36  ;;  %v1097_v43 = vld [vmem:[%s1319_s9 + $0x40] ss:$8 sps:$4 sm:$0xff] (!%p373_p8)   ;;  %v1098_v44 = vld [vmem:[%s1319_s9 + $0x54] ss:$8 sps:$4 sm:$0xff] (!%p373_p8)   ;;  %v1100_v45 = vld [vmem:[%s1319_s9 + $0x50] ss:$8 sps:$4 sm:$0xff] (!%p373_p8)  }
  0x2c   : > { %v1101_v46 = vld [vmem:[%s1319_s9 + $0x64] ss:$8 sps:$4 sm:$0xff] (!%p373_p8)   ;;  %v1103_v47 = vld [vmem:[%s1319_s9 + $0x60] ss:$8 sps:$4 sm:$0xff] (!%p373_p8)   ;;  %v1104_v48 = vld [vmem:[%s1319_s9 + $0x74] ss:$8 sps:$4 sm:$0xff] (!%p373_p8)  }
  0x2d   : > { %v1106_v49 = vld [vmem:[%s1319_s9 + $0x70] ss:$8 sps:$4 sm:$0xff]   ;;  %v1107_v50 = vld [vmem:[%s1319_s9 + $0x84] ss:$8 sps:$4 sm:$0xff]   ;;  %v1109_v51 = vld [vmem:[%s1319_s9 + $0x80] ss:$8 sps:$4 sm:$0xff]  }
  0x2e   : > { %688 = vmatpush1.bf16.msra.mxu0 %v1088_v37  ;;  %v1110_v52 = vld [vmem:[%s1319_s9 + $0x94] ss:$8 sps:$4 sm:$0xff]   ;;  %v1112_v53 = vld [vmem:[%s1319_s9 + $0x90] ss:$8 sps:$4 sm:$0xff]   ;;  %v1113_v54 = vld [vmem:[%s1319_s9 + $0xa4] ss:$8 sps:$4 sm:$0xff]  }
  0x2f   : > { %689 = vmatprep.subr.bf16.mxu0 %v1089_v38  ;;  %v1115_v55 = vld [vmem:[%s1319_s9 + $0xa0] ss:$8 sps:$4 sm:$0xff]   ;;  %v1116_v56 = vld [vmem:[%s1319_s9 + $0xb4] ss:$8 sps:$4 sm:$0xff]   ;;  %v1118_v57 = vld [vmem:[%s1319_s9 + $0xb0] ss:$8 sps:$4 sm:$0xff]  }
  0x30   : > { %v1119_v58 = vld [vmem:[%s1319_s9 + $0xc4] ss:$8 sps:$4 sm:$0xff]   ;;  %v1121_v59 = vld [vmem:[%s1319_s9 + $0xc0] ss:$8 sps:$4 sm:$0xff]   ;;  %v1122_v60 = vld [vmem:[%s1319_s9 + $0xd4] ss:$8 sps:$4 sm:$0xff]  }
  0x31   : > { %v1124_v61 = vld [vmem:[%s1319_s9 + $0xd0] ss:$8 sps:$4 sm:$0xff]   ;;  %v1125_v62 = vld [vmem:[%s1319_s9 + $0xe4] ss:$8 sps:$4 sm:$0xff]   ;;  %v1127_v63 = vld [vmem:[%s1319_s9 + $0xe0] ss:$8 sps:$4 sm:$0xff]  }
  0x32   : > { %690 = vmatpush1.bf16.msra.mxu0 %v1091_v39  ;;  %v1128_v0 = vld [vmem:[%s1319_s9 + $0xf4] ss:$8 sps:$4 sm:$0xff]   ;;  %v1130_v1 = vld [vmem:[%s1319_s9 + $0xf0] ss:$8 sps:$4 sm:$0xff]   ;;  %s1396_s10 = smov (!%p450_p9, %s998_s10), 3 }
  0x33   : > { %691 = vmatprep.subr.bf16.mxu0 %v1092_v40  ;;  %s999_s11 = sshll.u32 %s1396_s10, 2  ;;  %s1001_s15 = sshll.u32 %s1396_s10, 3 }
  0x34   : > { %s455_s14 = scalar_lea.vmem %s1386_s2, %s999_s11  ;;  %s465_s22 = scalar_lea.vmem %s1387_s3, %s1001_s15 }
  0x35   : > { %s475_s26 = scalar_lea.vmem %s1388_s4, %s1001_s15 }
  0x36   : > { %692 = vmatpush1.bf16.msra.mxu0 %v1094_v41 }
  0x37   : > { %693 = vmatprep.subr.bf16.mxu0 %v1095_v42 }
  0x3a   : > { %694 = vmatpush1.bf16.msra.mxu0 %v1097_v43 }
  0x3b   : > { %695 = vmatprep.subr.bf16.mxu0 %v1098_v44 }
  0x3e   : > { %696 = vmatpush1.bf16.msra.mxu0 %v1100_v45 }
  0x3f   : > { %697 = vmatprep.subr.bf16.mxu0 %v1101_v46 }
  0x42   : > { %698 = vmatpush1.bf16.msra.mxu0 %v1103_v47 }
  0x43   : > { %699 = vmatprep.subr.bf16.mxu0 %v1104_v48 }
  0x46   : > { %700 = vmatpush1.bf16.msra.mxu0 %v1106_v49 }
  0x47   : > { %701 = vmatprep.subr.bf16.mxu0 %v1107_v50 }
  0x4a   : > { %702 = vmatpush1.bf16.msra.mxu0 %v1109_v51 }
  0x4b   : > { %703 = vmatprep.subr.bf16.mxu0 %v1110_v52 }
  0x4e   : > { %704 = vmatpush1.bf16.msra.mxu0 %v1112_v53 }
  0x4f   : > { %705 = vmatprep.subr.bf16.mxu0 %v1113_v54 }
  0x52   : > { %706 = vmatpush1.bf16.msra.mxu0 %v1115_v55 }
  0x53   : > { %707 = vmatprep.subr.bf16.mxu0 %v1116_v56 }
  0x56   : > { %708 = vmatpush1.bf16.msra.mxu0 %v1118_v57 }
  0x57   : > { %709 = vmatprep.subr.bf16.mxu0 %v1119_v58 }
  0x5a   : > { %710 = vmatpush1.bf16.msra.mxu0 %v1121_v59 }
  0x5b   : > { %711 = vmatprep.subr.bf16.mxu0 %v1122_v60 }
  0x5e   : > { %712 = vmatpush1.bf16.msra.mxu0 %v1124_v61 }
  0x5f   : > { %713 = vmatprep.subr.bf16.mxu0 %v1125_v62 }
  0x62   : > { %714 = vmatpush1.bf16.msra.mxu0 %v1127_v63 }
  0x63   : > { %715 = vmatprep.subr.bf16.mxu0 %v1128_v0 }
  0x66   : > { %716 = vmatpush1.bf16.msra.mxu0 %v1130_v1 }
  0x69   : > { %718 = vmatmul.mubr.bf16.vlgmr.msra.gmra.mrb[0].mxu0 %v1004_v2 }
 0x13c   : > { %v719_v3 = vpop.f32.mrb[0].mxu0 }
 0x13d   : > { %v744_v4 = vrot.slane %v719_v3, 4  ;;  %v756_v5 = vmul.f32 %v719_v3, %v719_v3  ;;  %v721_v6 = vpop.f32.mrb[1].mxu0 }
 0x13e   : > { %v1042_v7 = vpack.c.bf16 %v721_v6, %v719_v3  ;;  %v750_v8 = vrot.slane %v721_v6, 4  ;;  %v757_v9 = vmul.f32 %v721_v6, %v721_v6  ;;  %v723_v10 = vpop.f32.mrb[2].mxu0 }
 0x13f   : > { %v745_v11 = vadd.f32 %v744_v4, %v719_v3  ;;  %v758_v12 = vrot.slane %v756_v5, 4  ;;  %v724_v13 = vpop.f32.mrb[3].mxu0 }
 0x140   : > { %743 = vst [vmem:[%s455_s14] sm:$0xff] %v1042_v7  ;;  %v751_v14 = vadd.f32 %v750_v8, %v721_v6  ;;  %v764_v15 = vrot.slane %v757_v9, 4 }
 0x141   : > { %v746_v16 = vrot.slane %v745_v11, 2  ;;  %v759_v17 = vadd.f32 %v758_v12, %v756_v5 }
 0x142   : > { %v752_v18 = vrot.slane %v751_v14, 2  ;;  %v765_v19 = vadd.f32 %v764_v15, %v757_v9 }
 0x143   : > { %v747_v20 = vadd.f32 %v746_v16, %v745_v11  ;;  %v760_v21 = vrot.slane %v759_v17, 2 }
 0x144   : > { %v753_v22 = vadd.f32 %v752_v18, %v751_v14  ;;  %v766_v23 = vrot.slane %v765_v19, 2 }
 0x145   : > { %v748_v24 = vrot.slane %v747_v20, 1  ;;  %v761_v25 = vadd.f32 %v760_v21, %v759_v17 }
 0x146   : > { %v754_v26 = vrot.slane %v753_v22, 1  ;;  %v767_v27 = vadd.f32 %v766_v23, %v765_v19 }
 0x147   : > { %v749_v28 = vadd.f32 %v748_v24, %v747_v20  ;;  %v762_v29 = vrot.slane %v761_v25, 1 }
 0x148   : > { %v755_v30 = vadd.f32 %v754_v26, %v753_v22  ;;  %v768_v31 = vrot.slane %v767_v27, 1 }
 0x149   : > { %v763_v32 = vadd.f32 %v762_v29, %v761_v25  ;;  %770 = vst [vmem:[%s465_s22] sm:$0xff] %v749_v28 }
 0x14a   : > { %v769_v33 = vadd.f32 %v768_v31, %v767_v27  ;;  %771 = vst [vmem:[%s465_s22 + $0x8] sm:$0xff] %v755_v30 }
 0x14b   : > { %772 = vst [vmem:[%s475_s26] sm:$0xff] %v763_v32 }
 0x14c   : > { %773 = vst [vmem:[%s475_s26 + $0x8] sm:$0xff] %v769_v33 }
 0x14d PF: > { %s15_s19 = sadd.s32 1, %s1171_s19   ;;  %s1389_s15 = smov %s1159_s16 }
 0x14e   : > { %p12_p10 = scmp.ge.s32.totalorder %s15_s19, 4   ;;  %s1390_s16 = smov %s1233_s23 }
 0x14f   : > { %s1391_s17 = smov %s1167_s18  ;;  %s1392_s18 = smov %s1394_s20 }
 0x150   :  { %14 = sbr.rel (!%p12_p10) target bundleno = 3 (0x3), region = 136 }

// kernel: feature_extractor_forward.71
= control target key start
LH: loop header
LB: loop body
LE: loop exit
PB: predicated region body
PF: predicated region fallthrough
CT: control target
= control target key end

     0   :  { %s1487_s15 = smov 0   ;;  %s1489_s16 = smov 0   ;;  %s1752_s0 = inlined_call_operand.vmem [shape: bf16[8,2304], index: 0, kind: input, shape index: {}]   ;;  %s1753_s1 = inlined_call_operand.vmem [shape: bf16[2304,512], index: 1, kind: input, shape index: {}]   ;;  %s1754_s2 = inlined_call_operand.vmem [shape: bf16[8,512], index: 2, kind: output, shape index: {0}]   ;;  %s1755_s3 = inlined_call_operand.vmem [shape: f32[8,512], index: 3, kind: output, shape index: {1}]   ;;  %s1756_s4 = inlined_call_operand.vmem [shape: f32[8,512], index: 4, kind: output, shape index: {2}]  }
   0x1   :  { %s1491_s17 = smov 0   ;;  %s1493_s18 = smov 0  }
   0x2   :  { %s1495_s19 = smov 0   ;;  %s1497_s20 = smov 0  }
   0x3   :  { %s1499_s21 = smov 0  }
   0x4 LB: > { %s27_s22 = sadd.s32 1, %s1450_s19  ;;  %s30_s23 = sadd.s32 1, %s1454_s20  ;;  %s1458_s21 = sphi %s1499_s21, %s15_s21   ;;  %s1454_s20 = sphi %s1497_s20, %s1762_s20   ;;  %s1450_s19 = sphi %s1495_s19, %s1761_s19   ;;  %s1446_s18 = sphi %s1493_s18, %s1760_s18   ;;  %s1442_s17 = sphi %s1491_s17, %s1759_s17   ;;  %s1438_s16 = sphi %s1489_s16, %s1758_s16   ;;  %s1434_s15 = sphi %s1487_s15, %s1757_s15  }
   0x5   : > { %p28_p0 = scmp.ge.s32.totalorder %s27_s22, 6  ;;  %p78_p1 = scmp.ne.s32.totalorder %s1438_s16, %s1434_s15 }
   0x6   : > { %p79_p2 = scmp.eq.s32.totalorder %s1458_s21, 0  ;;  %s71_s27 = sadd.s32 1, %s1438_s16 }
   0x7   : > { %s1764_s22 = smov (%p28_p0, %s27_s22), 0  ;;  %s1766_s23 = smov (!%p28_p0, %s30_s23), %s1454_s20 }
   0x8   : > { %p80_p3 = por %p79_p2, %p78_p1  ;;  %p32_p4 = scmp.ge.s32.totalorder %s1766_s23, 2 }
   0x9   : > { %s66_s24 = ssub.s32 %s1450_s19, %s1764_s22  ;;  %p1199_p6 = scmp.ge.s32.totalorder %s1458_s21, 12 }
   0xa   : > { %s1768_s23 = smov (%p32_p4, %s1766_s23), 0 }
   0xb   : > { %s67_s25 = ssub.s32 %s1454_s20, %s1768_s23  ;;  %188 = sbr.rel (%p1199_p6) target bundleno = 50 (0x32), region = 16 }
   0xc   : > { %s68_s26 = sor.u32 %s67_s25, %s66_s24 }
   0xd   : > { %p69_p5 = scmp.eq.s32.totalorder %s68_s26, 0 }
   0xf   : > { %s1538_s28 = scalar_select %p69_p5, %s1438_s16, %s71_s27  }
  0x12   : > { %204 = sbr.rel (!%p80_p3) target bundleno = 50 (0x32), region = 24  ;;  %s206_s29 = sand.u32 (%p80_p3), 1, %s1438_s16  }
  0x13   : > { %s1269_s30 = smul.u32 (%p80_p3), 384, %s206_s29  ;;  %s1200_s5 = sshll.u32 (%p80_p3), %s1454_s20, 1 }
  0x14   : > { %s1267_s6 = smul.u32 (%p80_p3), 192, %s1450_s19 }
  0x15   : > { %s1552_s12 = scalar_lea.vmem (%p80_p3), [#allocation3], %s1269_s30 }
  0x16   : > { %s212_s7 = sadd.s32 (%p80_p3), %s1267_s6, %s1200_s5 }
  0x17   : > { %s1202_s8 = sshll.u32 (%p80_p3), %s212_s7, 2 }
  0x18   : > { %s1547_s11 = scalar_lea.vmem (%p80_p3), %s1753_s1, %s1202_s8 }
  0x19   : > { %v336_v0 = vld [vmem:[%s1547_s11] sm:$0xff]  ;;  %v338_v1 = vld [vmem:[%s1547_s11 + $0x10] sm:$0xff] }
  0x1a   : > { %v340_v2 = vld [vmem:[%s1547_s11 + $0x20] sm:$0xff]  ;;  %337 = vst [vmem:[%s1552_s12] sm:$0xff] %v336_v0  ;;  %339 = vst [vmem:[%s1552_s12 + $0x8] sm:$0xff] %v338_v1  ;;  %v342_v3 = vld [vmem:[%s1547_s11 + $0x30] sm:$0xff] }
  0x1b   : > { %341 = vst [vmem:[%s1552_s12 + $0x10] sm:$0xff] %v340_v2  ;;  %v344_v4 = vld [vmem:[%s1547_s11 + $0x40] sm:$0xff]  ;;  %v346_v5 = vld [vmem:[%s1547_s11 + $0x50] sm:$0xff]  ;;  %343 = vst [vmem:[%s1552_s12 + $0x18] sm:$0xff] %v342_v3 }
  0x1c   : > { %345 = vst [vmem:[%s1552_s12 + $0x20] sm:$0xff] %v344_v4  ;;  %347 = vst [vmem:[%s1552_s12 + $0x28] sm:$0xff] %v346_v5  ;;  %v348_v6 = vld [vmem:[%s1547_s11 + $0x60] sm:$0xff]  ;;  %v350_v7 = vld [vmem:[%s1547_s11 + $0x70] sm:$0xff] }
  0x1d   : > { %v352_v8 = vld [vmem:[%s1547_s11 + $0x80] sm:$0xff]  ;;  %349 = vst [vmem:[%s1552_s12 + $0x30] sm:$0xff] %v348_v6  ;;  %351 = vst [vmem:[%s1552_s12 + $0x38] sm:$0xff] %v350_v7  ;;  %v354_v9 = vld [vmem:[%s1547_s11 + $0x90] sm:$0xff] }
  0x1e   : > { %353 = vst [vmem:[%s1552_s12 + $0x40] sm:$0xff] %v352_v8  ;;  %v356_v10 = vld [vmem:[%s1547_s11 + $0xa0] sm:$0xff]  ;;  %v358_v11 = vld [vmem:[%s1547_s11 + $0xb0] sm:$0xff]  ;;  %355 = vst [vmem:[%s1552_s12 + $0x48] sm:$0xff] %v354_v9 }
  0x1f   : > { %357 = vst [vmem:[%s1552_s12 + $0x50] sm:$0xff] %v356_v10  ;;  %359 = vst [vmem:[%s1552_s12 + $0x58] sm:$0xff] %v358_v11  ;;  %v360_v12 = vld [vmem:[%s1547_s11 + $0xc0] sm:$0xff]  ;;  %v362_v13 = vld [vmem:[%s1547_s11 + $0xd0] sm:$0xff] }
  0x20   : > { %v364_v14 = vld [vmem:[%s1547_s11 + $0xe0] sm:$0xff]  ;;  %361 = vst [vmem:[%s1552_s12 + $0x60] sm:$0xff] %v360_v12  ;;  %363 = vst [vmem:[%s1552_s12 + $0x68] sm:$0xff] %v362_v13  ;;  %v366_v15 = vld [vmem:[%s1547_s11 + $0xf0] sm:$0xff] }
  0x21   : > { %365 = vst [vmem:[%s1552_s12 + $0x70] sm:$0xff] %v364_v14  ;;  %v368_v16 = vld [vmem:[%s1547_s11 + $0x100] sm:$0xff]  ;;  %v370_v17 = vld [vmem:[%s1547_s11 + $0x110] sm:$0xff]  ;;  %367 = vst [vmem:[%s1552_s12 + $0x78] sm:$0xff] %v366_v15 }
  0x22   : > { %369 = vst [vmem:[%s1552_s12 + $0x80] sm:$0xff] %v368_v16  ;;  %371 = vst [vmem:[%s1552_s12 + $0x88] sm:$0xff] %v370_v17  ;;  %v372_v18 = vld [vmem:[%s1547_s11 + $0x120] sm:$0xff]  ;;  %v374_v19 = vld [vmem:[%s1547_s11 + $0x130] sm:$0xff] }
  0x23   : > { %v376_v20 = vld [vmem:[%s1547_s11 + $0x140] sm:$0xff]  ;;  %373 = vst [vmem:[%s1552_s12 + $0x90] sm:$0xff] %v372_v18  ;;  %375 = vst [vmem:[%s1552_s12 + $0x98] sm:$0xff] %v374_v19  ;;  %v378_v21 = vld [vmem:[%s1547_s11 + $0x150] sm:$0xff] }
  0x24   : > { %377 = vst [vmem:[%s1552_s12 + $0xa0] sm:$0xff] %v376_v20  ;;  %v380_v22 = vld [vmem:[%s1547_s11 + $0x160] sm:$0xff]  ;;  %v382_v23 = vld [vmem:[%s1547_s11 + $0x170] sm:$0xff]  ;;  %379 = vst [vmem:[%s1552_s12 + $0xa8] sm:$0xff] %v378_v21 }
  0x25   : > { %381 = vst [vmem:[%s1552_s12 + $0xb0] sm:$0xff] %v380_v22  ;;  %383 = vst [vmem:[%s1552_s12 + $0xb8] sm:$0xff] %v382_v23  ;;  %v384_v24 = vld [vmem:[%s1547_s11 + $0x180] sm:$0xff]  ;;  %v386_v25 = vld [vmem:[%s1547_s11 + $0x190] sm:$0xff] }
  0x26   : > { %v388_v26 = vld [vmem:[%s1547_s11 + $0x1a0] sm:$0xff]  ;;  %385 = vst [vmem:[%s1552_s12 + $0xc0] sm:$0xff] %v384_v24  ;;  %387 = vst [vmem:[%s1552_s12 + $0xc8] sm:$0xff] %v386_v25  ;;  %v390_v27 = vld [vmem:[%s1547_s11 + $0x1b0] sm:$0xff] }
  0x27   : > { %389 = vst [vmem:[%s1552_s12 + $0xd0] sm:$0xff] %v388_v26  ;;  %v392_v28 = vld [vmem:[%s1547_s11 + $0x1c0] sm:$0xff]  ;;  %v394_v29 = vld [vmem:[%s1547_s11 + $0x1d0] sm:$0xff]  ;;  %391 = vst [vmem:[%s1552_s12 + $0xd8] sm:$0xff] %v390_v27 }
  0x28   : > { %393 = vst [vmem:[%s1552_s12 + $0xe0] sm:$0xff] %v392_v28  ;;  %395 = vst [vmem:[%s1552_s12 + $0xe8] sm:$0xff] %v394_v29  ;;  %v396_v30 = vld [vmem:[%s1547_s11 + $0x1e0] sm:$0xff]  ;;  %v398_v31 = vld [vmem:[%s1547_s11 + $0x1f0] sm:$0xff] }
  0x29   : > { %v400_v32 = vld [vmem:[%s1547_s11 + $0x200] sm:$0xff]  ;;  %397 = vst [vmem:[%s1552_s12 + $0xf0] sm:$0xff] %v396_v30  ;;  %399 = vst [vmem:[%s1552_s12 + $0xf8] sm:$0xff] %v398_v31  ;;  %v402_v33 = vld [vmem:[%s1547_s11 + $0x210] sm:$0xff] }
  0x2a   : > { %401 = vst [vmem:[%s1552_s12 + $0x100] sm:$0xff] %v400_v32  ;;  %v404_v34 = vld [vmem:[%s1547_s11 + $0x220] sm:$0xff]  ;;  %v406_v35 = vld [vmem:[%s1547_s11 + $0x230] sm:$0xff]  ;;  %403 = vst [vmem:[%s1552_s12 + $0x108] sm:$0xff] %v402_v33 }
  0x2b   : > { %405 = vst [vmem:[%s1552_s12 + $0x110] sm:$0xff] %v404_v34  ;;  %407 = vst [vmem:[%s1552_s12 + $0x118] sm:$0xff] %v406_v35  ;;  %v408_v36 = vld [vmem:[%s1547_s11 + $0x240] sm:$0xff]  ;;  %v410_v37 = vld [vmem:[%s1547_s11 + $0x250] sm:$0xff] }
  0x2c   : > { %v412_v38 = vld [vmem:[%s1547_s11 + $0x260] sm:$0xff]  ;;  %409 = vst [vmem:[%s1552_s12 + $0x120] sm:$0xff] %v408_v36  ;;  %411 = vst [vmem:[%s1552_s12 + $0x128] sm:$0xff] %v410_v37  ;;  %v414_v39 = vld [vmem:[%s1547_s11 + $0x270] sm:$0xff] }
  0x2d   : > { %413 = vst [vmem:[%s1552_s12 + $0x130] sm:$0xff] %v412_v38  ;;  %v416_v40 = vld [vmem:[%s1547_s11 + $0x280] sm:$0xff]  ;;  %v418_v41 = vld [vmem:[%s1547_s11 + $0x290] sm:$0xff]  ;;  %415 = vst [vmem:[%s1552_s12 + $0x138] sm:$0xff] %v414_v39 }
  0x2e   : > { %417 = vst [vmem:[%s1552_s12 + $0x140] sm:$0xff] %v416_v40  ;;  %419 = vst [vmem:[%s1552_s12 + $0x148] sm:$0xff] %v418_v41  ;;  %v420_v42 = vld [vmem:[%s1547_s11 + $0x2a0] sm:$0xff]  ;;  %v422_v43 = vld [vmem:[%s1547_s11 + $0x2b0] sm:$0xff] }
  0x2f   : > { %v424_v44 = vld [vmem:[%s1547_s11 + $0x2c0] sm:$0xff]  ;;  %421 = vst [vmem:[%s1552_s12 + $0x150] sm:$0xff] %v420_v42  ;;  %423 = vst [vmem:[%s1552_s12 + $0x158] sm:$0xff] %v422_v43  ;;  %v426_v45 = vld [vmem:[%s1547_s11 + $0x2d0] sm:$0xff] }
  0x30   : > { %425 = vst [vmem:[%s1552_s12 + $0x160] sm:$0xff] %v424_v44  ;;  %v428_v46 = vld [vmem:[%s1547_s11 + $0x2e0] sm:$0xff]  ;;  %v430_v47 = vld [vmem:[%s1547_s11 + $0x2f0] sm:$0xff]  ;;  %427 = vst [vmem:[%s1552_s12 + $0x168] sm:$0xff] %v426_v45 }
  0x31   : > { %429 = vst [vmem:[%s1552_s12 + $0x170] sm:$0xff] %v428_v46  ;;  %431 = vst [vmem:[%s1552_s12 + $0x178] sm:$0xff] %v430_v47 }
  0x32 PF: > { %p1203_p7 = scmp.ge.s32.totalorder %s1458_s21, 1  ;;  %p436_p8 = scmp.lt.s32.totalorder %s1458_s21, 13 }
  0x34   : > { %p437_p9 = pnand %p1203_p7, %p436_p8 }
  0x35   : > { %s443_s13 = sand.u32 (!%p437_p9), 1, %s1434_s15   ;;  %s499_s14 = smul.u32 (!%p437_p9), 3, %s1442_s17 }
  0x36   : > { %440 = sbr.rel (%p437_p9) target bundleno = 378 (0x17a), region = 62  ;;  %s1205_s25 = sshll.u32 (!%p437_p9), %s1446_s18, 1 }
  0x37   : > { %s1270_s24 = smul.u32 (!%p437_p9), 384, %s443_s13  ;;  %p502_p10 = scmp.lt.s32.totalorder (!%p437_p9), %s499_s14, 17 }
  0x38   : > { %p514_p11 = scmp.lt.s32.totalorder (!%p437_p9), %s1205_s25, 3  ;;  %p1211_p12 = scmp.ne.s32.totalorder (!%p437_p9), %s1442_s17, 0 }
  0x3d   : > { %s1770_s14 = smov (!%p502_p10, %s499_s14), 17  ;;  %s1772_s25 = smov (!%p514_p11, %s1205_s25), 3 }
  0x3e   : > { %s1204_s26 = sshll.u32 %s1770_s14, 2  ;;  %s1206_s5 = sshll.u32 %s1772_s25, 2  ;;  %v1460_v48 = vmov (!%p1211_p12), 0.0  }
  0x3f   : > { %s1655_s30 = scalar_lea.vmem %s1752_s0, %s1204_s26  ;;  %s1660_s8 = scalar_lea.vmem %s1754_s2, %s1206_s5  ;;  %546 = vst [vmem:[#allocation2] sm:$0xff] (!%p1211_p12), %v1460_v48  ;;  %547 = vst [vmem:[#allocation2 + $0x8] sm:$0xff] (!%p1211_p12), %v1460_v48 }
  0x40   : > { %s1208_s15 = sshll.u32 %s1772_s25, 3  ;;  %s1672_s14 = scalar_lea.vmem [#allocation3], %s1270_s24 }
  0x41   : > { %s1665_s18 = scalar_lea.vmem %s1755_s3, %s1208_s15  ;;  %s1670_s13 = scalar_lea.vmem %s1756_s4, %s1208_s15 }
  0x42   : > { %545 = sbr.rel (%p1211_p12) target bundleno = 73 (0x49), region = 70 }
  0x49 PF: > { %v1329_v49 = vld [vmem:[%s1672_s14 + $0x4] ss:$8 sps:$4 sm:$0xff]   ;;  %v1331_v50 = vld [vmem:[%s1672_s14] ss:$8 sps:$4 sm:$0xff]   ;;  %v1461_v51 = vmov 0   ;;  %v550_v18 = vld [vmem:[%s1655_s30] sm:$0xff] }
  0x4a   : > { %924 = vmatprep.mubr.bf16.mxu1 %v1461_v51  ;;  %851 = vmatprep.subr.bf16.mxu0 %v1329_v49  ;;  %v1332_v52 = vld [vmem:[%s1672_s14 + $0x14] ss:$8 sps:$4 sm:$0xff]   ;;  %v1334_v53 = vld [vmem:[%s1672_s14 + $0x10] ss:$8 sps:$4 sm:$0xff]   ;;  %v1335_v54 = vld [vmem:[%s1672_s14 + $0x24] ss:$8 sps:$4 sm:$0xff]   ;;  %v1213_v19 = vcombine.high %v550_v18, %v550_v18  ;;  %v1212_v37 = vcombine.low %v550_v18, %v550_v18 }
  0x4b   : > { %852 = vmatpush1.bf16.msra.mxu0 %v1331_v50  ;;  %v1337_v55 = vld [vmem:[%s1672_s14 + $0x20] ss:$8 sps:$4 sm:$0xff]   ;;  %v1338_v56 = vld [vmem:[%s1672_s14 + $0x34] ss:$8 sps:$4 sm:$0xff]   ;;  %v1340_v57 = vld [vmem:[%s1672_s14 + $0x30] ss:$8 sps:$4 sm:$0xff]  }
  0x4c   : > { %853 = vmatprep.subr.bf16.mxu0 %v1332_v52  ;;  %v1353_v58 = vld [vmem:[%s1672_s14 + $0x104] ss:$8 sps:$4 sm:$0xff]   ;;  %v1355_v59 = vld [vmem:[%s1672_s14 + $0x100] ss:$8 sps:$4 sm:$0xff]   ;;  %v1359_v61 = vld [vmem:[%s1672_s14 + $0x114] ss:$8 sps:$4 sm:$0xff]   ;;  %883 = vmatprep.mubr.bf16.mxu0 %v1213_v19 }
  0x4d   : > { %v1341_v60 = vld [vmem:[%s1672_s14 + $0x44] ss:$8 sps:$4 sm:$0xff]   ;;  %892 = vmatprep.subr.bf16.mxu1 %v1353_v58  ;;  %v1361_v62 = vld [vmem:[%s1672_s14 + $0x110] ss:$8 sps:$4 sm:$0xff]   ;;  %v1343_v63 = vld [vmem:[%s1672_s14 + $0x40] ss:$8 sps:$4 sm:$0xff]  }
  0x4e   : > { %893 = vmatpush1.bf16.msra.mxu1 %v1355_v59  ;;  %v1344_v0 = vld [vmem:[%s1672_s14 + $0x54] ss:$8 sps:$4 sm:$0xff]   ;;  %v1365_v1 = vld [vmem:[%s1672_s14 + $0x124] ss:$8 sps:$4 sm:$0xff]   ;;  %v1367_v2 = vld [vmem:[%s1672_s14 + $0x120] ss:$8 sps:$4 sm:$0xff]  }
  0x4f   : > { %854 = vmatpush1.bf16.msra.mxu0 %v1334_v53  ;;  %894 = vmatprep.subr.bf16.mxu1 %v1359_v61  ;;  %v1346_v3 = vld [vmem:[%s1672_s14 + $0x50] ss:$8 sps:$4 sm:$0xff]   ;;  %v1371_v4 = vld [vmem:[%s1672_s14 + $0x134] ss:$8 sps:$4 sm:$0xff]   ;;  %v1347_v5 = vld [vmem:[%s1672_s14 + $0x64] ss:$8 sps:$4 sm:$0xff]  }
  0x50   : > { %855 = vmatprep.subr.bf16.mxu0 %v1335_v54  ;;  %v1373_v6 = vld [vmem:[%s1672_s14 + $0x130] ss:$8 sps:$4 sm:$0xff]   ;;  %v1349_v7 = vld [vmem:[%s1672_s14 + $0x60] ss:$8 sps:$4 sm:$0xff]   ;;  %v1377_v8 = vld [vmem:[%s1672_s14 + $0x144] ss:$8 sps:$4 sm:$0xff]  }
  0x51   : > { %v1350_v9 = vld [vmem:[%s1672_s14 + $0x74] ss:$8 sps:$4 sm:$0xff]   ;;  %v1379_v10 = vld [vmem:[%s1672_s14 + $0x140] ss:$8 sps:$4 sm:$0xff]   ;;  %v1352_v11 = vld [vmem:[%s1672_s14 + $0x70] ss:$8 sps:$4 sm:$0xff]  }
  0x52   : > { %895 = vmatpush1.bf16.msra.mxu1 %v1361_v62  ;;  %v1383_v12 = vld [vmem:[%s1672_s14 + $0x154] ss:$8 sps:$4 sm:$0xff]   ;;  %v1356_v13 = vld [vmem:[%s1672_s14 + $0x84] ss:$8 sps:$4 sm:$0xff]   ;;  %v1385_v14 = vld [vmem:[%s1672_s14 + $0x150] ss:$8 sps:$4 sm:$0xff]  }
  0x53   : > { %856 = vmatpush1.bf16.msra.mxu0 %v1337_v55  ;;  %896 = vmatprep.subr.bf16.mxu1 %v1365_v1  ;;  %v1358_v15 = vld [vmem:[%s1672_s14 + $0x80] ss:$8 sps:$4 sm:$0xff]   ;;  %v1389_v16 = vld [vmem:[%s1672_s14 + $0x164] ss:$8 sps:$4 sm:$0xff]   ;;  %v1362_v17 = vld [vmem:[%s1672_s14 + $0x94] ss:$8 sps:$4 sm:$0xff]  }
  0x54   : > { %857 = vmatprep.subr.bf16.mxu0 %v1338_v56  ;;  %v1391_v20 = vld [vmem:[%s1672_s14 + $0x160] ss:$8 sps:$4 sm:$0xff]   ;;  %v1364_v21 = vld [vmem:[%s1672_s14 + $0x90] ss:$8 sps:$4 sm:$0xff]   ;;  %v1395_v22 = vld [vmem:[%s1672_s14 + $0x174] ss:$8 sps:$4 sm:$0xff]  }
  0x55   : > { %v1368_v23 = vld [vmem:[%s1672_s14 + $0xa4] ss:$8 sps:$4 sm:$0xff]   ;;  %v1397_v24 = vld [vmem:[%s1672_s14 + $0x170] ss:$8 sps:$4 sm:$0xff]   ;;  %v1370_v25 = vld [vmem:[%s1672_s14 + $0xa0] ss:$8 sps:$4 sm:$0xff]  }
  0x56   : > { %897 = vmatpush1.bf16.msra.mxu1 %v1367_v2  ;;  %v1374_v26 = vld [vmem:[%s1672_s14 + $0xb4] ss:$8 sps:$4 sm:$0xff]   ;;  %v1401_v27 = vld [vmem:[%s1655_s30 + $0x8] ss:$0 sps:$4 sm:$0xff]   ;;  %v1380_v29 = vld [vmem:[%s1672_s14 + $0xc4] ss:$8 sps:$4 sm:$0xff]  }
  0x57   : > { %858 = vmatpush1.bf16.msra.mxu0 %v1340_v57  ;;  %898 = vmatprep.subr.bf16.mxu1 %v1371_v4  ;;  %v1376_v28 = vld [vmem:[%s1672_s14 + $0xb0] ss:$8 sps:$4 sm:$0xff]   ;;  %v1382_v30 = vld [vmem:[%s1672_s14 + $0xc0] ss:$8 sps:$4 sm:$0xff]   ;;  %v1386_v31 = vld [vmem:[%s1672_s14 + $0xd4] ss:$8 sps:$4 sm:$0xff]  }
  0x58   : > { %859 = vmatprep.subr.bf16.mxu0 %v1341_v60  ;;  %v1388_v32 = vld [vmem:[%s1672_s14 + $0xd0] ss:$8 sps:$4 sm:$0xff]   ;;  %v1392_v33 = vld [vmem:[%s1672_s14 + $0xe4] ss:$8 sps:$4 sm:$0xff]   ;;  %v1394_v34 = vld [vmem:[%s1672_s14 + $0xe0] ss:$8 sps:$4 sm:$0xff]  }
  0x59   : > { %v1398_v35 = vld [vmem:[%s1672_s14 + $0xf4] ss:$8 sps:$4 sm:$0xff]   ;;  %v1400_v36 = vld [vmem:[%s1672_s14 + $0xf0] ss:$8 sps:$4 sm:$0xff]   ;;  %p1263_p13 = scmp.ne.s32.totalorder %s1442_s17, 5 }
  0x5a   : > { %899 = vmatpush1.bf16.msra.mxu1 %v1373_v6  ;;  %v548_v42 = vld [vmem:[#allocation2] sm:$0xff]  ;;  %v549_v45 = vld [vmem:[#allocation2 + $0x8] sm:$0xff] }
  0x5b   : > { %860 = vmatpush1.bf16.msra.mxu0 %v1343_v63  ;;  %900 = vmatprep.subr.bf16.mxu1 %v1377_v8 }
  0x5c   : > { %861 = vmatprep.subr.bf16.mxu0 %v1344_v0 }
  0x5e   : > { %901 = vmatpush1.bf16.msra.mxu1 %v1379_v10 }
  0x5f   : > { %862 = vmatpush1.bf16.msra.mxu0 %v1346_v3  ;;  %902 = vmatprep.subr.bf16.mxu1 %v1383_v12 }
  0x60   : > { %863 = vmatprep.subr.bf16.mxu0 %v1347_v5 }
  0x62   : > { %903 = vmatpush1.bf16.msra.mxu1 %v1385_v14 }
  0x63   : > { %864 = vmatpush1.bf16.msra.mxu0 %v1349_v7  ;;  %904 = vmatprep.subr.bf16.mxu1 %v1389_v16 }
  0x64   : > { %865 = vmatprep.subr.bf16.mxu0 %v1350_v9 }
  0x66   : > { %905 = vmatpush1.bf16.msra.mxu1 %v1391_v20 }
  0x67   : > { %866 = vmatpush1.bf16.msra.mxu0 %v1352_v11  ;;  %906 = vmatprep.subr.bf16.mxu1 %v1395_v22 }
  0x68   : > { %867 = vmatprep.subr.bf16.mxu0 %v1356_v13 }
  0x6a   : > { %907 = vmatpush1.bf16.msra.mxu1 %v1397_v24 }
  0x6b   : > { %868 = vmatpush1.bf16.msra.mxu0 %v1358_v15 }
  0x6c   : > { %869 = vmatprep.subr.bf16.mxu0 %v1362_v17 }
  0x6d   : > { %925 = vmatmul.mubr.bf16.vlgmr.msra.gmra.mrb[0].mxu1 %v1401_v27 }
  0x6f   : > { %870 = vmatpush1.bf16.msra.mxu0 %v1364_v21 }
  0x70   : > { %871 = vmatprep.subr.bf16.mxu0 %v1368_v23 }
  0x73   : > { %872 = vmatpush1.bf16.msra.mxu0 %v1370_v25 }
  0x74   : > { %873 = vmatprep.subr.bf16.mxu0 %v1374_v26 }
  0x77   : > { %874 = vmatpush1.bf16.msra.mxu0 %v1376_v28 }
  0x78   : > { %875 = vmatprep.subr.bf16.mxu0 %v1380_v29 }
  0x7b   : > { %876 = vmatpush1.bf16.msra.mxu0 %v1382_v30 }
  0x7c   : > { %877 = vmatprep.subr.bf16.mxu0 %v1386_v31 }
  0x7f   : > { %878 = vmatpush1.bf16.msra.mxu0 %v1388_v32 }
  0x80   : > { %879 = vmatprep.subr.bf16.mxu0 %v1392_v33 }
  0x83   : > { %880 = vmatpush1.bf16.msra.mxu0 %v1394_v34 }
  0x84   : > { %881 = vmatprep.subr.bf16.mxu0 %v1398_v35 }
  0x87   : > { %882 = vmatpush1.bf16.msra.mxu0 %v1400_v36 }
  0x8a   : > { %884 = vmatmul.mubr.bf16.vlgmr.msra.gmra.mrb[0].mxu0 %v1212_v37 }
 0x140   : > { %v926_v38 = vpop.f32.mrb[0].mxu1 }
 0x141   : > { %v928_v39 = vpop.f32.mrb[1].mxu1 }
 0x142   : > { %v930_v40 = vpop.f32.mrb[2].mxu1 }
 0x143   : > { %v931_v41 = vpop.f32.mrb[3].mxu1 }
 0x15d   : > { %v885_v43 = vpop.f32.mrb[0].mxu0  ;;  %940 = sbr.rel (%p1263_p13) target bundleno = 378 (0x17a), region = 74 }
 0x15e   : > { %v927_v44 = vadd.f32 %v926_v38, %v885_v43  ;;  %v887_v46 = vpop.f32.mrb[1].mxu0 }
 0x15f   : > { %v929_v47 = vadd.f32 %v928_v39, %v887_v46  ;;  %v889_v48 = vpop.f32.mrb[2].mxu0 }
 0x160   : > { %v933_v49 = vadd.f32 %v927_v44, %v548_v42  ;;  %v890_v50 = vpop.f32.mrb[3].mxu0 }
 0x161   : > { %v934_v51 = vadd.f32 %v929_v47, %v549_v45 }
 0x162   : > { %935 = vst [vmem:[#allocation2] sm:$0xff] %v933_v49 }
 0x163   : > { %936 = vst [vmem:[#allocation2 + $0x8] sm:$0xff] %v934_v51 }
 0x169   : > { %v941_v52 = vld [vmem:[#allocation2] sm:$0xff] }
 0x16a   : > { %v942_v53 = vld [vmem:[#allocation2 + $0x8] sm:$0xff]  ;;  %v952_v54 = vrot.slane %v941_v52, 4  ;;  %v964_v55 = vmul.f32 %v941_v52, %v941_v52 }
 0x16b   : > { %v1268_v56 = vpack.c.bf16 %v942_v53, %v941_v52  ;;  %v958_v57 = vrot.slane %v942_v53, 4  ;;  %v965_v58 = vmul.f32 %v942_v53, %v942_v53 }
 0x16c   : > { %v953_v59 = vadd.f32 %v952_v54, %v941_v52  ;;  %v966_v60 = vrot.slane %v964_v55, 4 }
 0x16d   : > { %951 = vst [vmem:[%s1660_s8] sm:$0xff] %v1268_v56  ;;  %v959_v61 = vadd.f32 %v958_v57, %v942_v53  ;;  %v972_v62 = vrot.slane %v965_v58, 4 }
 0x16e   : > { %v954_v63 = vrot.slane %v953_v59, 2  ;;  %v967_v0 = vadd.f32 %v966_v60, %v964_v55 }
 0x16f   : > { %v960_v1 = vrot.slane %v959_v61, 2  ;;  %v973_v2 = vadd.f32 %v972_v62, %v965_v58 }
 0x170   : > { %v955_v3 = vadd.f32 %v954_v63, %v953_v59  ;;  %v968_v4 = vrot.slane %v967_v0, 2 }
 0x171   : > { %v961_v5 = vadd.f32 %v960_v1, %v959_v61  ;;  %v974_v6 = vrot.slane %v973_v2, 2 }
 0x172   : > { %v956_v7 = vrot.slane %v955_v3, 1  ;;  %v969_v8 = vadd.f32 %v968_v4, %v967_v0 }
 0x173   : > { %v962_v9 = vrot.slane %v961_v5, 1  ;;  %v975_v10 = vadd.f32 %v974_v6, %v973_v2 }
 0x174   : > { %v957_v11 = vadd.f32 %v956_v7, %v955_v3  ;;  %v970_v12 = vrot.slane %v969_v8, 1 }
 0x175   : > { %v963_v13 = vadd.f32 %v962_v9, %v961_v5  ;;  %v976_v14 = vrot.slane %v975_v10, 1 }
 0x176   : > { %978 = vst [vmem:[%s1665_s18] sm:$0xff] %v957_v11  ;;  %v971_v15 = vadd.f32 %v970_v12, %v969_v8 }
 0x177   : > { %979 = vst [vmem:[%s1665_s18 + $0x8] sm:$0xff] %v963_v13  ;;  %v977_v16 = vadd.f32 %v976_v14, %v975_v10 }
 0x178   : > { %980 = vst [vmem:[%s1670_s13] sm:$0xff] %v971_v15 }
 0x179   : > { %981 = vst [vmem:[%s1670_s13 + $0x8] sm:$0xff] %v977_v16 }
 0x17a PF: > { %s15_s21 = sadd.s32 1, %s1458_s21   ;;  %s1757_s15 = smov %s1438_s16 }
 0x17b   : > { %p12_p0 = scmp.ge.s32.totalorder %s15_s21, 14   ;;  %s1758_s16 = smov %s1538_s28 }
 0x17c   : > { %s1759_s17 = smov %s1450_s19  ;;  %s1760_s18 = smov %s1454_s20 }
 0x17d   : > { %s1761_s19 = smov %s1764_s22  ;;  %s1762_s20 = smov %s1768_s23 }
 0x17e   :  { %14 = sbr.rel (!%p12_p0) target bundleno = 4 (0x4), region = 136 }

// kernel: feature_extractor_forward.73
= control target key start
LH: loop header
LB: loop body
LE: loop exit
PB: predicated region body
PF: predicated region fallthrough
CT: control target
= control target key end

     0   :  { %s1691_s15 = smov 0   ;;  %s1693_s16 = smov 0   ;;  %s2004_s0 = inlined_call_operand.vmem [shape: bf16[8,4608], index: 0, kind: input, shape index: {}]   ;;  %s2005_s1 = inlined_call_operand.vmem [shape: bf16[4608,512], index: 1, kind: input, shape index: {}]   ;;  %s2006_s2 = inlined_call_operand.vmem [shape: bf16[8,512], index: 2, kind: output, shape index: {0}]   ;;  %s2007_s3 = inlined_call_operand.vmem [shape: f32[8,512], index: 3, kind: output, shape index: {1}]   ;;  %s2008_s4 = inlined_call_operand.vmem [shape: f32[8,512], index: 4, kind: output, shape index: {2}]  }
   0x1   :  { %s1695_s17 = smov 0   ;;  %s1697_s18 = smov 0  }
   0x2   :  { %s1699_s19 = smov 0   ;;  %s1701_s20 = smov 0  }
   0x3   :  { %s1703_s21 = smov 0  }
   0x4 LB: > { %s27_s22 = sadd.s32 1, %s1655_s19  ;;  %s30_s23 = sadd.s32 1, %s1659_s20  ;;  %s1663_s21 = sphi %s1703_s21, %s15_s21   ;;  %s1659_s20 = sphi %s1701_s20, %s2014_s20   ;;  %s1655_s19 = sphi %s1699_s19, %s2013_s19   ;;  %s1651_s18 = sphi %s1697_s18, %s2012_s18   ;;  %s1647_s17 = sphi %s1695_s17, %s2011_s17   ;;  %s1643_s16 = sphi %s1693_s16, %s2010_s16   ;;  %s1639_s15 = sphi %s1691_s15, %s2009_s15  }
   0x5   : > { %p28_p0 = scmp.ge.s32.totalorder %s27_s22, 9  ;;  %p78_p1 = scmp.ne.s32.totalorder %s1643_s16, %s1639_s15 }
   0x6   : > { %p79_p2 = scmp.eq.s32.totalorder %s1663_s21, 0  ;;  %s71_s27 = sadd.s32 1, %s1643_s16 }
   0x7   : > { %s2016_s22 = smov (%p28_p0, %s27_s22), 0  ;;  %s2018_s23 = smov (!%p28_p0, %s30_s23), %s1659_s20 }
   0x8   : > { %p80_p3 = por %p79_p2, %p78_p1  ;;  %p32_p4 = scmp.ge.s32.totalorder %s2018_s23, 2 }
   0x9   : > { %s66_s24 = ssub.s32 %s1655_s19, %s2016_s22  ;;  %p1361_p6 = scmp.ge.s32.totalorder %s1663_s21, 18 }
   0xa   : > { %s2020_s23 = smov (%p32_p4, %s2018_s23), 0 }
   0xb   : > { %s67_s25 = ssub.s32 %s1659_s20, %s2020_s23  ;;  %188 = sbr.rel (%p1361_p6) target bundleno = 57 (0x39), region = 16 }
   0xc   : > { %s68_s26 = sor.u32 %s67_s25, %s66_s24 }
   0xd   : > { %p69_p5 = scmp.eq.s32.totalorder %s68_s26, 0 }
   0xf   : > { %s1742_s28 = scalar_select %p69_p5, %s1643_s16, %s71_s27  }
  0x12   : > { %204 = sbr.rel (!%p80_p3) target bundleno = 57 (0x39), region = 24  ;;  %s206_s29 = sand.u32 (%p80_p3), 1, %s1643_s16  }
  0x13   : > { %s1364_s30 = sshll.u32 (%p80_p3), %s1659_s20, 1  ;;  %s1362_s5 = sshll.u32 (%p80_p3), %s206_s29, 9 }
  0x14   : > { %s1450_s6 = sshll.u32 (%p80_p3), %s1655_s19, 8  ;;  %s1756_s12 = scalar_lea.vmem (%p80_p3), [#allocation3], %s1362_s5 }
  0x15   : > { %s212_s7 = sadd.s32 (%p80_p3), %s1450_s6, %s1364_s30 }
  0x16   : > { %s1366_s8 = sshll.u32 (%p80_p3), %s212_s7, 2 }
  0x17   : > { %s1751_s11 = scalar_lea.vmem (%p80_p3), %s2005_s1, %s1366_s8 }
  0x18   : > { %v368_v0 = vld [vmem:[%s1751_s11] sm:$0xff] (%p80_p3)  ;;  %v370_v1 = vld [vmem:[%s1751_s11 + $0x10] sm:$0xff] (%p80_p3) }
  0x19   : > { %v372_v2 = vld [vmem:[%s1751_s11 + $0x20] sm:$0xff]  ;;  %369 = vst [vmem:[%s1756_s12] sm:$0xff] %v368_v0  ;;  %371 = vst [vmem:[%s1756_s12 + $0x8] sm:$0xff] %v370_v1  ;;  %v374_v3 = vld [vmem:[%s1751_s11 + $0x30] sm:$0xff] }
  0x1a   : > { %373 = vst [vmem:[%s1756_s12 + $0x10] sm:$0xff] %v372_v2  ;;  %v376_v4 = vld [vmem:[%s1751_s11 + $0x40] sm:$0xff]  ;;  %v378_v5 = vld [vmem:[%s1751_s11 + $0x50] sm:$0xff]  ;;  %375 = vst [vmem:[%s1756_s12 + $0x18] sm:$0xff] %v374_v3 }
  0x1b   : > { %377 = vst [vmem:[%s1756_s12 + $0x20] sm:$0xff] %v376_v4  ;;  %379 = vst [vmem:[%s1756_s12 + $0x28] sm:$0xff] %v378_v5  ;;  %v380_v6 = vld [vmem:[%s1751_s11 + $0x60] sm:$0xff]  ;;  %v382_v7 = vld [vmem:[%s1751_s11 + $0x70] sm:$0xff] }
  0x1c   : > { %v384_v8 = vld [vmem:[%s1751_s11 + $0x80] sm:$0xff]  ;;  %381 = vst [vmem:[%s1756_s12 + $0x30] sm:$0xff] %v380_v6  ;;  %383 = vst [vmem:[%s1756_s12 + $0x38] sm:$0xff] %v382_v7  ;;  %v386_v9 = vld [vmem:[%s1751_s11 + $0x90] sm:$0xff] }
  0x1d   : > { %385 = vst [vmem:[%s1756_s12 + $0x40] sm:$0xff] %v384_v8  ;;  %v388_v10 = vld [vmem:[%s1751_s11 + $0xa0] sm:$0xff]  ;;  %v390_v11 = vld [vmem:[%s1751_s11 + $0xb0] sm:$0xff]  ;;  %387 = vst [vmem:[%s1756_s12 + $0x48] sm:$0xff] %v386_v9 }
  0x1e   : > { %389 = vst [vmem:[%s1756_s12 + $0x50] sm:$0xff] %v388_v10  ;;  %391 = vst [vmem:[%s1756_s12 + $0x58] sm:$0xff] %v390_v11  ;;  %v392_v12 = vld [vmem:[%s1751_s11 + $0xc0] sm:$0xff]  ;;  %v394_v13 = vld [vmem:[%s1751_s11 + $0xd0] sm:$0xff] }
  0x1f   : > { %v396_v14 = vld [vmem:[%s1751_s11 + $0xe0] sm:$0xff]  ;;  %393 = vst [vmem:[%s1756_s12 + $0x60] sm:$0xff] %v392_v12  ;;  %395 = vst [vmem:[%s1756_s12 + $0x68] sm:$0xff] %v394_v13  ;;  %v398_v15 = vld [vmem:[%s1751_s11 + $0xf0] sm:$0xff] }
  0x20   : > { %397 = vst [vmem:[%s1756_s12 + $0x70] sm:$0xff] %v396_v14  ;;  %v400_v16 = vld [vmem:[%s1751_s11 + $0x100] sm:$0xff]  ;;  %v402_v17 = vld [vmem:[%s1751_s11 + $0x110] sm:$0xff]  ;;  %399 = vst [vmem:[%s1756_s12 + $0x78] sm:$0xff] %v398_v15 }
  0x21   : > { %401 = vst [vmem:[%s1756_s12 + $0x80] sm:$0xff] %v400_v16  ;;  %403 = vst [vmem:[%s1756_s12 + $0x88] sm:$0xff] %v402_v17  ;;  %v404_v18 = vld [vmem:[%s1751_s11 + $0x120] sm:$0xff]  ;;  %v406_v19 = vld [vmem:[%s1751_s11 + $0x130] sm:$0xff] }
  0x22   : > { %v408_v20 = vld [vmem:[%s1751_s11 + $0x140] sm:$0xff]  ;;  %405 = vst [vmem:[%s1756_s12 + $0x90] sm:$0xff] %v404_v18  ;;  %407 = vst [vmem:[%s1756_s12 + $0x98] sm:$0xff] %v406_v19  ;;  %v410_v21 = vld [vmem:[%s1751_s11 + $0x150] sm:$0xff] }
  0x23   : > { %409 = vst [vmem:[%s1756_s12 + $0xa0] sm:$0xff] %v408_v20  ;;  %v412_v22 = vld [vmem:[%s1751_s11 + $0x160] sm:$0xff]  ;;  %v414_v23 = vld [vmem:[%s1751_s11 + $0x170] sm:$0xff]  ;;  %411 = vst [vmem:[%s1756_s12 + $0xa8] sm:$0xff] %v410_v21 }
  0x24   : > { %413 = vst [vmem:[%s1756_s12 + $0xb0] sm:$0xff] %v412_v22  ;;  %415 = vst [vmem:[%s1756_s12 + $0xb8] sm:$0xff] %v414_v23  ;;  %v416_v24 = vld [vmem:[%s1751_s11 + $0x180] sm:$0xff]  ;;  %v418_v25 = vld [vmem:[%s1751_s11 + $0x190] sm:$0xff] }
  0x25   : > { %v420_v26 = vld [vmem:[%s1751_s11 + $0x1a0] sm:$0xff]  ;;  %417 = vst [vmem:[%s1756_s12 + $0xc0] sm:$0xff] %v416_v24  ;;  %419 = vst [vmem:[%s1756_s12 + $0xc8] sm:$0xff] %v418_v25  ;;  %v422_v27 = vld [vmem:[%s1751_s11 + $0x1b0] sm:$0xff] }
  0x26   : > { %421 = vst [vmem:[%s1756_s12 + $0xd0] sm:$0xff] %v420_v26  ;;  %v424_v28 = vld [vmem:[%s1751_s11 + $0x1c0] sm:$0xff]  ;;  %v426_v29 = vld [vmem:[%s1751_s11 + $0x1d0] sm:$0xff]  ;;  %423 = vst [vmem:[%s1756_s12 + $0xd8] sm:$0xff] %v422_v27 }
  0x27   : > { %425 = vst [vmem:[%s1756_s12 + $0xe0] sm:$0xff] %v424_v28  ;;  %427 = vst [vmem:[%s1756_s12 + $0xe8] sm:$0xff] %v426_v29  ;;  %v428_v30 = vld [vmem:[%s1751_s11 + $0x1e0] sm:$0xff]  ;;  %v430_v31 = vld [vmem:[%s1751_s11 + $0x1f0] sm:$0xff] }
  0x28   : > { %v432_v32 = vld [vmem:[%s1751_s11 + $0x200] sm:$0xff]  ;;  %429 = vst [vmem:[%s1756_s12 + $0xf0] sm:$0xff] %v428_v30  ;;  %431 = vst [vmem:[%s1756_s12 + $0xf8] sm:$0xff] %v430_v31  ;;  %v434_v33 = vld [vmem:[%s1751_s11 + $0x210] sm:$0xff] }
  0x29   : > { %433 = vst [vmem:[%s1756_s12 + $0x100] sm:$0xff] %v432_v32  ;;  %v436_v34 = vld [vmem:[%s1751_s11 + $0x220] sm:$0xff]  ;;  %v438_v35 = vld [vmem:[%s1751_s11 + $0x230] sm:$0xff]  ;;  %435 = vst [vmem:[%s1756_s12 + $0x108] sm:$0xff] %v434_v33 }
  0x2a   : > { %437 = vst [vmem:[%s1756_s12 + $0x110] sm:$0xff] %v436_v34  ;;  %439 = vst [vmem:[%s1756_s12 + $0x118] sm:$0xff] %v438_v35  ;;  %v440_v36 = vld [vmem:[%s1751_s11 + $0x240] sm:$0xff]  ;;  %v442_v37 = vld [vmem:[%s1751_s11 + $0x250] sm:$0xff] }
  0x2b   : > { %v444_v38 = vld [vmem:[%s1751_s11 + $0x260] sm:$0xff]  ;;  %441 = vst [vmem:[%s1756_s12 + $0x120] sm:$0xff] %v440_v36  ;;  %443 = vst [vmem:[%s1756_s12 + $0x128] sm:$0xff] %v442_v37  ;;  %v446_v39 = vld [vmem:[%s1751_s11 + $0x270] sm:$0xff] }
  0x2c   : > { %445 = vst [vmem:[%s1756_s12 + $0x130] sm:$0xff] %v444_v38  ;;  %v448_v40 = vld [vmem:[%s1751_s11 + $0x280] sm:$0xff]  ;;  %v450_v41 = vld [vmem:[%s1751_s11 + $0x290] sm:$0xff]  ;;  %447 = vst [vmem:[%s1756_s12 + $0x138] sm:$0xff] %v446_v39 }
  0x2d   : > { %449 = vst [vmem:[%s1756_s12 + $0x140] sm:$0xff] %v448_v40  ;;  %451 = vst [vmem:[%s1756_s12 + $0x148] sm:$0xff] %v450_v41  ;;  %v452_v42 = vld [vmem:[%s1751_s11 + $0x2a0] sm:$0xff]  ;;  %v454_v43 = vld [vmem:[%s1751_s11 + $0x2b0] sm:$0xff] }
  0x2e   : > { %v456_v44 = vld [vmem:[%s1751_s11 + $0x2c0] sm:$0xff]  ;;  %453 = vst [vmem:[%s1756_s12 + $0x150] sm:$0xff] %v452_v42  ;;  %455 = vst [vmem:[%s1756_s12 + $0x158] sm:$0xff] %v454_v43  ;;  %v458_v45 = vld [vmem:[%s1751_s11 + $0x2d0] sm:$0xff] }
  0x2f   : > { %457 = vst [vmem:[%s1756_s12 + $0x160] sm:$0xff] %v456_v44  ;;  %v460_v46 = vld [vmem:[%s1751_s11 + $0x2e0] sm:$0xff]  ;;  %v462_v47 = vld [vmem:[%s1751_s11 + $0x2f0] sm:$0xff]  ;;  %459 = vst [vmem:[%s1756_s12 + $0x168] sm:$0xff] %v458_v45 }
  0x30   : > { %461 = vst [vmem:[%s1756_s12 + $0x170] sm:$0xff] %v460_v46  ;;  %463 = vst [vmem:[%s1756_s12 + $0x178] sm:$0xff] %v462_v47  ;;  %v464_v48 = vld [vmem:[%s1751_s11 + $0x300] sm:$0xff]  ;;  %v466_v49 = vld [vmem:[%s1751_s11 + $0x310] sm:$0xff] }
  0x31   : > { %v468_v50 = vld [vmem:[%s1751_s11 + $0x320] sm:$0xff]  ;;  %465 = vst [vmem:[%s1756_s12 + $0x180] sm:$0xff] %v464_v48  ;;  %467 = vst [vmem:[%s1756_s12 + $0x188] sm:$0xff] %v466_v49  ;;  %v470_v51 = vld [vmem:[%s1751_s11 + $0x330] sm:$0xff] }
  0x32   : > { %469 = vst [vmem:[%s1756_s12 + $0x190] sm:$0xff] %v468_v50  ;;  %v472_v52 = vld [vmem:[%s1751_s11 + $0x340] sm:$0xff]  ;;  %v474_v53 = vld [vmem:[%s1751_s11 + $0x350] sm:$0xff]  ;;  %471 = vst [vmem:[%s1756_s12 + $0x198] sm:$0xff] %v470_v51 }
  0x33   : > { %473 = vst [vmem:[%s1756_s12 + $0x1a0] sm:$0xff] %v472_v52  ;;  %475 = vst [vmem:[%s1756_s12 + $0x1a8] sm:$0xff] %v474_v53  ;;  %v476_v54 = vld [vmem:[%s1751_s11 + $0x360] sm:$0xff]  ;;  %v478_v55 = vld [vmem:[%s1751_s11 + $0x370] sm:$0xff] }
  0x34   : > { %v480_v56 = vld [vmem:[%s1751_s11 + $0x380] sm:$0xff]  ;;  %477 = vst [vmem:[%s1756_s12 + $0x1b0] sm:$0xff] %v476_v54  ;;  %479 = vst [vmem:[%s1756_s12 + $0x1b8] sm:$0xff] %v478_v55  ;;  %v482_v57 = vld [vmem:[%s1751_s11 + $0x390] sm:$0xff] }
  0x35   : > { %481 = vst [vmem:[%s1756_s12 + $0x1c0] sm:$0xff] %v480_v56  ;;  %v484_v58 = vld [vmem:[%s1751_s11 + $0x3a0] sm:$0xff]  ;;  %v486_v59 = vld [vmem:[%s1751_s11 + $0x3b0] sm:$0xff]  ;;  %483 = vst [vmem:[%s1756_s12 + $0x1c8] sm:$0xff] %v482_v57 }
  0x36   : > { %485 = vst [vmem:[%s1756_s12 + $0x1d0] sm:$0xff] %v484_v58  ;;  %487 = vst [vmem:[%s1756_s12 + $0x1d8] sm:$0xff] %v486_v59  ;;  %v488_v60 = vld [vmem:[%s1751_s11 + $0x3c0] sm:$0xff]  ;;  %v490_v61 = vld [vmem:[%s1751_s11 + $0x3d0] sm:$0xff] }
  0x37   : > { %v492_v62 = vld [vmem:[%s1751_s11 + $0x3e0] sm:$0xff]  ;;  %489 = vst [vmem:[%s1756_s12 + $0x1e0] sm:$0xff] %v488_v60  ;;  %491 = vst [vmem:[%s1756_s12 + $0x1e8] sm:$0xff] %v490_v61  ;;  %v494_v63 = vld [vmem:[%s1751_s11 + $0x3f0] sm:$0xff] }
  0x38   : > { %493 = vst [vmem:[%s1756_s12 + $0x1f0] sm:$0xff] %v492_v62  ;;  %495 = vst [vmem:[%s1756_s12 + $0x1f8] sm:$0xff] %v494_v63 }
  0x39 PF: > { %p1367_p7 = scmp.ge.s32.totalorder %s1663_s21, 1  ;;  %p500_p8 = scmp.lt.s32.totalorder %s1663_s21, 19 }
  0x3b   : > { %p501_p9 = pnand %p1367_p7, %p500_p8 }
  0x3c   : > { %s507_s13 = sand.u32 (!%p501_p9), 1, %s1639_s15   ;;  %s1369_s14 = sshll.u32 (!%p501_p9), %s1647_s17, 2 }
  0x3d   : > { %504 = sbr.rel (%p501_p9) target bundleno = 386 (0x182), region = 62  ;;  %s1368_s24 = sshll.u32 (!%p501_p9), %s507_s13, 9 }
  0x3e   : > { %p566_p10 = scmp.lt.s32.totalorder (!%p501_p9), %s1369_s14, 35  ;;  %s1371_s25 = sshll.u32 (!%p501_p9), %s1651_s18, 1 }
  0x3f   : > { %p578_p11 = scmp.lt.s32.totalorder (!%p501_p9), %s1371_s25, 3  ;;  %p1377_p12 = scmp.ne.s32.totalorder (!%p501_p9), %s1647_s17, 0 }
  0x44   : > { %s2022_s14 = smov (!%p566_p10, %s1369_s14), 35  ;;  %s2024_s25 = smov (!%p578_p11, %s1371_s25), 3 }
  0x45   : > { %s1370_s26 = sshll.u32 %s2022_s14, 2  ;;  %s1372_s5 = sshll.u32 %s2024_s25, 2  ;;  %v1665_v0 = vmov (!%p1377_p12), 0.0  }
  0x46   : > { %s1891_s30 = scalar_lea.vmem %s2004_s0, %s1370_s26  ;;  %s1374_s6 = sshll.u32 %s2024_s25, 3  ;;  %609 = vst [vmem:[#allocation2] sm:$0xff] (!%p1377_p12), %v1665_v0  ;;  %610 = vst [vmem:[#allocation2 + $0x8] sm:$0xff] (!%p1377_p12), %v1665_v0 }
  0x47   : > { %s1896_s9 = scalar_lea.vmem %s2006_s2, %s1372_s5  ;;  %s1901_s18 = scalar_lea.vmem %s2007_s3, %s1374_s6 }
  0x48   : > { %s1906_s13 = scalar_lea.vmem %s2008_s4, %s1374_s6  ;;  %s1908_s14 = scalar_lea.vmem [#allocation3], %s1368_s24 }
  0x49   : > { %608 = sbr.rel (%p1377_p12) target bundleno = 80 (0x50), region = 70 }
  0x50 PF: > { %v1509_v1 = vld [vmem:[%s1908_s14 + $0x4] ss:$8 sps:$4 sm:$0xff]   ;;  %v1513_v3 = vld [vmem:[%s1908_s14] ss:$8 sps:$4 sm:$0xff]   ;;  %v1515_v5 = vld [vmem:[%s1908_s14 + $0x14] ss:$8 sps:$4 sm:$0xff]  }
  0x51   : > { %v1511_v2 = vld [vmem:[%s1908_s14 + $0x104] ss:$8 sps:$4 sm:$0xff]   ;;  %1013 = vmatprep.subr.bf16.mxu0 %v1509_v1  ;;  %v1514_v4 = vld [vmem:[%s1908_s14 + $0x100] ss:$8 sps:$4 sm:$0xff]   ;;  %v1517_v6 = vld [vmem:[%s1908_s14 + $0x114] ss:$8 sps:$4 sm:$0xff]  }
  0x52   : > { %1054 = vmatprep.subr.bf16.mxu1 %v1511_v2  ;;  %1014 = vmatpush1.bf16.msra.mxu0 %v1513_v3  ;;  %v1519_v7 = vld [vmem:[%s1908_s14 + $0x10] ss:$8 sps:$4 sm:$0xff]   ;;  %v1521_v9 = vld [vmem:[%s1908_s14 + $0x24] ss:$8 sps:$4 sm:$0xff]   ;;  %v1525_v11 = vld [vmem:[%s1908_s14 + $0x20] ss:$8 sps:$4 sm:$0xff]  }
  0x53   : > { %1055 = vmatpush1.bf16.msra.mxu1 %v1514_v4  ;;  %1015 = vmatprep.subr.bf16.mxu0 %v1515_v5  ;;  %v1520_v8 = vld [vmem:[%s1908_s14 + $0x110] ss:$8 sps:$4 sm:$0xff]   ;;  %v1523_v10 = vld [vmem:[%s1908_s14 + $0x124] ss:$8 sps:$4 sm:$0xff]   ;;  %v1526_v12 = vld [vmem:[%s1908_s14 + $0x120] ss:$8 sps:$4 sm:$0xff]  }
  0x54   : > { %1056 = vmatprep.subr.bf16.mxu1 %v1517_v6  ;;  %v1527_v13 = vld [vmem:[%s1908_s14 + $0x34] ss:$8 sps:$4 sm:$0xff]   ;;  %v1531_v15 = vld [vmem:[%s1908_s14 + $0x30] ss:$8 sps:$4 sm:$0xff]   ;;  %v1533_v17 = vld [vmem:[%s1908_s14 + $0x44] ss:$8 sps:$4 sm:$0xff]  }
  0x55   : > { %v1529_v14 = vld [vmem:[%s1908_s14 + $0x134] ss:$8 sps:$4 sm:$0xff]   ;;  %v1532_v16 = vld [vmem:[%s1908_s14 + $0x130] ss:$8 sps:$4 sm:$0xff]   ;;  %v1535_v18 = vld [vmem:[%s1908_s14 + $0x144] ss:$8 sps:$4 sm:$0xff]  }
  0x56   : > { %1016 = vmatpush1.bf16.msra.mxu0 %v1519_v7  ;;  %v1537_v19 = vld [vmem:[%s1908_s14 + $0x40] ss:$8 sps:$4 sm:$0xff]   ;;  %v1539_v21 = vld [vmem:[%s1908_s14 + $0x54] ss:$8 sps:$4 sm:$0xff]   ;;  %v1543_v23 = vld [vmem:[%s1908_s14 + $0x50] ss:$8 sps:$4 sm:$0xff]  }
  0x57   : > { %1057 = vmatpush1.bf16.msra.mxu1 %v1520_v8  ;;  %1017 = vmatprep.subr.bf16.mxu0 %v1521_v9  ;;  %v1538_v20 = vld [vmem:[%s1908_s14 + $0x140] ss:$8 sps:$4 sm:$0xff]   ;;  %v1541_v22 = vld [vmem:[%s1908_s14 + $0x154] ss:$8 sps:$4 sm:$0xff]   ;;  %v1544_v24 = vld [vmem:[%s1908_s14 + $0x150] ss:$8 sps:$4 sm:$0xff]  }
  0x58   : > { %1058 = vmatprep.subr.bf16.mxu1 %v1523_v10  ;;  %v1545_v25 = vld [vmem:[%s1908_s14 + $0x64] ss:$8 sps:$4 sm:$0xff]   ;;  %v1549_v27 = vld [vmem:[%s1908_s14 + $0x60] ss:$8 sps:$4 sm:$0xff]   ;;  %v1551_v29 = vld [vmem:[%s1908_s14 + $0x74] ss:$8 sps:$4 sm:$0xff]  }
  0x59   : > { %v1547_v26 = vld [vmem:[%s1908_s14 + $0x164] ss:$8 sps:$4 sm:$0xff]   ;;  %v1550_v28 = vld [vmem:[%s1908_s14 + $0x160] ss:$8 sps:$4 sm:$0xff]   ;;  %v1553_v30 = vld [vmem:[%s1908_s14 + $0x174] ss:$8 sps:$4 sm:$0xff]  }
  0x5a   : > { %1018 = vmatpush1.bf16.msra.mxu0 %v1525_v11  ;;  %v1555_v31 = vld [vmem:[%s1908_s14 + $0x70] ss:$8 sps:$4 sm:$0xff]   ;;  %v1557_v33 = vld [vmem:[%s1908_s14 + $0x84] ss:$8 sps:$4 sm:$0xff]   ;;  %v1561_v35 = vld [vmem:[%s1908_s14 + $0x80] ss:$8 sps:$4 sm:$0xff]  }
  0x5b   : > { %1059 = vmatpush1.bf16.msra.mxu1 %v1526_v12  ;;  %1019 = vmatprep.subr.bf16.mxu0 %v1527_v13  ;;  %v1556_v32 = vld [vmem:[%s1908_s14 + $0x170] ss:$8 sps:$4 sm:$0xff]   ;;  %v1559_v34 = vld [vmem:[%s1908_s14 + $0x184] ss:$8 sps:$4 sm:$0xff]   ;;  %v1562_v36 = vld [vmem:[%s1908_s14 + $0x180] ss:$8 sps:$4 sm:$0xff]  }
  0x5c   : > { %1060 = vmatprep.subr.bf16.mxu1 %v1529_v14  ;;  %v1563_v37 = vld [vmem:[%s1908_s14 + $0x94] ss:$8 sps:$4 sm:$0xff]   ;;  %v1567_v39 = vld [vmem:[%s1908_s14 + $0x90] ss:$8 sps:$4 sm:$0xff]   ;;  %v1569_v41 = vld [vmem:[%s1908_s14 + $0xa4] ss:$8 sps:$4 sm:$0xff]  }
  0x5d   : > { %v1565_v38 = vld [vmem:[%s1908_s14 + $0x194] ss:$8 sps:$4 sm:$0xff]   ;;  %v1568_v40 = vld [vmem:[%s1908_s14 + $0x190] ss:$8 sps:$4 sm:$0xff]   ;;  %v1571_v42 = vld [vmem:[%s1908_s14 + $0x1a4] ss:$8 sps:$4 sm:$0xff]  }
  0x5e   : > { %1020 = vmatpush1.bf16.msra.mxu0 %v1531_v15  ;;  %v1573_v43 = vld [vmem:[%s1908_s14 + $0xa0] ss:$8 sps:$4 sm:$0xff]   ;;  %v1575_v45 = vld [vmem:[%s1908_s14 + $0xb4] ss:$8 sps:$4 sm:$0xff]   ;;  %v1579_v50 = vld [vmem:[%s1908_s14 + $0xb0] ss:$8 sps:$4 sm:$0xff]  }
  0x5f   : > { %1061 = vmatpush1.bf16.msra.mxu1 %v1532_v16  ;;  %1021 = vmatprep.subr.bf16.mxu0 %v1533_v17  ;;  %v1574_v44 = vld [vmem:[%s1908_s14 + $0x1a0] ss:$8 sps:$4 sm:$0xff]   ;;  %v1577_v46 = vld [vmem:[%s1908_s14 + $0x1b4] ss:$8 sps:$4 sm:$0xff]   ;;  %v1580_v51 = vld [vmem:[%s1908_s14 + $0x1b0] ss:$8 sps:$4 sm:$0xff]  }
  0x60   : > { %1062 = vmatprep.subr.bf16.mxu1 %v1535_v18  ;;  %v613_v47 = vld [vmem:[%s1891_s30] sm:$0xff]  ;;  %v614_v49 = vld [vmem:[%s1891_s30 + $0x8] sm:$0xff]  ;;  %v1581_v53 = vld [vmem:[%s1908_s14 + $0xc4] ss:$8 sps:$4 sm:$0xff]   ;;  %p1446_p13 = scmp.ne.s32.totalorder %s1647_s17, 8 }
  0x61   : > { %v1379_v48 = vcombine.high %v613_v47, %v613_v47  ;;  %v1381_v52 = vcombine.high %v614_v49, %v614_v49  ;;  %v1583_v54 = vld [vmem:[%s1908_s14 + $0x1c4] ss:$8 sps:$4 sm:$0xff]   ;;  %v1585_v55 = vld [vmem:[%s1908_s14 + $0xc0] ss:$8 sps:$4 sm:$0xff]   ;;  %v1587_v57 = vld [vmem:[%s1908_s14 + $0xd4] ss:$8 sps:$4 sm:$0xff]   ;;  %v1378_v5 = vcombine.low %v613_v47, %v613_v47  ;;  %v1380_v6 = vcombine.low %v614_v49, %v614_v49 }
  0x62   : > { %1022 = vmatpush1.bf16.msra.mxu0 %v1537_v19  ;;  %v1586_v56 = vld [vmem:[%s1908_s14 + $0x1c0] ss:$8 sps:$4 sm:$0xff]   ;;  %v1589_v58 = vld [vmem:[%s1908_s14 + $0x1d4] ss:$8 sps:$4 sm:$0xff]   ;;  %v1591_v59 = vld [vmem:[%s1908_s14 + $0xd0] ss:$8 sps:$4 sm:$0xff]  }
  0x63   : > { %1063 = vmatpush1.bf16.msra.mxu1 %v1538_v20  ;;  %1023 = vmatprep.subr.bf16.mxu0 %v1539_v21  ;;  %v1592_v60 = vld [vmem:[%s1908_s14 + $0x1d0] ss:$8 sps:$4 sm:$0xff]   ;;  %v1593_v61 = vld [vmem:[%s1908_s14 + $0xe4] ss:$8 sps:$4 sm:$0xff]   ;;  %v1597_v63 = vld [vmem:[%s1908_s14 + $0xe0] ss:$8 sps:$4 sm:$0xff]  }
  0x64   : > { %1064 = vmatprep.subr.bf16.mxu1 %v1541_v22  ;;  %1045 = vmatprep.mubr.bf16.mxu0 %v1379_v48  ;;  %v1595_v62 = vld [vmem:[%s1908_s14 + $0x1e4] ss:$8 sps:$4 sm:$0xff]   ;;  %v1598_v0 = vld [vmem:[%s1908_s14 + $0x1e0] ss:$8 sps:$4 sm:$0xff]   ;;  %v1599_v1 = vld [vmem:[%s1908_s14 + $0xf4] ss:$8 sps:$4 sm:$0xff]  }
  0x65   : > { %1086 = vmatprep.mubr.bf16.mxu1 %v1381_v52  ;;  %v1601_v2 = vld [vmem:[%s1908_s14 + $0x1f4] ss:$8 sps:$4 sm:$0xff]   ;;  %v1603_v3 = vld [vmem:[%s1908_s14 + $0xf0] ss:$8 sps:$4 sm:$0xff]  }
  0x66   : > { %1024 = vmatpush1.bf16.msra.mxu0 %v1543_v23  ;;  %v1604_v4 = vld [vmem:[%s1908_s14 + $0x1f0] ss:$8 sps:$4 sm:$0xff]  }
  0x67   : > { %1065 = vmatpush1.bf16.msra.mxu1 %v1544_v24  ;;  %1025 = vmatprep.subr.bf16.mxu0 %v1545_v25  ;;  %v611_v8 = vld [vmem:[#allocation2] sm:$0xff]  ;;  %v612_v12 = vld [vmem:[#allocation2 + $0x8] sm:$0xff] }
  0x68   : > { %1066 = vmatprep.subr.bf16.mxu1 %v1547_v26 }
  0x6a   : > { %1026 = vmatpush1.bf16.msra.mxu0 %v1549_v27 }
  0x6b   : > { %1067 = vmatpush1.bf16.msra.mxu1 %v1550_v28  ;;  %1027 = vmatprep.subr.bf16.mxu0 %v1551_v29 }
  0x6c   : > { %1068 = vmatprep.subr.bf16.mxu1 %v1553_v30 }
  0x6e   : > { %1028 = vmatpush1.bf16.msra.mxu0 %v1555_v31 }
  0x6f   : > { %1069 = vmatpush1.bf16.msra.mxu1 %v1556_v32  ;;  %1029 = vmatprep.subr.bf16.mxu0 %v1557_v33 }
  0x70   : > { %1070 = vmatprep.subr.bf16.mxu1 %v1559_v34 }
  0x72   : > { %1030 = vmatpush1.bf16.msra.mxu0 %v1561_v35 }
  0x73   : > { %1071 = vmatpush1.bf16.msra.mxu1 %v1562_v36  ;;  %1031 = vmatprep.subr.bf16.mxu0 %v1563_v37 }
  0x74   : > { %1072 = vmatprep.subr.bf16.mxu1 %v1565_v38 }
  0x76   : > { %1032 = vmatpush1.bf16.msra.mxu0 %v1567_v39 }
  0x77   : > { %1073 = vmatpush1.bf16.msra.mxu1 %v1568_v40  ;;  %1033 = vmatprep.subr.bf16.mxu0 %v1569_v41 }
  0x78   : > { %1074 = vmatprep.subr.bf16.mxu1 %v1571_v42 }
  0x7a   : > { %1034 = vmatpush1.bf16.msra.mxu0 %v1573_v43 }
  0x7b   : > { %1075 = vmatpush1.bf16.msra.mxu1 %v1574_v44  ;;  %1035 = vmatprep.subr.bf16.mxu0 %v1575_v45 }
  0x7c   : > { %1076 = vmatprep.subr.bf16.mxu1 %v1577_v46 }
  0x7e   : > { %1036 = vmatpush1.bf16.msra.mxu0 %v1579_v50 }
  0x7f   : > { %1077 = vmatpush1.bf16.msra.mxu1 %v1580_v51  ;;  %1037 = vmatprep.subr.bf16.mxu0 %v1581_v53 }
  0x80   : > { %1078 = vmatprep.subr.bf16.mxu1 %v1583_v54 }
  0x82   : > { %1038 = vmatpush1.bf16.msra.mxu0 %v1585_v55 }
  0x83   : > { %1079 = vmatpush1.bf16.msra.mxu1 %v1586_v56  ;;  %1039 = vmatprep.subr.bf16.mxu0 %v1587_v57 }
  0x84   : > { %1080 = vmatprep.subr.bf16.mxu1 %v1589_v58 }
  0x86   : > { %1040 = vmatpush1.bf16.msra.mxu0 %v1591_v59 }
  0x87   : > { %1081 = vmatpush1.bf16.msra.mxu1 %v1592_v60  ;;  %1041 = vmatprep.subr.bf16.mxu0 %v1593_v61 }
  0x88   : > { %1082 = vmatprep.subr.bf16.mxu1 %v1595_v62 }
  0x8a   : > { %1042 = vmatpush1.bf16.msra.mxu0 %v1597_v63 }
  0x8b   : > { %1083 = vmatpush1.bf16.msra.mxu1 %v1598_v0  ;;  %1043 = vmatprep.subr.bf16.mxu0 %v1599_v1 }
  0x8c   : > { %1084 = vmatprep.subr.bf16.mxu1 %v1601_v2 }
  0x8e   : > { %1044 = vmatpush1.bf16.msra.mxu0 %v1603_v3 }
  0x8f   : > { %1085 = vmatpush1.bf16.msra.mxu1 %v1604_v4 }
  0x91   : > { %1046 = vmatmul.mubr.bf16.vlgmr.msra.gmra.mrb[0].mxu0 %v1378_v5 }
  0x92   : > { %1087 = vmatmul.mubr.bf16.vlgmr.msra.gmra.mrb[0].mxu1 %v1380_v6 }
 0x164   : > { %v1047_v7 = vpop.f32.mrb[0].mxu0 }
 0x165   : > { %v1088_v9 = vpop.f32.mrb[0].mxu1  ;;  %v1049_v11 = vpop.f32.mrb[1].mxu0  ;;  %1102 = sbr.rel (%p1446_p13) target bundleno = 386 (0x182), region = 74 }
 0x166   : > { %v1089_v10 = vadd.f32 %v1088_v9, %v1047_v7  ;;  %v1090_v13 = vpop.f32.mrb[1].mxu1  ;;  %v1051_v15 = vpop.f32.mrb[2].mxu0 }
 0x167   : > { %v1091_v14 = vadd.f32 %v1090_v13, %v1049_v11  ;;  %v1092_v16 = vpop.f32.mrb[2].mxu1  ;;  %v1052_v18 = vpop.f32.mrb[3].mxu0 }
 0x168   : > { %v1095_v17 = vadd.f32 %v1089_v10, %v611_v8  ;;  %v1093_v19 = vpop.f32.mrb[3].mxu1 }
 0x169   : > { %v1096_v20 = vadd.f32 %v1091_v14, %v612_v12 }
 0x16a   : > { %1097 = vst [vmem:[#allocation2] sm:$0xff] %v1095_v17 }
 0x16b   : > { %1098 = vst [vmem:[#allocation2 + $0x8] sm:$0xff] %v1096_v20 }
 0x171   : > { %v1103_v21 = vld [vmem:[#allocation2] sm:$0xff] }
 0x172   : > { %v1104_v22 = vld [vmem:[#allocation2 + $0x8] sm:$0xff]  ;;  %v1114_v23 = vrot.slane %v1103_v21, 4  ;;  %v1126_v24 = vmul.f32 %v1103_v21, %v1103_v21 }
 0x173   : > { %v1451_v25 = vpack.c.bf16 %v1104_v22, %v1103_v21  ;;  %v1120_v26 = vrot.slane %v1104_v22, 4  ;;  %v1127_v27 = vmul.f32 %v1104_v22, %v1104_v22 }
 0x174   : > { %v1115_v28 = vadd.f32 %v1114_v23, %v1103_v21  ;;  %v1128_v29 = vrot.slane %v1126_v24, 4 }
 0x175   : > { %1113 = vst [vmem:[%s1896_s9] sm:$0xff] %v1451_v25  ;;  %v1121_v30 = vadd.f32 %v1120_v26, %v1104_v22  ;;  %v1134_v31 = vrot.slane %v1127_v27, 4 }
 0x176   : > { %v1116_v32 = vrot.slane %v1115_v28, 2  ;;  %v1129_v33 = vadd.f32 %v1128_v29, %v1126_v24 }
 0x177   : > { %v1122_v34 = vrot.slane %v1121_v30, 2  ;;  %v1135_v35 = vadd.f32 %v1134_v31, %v1127_v27 }
 0x178   : > { %v1117_v36 = vadd.f32 %v1116_v32, %v1115_v28  ;;  %v1130_v37 = vrot.slane %v1129_v33, 2 }
 0x179   : > { %v1123_v38 = vadd.f32 %v1122_v34, %v1121_v30  ;;  %v1136_v39 = vrot.slane %v1135_v35, 2 }
 0x17a   : > { %v1118_v40 = vrot.slane %v1117_v36, 1  ;;  %v1131_v41 = vadd.f32 %v1130_v37, %v1129_v33 }
 0x17b   : > { %v1124_v42 = vrot.slane %v1123_v38, 1  ;;  %v1137_v43 = vadd.f32 %v1136_v39, %v1135_v35 }
 0x17c   : > { %v1119_v44 = vadd.f32 %v1118_v40, %v1117_v36  ;;  %v1132_v45 = vrot.slane %v1131_v41, 1 }
 0x17d   : > { %v1125_v46 = vadd.f32 %v1124_v42, %v1123_v38  ;;  %v1138_v47 = vrot.slane %v1137_v43, 1 }
 0x17e   : > { %1140 = vst [vmem:[%s1901_s18] sm:$0xff] %v1119_v44  ;;  %v1133_v48 = vadd.f32 %v1132_v45, %v1131_v41 }
 0x17f   : > { %1141 = vst [vmem:[%s1901_s18 + $0x8] sm:$0xff] %v1125_v46  ;;  %v1139_v49 = vadd.f32 %v1138_v47, %v1137_v43 }
 0x180   : > { %1142 = vst [vmem:[%s1906_s13] sm:$0xff] %v1133_v48 }
 0x181   : > { %1143 = vst [vmem:[%s1906_s13 + $0x8] sm:$0xff] %v1139_v49 }
 0x182 PF: > { %s15_s21 = sadd.s32 1, %s1663_s21   ;;  %s2009_s15 = smov %s1643_s16 }
 0x183   : > { %p12_p0 = scmp.ge.s32.totalorder %s15_s21, 20   ;;  %s2010_s16 = smov %s1742_s28 }
 0x184   : > { %s2011_s17 = smov %s1655_s19  ;;  %s2012_s18 = smov %s1659_s20 }
 0x185   : > { %s2013_s19 = smov %s2016_s22  ;;  %s2014_s20 = smov %s2020_s23 }
 0x186   :  { %14 = sbr.rel (!%p12_p0) target bundleno = 4 (0x4), region = 136 }

// kernel: feature_extractor_forward.75
= control target key start
LH: loop header
LB: loop body
LE: loop exit
PB: predicated region body
PF: predicated region fallthrough
CT: control target
= control target key end

     0   :  { %v22_v0 = vlaneseq  ;;  %s136_s0 = inlined_call_operand.vmem [shape: bf16[8,512], index: 0, kind: input, shape index: {}]   ;;  %s137_s1 = inlined_call_operand.vmem [shape: f32[1,512], index: 1, kind: input, shape index: {}]   ;;  %s138_s2 = inlined_call_operand.vmem [shape: f32[1,512], index: 2, kind: input, shape index: {}]   ;;  %s139_s3 = inlined_call_operand.vmem [shape: bf16[8,512], index: 3, kind: output, shape index: {}]  }
   0x1   :  { %v14_v1 = vld [vmem:[%s136_s0] sm:$0xff]  ;;  %v15_v3 = vld [vmem:[%s136_s0 + $0x8] sm:$0xff] }
   0x2   :  { %v23_v2 = vshrl.u32 %v22_v0, 7  ;;  %v16_v4 = vunpack.c.l.bf16 %v14_v1  ;;  %v17_v5 = vunpack.c.h.bf16 %v14_v1  ;;  %v20_v6 = vld [vmem:[%s137_s1] sm:$0xf]  ;;  %v18_v12 = vunpack.c.l.bf16 %v15_v3 }
   0x3   :  { %v46_v7 = vld [vmem:[%s138_s2] sm:$0xf]  ;;  %v19_v13 = vunpack.c.h.bf16 %v15_v3 }
   0x4   :  { %v24_v8 = vsub.s32 0, %v23_v2  ;;  %v28_v9 = vsub.s32 1, %v23_v2  ;;  %v32_v10 = vsub.s32 2, %v23_v2  ;;  %v36_v11 = vsub.s32 3, %v23_v2 }
   0x6   :  { %v25_v14 = vrot.slane %v20_v6, %v24_v8  ;;  %v29_v15 = vrot.slane %v20_v6, %v28_v9  ;;  %v51_v16 = vrot.slane %v46_v7, %v24_v8  ;;  %v55_v17 = vrot.slane %v46_v7, %v28_v9 }
   0x7   :  { %v33_v18 = vrot.slane %v20_v6, %v32_v10  ;;  %v37_v19 = vrot.slane %v20_v6, %v36_v11  ;;  %v59_v20 = vrot.slane %v46_v7, %v32_v10  ;;  %v63_v21 = vrot.slane %v46_v7, %v36_v11 }
   0x8   :  { %v42_v22 = vmul.f32 %v25_v14, %v16_v4  ;;  %v43_v23 = vmul.f32 %v29_v15, %v17_v5 }
   0x9   :  { %v44_v24 = vmul.f32 %v33_v18, %v18_v12  ;;  %v45_v25 = vmul.f32 %v37_v19, %v19_v13 }
   0xa   :  { %v68_v26 = vadd.f32 %v51_v16, %v42_v22  ;;  %v69_v27 = vadd.f32 %v55_v17, %v43_v23 }
   0xb   :  { %v70_v28 = vadd.f32 %v59_v20, %v44_v24  ;;  %v71_v29 = vadd.f32 %v63_v21, %v45_v25 }
   0xc   :  { %v96_v30 = vpack.c.bf16 %v69_v27, %v68_v26 }
   0xd   :  { %v97_v31 = vpack.c.bf16 %v71_v29, %v70_v28 }
   0xe   :  { %88 = vst [vmem:[%s139_s3] sm:$0xff] %v96_v30 }
   0xf   :  { %89 = vst [vmem:[%s139_s3 + $0x8] sm:$0xff] %v97_v31 }

// kernel: feature_extractor_forward.81
= control target key start
LH: loop header
LB: loop body
LE: loop exit
PB: predicated region body
PF: predicated region fallthrough
CT: control target
= control target key end

     0   :  { %s930_s1 = inlined_call_operand.vmem [shape: bf16[512,256], index: 1, kind: input, shape index: {}]   ;;  %s931_s0 = inlined_call_operand.vmem [shape: bf16[8,512], index: 0, kind: input, shape index: {}]   ;;  %s932_s2 = inlined_call_operand.vmem [shape: f32[1,256], index: 2, kind: input, shape index: {}]   ;;  %s933_s3 = inlined_call_operand.vmem [shape: f32[8,256], index: 3, kind: output, shape index: {}]  }
   0x1   :  { %v603_v0 = vld [vmem:[%s930_s1 + $0x4] ss:$8 sps:$4 sm:$0xff]   ;;  %v607_v2 = vld [vmem:[%s930_s1] ss:$8 sps:$4 sm:$0xff]   ;;  %v609_v4 = vld [vmem:[%s930_s1 + $0x14] ss:$8 sps:$4 sm:$0xff]  }
   0x2   :  { %v605_v1 = vld [vmem:[%s930_s1 + $0x104] ss:$8 sps:$4 sm:$0xff]   ;;  %422 = vmatprep.subr.bf16.mxu0 %v603_v0  ;;  %v608_v3 = vld [vmem:[%s930_s1 + $0x100] ss:$8 sps:$4 sm:$0xff]   ;;  %v611_v5 = vld [vmem:[%s930_s1 + $0x114] ss:$8 sps:$4 sm:$0xff]  }
   0x3   :  { %463 = vmatprep.subr.bf16.mxu1 %v605_v1  ;;  %423 = vmatpush1.bf16.msra.mxu0 %v607_v2  ;;  %v613_v6 = vld [vmem:[%s930_s1 + $0x10] ss:$8 sps:$4 sm:$0xff]   ;;  %v615_v8 = vld [vmem:[%s930_s1 + $0x24] ss:$8 sps:$4 sm:$0xff]   ;;  %v619_v10 = vld [vmem:[%s930_s1 + $0x20] ss:$8 sps:$4 sm:$0xff]  }
   0x4   :  { %464 = vmatpush1.bf16.msra.mxu1 %v608_v3  ;;  %424 = vmatprep.subr.bf16.mxu0 %v609_v4  ;;  %v614_v7 = vld [vmem:[%s930_s1 + $0x110] ss:$8 sps:$4 sm:$0xff]   ;;  %v617_v9 = vld [vmem:[%s930_s1 + $0x124] ss:$8 sps:$4 sm:$0xff]   ;;  %v620_v11 = vld [vmem:[%s930_s1 + $0x120] ss:$8 sps:$4 sm:$0xff]  }
   0x5   :  { %465 = vmatprep.subr.bf16.mxu1 %v611_v5  ;;  %v621_v12 = vld [vmem:[%s930_s1 + $0x34] ss:$8 sps:$4 sm:$0xff]   ;;  %v625_v14 = vld [vmem:[%s930_s1 + $0x30] ss:$8 sps:$4 sm:$0xff]   ;;  %v627_v16 = vld [vmem:[%s930_s1 + $0x44] ss:$8 sps:$4 sm:$0xff]  }
   0x6   :  { %v623_v13 = vld [vmem:[%s930_s1 + $0x134] ss:$8 sps:$4 sm:$0xff]   ;;  %v626_v15 = vld [vmem:[%s930_s1 + $0x130] ss:$8 sps:$4 sm:$0xff]   ;;  %v629_v17 = vld [vmem:[%s930_s1 + $0x144] ss:$8 sps:$4 sm:$0xff]  }
   0x7   :  { %425 = vmatpush1.bf16.msra.mxu0 %v613_v6  ;;  %v631_v18 = vld [vmem:[%s930_s1 + $0x40] ss:$8 sps:$4 sm:$0xff]   ;;  %v633_v20 = vld [vmem:[%s930_s1 + $0x54] ss:$8 sps:$4 sm:$0xff]   ;;  %v637_v22 = vld [vmem:[%s930_s1 + $0x50] ss:$8 sps:$4 sm:$0xff]   ;;  %v515_v6 = vlaneseq }
   0x8   :  { %466 = vmatpush1.bf16.msra.mxu1 %v614_v7  ;;  %426 = vmatprep.subr.bf16.mxu0 %v615_v8  ;;  %v632_v19 = vld [vmem:[%s930_s1 + $0x140] ss:$8 sps:$4 sm:$0xff]   ;;  %v635_v21 = vld [vmem:[%s930_s1 + $0x154] ss:$8 sps:$4 sm:$0xff]   ;;  %v638_v23 = vld [vmem:[%s930_s1 + $0x150] ss:$8 sps:$4 sm:$0xff]  }
   0x9   :  { %467 = vmatprep.subr.bf16.mxu1 %v617_v9  ;;  %v639_v24 = vld [vmem:[%s930_s1 + $0x64] ss:$8 sps:$4 sm:$0xff]   ;;  %v643_v26 = vld [vmem:[%s930_s1 + $0x60] ss:$8 sps:$4 sm:$0xff]   ;;  %v645_v28 = vld [vmem:[%s930_s1 + $0x74] ss:$8 sps:$4 sm:$0xff]  }
   0xa   :  { %v641_v25 = vld [vmem:[%s930_s1 + $0x164] ss:$8 sps:$4 sm:$0xff]   ;;  %v644_v27 = vld [vmem:[%s930_s1 + $0x160] ss:$8 sps:$4 sm:$0xff]   ;;  %v647_v29 = vld [vmem:[%s930_s1 + $0x174] ss:$8 sps:$4 sm:$0xff]  }
   0xb   :  { %427 = vmatpush1.bf16.msra.mxu0 %v619_v10  ;;  %v649_v30 = vld [vmem:[%s930_s1 + $0x70] ss:$8 sps:$4 sm:$0xff]   ;;  %v651_v32 = vld [vmem:[%s930_s1 + $0x84] ss:$8 sps:$4 sm:$0xff]   ;;  %v655_v34 = vld [vmem:[%s930_s1 + $0x80] ss:$8 sps:$4 sm:$0xff]  }
   0xc   :  { %468 = vmatpush1.bf16.msra.mxu1 %v620_v11  ;;  %428 = vmatprep.subr.bf16.mxu0 %v621_v12  ;;  %v650_v31 = vld [vmem:[%s930_s1 + $0x170] ss:$8 sps:$4 sm:$0xff]   ;;  %v653_v33 = vld [vmem:[%s930_s1 + $0x184] ss:$8 sps:$4 sm:$0xff]   ;;  %v656_v35 = vld [vmem:[%s930_s1 + $0x180] ss:$8 sps:$4 sm:$0xff]  }
   0xd   :  { %469 = vmatprep.subr.bf16.mxu1 %v623_v13  ;;  %v657_v36 = vld [vmem:[%s930_s1 + $0x94] ss:$8 sps:$4 sm:$0xff]   ;;  %v661_v38 = vld [vmem:[%s930_s1 + $0x90] ss:$8 sps:$4 sm:$0xff]   ;;  %v663_v40 = vld [vmem:[%s930_s1 + $0xa4] ss:$8 sps:$4 sm:$0xff]  }
   0xe   :  { %v659_v37 = vld [vmem:[%s930_s1 + $0x194] ss:$8 sps:$4 sm:$0xff]   ;;  %v662_v39 = vld [vmem:[%s930_s1 + $0x190] ss:$8 sps:$4 sm:$0xff]   ;;  %v665_v41 = vld [vmem:[%s930_s1 + $0x1a4] ss:$8 sps:$4 sm:$0xff]  }
   0xf   :  { %429 = vmatpush1.bf16.msra.mxu0 %v625_v14  ;;  %v667_v42 = vld [vmem:[%s930_s1 + $0xa0] ss:$8 sps:$4 sm:$0xff]   ;;  %v669_v44 = vld [vmem:[%s930_s1 + $0xb4] ss:$8 sps:$4 sm:$0xff]   ;;  %v673_v49 = vld [vmem:[%s930_s1 + $0xb0] ss:$8 sps:$4 sm:$0xff]  }
  0x10   :  { %470 = vmatpush1.bf16.msra.mxu1 %v626_v15  ;;  %430 = vmatprep.subr.bf16.mxu0 %v627_v16  ;;  %v668_v43 = vld [vmem:[%s930_s1 + $0x1a0] ss:$8 sps:$4 sm:$0xff]   ;;  %v671_v45 = vld [vmem:[%s930_s1 + $0x1b4] ss:$8 sps:$4 sm:$0xff]   ;;  %v674_v50 = vld [vmem:[%s930_s1 + $0x1b0] ss:$8 sps:$4 sm:$0xff]  }
  0x11   :  { %471 = vmatprep.subr.bf16.mxu1 %v629_v17  ;;  %v22_v46 = vld [vmem:[%s931_s0] sm:$0xff]  ;;  %v23_v48 = vld [vmem:[%s931_s0 + $0x8] sm:$0xff]  ;;  %v681_v56 = vld [vmem:[%s930_s1 + $0xd4] ss:$8 sps:$4 sm:$0xff]   ;;  %v516_v7 = vshrl.u32 %v515_v6, 7 }
  0x12   :  { %v536_v47 = vcombine.high %v22_v46, %v22_v46  ;;  %v538_v51 = vcombine.high %v23_v48, %v23_v48  ;;  %v675_v52 = vld [vmem:[%s930_s1 + $0xc4] ss:$8 sps:$4 sm:$0xff]   ;;  %v679_v54 = vld [vmem:[%s930_s1 + $0xc0] ss:$8 sps:$4 sm:$0xff]   ;;  %v683_v57 = vld [vmem:[%s930_s1 + $0x1d4] ss:$8 sps:$4 sm:$0xff]   ;;  %v535_v4 = vcombine.low %v22_v46, %v22_v46  ;;  %v537_v5 = vcombine.low %v23_v48, %v23_v48 }
  0x13   :  { %431 = vmatpush1.bf16.msra.mxu0 %v631_v18  ;;  %v677_v53 = vld [vmem:[%s930_s1 + $0x1c4] ss:$8 sps:$4 sm:$0xff]   ;;  %v680_v55 = vld [vmem:[%s930_s1 + $0x1c0] ss:$8 sps:$4 sm:$0xff]   ;;  %v685_v58 = vld [vmem:[%s930_s1 + $0xd0] ss:$8 sps:$4 sm:$0xff]  }
  0x14   :  { %472 = vmatpush1.bf16.msra.mxu1 %v632_v19  ;;  %432 = vmatprep.subr.bf16.mxu0 %v633_v20  ;;  %v686_v59 = vld [vmem:[%s930_s1 + $0x1d0] ss:$8 sps:$4 sm:$0xff]   ;;  %v687_v60 = vld [vmem:[%s930_s1 + $0xe4] ss:$8 sps:$4 sm:$0xff]   ;;  %v691_v62 = vld [vmem:[%s930_s1 + $0xe0] ss:$8 sps:$4 sm:$0xff]  }
  0x15   :  { %473 = vmatprep.subr.bf16.mxu1 %v635_v21  ;;  %454 = vmatprep.mubr.bf16.mxu0 %v536_v47  ;;  %v689_v61 = vld [vmem:[%s930_s1 + $0x1e4] ss:$8 sps:$4 sm:$0xff]   ;;  %v692_v63 = vld [vmem:[%s930_s1 + $0x1e0] ss:$8 sps:$4 sm:$0xff]   ;;  %v693_v0 = vld [vmem:[%s930_s1 + $0xf4] ss:$8 sps:$4 sm:$0xff]  }
  0x16   :  { %495 = vmatprep.mubr.bf16.mxu1 %v538_v51  ;;  %v695_v1 = vld [vmem:[%s930_s1 + $0x1f4] ss:$8 sps:$4 sm:$0xff]   ;;  %v697_v2 = vld [vmem:[%s930_s1 + $0xf0] ss:$8 sps:$4 sm:$0xff]   ;;  %v517_v8 = vsub.s32 0, %v516_v7  ;;  %v521_v10 = vsub.s32 1, %v516_v7 }
  0x17   :  { %433 = vmatpush1.bf16.msra.mxu0 %v637_v22  ;;  %v698_v3 = vld [vmem:[%s930_s1 + $0x1f0] ss:$8 sps:$4 sm:$0xff]   ;;  %v513_v9 = vld [vmem:[%s932_s2] sm:$0x3] }
  0x18   :  { %474 = vmatpush1.bf16.msra.mxu1 %v638_v23  ;;  %434 = vmatprep.subr.bf16.mxu0 %v639_v24  ;;  %v518_v11 = vrot.slane %v513_v9, %v517_v8  ;;  %v522_v14 = vrot.slane %v513_v9, %v521_v10 }
  0x19   :  { %475 = vmatprep.subr.bf16.mxu1 %v641_v25 }
  0x1b   :  { %435 = vmatpush1.bf16.msra.mxu0 %v643_v26 }
  0x1c   :  { %476 = vmatpush1.bf16.msra.mxu1 %v644_v27  ;;  %436 = vmatprep.subr.bf16.mxu0 %v645_v28 }
  0x1d   :  { %477 = vmatprep.subr.bf16.mxu1 %v647_v29 }
  0x1f   :  { %437 = vmatpush1.bf16.msra.mxu0 %v649_v30 }
  0x20   :  { %478 = vmatpush1.bf16.msra.mxu1 %v650_v31  ;;  %438 = vmatprep.subr.bf16.mxu0 %v651_v32 }
  0x21   :  { %479 = vmatprep.subr.bf16.mxu1 %v653_v33 }
  0x23   :  { %439 = vmatpush1.bf16.msra.mxu0 %v655_v34 }
  0x24   :  { %480 = vmatpush1.bf16.msra.mxu1 %v656_v35  ;;  %440 = vmatprep.subr.bf16.mxu0 %v657_v36 }
  0x25   :  { %481 = vmatprep.subr.bf16.mxu1 %v659_v37 }
  0x27   :  { %441 = vmatpush1.bf16.msra.mxu0 %v661_v38 }
  0x28   :  { %482 = vmatpush1.bf16.msra.mxu1 %v662_v39  ;;  %442 = vmatprep.subr.bf16.mxu0 %v663_v40 }
  0x29   :  { %483 = vmatprep.subr.bf16.mxu1 %v665_v41 }
  0x2b   :  { %443 = vmatpush1.bf16.msra.mxu0 %v667_v42 }
  0x2c   :  { %484 = vmatpush1.bf16.msra.mxu1 %v668_v43  ;;  %444 = vmatprep.subr.bf16.mxu0 %v669_v44 }
  0x2d   :  { %485 = vmatprep.subr.bf16.mxu1 %v671_v45 }
  0x2f   :  { %445 = vmatpush1.bf16.msra.mxu0 %v673_v49 }
  0x30   :  { %486 = vmatpush1.bf16.msra.mxu1 %v674_v50  ;;  %446 = vmatprep.subr.bf16.mxu0 %v675_v52 }
  0x31   :  { %487 = vmatprep.subr.bf16.mxu1 %v677_v53 }
  0x33   :  { %447 = vmatpush1.bf16.msra.mxu0 %v679_v54 }
  0x34   :  { %488 = vmatpush1.bf16.msra.mxu1 %v680_v55  ;;  %448 = vmatprep.subr.bf16.mxu0 %v681_v56 }
  0x35   :  { %489 = vmatprep.subr.bf16.mxu1 %v683_v57 }
  0x37   :  { %449 = vmatpush1.bf16.msra.mxu0 %v685_v58 }
  0x38   :  { %490 = vmatpush1.bf16.msra.mxu1 %v686_v59  ;;  %450 = vmatprep.subr.bf16.mxu0 %v687_v60 }
  0x39   :  { %491 = vmatprep.subr.bf16.mxu1 %v689_v61 }
  0x3b   :  { %451 = vmatpush1.bf16.msra.mxu0 %v691_v62 }
  0x3c   :  { %492 = vmatpush1.bf16.msra.mxu1 %v692_v63  ;;  %452 = vmatprep.subr.bf16.mxu0 %v693_v0 }
  0x3d   :  { %493 = vmatprep.subr.bf16.mxu1 %v695_v1 }
  0x3f   :  { %453 = vmatpush1.bf16.msra.mxu0 %v697_v2 }
  0x40   :  { %494 = vmatpush1.bf16.msra.mxu1 %v698_v3 }
  0x42   :  { %455 = vmatmul.mubr.bf16.vlgmr.msra.gmra.mrb[0].mxu0 %v535_v4 }
  0x43   :  { %496 = vmatmul.mubr.bf16.vlgmr.msra.gmra.mrb[0].mxu1 %v537_v5 }
 0x115   :  { %v456_v12 = vpop.f32.mrb[0].mxu0 }
 0x116   :  { %v497_v13 = vpop.f32.mrb[0].mxu1  ;;  %v458_v16 = vpop.f32.mrb[1].mxu0 }
 0x117   :  { %v498_v15 = vadd.f32 %v497_v13, %v456_v12  ;;  %v499_v17 = vpop.f32.mrb[1].mxu1  ;;  %v460_v19 = vpop.f32.mrb[2].mxu0 }
 0x118   :  { %v500_v18 = vadd.f32 %v499_v17, %v458_v16  ;;  %v501_v20 = vpop.f32.mrb[2].mxu1  ;;  %v461_v22 = vpop.f32.mrb[3].mxu0 }
 0x119   :  { %v525_v21 = vadd.f32 %v518_v11, %v498_v15  ;;  %v502_v23 = vpop.f32.mrb[3].mxu1 }
 0x11a   :  { %v526_v24 = vadd.f32 %v522_v14, %v500_v18 }
 0x11b   :  { %v527_v25 = vmax.f32 %v525_v21, 0.0 }
 0x11c   :  { %v528_v26 = vmax.f32 %v526_v24, 0.0 }
 0x11d   :  { %529 = vst [vmem:[%s933_s3] sm:$0xff] %v527_v25 }
 0x11e   :  { %530 = vst [vmem:[%s933_s3 + $0x8] sm:$0xff] %v528_v26 }

// kernel: feature_extractor_forward.76
= control target key start
LH: loop header
LB: loop body
LE: loop exit
PB: predicated region body
PF: predicated region fallthrough
CT: control target
= control target key end

     0   :  { %v25_v0 = vlaneseq  ;;  %s164_s0 = inlined_call_operand.vmem [shape: bf16[8,512], index: 0, kind: input, shape index: {}]   ;;  %s165_s2 = inlined_call_operand.vmem [shape: f32[1,512], index: 2, kind: input, shape index: {}]   ;;  %s166_s3 = inlined_call_operand.vmem [shape: f32[1,512], index: 3, kind: input, shape index: {}]   ;;  %s167_s1 = inlined_call_operand.vmem [shape: bf16[8,512], index: 1, kind: input, shape index: {}]   ;;  %s168_s4 = inlined_call_operand.vmem [shape: bf16[8,512], index: 4, kind: output, shape index: {}]  }
   0x1   :  { %v17_v1 = vld [vmem:[%s164_s0] sm:$0xff]  ;;  %v18_v3 = vld [vmem:[%s164_s0 + $0x8] sm:$0xff] }
   0x2   :  { %v26_v2 = vshrl.u32 %v25_v0, 7  ;;  %v19_v4 = vunpack.c.l.bf16 %v17_v1  ;;  %v20_v5 = vunpack.c.h.bf16 %v17_v1  ;;  %v23_v6 = vld [vmem:[%s165_s2] sm:$0xf]  ;;  %v21_v13 = vunpack.c.l.bf16 %v18_v3  ;;  %v76_v19 = vld [vmem:[%s167_s1 + $0x8] sm:$0xff] }
   0x3   :  { %v49_v7 = vld [vmem:[%s166_s3] sm:$0xf]  ;;  %v22_v14 = vunpack.c.h.bf16 %v18_v3  ;;  %v79_v30 = vunpack.c.l.bf16 %v76_v19  ;;  %v80_v31 = vunpack.c.h.bf16 %v76_v19 }
   0x4   :  { %v27_v8 = vsub.s32 0, %v26_v2  ;;  %v31_v9 = vsub.s32 1, %v26_v2  ;;  %v35_v10 = vsub.s32 2, %v26_v2  ;;  %v39_v11 = vsub.s32 3, %v26_v2  ;;  %v75_v12 = vld [vmem:[%s167_s1] sm:$0xff] }
   0x5   :  { %v77_v26 = vunpack.c.l.bf16 %v75_v12  ;;  %v78_v27 = vunpack.c.h.bf16 %v75_v12 }
   0x6   :  { %v28_v15 = vrot.slane %v23_v6, %v27_v8  ;;  %v32_v16 = vrot.slane %v23_v6, %v31_v9  ;;  %v54_v17 = vrot.slane %v49_v7, %v27_v8  ;;  %v58_v18 = vrot.slane %v49_v7, %v31_v9 }
   0x7   :  { %v36_v20 = vrot.slane %v23_v6, %v35_v10  ;;  %v40_v21 = vrot.slane %v23_v6, %v39_v11  ;;  %v62_v22 = vrot.slane %v49_v7, %v35_v10  ;;  %v66_v23 = vrot.slane %v49_v7, %v39_v11 }
   0x8   :  { %v45_v24 = vmul.f32 %v28_v15, %v19_v4  ;;  %v46_v25 = vmul.f32 %v32_v16, %v20_v5 }
   0x9   :  { %v47_v28 = vmul.f32 %v36_v20, %v21_v13  ;;  %v48_v29 = vmul.f32 %v40_v21, %v22_v14 }
   0xa   :  { %v71_v32 = vadd.f32 %v54_v17, %v45_v24  ;;  %v72_v33 = vadd.f32 %v58_v18, %v46_v25 }
   0xb   :  { %v73_v34 = vadd.f32 %v62_v22, %v47_v28  ;;  %v74_v35 = vadd.f32 %v66_v23, %v48_v29 }
   0xc   :  { %v81_v36 = vadd.f32 %v77_v26, %v71_v32  ;;  %v82_v37 = vadd.f32 %v78_v27, %v72_v33 }
   0xd   :  { %v83_v38 = vadd.f32 %v79_v30, %v73_v34  ;;  %v84_v39 = vadd.f32 %v80_v31, %v74_v35 }
   0xe   :  { %v85_v40 = vmax.f32 %v81_v36, 0.0  ;;  %v86_v41 = vmax.f32 %v82_v37, 0.0 }
   0xf   :  { %v87_v42 = vmax.f32 %v83_v38, 0.0  ;;  %v88_v43 = vmax.f32 %v84_v39, 0.0 }
  0x10   :  { %v113_v44 = vpack.c.bf16 %v86_v41, %v85_v40 }
  0x11   :  { %v114_v45 = vpack.c.bf16 %v88_v43, %v87_v42 }
  0x12   :  { %105 = vst [vmem:[%s168_s4] sm:$0xff] %v113_v44 }
  0x13   :  { %106 = vst [vmem:[%s168_s4 + $0x8] sm:$0xff] %v114_v45 }

</bundles_post_ra>
